<compile_context>
chip_gen: v6e
topology: v6e:2x2x1
jax: 0.10.0
libtpu: 0.0.40
codegen_flags: <defaults>
</compile_context>

<pallas_src>
import functools

import jax
import jax.numpy as jnp
import numpy as np
from jax import lax
from jax.experimental import pallas as pl
from jax.experimental.pallas import tpu as pltpu

# Per-dot contraction precision (see header note on why HIGHEST, not HIGH).
_DOT_PREC = lax.Precision.HIGHEST


def _sigmoid(v):
    return 1.0 / (1.0 + jnp.exp(-v))


def _boundary_masks(H, W, batch_tile):
    """(8, batch_tile*H*W) f32 masks, one row per non-center 3x3 tap.

    Entry is 1.0 where the tap lands inside the *same* HxW image (zero padding
    otherwise).  Computed from the per-image position (col % HW) so lane-packed
    images never read across their seams when the slab is rolled.
    """
    HW = H * W
    local = np.arange(batch_tile * HW) % HW
    hh, ww = local // W, local % W
    rows = []
    for t in range(9):
        di, dj = t // 3 - 1, t % 3 - 1
        if di == 0 and dj == 0:
            continue
        rows.append(((hh + di >= 0) & (hh + di < H) &
                     (ww + dj >= 0) & (ww + dj < W)).astype(np.float32))
    return jnp.asarray(np.stack(rows, axis=0))


# ----------------------------------------------------------------------------
# Pallas kernel: `Bt` lane-packed images per grid step.
# ----------------------------------------------------------------------------
def rcsab_kernel(x_ref, m_ref, w1_ref, b1_ref, w2_ref, b2_ref,
                 ca1_ref, ca2_ref, sw1_ref, sw2_ref,
                 out_ref, res_ref, *, H, W, C, Bt, res_scale):
    HW = H * W
    LANES = Bt * HW
    x = x_ref[0]                      # (C, LANES)
    masks = m_ref[...]                # (8, LANES) f32

    taps = [(t // 3 - 1, t % 3 - 1) for t in range(9)]

    def shifted(a, t):
        """`a` sampled at 3x3 tap offset t; zero outside each HxW image."""
        di, dj = taps[t]
        if di == 0 and dj == 0:
            return a
        amt = (-(di * W + dj)) % LANES
        mi = t if t < 4 else t - 1    # mask row index (center tap excluded)
        return pltpu.roll(a, shift=amt, axis=1) * masks[mi:mi + 1, :]

    def conv3x3(a, w_ref):
        # Per-tap accumulation: 9 small MXU dots, peak VMEM ~1x activation
        # (no (9C, LANES) stacked slab / concatenate).
        acc = jnp.dot(w_ref[4], a, preferred_element_type=jnp.float32,
                      precision=_DOT_PREC)
        for t in (0, 1, 2, 3, 5, 6, 7, 8):
            acc = acc + jnp.dot(w_ref[t], shifted(a, t),
                                preferred_element_type=jnp.float32,
                                precision=_DOT_PREC)
        return acc

    # ---- body: conv3x3 + ReLU, conv3x3 -------------------------------------
    y1 = jnp.maximum(conv3x3(x, w1_ref) + b1_ref[...], 0.0)
    y2 = conv3x3(y1, w2_ref) + b2_ref[...]                      # (C, LANES)

    # ---- channel attention: per-image avg/max pools -> shared fc1/fc2 ------
    lane = lax.broadcasted_iota(jnp.int32, (C, 2 * Bt), 1)
    pools = jnp.zeros((C, 2 * Bt), jnp.float32)
    for b in range(Bt):
        y2b = y2[:, b * HW:(b + 1) * HW]
        pools = jnp.where(lane == 2 * b,
                          jnp.mean(y2b, axis=1, keepdims=True), pools)
        pools = jnp.where(lane == 2 * b + 1,
                          jnp.max(y2b, axis=1, keepdims=True), pools)
    hfc = jnp.maximum(jnp.dot(ca1_ref[...], pools,
                              preferred_element_type=jnp.float32,
                              precision=_DOT_PREC), 0.0)
    ofc = jnp.dot(ca2_ref[...], hfc, preferred_element_type=jnp.float32,
                  precision=_DOT_PREC)                           # (C, 2*Bt)

    # ---- spatial attention: two 3x3 convs as 9 scalar-FMA taps on the VPU --
    sa_mean = jnp.mean(y2, axis=0, keepdims=True)                # (1, LANES)
    sa_max = jnp.max(y2, axis=0, keepdims=True)                  # (1, LANES)
    s1 = jnp.zeros((1, LANES), jnp.float32)
    for t in range(9):
        s1 = s1 + shifted(sw1_ref[t] * sa_mean + sw1_ref[9 + t] * sa_max, t)
    r1 = jnp.maximum(s1, 0.0)
    s2 = jnp.zeros((1, LANES), jnp.float32)
    for t in range(9):
        s2 = s2 + shifted(sw2_ref[t] * r1, t)
    sp = _sigmoid(s2)                                            # (1, LANES)

    # ---- combine, residual scale, skip connection (per image) --------------
    for b in range(Bt):
        # sum the two channel-attention branch columns BEFORE the sigmoid
        ch_b = _sigmoid(ofc[:, 2 * b:2 * b + 1] + ofc[:, 2 * b + 1:2 * b + 2])
        res_b = y2[:, b * HW:(b + 1) * HW] * (ch_b + sp[:, b * HW:(b + 1) * HW])
        if res_scale != 1.0:
            res_b = res_b * res_scale
        res_ref[0, :, pl.ds(b * HW, HW)] = res_b
        out_ref[0, :, pl.ds(b * HW, HW)] = res_b + x[:, b * HW:(b + 1) * HW]


# ----------------------------------------------------------------------------
# Wrapper (layout packing / weight repacking)
# ----------------------------------------------------------------------------
def rcsab_pallas(x, params, res_scale=1.0, batch_tile=1):
    B, C, H, W = x.shape
    HW = H * W
    if B % batch_tile != 0:
        batch_tile = 1
    Bt = batch_tile
    G = B // Bt
    LANES = Bt * HW
    # NOTE: for best layout C should be a multiple of 8 (f32 sublane tile);
    # other values are still correct, just add relayout copies.

    W1, b1 = params["W1"], params["b1"]
    W2, b2 = params["W2"], params["b2"]
    caw1, caw2 = params["caw1"], params["caw2"]
    saw1, saw2 = params["saw1"], params["saw2"]
    inter = caw1.shape[0]

    # x: (B,C,H,W) -> (G, C, Bt*HW): Bt images side by side along lanes.
    x_flat = (x.astype(jnp.float32)
              .reshape(G, Bt, C, HW)
              .transpose(0, 2, 1, 3)
              .reshape(G, C, LANES))

    # body conv weights OIHW -> (9, O, I): w[t, o, i] = W[o, i, t//3, t%3]
    w1k = jnp.transpose(W1, (2, 3, 0, 1)).reshape(9, C, C).astype(jnp.float32)
    w2k = jnp.transpose(W2, (2, 3, 0, 1)).reshape(9, C, C).astype(jnp.float32)
    b1k = b1.reshape(C, 1).astype(jnp.float32)
    b2k = b2.reshape(C, 1).astype(jnp.float32)

    # spatial-attention conv weights as flat per-tap scalar tables (SMEM):
    # sw1[t] applies to the channel-mean row, sw1[9+t] to the channel-max row.
    sw1 = jnp.concatenate([saw1[0, 0].reshape(9),
                           saw1[0, 1].reshape(9)]).astype(jnp.float32)  # (18,)
    sw2 = saw2.reshape(9).astype(jnp.float32)                            # (9,)

    masks = _boundary_masks(H, W, Bt)                                    # (8, LANES)

    kernel = functools.partial(rcsab_kernel, H=H, W=W, C=C, Bt=Bt,
                               res_scale=float(res_scale))

    const2 = lambda g: (0, 0)
    const3 = lambda g: (0, 0, 0)
    batch3 = lambda g: (g, 0, 0)

    # Rough per-step VMEM need; only raise the scoped limit (16 MiB default on
    # v5e, 32 MiB on v6e/v7x) when the tiles actually get big.
    act = C * LANES * 4
    est = (2 + 4) * act                      # double-buffered x + two outputs
    est += 2 * 8 * LANES * 4                 # boundary masks
    est += 2 * 2 * 9 * C * C * 4             # conv weights (double-buffered)
    est += 6 * act                           # y1/y2/tap temp/acc/attention rows
    vmem_limit = None
    if est > 16 * 2**20:
        vmem_limit = min(max(2 * est, 32 * 2**20), 100 * 2**20)

    out_sum, out_res = pl.pallas_call(
        kernel,
        out_shape=(jax.ShapeDtypeStruct((G, C, LANES), jnp.float32),
                   jax.ShapeDtypeStruct((G, C, LANES), jnp.float32)),
        grid=(G,),
        in_specs=[
            pl.BlockSpec((1, C, LANES), batch3),                 # x
            pl.BlockSpec((8, LANES), const2),                    # boundary masks
            pl.BlockSpec((9, C, C), const3),                     # conv1 weights
            pl.BlockSpec((C, 1), const2),                        # conv1 bias
            pl.BlockSpec((9, C, C), const3),                     # conv2 weights
            pl.BlockSpec((C, 1), const2),                        # conv2 bias
            pl.BlockSpec((inter, C), const2),                    # channel-attn fc1
            pl.BlockSpec((C, inter), const2),                    # channel-attn fc2
            pl.BlockSpec(memory_space=pltpu.MemorySpace.SMEM),   # spatial conv1 taps
            pl.BlockSpec(memory_space=pltpu.MemorySpace.SMEM),   # spatial conv2 taps
        ],
        out_specs=(pl.BlockSpec((1, C, LANES), batch3),
                   pl.BlockSpec((1, C, LANES), batch3)),
        compiler_params=pltpu.CompilerParams(
            dimension_semantics=("parallel",),
            vmem_limit_bytes=vmem_limit),
    )(x_flat, masks, w1k, b1k, w2k, b2k,
      caw1.astype(jnp.float32), caw2.astype(jnp.float32), sw1, sw2)

    def unpack(o):
        return (o.reshape(G, C, Bt, H, W)
                 .transpose(0, 2, 1, 3, 4)
                 .reshape(B, C, H, W))

    return unpack(out_sum), unpack(out_res)


# ----------------------------------------------------------------------------
# Deterministic synthetic parameters (shapes from RCSAB.__init__ with
# num_channels=C, reduction=r, kernel_size=3, padding_mode='zeros')
# ----------------------------------------------------------------------------
def init_params(key, C, reduction):
    inter = max(1, C // reduction)
    ks = jax.random.split(key, 8)
    return dict(
        W1=jax.random.normal(ks[0], (C, C, 3, 3), jnp.float32) * 0.2,
        b1=jax.random.normal(ks[1], (C,), jnp.float32) * 0.1,
        W2=jax.random.normal(ks[2], (C, C, 3, 3), jnp.float32) * 0.2,
        b2=jax.random.normal(ks[3], (C,), jnp.float32) * 0.1,
        caw1=jax.random.normal(ks[4], (inter, C), jnp.float32) * 0.3,
        caw2=jax.random.normal(ks[5], (C, inter), jnp.float32) * 0.3,
        saw1=jax.random.normal(ks[6], (1, 2, 3, 3), jnp.float32) * 0.3,
        saw2=jax.random.normal(ks[7], (1, 1, 3, 3), jnp.float32) * 0.3,
    )


# ----------------------------------------------------------------------------
# Pure-JAX reference (mirrors the PyTorch RCSAB forward, skip_conn=True).
# ----------------------------------------------------------------------------
def rcsab_ref(x, params, res_scale=1.0):
    prec = lax.Precision.HIGHEST
    dn = ("NCHW", "OIHW", "NCHW")
    W1, b1 = params["W1"], params["b1"]
    W2, b2 = params["W2"], params["b2"]
    caw1, caw2 = params["caw1"], params["caw2"]
    saw1, saw2 = params["saw1"], params["saw2"]

    y1 = jnp.maximum(
        lax.conv_general_dilated(x, W1, (1, 1), ((1, 1), (1, 1)),
                                 dimension_numbers=dn, precision=prec)
        + b1[None, :, None, None], 0.0)
    y2 = lax.conv_general_dilated(y1, W2, (1, 1), ((1, 1), (1, 1)),
                                  dimension_numbers=dn, precision=prec) \
        + b2[None, :, None, None]

    avgp = jnp.mean(y2, axis=(2, 3))                          # (B, C)
    maxp = jnp.max(y2, axis=(2, 3))

    def branch(p):
        h = jnp.maximum(jnp.dot(p, caw1.T, precision=prec), 0.0)
        return jnp.dot(h, caw2.T, precision=prec)

    ch = _sigmoid(branch(avgp) + branch(maxp))                # (B, C)

    sa_in = jnp.stack([jnp.mean(y2, axis=1), jnp.max(y2, axis=1)], axis=1)
    s1 = jnp.maximum(
        lax.conv_general_dilated(sa_in, saw1, (1, 1), ((1, 1), (1, 1)),
                                 dimension_numbers=dn, precision=prec), 0.0)
    s2 = lax.conv_general_dilated(s1, saw2, (1, 1), ((1, 1), (1, 1)),
                                  dimension_numbers=dn, precision=prec)
    sp = _sigmoid(s2)                                         # (B, 1, H, W)

    res = y2 * (ch[:, :, None, None] + sp) * res_scale
    return res + x, res


def _sigmoid_ref_guard():  # keep a single sigmoid definition for both paths
    return _sigmoid


if __name__ == "__main__":
    B, C, H, W = 4, 8, 16, 16
    key = jax.random.PRNGKey(0)
    kx, kp = jax.random.split(key)
    x = jax.random.normal(kx, (B, C, H, W), jnp.float32)
    params = init_params(kp, C, reduction=4)

    ref_out, ref_res = jax.block_until_ready(rcsab_ref(x, params, res_scale=1.0))

    # batch_tile=2: two lane-packed images per step (grid=2, even -> both v7x
    # TensorCores busy).  batch_tile=1 exercises the plain single-image path.
    for bt in (2, 1):
        out, res = jax.block_until_ready(
            rcsab_pallas(x, params, res_scale=1.0, batch_tile=bt))
        np.testing.assert_allclose(np.asarray(out), np.asarray(ref_out),
                                   rtol=1e-3, atol=1e-4)
        np.testing.assert_allclose(np.asarray(res), np.asarray(ref_res),
                                   rtol=1e-3, atol=1e-4)

    print("KERNEL_OK")
</pallas_src>

<mosaic_0001>
module attributes {stable_mosaic.version = 11 : i64} {
  func.func @rcsab_kernel(%arg0: i32, %arg1: memref<1x8x512xf32, #tpu.memory_space<vmem>>, %arg2: memref<8x512xf32, #tpu.memory_space<vmem>>, %arg3: memref<9x8x8xf32, #tpu.memory_space<vmem>>, %arg4: memref<8x1xf32, #tpu.memory_space<vmem>>, %arg5: memref<9x8x8xf32, #tpu.memory_space<vmem>>, %arg6: memref<8x1xf32, #tpu.memory_space<vmem>>, %arg7: memref<2x8xf32, #tpu.memory_space<vmem>>, %arg8: memref<8x2xf32, #tpu.memory_space<vmem>>, %arg9: memref<18xf32, #tpu.memory_space<smem>>, %arg10: memref<9xf32, #tpu.memory_space<smem>>, %arg11: memref<1x8x512xf32, #tpu.memory_space<vmem>>, %arg12: memref<1x8x512xf32, #tpu.memory_space<vmem>>) attributes {dimension_semantics = [#tpu.dimension_semantics<parallel>], iteration_bounds = array<i64: 2>, scalar_prefetch = 0 : i64, scratch_operands = 0 : i64, tpu.core_type = #tpu.core_type<tc>, window_params = [{transform_indices = @transform_0, window_bounds = array<i64: 1, 8, 512>}, {pipeline_mode = #tpu.pipeline_mode<synchronous>, transform_indices = @transform_1, window_bounds = array<i64: 8, 512>}, {pipeline_mode = #tpu.pipeline_mode<synchronous>, transform_indices = @transform_2, window_bounds = array<i64: 9, 8, 8>}, {pipeline_mode = #tpu.pipeline_mode<synchronous>, transform_indices = @transform_3, window_bounds = array<i64: 8, 1>}, {pipeline_mode = #tpu.pipeline_mode<synchronous>, transform_indices = @transform_4, window_bounds = array<i64: 9, 8, 8>}, {pipeline_mode = #tpu.pipeline_mode<synchronous>, transform_indices = @transform_5, window_bounds = array<i64: 8, 1>}, {pipeline_mode = #tpu.pipeline_mode<synchronous>, transform_indices = @transform_6, window_bounds = array<i64: 2, 8>}, {pipeline_mode = #tpu.pipeline_mode<synchronous>, transform_indices = @transform_7, window_bounds = array<i64: 8, 2>}, {transform_indices = @transform_8, window_bounds = array<i64: 18>}, {transform_indices = @transform_9, window_bounds = array<i64: 9>}, {transform_indices = @transform_10, window_bounds = array<i64: 1, 8, 512>}, {transform_indices = @transform_11, window_bounds = array<i64: 1, 8, 512>}]} {
    %c0 = arith.constant 0 : index
    %c0_0 = arith.constant 0 : index
    %c0_1 = arith.constant 0 : index
    %0 = vector.load %arg1[%c0, %c0_0, %c0_1] : memref<1x8x512xf32, #tpu.memory_space<vmem>>, vector<1x8x512xf32>
    %1 = vector.shape_cast %0 : vector<1x8x512xf32> to vector<8x512xf32>
    %c0_2 = arith.constant 0 : index
    %c0_3 = arith.constant 0 : index
    %2 = vector.load %arg2[%c0_2, %c0_3] : memref<8x512xf32, #tpu.memory_space<vmem>>, vector<8x512xf32>
    %c4 = arith.constant 4 : index
    %c0_4 = arith.constant 0 : index
    %c0_5 = arith.constant 0 : index
    %3 = vector.load %arg3[%c4, %c0_4, %c0_5] : memref<9x8x8xf32, #tpu.memory_space<vmem>>, vector<1x8x8xf32>
    %4 = vector.shape_cast %3 : vector<1x8x8xf32> to vector<8x8xf32>
    %cst = arith.constant dense<0.000000e+00> : vector<8x512xf32>
    %5 = tpu.matmul %4, %1, %cst {dimension_numbers = #tpu.dot_dimension_numbers<[1], [0], [0], [1], [0, 0, 1, 1], [], []>, precision = #tpu.contract_precision<fp32>} : vector<8x8xf32>, vector<8x512xf32>, vector<8x512xf32> -> vector<8x512xf32>
    %c0_6 = arith.constant 0 : index
    %c0_7 = arith.constant 0 : index
    %c0_8 = arith.constant 0 : index
    %6 = vector.load %arg3[%c0_6, %c0_7, %c0_8] : memref<9x8x8xf32, #tpu.memory_space<vmem>>, vector<1x8x8xf32>
    %7 = vector.shape_cast %6 : vector<1x8x8xf32> to vector<8x8xf32>
    %c17_i32 = arith.constant 17 : i32
    %8 = tpu.dynamic_rotate %1 by %c17_i32 dim 1 : vector<8x512xf32>, i32 -> vector<8x512xf32>
    %9 = vector.extract_strided_slice %2 {offsets = [0, 0], sizes = [1, 512], strides = [1, 1]} : vector<8x512xf32> to vector<1x512xf32>
    %10 = vector.broadcast %9 : vector<1x512xf32> to vector<8x512xf32>
    %11 = arith.mulf %8, %10 : vector<8x512xf32>
    %cst_9 = arith.constant dense<0.000000e+00> : vector<8x512xf32>
    %12 = tpu.matmul %7, %11, %cst_9 {dimension_numbers = #tpu.dot_dimension_numbers<[1], [0], [0], [1], [0, 0, 1, 1], [], []>, precision = #tpu.contract_precision<fp32>} : vector<8x8xf32>, vector<8x512xf32>, vector<8x512xf32> -> vector<8x512xf32>
    %13 = arith.addf %5, %12 : vector<8x512xf32>
    %c1 = arith.constant 1 : index
    %c0_10 = arith.constant 0 : index
    %c0_11 = arith.constant 0 : index
    %14 = vector.load %arg3[%c1, %c0_10, %c0_11] : memref<9x8x8xf32, #tpu.memory_space<vmem>>, vector<1x8x8xf32>
    %15 = vector.shape_cast %14 : vector<1x8x8xf32> to vector<8x8xf32>
    %c16_i32 = arith.constant 16 : i32
    %16 = tpu.dynamic_rotate %1 by %c16_i32 dim 1 : vector<8x512xf32>, i32 -> vector<8x512xf32>
    %17 = vector.extract_strided_slice %2 {offsets = [1, 0], sizes = [1, 512], strides = [1, 1]} : vector<8x512xf32> to vector<1x512xf32>
    %18 = vector.broadcast %17 : vector<1x512xf32> to vector<8x512xf32>
    %19 = arith.mulf %16, %18 : vector<8x512xf32>
    %cst_12 = arith.constant dense<0.000000e+00> : vector<8x512xf32>
    %20 = tpu.matmul %15, %19, %cst_12 {dimension_numbers = #tpu.dot_dimension_numbers<[1], [0], [0], [1], [0, 0, 1, 1], [], []>, precision = #tpu.contract_precision<fp32>} : vector<8x8xf32>, vector<8x512xf32>, vector<8x512xf32> -> vector<8x512xf32>
    %21 = arith.addf %13, %20 : vector<8x512xf32>
    %c2 = arith.constant 2 : index
    %c0_13 = arith.constant 0 : index
    %c0_14 = arith.constant 0 : index
    %22 = vector.load %arg3[%c2, %c0_13, %c0_14] : memref<9x8x8xf32, #tpu.memory_space<vmem>>, vector<1x8x8xf32>
    %23 = vector.shape_cast %22 : vector<1x8x8xf32> to vector<8x8xf32>
    %c15_i32 = arith.constant 15 : i32
    %24 = tpu.dynamic_rotate %1 by %c15_i32 dim 1 : vector<8x512xf32>, i32 -> vector<8x512xf32>
    %25 = vector.extract_strided_slice %2 {offsets = [2, 0], sizes = [1, 512], strides = [1, 1]} : vector<8x512xf32> to vector<1x512xf32>
    %26 = vector.broadcast %25 : vector<1x512xf32> to vector<8x512xf32>
    %27 = arith.mulf %24, %26 : vector<8x512xf32>
    %cst_15 = arith.constant dense<0.000000e+00> : vector<8x512xf32>
    %28 = tpu.matmul %23, %27, %cst_15 {dimension_numbers = #tpu.dot_dimension_numbers<[1], [0], [0], [1], [0, 0, 1, 1], [], []>, precision = #tpu.contract_precision<fp32>} : vector<8x8xf32>, vector<8x512xf32>, vector<8x512xf32> -> vector<8x512xf32>
    %29 = arith.addf %21, %28 : vector<8x512xf32>
    %c3 = arith.constant 3 : index
    %c0_16 = arith.constant 0 : index
    %c0_17 = arith.constant 0 : index
    %30 = vector.load %arg3[%c3, %c0_16, %c0_17] : memref<9x8x8xf32, #tpu.memory_space<vmem>>, vector<1x8x8xf32>
    %31 = vector.shape_cast %30 : vector<1x8x8xf32> to vector<8x8xf32>
    %c1_i32 = arith.constant 1 : i32
    %32 = tpu.dynamic_rotate %1 by %c1_i32 dim 1 : vector<8x512xf32>, i32 -> vector<8x512xf32>
    %33 = vector.extract_strided_slice %2 {offsets = [3, 0], sizes = [1, 512], strides = [1, 1]} : vector<8x512xf32> to vector<1x512xf32>
    %34 = vector.broadcast %33 : vector<1x512xf32> to vector<8x512xf32>
    %35 = arith.mulf %32, %34 : vector<8x512xf32>
    %cst_18 = arith.constant dense<0.000000e+00> : vector<8x512xf32>
    %36 = tpu.matmul %31, %35, %cst_18 {dimension_numbers = #tpu.dot_dimension_numbers<[1], [0], [0], [1], [0, 0, 1, 1], [], []>, precision = #tpu.contract_precision<fp32>} : vector<8x8xf32>, vector<8x512xf32>, vector<8x512xf32> -> vector<8x512xf32>
    %37 = arith.addf %29, %36 : vector<8x512xf32>
    %c5 = arith.constant 5 : index
    %c0_19 = arith.constant 0 : index
    %c0_20 = arith.constant 0 : index
    %38 = vector.load %arg3[%c5, %c0_19, %c0_20] : memref<9x8x8xf32, #tpu.memory_space<vmem>>, vector<1x8x8xf32>
    %39 = vector.shape_cast %38 : vector<1x8x8xf32> to vector<8x8xf32>
    %c511_i32 = arith.constant 511 : i32
    %40 = tpu.dynamic_rotate %1 by %c511_i32 dim 1 : vector<8x512xf32>, i32 -> vector<8x512xf32>
    %41 = vector.extract_strided_slice %2 {offsets = [4, 0], sizes = [1, 512], strides = [1, 1]} : vector<8x512xf32> to vector<1x512xf32>
    %42 = vector.broadcast %41 : vector<1x512xf32> to vector<8x512xf32>
    %43 = arith.mulf %40, %42 : vector<8x512xf32>
    %cst_21 = arith.constant dense<0.000000e+00> : vector<8x512xf32>
    %44 = tpu.matmul %39, %43, %cst_21 {dimension_numbers = #tpu.dot_dimension_numbers<[1], [0], [0], [1], [0, 0, 1, 1], [], []>, precision = #tpu.contract_precision<fp32>} : vector<8x8xf32>, vector<8x512xf32>, vector<8x512xf32> -> vector<8x512xf32>
    %45 = arith.addf %37, %44 : vector<8x512xf32>
    %c6 = arith.constant 6 : index
    %c0_22 = arith.constant 0 : index
    %c0_23 = arith.constant 0 : index
    %46 = vector.load %arg3[%c6, %c0_22, %c0_23] : memref<9x8x8xf32, #tpu.memory_space<vmem>>, vector<1x8x8xf32>
    %47 = vector.shape_cast %46 : vector<1x8x8xf32> to vector<8x8xf32>
    %c497_i32 = arith.constant 497 : i32
    %48 = tpu.dynamic_rotate %1 by %c497_i32 dim 1 : vector<8x512xf32>, i32 -> vector<8x512xf32>
    %49 = vector.extract_strided_slice %2 {offsets = [5, 0], sizes = [1, 512], strides = [1, 1]} : vector<8x512xf32> to vector<1x512xf32>
    %50 = vector.broadcast %49 : vector<1x512xf32> to vector<8x512xf32>
    %51 = arith.mulf %48, %50 : vector<8x512xf32>
    %cst_24 = arith.constant dense<0.000000e+00> : vector<8x512xf32>
    %52 = tpu.matmul %47, %51, %cst_24 {dimension_numbers = #tpu.dot_dimension_numbers<[1], [0], [0], [1], [0, 0, 1, 1], [], []>, precision = #tpu.contract_precision<fp32>} : vector<8x8xf32>, vector<8x512xf32>, vector<8x512xf32> -> vector<8x512xf32>
    %53 = arith.addf %45, %52 : vector<8x512xf32>
    %c7 = arith.constant 7 : index
    %c0_25 = arith.constant 0 : index
    %c0_26 = arith.constant 0 : index
    %54 = vector.load %arg3[%c7, %c0_25, %c0_26] : memref<9x8x8xf32, #tpu.memory_space<vmem>>, vector<1x8x8xf32>
    %55 = vector.shape_cast %54 : vector<1x8x8xf32> to vector<8x8xf32>
    %c496_i32 = arith.constant 496 : i32
    %56 = tpu.dynamic_rotate %1 by %c496_i32 dim 1 : vector<8x512xf32>, i32 -> vector<8x512xf32>
    %57 = vector.extract_strided_slice %2 {offsets = [6, 0], sizes = [1, 512], strides = [1, 1]} : vector<8x512xf32> to vector<1x512xf32>
    %58 = vector.broadcast %57 : vector<1x512xf32> to vector<8x512xf32>
    %59 = arith.mulf %56, %58 : vector<8x512xf32>
    %cst_27 = arith.constant dense<0.000000e+00> : vector<8x512xf32>
    %60 = tpu.matmul %55, %59, %cst_27 {dimension_numbers = #tpu.dot_dimension_numbers<[1], [0], [0], [1], [0, 0, 1, 1], [], []>, precision = #tpu.contract_precision<fp32>} : vector<8x8xf32>, vector<8x512xf32>, vector<8x512xf32> -> vector<8x512xf32>
    %61 = arith.addf %53, %60 : vector<8x512xf32>
    %c8 = arith.constant 8 : index
    %c0_28 = arith.constant 0 : index
    %c0_29 = arith.constant 0 : index
    %62 = vector.load %arg3[%c8, %c0_28, %c0_29] : memref<9x8x8xf32, #tpu.memory_space<vmem>>, vector<1x8x8xf32>
    %63 = vector.shape_cast %62 : vector<1x8x8xf32> to vector<8x8xf32>
    %c495_i32 = arith.constant 495 : i32
    %64 = tpu.dynamic_rotate %1 by %c495_i32 dim 1 : vector<8x512xf32>, i32 -> vector<8x512xf32>
    %65 = vector.extract_strided_slice %2 {offsets = [7, 0], sizes = [1, 512], strides = [1, 1]} : vector<8x512xf32> to vector<1x512xf32>
    %66 = vector.broadcast %65 : vector<1x512xf32> to vector<8x512xf32>
    %67 = arith.mulf %64, %66 : vector<8x512xf32>
    %cst_30 = arith.constant dense<0.000000e+00> : vector<8x512xf32>
    %68 = tpu.matmul %63, %67, %cst_30 {dimension_numbers = #tpu.dot_dimension_numbers<[1], [0], [0], [1], [0, 0, 1, 1], [], []>, precision = #tpu.contract_precision<fp32>} : vector<8x8xf32>, vector<8x512xf32>, vector<8x512xf32> -> vector<8x512xf32>
    %69 = arith.addf %61, %68 : vector<8x512xf32>
    %c0_31 = arith.constant 0 : index
    %c0_32 = arith.constant 0 : index
    %70 = vector.load %arg4[%c0_31, %c0_32] : memref<8x1xf32, #tpu.memory_space<vmem>>, vector<8x1xf32>
    %71 = vector.broadcast %70 : vector<8x1xf32> to vector<8x512xf32>
    %72 = arith.addf %69, %71 : vector<8x512xf32>
    %cst_33 = arith.constant 0.000000e+00 : f32
    %73 = vector.broadcast %cst_33 : f32 to vector<8x512xf32>
    %74 = arith.maximumf %72, %73 : vector<8x512xf32>
    %c4_34 = arith.constant 4 : index
    %c0_35 = arith.constant 0 : index
    %c0_36 = arith.constant 0 : index
    %75 = vector.load %arg5[%c4_34, %c0_35, %c0_36] : memref<9x8x8xf32, #tpu.memory_space<vmem>>, vector<1x8x8xf32>
    %76 = vector.shape_cast %75 : vector<1x8x8xf32> to vector<8x8xf32>
    %cst_37 = arith.constant dense<0.000000e+00> : vector<8x512xf32>
    %77 = tpu.matmul %76, %74, %cst_37 {dimension_numbers = #tpu.dot_dimension_numbers<[1], [0], [0], [1], [0, 0, 1, 1], [], []>, precision = #tpu.contract_precision<fp32>} : vector<8x8xf32>, vector<8x512xf32>, vector<8x512xf32> -> vector<8x512xf32>
    %c0_38 = arith.constant 0 : index
    %c0_39 = arith.constant 0 : index
    %c0_40 = arith.constant 0 : index
    %78 = vector.load %arg5[%c0_38, %c0_39, %c0_40] : memref<9x8x8xf32, #tpu.memory_space<vmem>>, vector<1x8x8xf32>
    %79 = vector.shape_cast %78 : vector<1x8x8xf32> to vector<8x8xf32>
    %c17_i32_41 = arith.constant 17 : i32
    %80 = tpu.dynamic_rotate %74 by %c17_i32_41 dim 1 : vector<8x512xf32>, i32 -> vector<8x512xf32>
    %81 = vector.extract_strided_slice %2 {offsets = [0, 0], sizes = [1, 512], strides = [1, 1]} : vector<8x512xf32> to vector<1x512xf32>
    %82 = vector.broadcast %81 : vector<1x512xf32> to vector<8x512xf32>
    %83 = arith.mulf %80, %82 : vector<8x512xf32>
    %cst_42 = arith.constant dense<0.000000e+00> : vector<8x512xf32>
    %84 = tpu.matmul %79, %83, %cst_42 {dimension_numbers = #tpu.dot_dimension_numbers<[1], [0], [0], [1], [0, 0, 1, 1], [], []>, precision = #tpu.contract_precision<fp32>} : vector<8x8xf32>, vector<8x512xf32>, vector<8x512xf32> -> vector<8x512xf32>
    %85 = arith.addf %77, %84 : vector<8x512xf32>
    %c1_43 = arith.constant 1 : index
    %c0_44 = arith.constant 0 : index
    %c0_45 = arith.constant 0 : index
    %86 = vector.load %arg5[%c1_43, %c0_44, %c0_45] : memref<9x8x8xf32, #tpu.memory_space<vmem>>, vector<1x8x8xf32>
    %87 = vector.shape_cast %86 : vector<1x8x8xf32> to vector<8x8xf32>
    %c16_i32_46 = arith.constant 16 : i32
    %88 = tpu.dynamic_rotate %74 by %c16_i32_46 dim 1 : vector<8x512xf32>, i32 -> vector<8x512xf32>
    %89 = vector.extract_strided_slice %2 {offsets = [1, 0], sizes = [1, 512], strides = [1, 1]} : vector<8x512xf32> to vector<1x512xf32>
    %90 = vector.broadcast %89 : vector<1x512xf32> to vector<8x512xf32>
    %91 = arith.mulf %88, %90 : vector<8x512xf32>
    %cst_47 = arith.constant dense<0.000000e+00> : vector<8x512xf32>
    %92 = tpu.matmul %87, %91, %cst_47 {dimension_numbers = #tpu.dot_dimension_numbers<[1], [0], [0], [1], [0, 0, 1, 1], [], []>, precision = #tpu.contract_precision<fp32>} : vector<8x8xf32>, vector<8x512xf32>, vector<8x512xf32> -> vector<8x512xf32>
    %93 = arith.addf %85, %92 : vector<8x512xf32>
    %c2_48 = arith.constant 2 : index
    %c0_49 = arith.constant 0 : index
    %c0_50 = arith.constant 0 : index
    %94 = vector.load %arg5[%c2_48, %c0_49, %c0_50] : memref<9x8x8xf32, #tpu.memory_space<vmem>>, vector<1x8x8xf32>
    %95 = vector.shape_cast %94 : vector<1x8x8xf32> to vector<8x8xf32>
    %c15_i32_51 = arith.constant 15 : i32
    %96 = tpu.dynamic_rotate %74 by %c15_i32_51 dim 1 : vector<8x512xf32>, i32 -> vector<8x512xf32>
    %97 = vector.extract_strided_slice %2 {offsets = [2, 0], sizes = [1, 512], strides = [1, 1]} : vector<8x512xf32> to vector<1x512xf32>
    %98 = vector.broadcast %97 : vector<1x512xf32> to vector<8x512xf32>
    %99 = arith.mulf %96, %98 : vector<8x512xf32>
    %cst_52 = arith.constant dense<0.000000e+00> : vector<8x512xf32>
    %100 = tpu.matmul %95, %99, %cst_52 {dimension_numbers = #tpu.dot_dimension_numbers<[1], [0], [0], [1], [0, 0, 1, 1], [], []>, precision = #tpu.contract_precision<fp32>} : vector<8x8xf32>, vector<8x512xf32>, vector<8x512xf32> -> vector<8x512xf32>
    %101 = arith.addf %93, %100 : vector<8x512xf32>
    %c3_53 = arith.constant 3 : index
    %c0_54 = arith.constant 0 : index
    %c0_55 = arith.constant 0 : index
    %102 = vector.load %arg5[%c3_53, %c0_54, %c0_55] : memref<9x8x8xf32, #tpu.memory_space<vmem>>, vector<1x8x8xf32>
    %103 = vector.shape_cast %102 : vector<1x8x8xf32> to vector<8x8xf32>
    %c1_i32_56 = arith.constant 1 : i32
    %104 = tpu.dynamic_rotate %74 by %c1_i32_56 dim 1 : vector<8x512xf32>, i32 -> vector<8x512xf32>
    %105 = vector.extract_strided_slice %2 {offsets = [3, 0], sizes = [1, 512], strides = [1, 1]} : vector<8x512xf32> to vector<1x512xf32>
    %106 = vector.broadcast %105 : vector<1x512xf32> to vector<8x512xf32>
    %107 = arith.mulf %104, %106 : vector<8x512xf32>
    %cst_57 = arith.constant dense<0.000000e+00> : vector<8x512xf32>
    %108 = tpu.matmul %103, %107, %cst_57 {dimension_numbers = #tpu.dot_dimension_numbers<[1], [0], [0], [1], [0, 0, 1, 1], [], []>, precision = #tpu.contract_precision<fp32>} : vector<8x8xf32>, vector<8x512xf32>, vector<8x512xf32> -> vector<8x512xf32>
    %109 = arith.addf %101, %108 : vector<8x512xf32>
    %c5_58 = arith.constant 5 : index
    %c0_59 = arith.constant 0 : index
    %c0_60 = arith.constant 0 : index
    %110 = vector.load %arg5[%c5_58, %c0_59, %c0_60] : memref<9x8x8xf32, #tpu.memory_space<vmem>>, vector<1x8x8xf32>
    %111 = vector.shape_cast %110 : vector<1x8x8xf32> to vector<8x8xf32>
    %c511_i32_61 = arith.constant 511 : i32
    %112 = tpu.dynamic_rotate %74 by %c511_i32_61 dim 1 : vector<8x512xf32>, i32 -> vector<8x512xf32>
    %113 = vector.extract_strided_slice %2 {offsets = [4, 0], sizes = [1, 512], strides = [1, 1]} : vector<8x512xf32> to vector<1x512xf32>
    %114 = vector.broadcast %113 : vector<1x512xf32> to vector<8x512xf32>
    %115 = arith.mulf %112, %114 : vector<8x512xf32>
    %cst_62 = arith.constant dense<0.000000e+00> : vector<8x512xf32>
    %116 = tpu.matmul %111, %115, %cst_62 {dimension_numbers = #tpu.dot_dimension_numbers<[1], [0], [0], [1], [0, 0, 1, 1], [], []>, precision = #tpu.contract_precision<fp32>} : vector<8x8xf32>, vector<8x512xf32>, vector<8x512xf32> -> vector<8x512xf32>
    %117 = arith.addf %109, %116 : vector<8x512xf32>
    %c6_63 = arith.constant 6 : index
    %c0_64 = arith.constant 0 : index
    %c0_65 = arith.constant 0 : index
    %118 = vector.load %arg5[%c6_63, %c0_64, %c0_65] : memref<9x8x8xf32, #tpu.memory_space<vmem>>, vector<1x8x8xf32>
    %119 = vector.shape_cast %118 : vector<1x8x8xf32> to vector<8x8xf32>
    %c497_i32_66 = arith.constant 497 : i32
    %120 = tpu.dynamic_rotate %74 by %c497_i32_66 dim 1 : vector<8x512xf32>, i32 -> vector<8x512xf32>
    %121 = vector.extract_strided_slice %2 {offsets = [5, 0], sizes = [1, 512], strides = [1, 1]} : vector<8x512xf32> to vector<1x512xf32>
    %122 = vector.broadcast %121 : vector<1x512xf32> to vector<8x512xf32>
    %123 = arith.mulf %120, %122 : vector<8x512xf32>
    %cst_67 = arith.constant dense<0.000000e+00> : vector<8x512xf32>
    %124 = tpu.matmul %119, %123, %cst_67 {dimension_numbers = #tpu.dot_dimension_numbers<[1], [0], [0], [1], [0, 0, 1, 1], [], []>, precision = #tpu.contract_precision<fp32>} : vector<8x8xf32>, vector<8x512xf32>, vector<8x512xf32> -> vector<8x512xf32>
    %125 = arith.addf %117, %124 : vector<8x512xf32>
    %c7_68 = arith.constant 7 : index
    %c0_69 = arith.constant 0 : index
    %c0_70 = arith.constant 0 : index
    %126 = vector.load %arg5[%c7_68, %c0_69, %c0_70] : memref<9x8x8xf32, #tpu.memory_space<vmem>>, vector<1x8x8xf32>
    %127 = vector.shape_cast %126 : vector<1x8x8xf32> to vector<8x8xf32>
    %c496_i32_71 = arith.constant 496 : i32
    %128 = tpu.dynamic_rotate %74 by %c496_i32_71 dim 1 : vector<8x512xf32>, i32 -> vector<8x512xf32>
    %129 = vector.extract_strided_slice %2 {offsets = [6, 0], sizes = [1, 512], strides = [1, 1]} : vector<8x512xf32> to vector<1x512xf32>
    %130 = vector.broadcast %129 : vector<1x512xf32> to vector<8x512xf32>
    %131 = arith.mulf %128, %130 : vector<8x512xf32>
    %cst_72 = arith.constant dense<0.000000e+00> : vector<8x512xf32>
    %132 = tpu.matmul %127, %131, %cst_72 {dimension_numbers = #tpu.dot_dimension_numbers<[1], [0], [0], [1], [0, 0, 1, 1], [], []>, precision = #tpu.contract_precision<fp32>} : vector<8x8xf32>, vector<8x512xf32>, vector<8x512xf32> -> vector<8x512xf32>
    %133 = arith.addf %125, %132 : vector<8x512xf32>
    %c8_73 = arith.constant 8 : index
    %c0_74 = arith.constant 0 : index
    %c0_75 = arith.constant 0 : index
    %134 = vector.load %arg5[%c8_73, %c0_74, %c0_75] : memref<9x8x8xf32, #tpu.memory_space<vmem>>, vector<1x8x8xf32>
    %135 = vector.shape_cast %134 : vector<1x8x8xf32> to vector<8x8xf32>
    %c495_i32_76 = arith.constant 495 : i32
    %136 = tpu.dynamic_rotate %74 by %c495_i32_76 dim 1 : vector<8x512xf32>, i32 -> vector<8x512xf32>
    %137 = vector.extract_strided_slice %2 {offsets = [7, 0], sizes = [1, 512], strides = [1, 1]} : vector<8x512xf32> to vector<1x512xf32>
    %138 = vector.broadcast %137 : vector<1x512xf32> to vector<8x512xf32>
    %139 = arith.mulf %136, %138 : vector<8x512xf32>
    %cst_77 = arith.constant dense<0.000000e+00> : vector<8x512xf32>
    %140 = tpu.matmul %135, %139, %cst_77 {dimension_numbers = #tpu.dot_dimension_numbers<[1], [0], [0], [1], [0, 0, 1, 1], [], []>, precision = #tpu.contract_precision<fp32>} : vector<8x8xf32>, vector<8x512xf32>, vector<8x512xf32> -> vector<8x512xf32>
    %141 = arith.addf %133, %140 : vector<8x512xf32>
    %c0_78 = arith.constant 0 : index
    %c0_79 = arith.constant 0 : index
    %142 = vector.load %arg6[%c0_78, %c0_79] : memref<8x1xf32, #tpu.memory_space<vmem>>, vector<8x1xf32>
    %143 = vector.broadcast %142 : vector<8x1xf32> to vector<8x512xf32>
    %144 = arith.addf %141, %143 : vector<8x512xf32>
    %145 = tpu.iota {dimensions = array<i32: 1>} : vector<8x4xi32>
    %cst_80 = arith.constant 0.000000e+00 : f32
    %146 = vector.broadcast %cst_80 : f32 to vector<8x4xf32>
    %147 = vector.extract_strided_slice %144 {offsets = [0, 0], sizes = [8, 256], strides = [1, 1]} : vector<8x512xf32> to vector<8x256xf32>
    %c0_i32 = arith.constant 0 : i32
    %148 = vector.broadcast %c0_i32 : i32 to vector<8x4xi32>
    %149 = arith.cmpi eq, %145, %148 : vector<8x4xi32>
    %cst_81 = arith.constant dense<0.000000e+00> : vector<8xf32>
    %150 = vector.multi_reduction <add>, %147, %cst_81 [1] : vector<8x256xf32> to vector<8xf32>
    %151 = vector.shape_cast %150 : vector<8xf32> to vector<8x1xf32>
    %cst_82 = arith.constant 2.560000e+02 : f32
    %152 = vector.broadcast %cst_82 : f32 to vector<8x1xf32>
    %153 = arith.divf %151, %152 : vector<8x1xf32>
    %154 = vector.shape_cast %153 : vector<8x1xf32> to vector<8x1xf32>
    %155 = vector.broadcast %154 : vector<8x1xf32> to vector<8x4xf32>
    %156 = arith.select %149, %155, %146 : vector<8x4xi1>, vector<8x4xf32>
    %c1_i32_83 = arith.constant 1 : i32
    %157 = vector.broadcast %c1_i32_83 : i32 to vector<8x4xi32>
    %158 = arith.cmpi eq, %145, %157 : vector<8x4xi32>
    %cst_84 = arith.constant dense<0xFF800000> : vector<8xf32>
    %159 = vector.multi_reduction <maximumf>, %147, %cst_84 [1] : vector<8x256xf32> to vector<8xf32>
    %160 = vector.shape_cast %159 : vector<8xf32> to vector<8x1xf32>
    %161 = vector.shape_cast %160 : vector<8x1xf32> to vector<8x1xf32>
    %162 = vector.broadcast %161 : vector<8x1xf32> to vector<8x4xf32>
    %163 = arith.select %158, %162, %156 : vector<8x4xi1>, vector<8x4xf32>
    %164 = vector.extract_strided_slice %144 {offsets = [0, 256], sizes = [8, 256], strides = [1, 1]} : vector<8x512xf32> to vector<8x256xf32>
    %c2_i32 = arith.constant 2 : i32
    %165 = vector.broadcast %c2_i32 : i32 to vector<8x4xi32>
    %166 = arith.cmpi eq, %145, %165 : vector<8x4xi32>
    %cst_85 = arith.constant dense<0.000000e+00> : vector<8xf32>
    %167 = vector.multi_reduction <add>, %164, %cst_85 [1] : vector<8x256xf32> to vector<8xf32>
    %168 = vector.shape_cast %167 : vector<8xf32> to vector<8x1xf32>
    %cst_86 = arith.constant 2.560000e+02 : f32
    %169 = vector.broadcast %cst_86 : f32 to vector<8x1xf32>
    %170 = arith.divf %168, %169 : vector<8x1xf32>
    %171 = vector.shape_cast %170 : vector<8x1xf32> to vector<8x1xf32>
    %172 = vector.broadcast %171 : vector<8x1xf32> to vector<8x4xf32>
    %173 = arith.select %166, %172, %163 : vector<8x4xi1>, vector<8x4xf32>
    %c3_i32 = arith.constant 3 : i32
    %174 = vector.broadcast %c3_i32 : i32 to vector<8x4xi32>
    %175 = arith.cmpi eq, %145, %174 : vector<8x4xi32>
    %cst_87 = arith.constant dense<0xFF800000> : vector<8xf32>
    %176 = vector.multi_reduction <maximumf>, %164, %cst_87 [1] : vector<8x256xf32> to vector<8xf32>
    %177 = vector.shape_cast %176 : vector<8xf32> to vector<8x1xf32>
    %178 = vector.shape_cast %177 : vector<8x1xf32> to vector<8x1xf32>
    %179 = vector.broadcast %178 : vector<8x1xf32> to vector<8x4xf32>
    %180 = arith.select %175, %179, %173 : vector<8x4xi1>, vector<8x4xf32>
    %c0_88 = arith.constant 0 : index
    %c0_89 = arith.constant 0 : index
    %181 = vector.load %arg7[%c0_88, %c0_89] : memref<2x8xf32, #tpu.memory_space<vmem>>, vector<2x8xf32>
    %cst_90 = arith.constant dense<0.000000e+00> : vector<2x4xf32>
    %182 = tpu.matmul %181, %180, %cst_90 {dimension_numbers = #tpu.dot_dimension_numbers<[1], [0], [0], [1], [0, 0, 1, 1], [], []>, precision = #tpu.contract_precision<fp32>} : vector<2x8xf32>, vector<8x4xf32>, vector<2x4xf32> -> vector<2x4xf32>
    %cst_91 = arith.constant 0.000000e+00 : f32
    %183 = vector.broadcast %cst_91 : f32 to vector<2x4xf32>
    %184 = arith.maximumf %182, %183 : vector<2x4xf32>
    %c0_92 = arith.constant 0 : index
    %c0_93 = arith.constant 0 : index
    %185 = vector.load %arg8[%c0_92, %c0_93] : memref<8x2xf32, #tpu.memory_space<vmem>>, vector<8x2xf32>
    %cst_94 = arith.constant dense<0.000000e+00> : vector<8x4xf32>
    %186 = tpu.matmul %185, %184, %cst_94 {dimension_numbers = #tpu.dot_dimension_numbers<[1], [0], [0], [1], [0, 0, 1, 1], [], []>, precision = #tpu.contract_precision<fp32>} : vector<8x2xf32>, vector<2x4xf32>, vector<8x4xf32> -> vector<8x4xf32>
    %cst_95 = arith.constant dense<0.000000e+00> : vector<512xf32>
    %187 = vector.multi_reduction <add>, %144, %cst_95 [0] : vector<8x512xf32> to vector<512xf32>
    %188 = vector.shape_cast %187 : vector<512xf32> to vector<1x512xf32>
    %cst_96 = arith.constant 8.000000e+00 : f32
    %189 = vector.broadcast %cst_96 : f32 to vector<1x512xf32>
    %190 = arith.divf %188, %189 : vector<1x512xf32>
    %cst_97 = arith.constant dense<0xFF800000> : vector<512xf32>
    %191 = vector.multi_reduction <maximumf>, %144, %cst_97 [0] : vector<8x512xf32> to vector<512xf32>
    %192 = vector.shape_cast %191 : vector<512xf32> to vector<1x512xf32>
    %cst_98 = arith.constant 0.000000e+00 : f32
    %193 = vector.broadcast %cst_98 : f32 to vector<1x512xf32>
    %c0_99 = arith.constant 0 : index
    %194 = memref.load %arg9[%c0_99] : memref<18xf32, #tpu.memory_space<smem>>
    %195 = vector.broadcast %194 : f32 to vector<1x512xf32>
    %196 = arith.mulf %195, %190 : vector<1x512xf32>
    %c9 = arith.constant 9 : index
    %197 = memref.load %arg9[%c9] : memref<18xf32, #tpu.memory_space<smem>>
    %198 = vector.broadcast %197 : f32 to vector<1x512xf32>
    %199 = arith.mulf %198, %192 : vector<1x512xf32>
    %200 = arith.addf %196, %199 : vector<1x512xf32>
    %c17_i32_100 = arith.constant 17 : i32
    %201 = tpu.dynamic_rotate %200 by %c17_i32_100 dim 1 : vector<1x512xf32>, i32 -> vector<1x512xf32>
    %202 = vector.extract_strided_slice %2 {offsets = [0, 0], sizes = [1, 512], strides = [1, 1]} : vector<8x512xf32> to vector<1x512xf32>
    %203 = arith.mulf %201, %202 : vector<1x512xf32>
    %204 = arith.addf %193, %203 : vector<1x512xf32>
    %c1_101 = arith.constant 1 : index
    %205 = memref.load %arg9[%c1_101] : memref<18xf32, #tpu.memory_space<smem>>
    %206 = vector.broadcast %205 : f32 to vector<1x512xf32>
    %207 = arith.mulf %206, %190 : vector<1x512xf32>
    %c10 = arith.constant 10 : index
    %208 = memref.load %arg9[%c10] : memref<18xf32, #tpu.memory_space<smem>>
    %209 = vector.broadcast %208 : f32 to vector<1x512xf32>
    %210 = arith.mulf %209, %192 : vector<1x512xf32>
    %211 = arith.addf %207, %210 : vector<1x512xf32>
    %c16_i32_102 = arith.constant 16 : i32
    %212 = tpu.dynamic_rotate %211 by %c16_i32_102 dim 1 : vector<1x512xf32>, i32 -> vector<1x512xf32>
    %213 = vector.extract_strided_slice %2 {offsets = [1, 0], sizes = [1, 512], strides = [1, 1]} : vector<8x512xf32> to vector<1x512xf32>
    %214 = arith.mulf %212, %213 : vector<1x512xf32>
    %215 = arith.addf %204, %214 : vector<1x512xf32>
    %c2_103 = arith.constant 2 : index
    %216 = memref.load %arg9[%c2_103] : memref<18xf32, #tpu.memory_space<smem>>
    %217 = vector.broadcast %216 : f32 to vector<1x512xf32>
    %218 = arith.mulf %217, %190 : vector<1x512xf32>
    %c11 = arith.constant 11 : index
    %219 = memref.load %arg9[%c11] : memref<18xf32, #tpu.memory_space<smem>>
    %220 = vector.broadcast %219 : f32 to vector<1x512xf32>
    %221 = arith.mulf %220, %192 : vector<1x512xf32>
    %222 = arith.addf %218, %221 : vector<1x512xf32>
    %c15_i32_104 = arith.constant 15 : i32
    %223 = tpu.dynamic_rotate %222 by %c15_i32_104 dim 1 : vector<1x512xf32>, i32 -> vector<1x512xf32>
    %224 = vector.extract_strided_slice %2 {offsets = [2, 0], sizes = [1, 512], strides = [1, 1]} : vector<8x512xf32> to vector<1x512xf32>
    %225 = arith.mulf %223, %224 : vector<1x512xf32>
    %226 = arith.addf %215, %225 : vector<1x512xf32>
    %c3_105 = arith.constant 3 : index
    %227 = memref.load %arg9[%c3_105] : memref<18xf32, #tpu.memory_space<smem>>
    %228 = vector.broadcast %227 : f32 to vector<1x512xf32>
    %229 = arith.mulf %228, %190 : vector<1x512xf32>
    %c12 = arith.constant 12 : index
    %230 = memref.load %arg9[%c12] : memref<18xf32, #tpu.memory_space<smem>>
    %231 = vector.broadcast %230 : f32 to vector<1x512xf32>
    %232 = arith.mulf %231, %192 : vector<1x512xf32>
    %233 = arith.addf %229, %232 : vector<1x512xf32>
    %c1_i32_106 = arith.constant 1 : i32
    %234 = tpu.dynamic_rotate %233 by %c1_i32_106 dim 1 : vector<1x512xf32>, i32 -> vector<1x512xf32>
    %235 = vector.extract_strided_slice %2 {offsets = [3, 0], sizes = [1, 512], strides = [1, 1]} : vector<8x512xf32> to vector<1x512xf32>
    %236 = arith.mulf %234, %235 : vector<1x512xf32>
    %237 = arith.addf %226, %236 : vector<1x512xf32>
    %c4_107 = arith.constant 4 : index
    %238 = memref.load %arg9[%c4_107] : memref<18xf32, #tpu.memory_space<smem>>
    %239 = vector.broadcast %238 : f32 to vector<1x512xf32>
    %240 = arith.mulf %239, %190 : vector<1x512xf32>
    %c13 = arith.constant 13 : index
    %241 = memref.load %arg9[%c13] : memref<18xf32, #tpu.memory_space<smem>>
    %242 = vector.broadcast %241 : f32 to vector<1x512xf32>
    %243 = arith.mulf %242, %192 : vector<1x512xf32>
    %244 = arith.addf %240, %243 : vector<1x512xf32>
    %245 = arith.addf %237, %244 : vector<1x512xf32>
    %c5_108 = arith.constant 5 : index
    %246 = memref.load %arg9[%c5_108] : memref<18xf32, #tpu.memory_space<smem>>
    %247 = vector.broadcast %246 : f32 to vector<1x512xf32>
    %248 = arith.mulf %247, %190 : vector<1x512xf32>
    %c14 = arith.constant 14 : index
    %249 = memref.load %arg9[%c14] : memref<18xf32, #tpu.memory_space<smem>>
    %250 = vector.broadcast %249 : f32 to vector<1x512xf32>
    %251 = arith.mulf %250, %192 : vector<1x512xf32>
    %252 = arith.addf %248, %251 : vector<1x512xf32>
    %c511_i32_109 = arith.constant 511 : i32
    %253 = tpu.dynamic_rotate %252 by %c511_i32_109 dim 1 : vector<1x512xf32>, i32 -> vector<1x512xf32>
    %254 = vector.extract_strided_slice %2 {offsets = [4, 0], sizes = [1, 512], strides = [1, 1]} : vector<8x512xf32> to vector<1x512xf32>
    %255 = arith.mulf %253, %254 : vector<1x512xf32>
    %256 = arith.addf %245, %255 : vector<1x512xf32>
    %c6_110 = arith.constant 6 : index
    %257 = memref.load %arg9[%c6_110] : memref<18xf32, #tpu.memory_space<smem>>
    %258 = vector.broadcast %257 : f32 to vector<1x512xf32>
    %259 = arith.mulf %258, %190 : vector<1x512xf32>
    %c15 = arith.constant 15 : index
    %260 = memref.load %arg9[%c15] : memref<18xf32, #tpu.memory_space<smem>>
    %261 = vector.broadcast %260 : f32 to vector<1x512xf32>
    %262 = arith.mulf %261, %192 : vector<1x512xf32>
    %263 = arith.addf %259, %262 : vector<1x512xf32>
    %c497_i32_111 = arith.constant 497 : i32
    %264 = tpu.dynamic_rotate %263 by %c497_i32_111 dim 1 : vector<1x512xf32>, i32 -> vector<1x512xf32>
    %265 = vector.extract_strided_slice %2 {offsets = [5, 0], sizes = [1, 512], strides = [1, 1]} : vector<8x512xf32> to vector<1x512xf32>
    %266 = arith.mulf %264, %265 : vector<1x512xf32>
    %267 = arith.addf %256, %266 : vector<1x512xf32>
    %c7_112 = arith.constant 7 : index
    %268 = memref.load %arg9[%c7_112] : memref<18xf32, #tpu.memory_space<smem>>
    %269 = vector.broadcast %268 : f32 to vector<1x512xf32>
    %270 = arith.mulf %269, %190 : vector<1x512xf32>
    %c16 = arith.constant 16 : index
    %271 = memref.load %arg9[%c16] : memref<18xf32, #tpu.memory_space<smem>>
    %272 = vector.broadcast %271 : f32 to vector<1x512xf32>
    %273 = arith.mulf %272, %192 : vector<1x512xf32>
    %274 = arith.addf %270, %273 : vector<1x512xf32>
    %c496_i32_113 = arith.constant 496 : i32
    %275 = tpu.dynamic_rotate %274 by %c496_i32_113 dim 1 : vector<1x512xf32>, i32 -> vector<1x512xf32>
    %276 = vector.extract_strided_slice %2 {offsets = [6, 0], sizes = [1, 512], strides = [1, 1]} : vector<8x512xf32> to vector<1x512xf32>
    %277 = arith.mulf %275, %276 : vector<1x512xf32>
    %278 = arith.addf %267, %277 : vector<1x512xf32>
    %c8_114 = arith.constant 8 : index
    %279 = memref.load %arg9[%c8_114] : memref<18xf32, #tpu.memory_space<smem>>
    %280 = vector.broadcast %279 : f32 to vector<1x512xf32>
    %281 = arith.mulf %280, %190 : vector<1x512xf32>
    %c17 = arith.constant 17 : index
    %282 = memref.load %arg9[%c17] : memref<18xf32, #tpu.memory_space<smem>>
    %283 = vector.broadcast %282 : f32 to vector<1x512xf32>
    %284 = arith.mulf %283, %192 : vector<1x512xf32>
    %285 = arith.addf %281, %284 : vector<1x512xf32>
    %c495_i32_115 = arith.constant 495 : i32
    %286 = tpu.dynamic_rotate %285 by %c495_i32_115 dim 1 : vector<1x512xf32>, i32 -> vector<1x512xf32>
    %287 = vector.extract_strided_slice %2 {offsets = [7, 0], sizes = [1, 512], strides = [1, 1]} : vector<8x512xf32> to vector<1x512xf32>
    %288 = arith.mulf %286, %287 : vector<1x512xf32>
    %289 = arith.addf %278, %288 : vector<1x512xf32>
    %cst_116 = arith.constant 0.000000e+00 : f32
    %290 = vector.broadcast %cst_116 : f32 to vector<1x512xf32>
    %291 = arith.maximumf %289, %290 : vector<1x512xf32>
    %cst_117 = arith.constant 0.000000e+00 : f32
    %292 = vector.broadcast %cst_117 : f32 to vector<1x512xf32>
    %c0_118 = arith.constant 0 : index
    %293 = memref.load %arg10[%c0_118] : memref<9xf32, #tpu.memory_space<smem>>
    %294 = vector.broadcast %293 : f32 to vector<1x512xf32>
    %295 = arith.mulf %294, %291 : vector<1x512xf32>
    %c17_i32_119 = arith.constant 17 : i32
    %296 = tpu.dynamic_rotate %295 by %c17_i32_119 dim 1 : vector<1x512xf32>, i32 -> vector<1x512xf32>
    %297 = vector.extract_strided_slice %2 {offsets = [0, 0], sizes = [1, 512], strides = [1, 1]} : vector<8x512xf32> to vector<1x512xf32>
    %298 = arith.mulf %296, %297 : vector<1x512xf32>
    %299 = arith.addf %292, %298 : vector<1x512xf32>
    %c1_120 = arith.constant 1 : index
    %300 = memref.load %arg10[%c1_120] : memref<9xf32, #tpu.memory_space<smem>>
    %301 = vector.broadcast %300 : f32 to vector<1x512xf32>
    %302 = arith.mulf %301, %291 : vector<1x512xf32>
    %c16_i32_121 = arith.constant 16 : i32
    %303 = tpu.dynamic_rotate %302 by %c16_i32_121 dim 1 : vector<1x512xf32>, i32 -> vector<1x512xf32>
    %304 = vector.extract_strided_slice %2 {offsets = [1, 0], sizes = [1, 512], strides = [1, 1]} : vector<8x512xf32> to vector<1x512xf32>
    %305 = arith.mulf %303, %304 : vector<1x512xf32>
    %306 = arith.addf %299, %305 : vector<1x512xf32>
    %c2_122 = arith.constant 2 : index
    %307 = memref.load %arg10[%c2_122] : memref<9xf32, #tpu.memory_space<smem>>
    %308 = vector.broadcast %307 : f32 to vector<1x512xf32>
    %309 = arith.mulf %308, %291 : vector<1x512xf32>
    %c15_i32_123 = arith.constant 15 : i32
    %310 = tpu.dynamic_rotate %309 by %c15_i32_123 dim 1 : vector<1x512xf32>, i32 -> vector<1x512xf32>
    %311 = vector.extract_strided_slice %2 {offsets = [2, 0], sizes = [1, 512], strides = [1, 1]} : vector<8x512xf32> to vector<1x512xf32>
    %312 = arith.mulf %310, %311 : vector<1x512xf32>
    %313 = arith.addf %306, %312 : vector<1x512xf32>
    %c3_124 = arith.constant 3 : index
    %314 = memref.load %arg10[%c3_124] : memref<9xf32, #tpu.memory_space<smem>>
    %315 = vector.broadcast %314 : f32 to vector<1x512xf32>
    %316 = arith.mulf %315, %291 : vector<1x512xf32>
    %c1_i32_125 = arith.constant 1 : i32
    %317 = tpu.dynamic_rotate %316 by %c1_i32_125 dim 1 : vector<1x512xf32>, i32 -> vector<1x512xf32>
    %318 = vector.extract_strided_slice %2 {offsets = [3, 0], sizes = [1, 512], strides = [1, 1]} : vector<8x512xf32> to vector<1x512xf32>
    %319 = arith.mulf %317, %318 : vector<1x512xf32>
    %320 = arith.addf %313, %319 : vector<1x512xf32>
    %c4_126 = arith.constant 4 : index
    %321 = memref.load %arg10[%c4_126] : memref<9xf32, #tpu.memory_space<smem>>
    %322 = vector.broadcast %321 : f32 to vector<1x512xf32>
    %323 = arith.mulf %322, %291 : vector<1x512xf32>
    %324 = arith.addf %320, %323 : vector<1x512xf32>
    %c5_127 = arith.constant 5 : index
    %325 = memref.load %arg10[%c5_127] : memref<9xf32, #tpu.memory_space<smem>>
    %326 = vector.broadcast %325 : f32 to vector<1x512xf32>
    %327 = arith.mulf %326, %291 : vector<1x512xf32>
    %c511_i32_128 = arith.constant 511 : i32
    %328 = tpu.dynamic_rotate %327 by %c511_i32_128 dim 1 : vector<1x512xf32>, i32 -> vector<1x512xf32>
    %329 = vector.extract_strided_slice %2 {offsets = [4, 0], sizes = [1, 512], strides = [1, 1]} : vector<8x512xf32> to vector<1x512xf32>
    %330 = arith.mulf %328, %329 : vector<1x512xf32>
    %331 = arith.addf %324, %330 : vector<1x512xf32>
    %c6_129 = arith.constant 6 : index
    %332 = memref.load %arg10[%c6_129] : memref<9xf32, #tpu.memory_space<smem>>
    %333 = vector.broadcast %332 : f32 to vector<1x512xf32>
    %334 = arith.mulf %333, %291 : vector<1x512xf32>
    %c497_i32_130 = arith.constant 497 : i32
    %335 = tpu.dynamic_rotate %334 by %c497_i32_130 dim 1 : vector<1x512xf32>, i32 -> vector<1x512xf32>
    %336 = vector.extract_strided_slice %2 {offsets = [5, 0], sizes = [1, 512], strides = [1, 1]} : vector<8x512xf32> to vector<1x512xf32>
    %337 = arith.mulf %335, %336 : vector<1x512xf32>
    %338 = arith.addf %331, %337 : vector<1x512xf32>
    %c7_131 = arith.constant 7 : index
    %339 = memref.load %arg10[%c7_131] : memref<9xf32, #tpu.memory_space<smem>>
    %340 = vector.broadcast %339 : f32 to vector<1x512xf32>
    %341 = arith.mulf %340, %291 : vector<1x512xf32>
    %c496_i32_132 = arith.constant 496 : i32
    %342 = tpu.dynamic_rotate %341 by %c496_i32_132 dim 1 : vector<1x512xf32>, i32 -> vector<1x512xf32>
    %343 = vector.extract_strided_slice %2 {offsets = [6, 0], sizes = [1, 512], strides = [1, 1]} : vector<8x512xf32> to vector<1x512xf32>
    %344 = arith.mulf %342, %343 : vector<1x512xf32>
    %345 = arith.addf %338, %344 : vector<1x512xf32>
    %c8_133 = arith.constant 8 : index
    %346 = memref.load %arg10[%c8_133] : memref<9xf32, #tpu.memory_space<smem>>
    %347 = vector.broadcast %346 : f32 to vector<1x512xf32>
    %348 = arith.mulf %347, %291 : vector<1x512xf32>
    %c495_i32_134 = arith.constant 495 : i32
    %349 = tpu.dynamic_rotate %348 by %c495_i32_134 dim 1 : vector<1x512xf32>, i32 -> vector<1x512xf32>
    %350 = vector.extract_strided_slice %2 {offsets = [7, 0], sizes = [1, 512], strides = [1, 1]} : vector<8x512xf32> to vector<1x512xf32>
    %351 = arith.mulf %349, %350 : vector<1x512xf32>
    %352 = arith.addf %345, %351 : vector<1x512xf32>
    %cst_135 = arith.constant 0.000000e+00 : f32
    %353 = vector.broadcast %cst_135 : f32 to vector<1x512xf32>
    %354 = arith.subf %353, %352 : vector<1x512xf32>
    %355 = math.exp %354 : vector<1x512xf32>
    %cst_136 = arith.constant 1.000000e+00 : f32
    %356 = vector.broadcast %cst_136 : f32 to vector<1x512xf32>
    %357 = arith.addf %356, %355 : vector<1x512xf32>
    %cst_137 = arith.constant 1.000000e+00 : f32
    %358 = vector.broadcast %cst_137 : f32 to vector<1x512xf32>
    %359 = arith.divf %358, %357 : vector<1x512xf32>
    %360 = vector.extract_strided_slice %186 {offsets = [0, 0], sizes = [8, 1], strides = [1, 1]} : vector<8x4xf32> to vector<8x1xf32>
    %361 = vector.extract_strided_slice %186 {offsets = [0, 1], sizes = [8, 1], strides = [1, 1]} : vector<8x4xf32> to vector<8x1xf32>
    %362 = arith.addf %360, %361 : vector<8x1xf32>
    %cst_138 = arith.constant 0.000000e+00 : f32
    %363 = vector.broadcast %cst_138 : f32 to vector<8x1xf32>
    %364 = arith.subf %363, %362 : vector<8x1xf32>
    %365 = math.exp %364 : vector<8x1xf32>
    %cst_139 = arith.constant 1.000000e+00 : f32
    %366 = vector.broadcast %cst_139 : f32 to vector<8x1xf32>
    %367 = arith.addf %366, %365 : vector<8x1xf32>
    %cst_140 = arith.constant 1.000000e+00 : f32
    %368 = vector.broadcast %cst_140 : f32 to vector<8x1xf32>
    %369 = arith.divf %368, %367 : vector<8x1xf32>
    %370 = vector.extract_strided_slice %144 {offsets = [0, 0], sizes = [8, 256], strides = [1, 1]} : vector<8x512xf32> to vector<8x256xf32>
    %371 = vector.extract_strided_slice %359 {offsets = [0, 0], sizes = [1, 256], strides = [1, 1]} : vector<1x512xf32> to vector<1x256xf32>
    %372 = vector.broadcast %369 : vector<8x1xf32> to vector<8x256xf32>
    %373 = vector.broadcast %371 : vector<1x256xf32> to vector<8x256xf32>
    %374 = arith.addf %372, %373 : vector<8x256xf32>
    %375 = arith.mulf %370, %374 : vector<8x256xf32>
    %c0_141 = arith.constant 0 : index
    %c0_142 = arith.constant 0 : index
    %c0_143 = arith.constant 0 : index
    %376 = vector.load %arg12[%c0_141, %c0_142, %c0_143] : memref<1x8x512xf32, #tpu.memory_space<vmem>>, vector<1x8x256xf32>
    %377 = vector.shape_cast %376 : vector<1x8x256xf32> to vector<8x256xf32>
    %378 = vector.shape_cast %375 : vector<8x256xf32> to vector<1x8x256xf32>
    tpu.vector_store %arg12[%c0_141, %c0_142, %c0_143], %378 {strides = array<i32>} : memref<1x8x512xf32, #tpu.memory_space<vmem>>, vector<1x8x256xf32>,
    %379 = vector.extract_strided_slice %1 {offsets = [0, 0], sizes = [8, 256], strides = [1, 1]} : vector<8x512xf32> to vector<8x256xf32>
    %380 = arith.addf %375, %379 : vector<8x256xf32>
    %c0_144 = arith.constant 0 : index
    %c0_145 = arith.constant 0 : index
    %c0_146 = arith.constant 0 : index
    %381 = vector.load %arg11[%c0_144, %c0_145, %c0_146] : memref<1x8x512xf32, #tpu.memory_space<vmem>>, vector<1x8x256xf32>
    %382 = vector.shape_cast %381 : vector<1x8x256xf32> to vector<8x256xf32>
    %383 = vector.shape_cast %380 : vector<8x256xf32> to vector<1x8x256xf32>
    tpu.vector_store %arg11[%c0_144, %c0_145, %c0_146], %383 {strides = array<i32>} : memref<1x8x512xf32, #tpu.memory_space<vmem>>, vector<1x8x256xf32>,
    %384 = vector.extract_strided_slice %186 {offsets = [0, 2], sizes = [8, 1], strides = [1, 1]} : vector<8x4xf32> to vector<8x1xf32>
    %385 = vector.extract_strided_slice %186 {offsets = [0, 3], sizes = [8, 1], strides = [1, 1]} : vector<8x4xf32> to vector<8x1xf32>
    %386 = arith.addf %384, %385 : vector<8x1xf32>
    %cst_147 = arith.constant 0.000000e+00 : f32
    %387 = vector.broadcast %cst_147 : f32 to vector<8x1xf32>
    %388 = arith.subf %387, %386 : vector<8x1xf32>
    %389 = math.exp %388 : vector<8x1xf32>
    %cst_148 = arith.constant 1.000000e+00 : f32
    %390 = vector.broadcast %cst_148 : f32 to vector<8x1xf32>
    %391 = arith.addf %390, %389 : vector<8x1xf32>
    %cst_149 = arith.constant 1.000000e+00 : f32
    %392 = vector.broadcast %cst_149 : f32 to vector<8x1xf32>
    %393 = arith.divf %392, %391 : vector<8x1xf32>
    %394 = vector.extract_strided_slice %144 {offsets = [0, 256], sizes = [8, 256], strides = [1, 1]} : vector<8x512xf32> to vector<8x256xf32>
    %395 = vector.extract_strided_slice %359 {offsets = [0, 256], sizes = [1, 256], strides = [1, 1]} : vector<1x512xf32> to vector<1x256xf32>
    %396 = vector.broadcast %393 : vector<8x1xf32> to vector<8x256xf32>
    %397 = vector.broadcast %395 : vector<1x256xf32> to vector<8x256xf32>
    %398 = arith.addf %396, %397 : vector<8x256xf32>
    %399 = arith.mulf %394, %398 : vector<8x256xf32>
    %c0_150 = arith.constant 0 : index
    %c0_151 = arith.constant 0 : index
    %c256 = arith.constant 256 : index
    %400 = vector.load %arg12[%c0_150, %c0_151, %c256] : memref<1x8x512xf32, #tpu.memory_space<vmem>>, vector<1x8x256xf32>
    %401 = vector.shape_cast %400 : vector<1x8x256xf32> to vector<8x256xf32>
    %402 = vector.shape_cast %399 : vector<8x256xf32> to vector<1x8x256xf32>
    tpu.vector_store %arg12[%c0_150, %c0_151, %c256], %402 {strides = array<i32>} : memref<1x8x512xf32, #tpu.memory_space<vmem>>, vector<1x8x256xf32>,
    %403 = vector.extract_strided_slice %1 {offsets = [0, 256], sizes = [8, 256], strides = [1, 1]} : vector<8x512xf32> to vector<8x256xf32>
    %404 = arith.addf %399, %403 : vector<8x256xf32>
    %c0_152 = arith.constant 0 : index
    %c0_153 = arith.constant 0 : index
    %c256_154 = arith.constant 256 : index
    %405 = vector.load %arg11[%c0_152, %c0_153, %c256_154] : memref<1x8x512xf32, #tpu.memory_space<vmem>>, vector<1x8x256xf32>
    %406 = vector.shape_cast %405 : vector<1x8x256xf32> to vector<8x256xf32>
    %407 = vector.shape_cast %404 : vector<8x256xf32> to vector<1x8x256xf32>
    tpu.vector_store %arg11[%c0_152, %c0_153, %c256_154], %407 {strides = array<i32>} : memref<1x8x512xf32, #tpu.memory_space<vmem>>, vector<1x8x256xf32>,
    return
  }
  func.func @transform_0(%arg0: i32) -> (i32, i32, i32) {
    %c0_i32 = arith.constant 0 : i32
    %c0_i32_0 = arith.constant 0 : i32
    %c0_i32_1 = arith.constant 0 : i32
    return %arg0, %c0_i32, %c0_i32_0 : i32, i32, i32
  }
  func.func @transform_1(%arg0: i32) -> (i32, i32) {
    %c0_i32 = arith.constant 0 : i32
    %c0_i32_0 = arith.constant 0 : i32
    %c0_i32_1 = arith.constant 0 : i32
    return %c0_i32, %c0_i32_0 : i32, i32
  }
  func.func @transform_2(%arg0: i32) -> (i32, i32, i32) {
    %c0_i32 = arith.constant 0 : i32
    %c0_i32_0 = arith.constant 0 : i32
    %c0_i32_1 = arith.constant 0 : i32
    %c0_i32_2 = arith.constant 0 : i32
    return %c0_i32, %c0_i32_0, %c0_i32_1 : i32, i32, i32
  }
  func.func @transform_3(%arg0: i32) -> (i32, i32) {
    %c0_i32 = arith.constant 0 : i32
    %c0_i32_0 = arith.constant 0 : i32
    %c0_i32_1 = arith.constant 0 : i32
    return %c0_i32, %c0_i32_0 : i32, i32
  }
  func.func @transform_4(%arg0: i32) -> (i32, i32, i32) {
    %c0_i32 = arith.constant 0 : i32
    %c0_i32_0 = arith.constant 0 : i32
    %c0_i32_1 = arith.constant 0 : i32
    %c0_i32_2 = arith.constant 0 : i32
    return %c0_i32, %c0_i32_0, %c0_i32_1 : i32, i32, i32
  }
  func.func @transform_5(%arg0: i32) -> (i32, i32) {
    %c0_i32 = arith.constant 0 : i32
    %c0_i32_0 = arith.constant 0 : i32
    %c0_i32_1 = arith.constant 0 : i32
    return %c0_i32, %c0_i32_0 : i32, i32
  }
  func.func @transform_6(%arg0: i32) -> (i32, i32) {
    %c0_i32 = arith.constant 0 : i32
    %c0_i32_0 = arith.constant 0 : i32
    %c0_i32_1 = arith.constant 0 : i32
    return %c0_i32, %c0_i32_0 : i32, i32
  }
  func.func @transform_7(%arg0: i32) -> (i32, i32) {
    %c0_i32 = arith.constant 0 : i32
    %c0_i32_0 = arith.constant 0 : i32
    %c0_i32_1 = arith.constant 0 : i32
    return %c0_i32, %c0_i32_0 : i32, i32
  }
  func.func @transform_8(%arg0: i32) -> i32 {
    %c0_i32 = arith.constant 0 : i32
    %c0_i32_0 = arith.constant 0 : i32
    return %c0_i32 : i32
  }
  func.func @transform_9(%arg0: i32) -> i32 {
    %c0_i32 = arith.constant 0 : i32
    %c0_i32_0 = arith.constant 0 : i32
    return %c0_i32 : i32
  }
  func.func @transform_10(%arg0: i32) -> (i32, i32, i32) {
    %c0_i32 = arith.constant 0 : i32
    %c0_i32_0 = arith.constant 0 : i32
    %c0_i32_1 = arith.constant 0 : i32
    return %arg0, %c0_i32, %c0_i32_0 : i32, i32, i32
  }
  func.func @transform_11(%arg0: i32) -> (i32, i32, i32) {
    %c0_i32 = arith.constant 0 : i32
    %c0_i32_0 = arith.constant 0 : i32
    %c0_i32_1 = arith.constant 0 : i32
    return %arg0, %c0_i32, %c0_i32_0 : i32, i32, i32
  }
}

</mosaic_0001>

<bundles_post_ra>
// kernel: tpu_custom_call.1
= control target key start
LH: loop header
LB: loop body
LE: loop exit
PB: predicated region body
PF: predicated region fallthrough
CT: control target
= control target key end

     0   :  { %s23104_s0 = inlined_call_operand.vmem [shape: f32[2,8,512], index: 0, kind: input, shape index: {}]   ;;  %s23105_s1 = inlined_call_operand.vmem [shape: f32[8,512], index: 1, kind: input, shape index: {}]   ;;  %s23106_s2 = inlined_call_operand.vmem [shape: f32[9,8,8], index: 2, kind: input, shape index: {}]   ;;  %s23107_s3 = inlined_call_operand.vmem [shape: f32[8,1], index: 3, kind: input, shape index: {}]   ;;  %s23108_s4 = inlined_call_operand.vmem [shape: f32[9,8,8], index: 4, kind: input, shape index: {}]   ;;  %s23109_s5 = inlined_call_operand.vmem [shape: f32[8,1], index: 5, kind: input, shape index: {}]   ;;  %s23110_s6 = inlined_call_operand.vmem [shape: f32[2,8], index: 6, kind: input, shape index: {}]   ;;  %s23111_s7 = inlined_call_operand.vmem [shape: f32[8,2], index: 7, kind: input, shape index: {}]   ;;  %s23112_s8 = inlined_call_operand.vmem [shape: f32[18], index: 8, kind: input, shape index: {}]   ;;  %s23113_s9 = inlined_call_operand.vmem [shape: f32[9], index: 9, kind: input, shape index: {}]   ;;  %s23114_s10 = inlined_call_operand.hbm [shape: f32[2,8,512], index: 10, kind: output, shape index: {0}]   ;;  %s23115_s11 = inlined_call_operand.hbm [shape: f32[2,8,512], index: 11, kind: output, shape index: {1}]  }
   0x1   :  { %23187 = sst [smem:[#allocation88_spill]] %s23104_s0 }
   0x2   :  { %23188 = sst [smem:[#allocation89_spill]] %s23106_s2 }
   0x3   :  { %23189 = sst [smem:[#allocation90_spill]] %s23107_s3 }
   0x4   :  { %23190 = sst [smem:[#allocation91_spill]] %s23108_s4 }
   0x5   :  { %23191 = sst [smem:[#allocation92_spill]] %s23109_s5 }
   0x6   :  { %23192 = sst [smem:[#allocation93_spill]] %s23112_s8 }
   0x7   :  { %23193 = sst [smem:[#allocation94_spill]] %s23113_s9 }
   0x8   :  { %17 = vsyncpa [#allocation4], 0 }
   0x9   :  { %18 = vsyncpa [#allocation6], 0 }
   0xa   :  { %19 = vsyncpa [#allocation3], 0 }
   0xb   :  { %21 = vsyncpa [#allocation3 + $0x1], 0 }
   0xc   :  { %22 = vsyncpa [#allocation9], 0 }
   0xd   :  { %24 = vsyncpa [#allocation9 + $0x1], 0  ;;  %s19999_s17 = smov 0   ;;  %s20001_s18 = smov 0  }
   0xe   :  { %s20003_s19 = smov 0   ;;  %s20005_s20 = smov 0  }
   0xf LB: > { %s20020_s21 = sadd.s32 4294967295, %s19921_s20   ;;  %s19533_s22 = sadd.s32 4294967294, %s19921_s20   ;;  %s19921_s20 = sphi %s20005_s20, %s23394_s20   ;;  %s19917_s19 = sphi %s20003_s19, %s23393_s19   ;;  %s19913_s18 = sphi %s20001_s18, %s23392_s18   ;;  %s19909_s17 = sphi %s19999_s17, %s23391_s17  }
  0x10   : > { %s20024_s23 = sadd.s32 1, %s19921_s20   ;;  %s252_s24 = sadd.s32 1, %s19917_s19 }
  0x11   : > { %s249_s25 = ssub.s32 %s19921_s20, %s20024_s23  ;;  %p262_p0 = scmp.ne.s32.totalorder %s19917_s19, %s19913_s18 }
  0x12   : > { %p250_p1 = scmp.eq.s32.totalorder %s249_s25, 0  ;;  %p263_p2 = scmp.eq.s32.totalorder %s20020_s21, 1 }
  0x13   : > { %p268_p3 = scmp.ne.s32.totalorder %s19913_s18, %s19909_s17  ;;  %p269_p4 = scmp.eq.s32.totalorder %s19533_s22, 1 }
  0x14   : > { %s20035_s26 = scalar_select %p250_p1, %s19917_s19, %s252_s24  }
  0x15   : > { %p20037_p5 = por %p263_p2, %p262_p0  ;;  %p20041_p6 = por %p269_p4, %p268_p3 }
  0x16   : > { %p19534_p7 = scmp.ge.s32.totalorder %s19921_s20, 1  ;;  %p302_p8 = scmp.lt.s32.totalorder %s19921_s20, 3 }
  0x17   : > { %s23194_s27 = scalar_select %p20037_p5, 1, 0 }
  0x18   : > { %s23195_s28 = scalar_select %p20041_p6, 1, 0 }
  0x19   : > { %p23116_p9 = scmp.eq.s32.totalorder %s20020_s21, 0  ;;  %p20048_p10 = pnand %p19534_p7, %p302_p8 }
  0x1a   : > { %s23197_s8 = sld [smem:[#allocation93_spill]] }
  0x1b   : > { %s23196_s29 = scalar_select %p20048_p10, 1, 0 }
  0x1c   : > { %p19693_p11 = pneg %p20048_p10  ;;  %s23198_s9 = sld [smem:[#allocation94_spill]] }
  0x1e   : > { %p20062_p12 = pnand %p23116_p9, %p19693_p11 }
  0x20   : > { %s336_s13 = sshll.u32 %s23197_s8, 4  ;;  %p19795_p0 = pneg %p20062_p12  ;;  %s337_s13 = int_to_ptr.vmem [resolvable:$true] %s336_s13 }
  0x21   : > { %s19793_s24 = scalar_lea.vmem %s337_s13, 16  ;;  %p19801_p3 = scmp.lt.s32.totalorder %s337_s13, %s337_s13 }
  0x22   : > { %s347_s16 = sshll.u32 %s23198_s9, 4  ;;  %p19794_p13 = scmp.ne.s32.totalorder %s337_s13, %s19793_s24  ;;  %s348_s16 = int_to_ptr.vmem [resolvable:$true] %s347_s16 }
  0x23   : > { %p19802_p4 = scmp.lt.s32.totalorder %s19793_s24, %s19793_s24 }
  0x24   : > { %p19796_p1 = pnand %p19795_p0, %p19794_p13 }
  0x25   : > { %p19803_p7 = por %p19802_p4, %p19801_p3 }
  0x26   : > { %p19797_p2 = pneg %p19796_p1 }
  0x28   : > { %p19804_p8 = pnand %p19803_p7, %p19797_p2 }
  0x2a   : > { %19807 = shalt.err (!%p19804_p8)
}
  0x2b   : > { %s19923_s25 = smov [#allocation2]   ;;  %s19808_s30 = scalar_lea.vmem %s348_s16, 16 }
  0x2c   : > { %19696 = dma.vmem_to_smem (!%p20062_p12), %s337_s13, 16, %s19923_s25, [#allocation4]  }
  0x2d   : > { %p19809_p11 = scmp.ne.s32.totalorder %s348_s16, %s19808_s30  ;;  %p19816_p5 = scmp.lt.s32.totalorder %s348_s16, %s348_s16 }
  0x2e   : > { %p19817_p10 = scmp.lt.s32.totalorder %s19808_s30, %s19808_s30 }
  0x2f   : > { %p19811_p9 = pnand %p19809_p11, %p19795_p0 }
  0x30   : > { %p19818_p13 = por %p19817_p10, %p19816_p5 }
  0x31   : > { %p19812_p6 = pneg %p19811_p9 }
  0x33   : > { %p19819_p1 = pnand %p19818_p13, %p19812_p6 }
  0x35   : > { %19822 = shalt.err (!%p19819_p1)
}
  0x36   : > { %s19924_s12 = smov [#allocation5]   ;;  %p23200_p2 = scmp.ne.s32.totalorder %s23196_s29, 0 }
  0x37   : > { %19699 = dma.vmem_to_smem (!%p20062_p12), %s348_s16, 16, %s19924_s12, [#allocation6]  }
  0x38   : > { %368 = sbr.rel (%p23200_p2) target bundleno = 2062 (0x80e), region = 60 }
  0x3d   : > { %p23201_p3 = scmp.eq.s32.totalorder %s20020_s21, 0 }
  0x3f   : > { %19892 = dma.done.wait (%p23201_p3), [#allocation4], 16   ;;  %p23202_p4 = pmov %p23201_p3 }
  0x40   : > { %p23203_p9 = pmov %p23201_p3 }
  0x41   : > { %19894 = vsyncadd (%p23202_p4), [#allocation4], 4294967280 }
  0x42   : > { %19896 = dma.done.wait (%p23203_p9), [#allocation6], 16   ;;  %p23204_p5 = pmov %p23201_p3 }
  0x44   : > { %19898 = vsyncadd (%p23204_p5), [#allocation6], 4294967280 }
  0x45   : > { %378 = sfence }
  0x46   : > { %p418_p6 = scmp.lt.s32.totalorder %s20020_s21, 1  ;;  %v23129_v0 = vmov 0.0   ;;  %s23205_s0 = sld [smem:[#allocation88_spill]]  ;;  %v442_v5 = vlaneseq  ;;  %vm469_vm0 = vcmask 64512   ;;  %v20183_v12 = vld [vmem:[%s23105_s1] sm:$0xff]  ;;  %v20196_v15 = vld [vmem:[%s23105_s1 + $0x18] sm:$0xff] }
  0x47   : > { %539 = vmatprep.mubr.f32.mxu0 %v23129_v0  ;;  %625 = vmatprep.mubr.f32.mxu1 %v23129_v0  ;;  %s23167_s22 = smov 17   ;;  %s23171_s24 = smov 16   ;;  %v20201_v16 = vld [vmem:[%s23105_s1 + $0x8] sm:$0xff]  ;;  %v20206_v19 = vld [vmem:[%s23105_s1 + $0x10] sm:$0xff]  ;;  %vm19935_vm9 = vmmov 0   ;;  %vm18209_vm14 = vcmask 15360  }
  0x48   : > { %s419_s13 = scalar_select %p418_p6, %s20020_s21, 1  ;;  %v20171_v8 = vshrl.u32 %v442_v5, 7  ;;  %v20175_v10 = vand.u32 127, %v442_v5  ;;  %vm18213_vm15 = vcmask 1041408  }
  0x49   : > { %s23169_s25 = smov 15   ;;  %s23127_s30 = smov 1  }
  0x4a   : > { %s19594_s14 = sshll.u32 %s419_s13, 5  ;;  %s23123_s12 = smov 127   ;;  %23207 = vst [vmem:[#allocation14_spill] sm:$0xff] %v20175_v10  ;;  %v20178_v11 = vsub.s32 0, %v20171_v8  ;;  %vm444_vm1 = vcmp.lt.s32.totalorder %v20175_v10, 17  ;;  %vm2346_vm2 = vcmp.lt.s32.totalorder %v20175_v10, 16 }
  0x4b   : > { %s23119_s13 = smov 113   ;;  %s23125_s29 = smov 111   ;;  %vm3318_vm3 = vcmp.lt.s32.totalorder %v20175_v10, 15  ;;  %vm4290_vm4 = vcmp.lt.s32.totalorder %v20175_v10, 1  ;;  %vm5262_vm5 = vcmp.lt.s32.totalorder %v20175_v10, 127  ;;  %vm6234_vm6 = vcmp.lt.s32.totalorder %v20175_v10, 113 }
  0x4c   : > { %s20089_s16 = scalar_lea.vmem %s23205_s0, %s19594_s14  ;;  %s23121_s14 = smov 112   ;;  %23208 = vst [vmem:[#allocation15_spill] sm:$0xff] %v20178_v11  ;;  %v20191_v14 = vrot.slane %v20183_v12, %v20178_v11  ;;  %v20216_v23 = vrot.slane %v20196_v15, %v20178_v11  ;;  %v20220_v24 = vrot.slane %v20201_v16, %v20178_v11  ;;  %v20224_v25 = vrot.slane %v20206_v19, %v20178_v11 }
  0x4d   : > { %v20092_v1 = vld [vmem:[%s20089_s16 + $0x18] sm:$0xff]  ;;  %v20095_v2 = vld [vmem:[%s20089_s16] sm:$0xff]  ;;  %v20102_v3 = vld [vmem:[%s20089_s16 + $0x10] sm:$0xff]  ;;  %s23206_s2 = sld [smem:[#allocation89_spill]]  ;;  %vm7206_vm7 = vcmp.lt.s32.totalorder %v20175_v10, 112  ;;  %vm8178_vm8 = vcmp.lt.s32.totalorder %v20175_v10, 111 }
  0x4e   : > { %440 = vrot.lane.b32.xlu1 %v20092_v1, %s23167_s22  ;;  %434 = vrot.lane.b32.xlu0 %v20095_v2, %s23167_s22  ;;  %v20105_v4 = vld [vmem:[%s20089_s16 + $0x8] sm:$0xff]  ;;  %23209 = vst [vmem:[#allocation16_spill] sm:$0xff] %v20191_v14  ;;  %23210 = vst [vmem:[#allocation17_spill] sm:$0xff] %v20216_v23  ;;  %v20259_v57 = vand.u32 4294901760, %v20095_v2  ;;  %s23241_s3 = sld [smem:[#allocation90_spill]]  ;;  %s23323_s15 = smov 127  }
  0x4f   : > { %23211 = vst [vmem:[#allocation18_spill] sm:$0xff] %v20220_v24  ;;  %23212 = vst [vmem:[#allocation19_spill] sm:$0xff] %v20224_v25  ;;  %v20254_v55 = vand.u32 4294901760, %v20105_v4  ;;  %s23327_s5 = sld [smem:[#allocation92_spill]]  ;;  %p23389_p12 = scmp.ne.s32.totalorder %s23194_s27, 0 }
  0x50   : > { %v1521_v63 = vsub.f32 %v20095_v2, %v20259_v57  ;;  %s23328_s4 = sld [smem:[#allocation91_spill]] }
  0x51   : > { %v1515_v60 = vsub.f32 %v20105_v4, %v20254_v55  ;;  %s22164_s0 = sld [smem:[#allocation2 + $0x3]] }
  0x52   : > { %438 = vrot.lane.b32.xlu1 %v20102_v3, %s23167_s22  ;;  %436 = vrot.lane.b32.xlu0 %v20105_v4, %s23167_s22  ;;  %s22202_s8 = sld [smem:[#allocation2 + $0x4]] }
  0x53   : > { %v433_v6 = vld [vmem:[%s23206_s2] sm:$0xff]  ;;  %s22209_s9 = sld [smem:[#allocation2 + $0xd]] }
  0x54   : > { %v471_v7 = vsel %vm469_vm0, %v433_v6, 0  ;;  %v19545_v43 = vld [vmem:[%s23206_s2 + $0x20] sm:$0xff] }
  0x55   : > { %v20173_v9 = vand.u32 4294901760, %v471_v7  ;;  %v1404_v48 = vsel %vm469_vm0, %v19545_v43, 0 }
  0x56   : > { %2338 = vrot.lane.b32.xlu0 %v20095_v2, %s23171_s24  ;;  %2340 = vrot.lane.b32.xlu1 %v20105_v4, %s23171_s24  ;;  %v20250_v53 = vand.u32 4294901760, %v1404_v48 }
  0x57   : > { %v20186_v13 = vsub.f32 %v471_v7, %v20173_v9  ;;  %v1522_v7 = vand.u32 4294901760, %v1521_v63 }
  0x58   : > { %v20262_v58 = vsub.f32 %v1404_v48, %v20250_v53 }
  0x59   : > { %v20209_v20 = vand.u32 4294901760, %v20186_v13 }
  0x5a   : > { %2344 = vrot.lane.b32.xlu0 %v20092_v1, %s23171_s24  ;;  %2342 = vrot.lane.b32.xlu1 %v20102_v3, %s23171_s24  ;;  %v20271_v62 = vand.u32 4294901760, %v20262_v58 }
  0x5b   : > { %v543_v29 = vsub.f32 %v20186_v13, %v20209_v20 }
  0x5c   : > { %v1476_v6 = vsub.f32 %v20262_v58, %v20271_v62 }
  0x5d   : > { %v544_v39 = vand.u32 4294901760, %v543_v29  ;;  %v19546_v29 = vld [vmem:[%s23206_s2 + $0x8] sm:$0xff] }
  0x5e   : > { %3310 = vrot.lane.b32.xlu0 %v20095_v2, %s23169_s25  ;;  %3312 = vrot.lane.b32.xlu1 %v20105_v4, %s23169_s25 }
  0x62   : > { %3316 = vrot.lane.b32.xlu0 %v20092_v1, %s23169_s25  ;;  %3314 = vrot.lane.b32.xlu1 %v20102_v3, %s23169_s25 }
  0x66   : > { %4282 = vrot.lane.b32.xlu0 %v20095_v2, %s23127_s30  ;;  %4284 = vrot.lane.b32.xlu1 %v20105_v4, %s23127_s30 }
  0x6a   : > { %4288 = vrot.lane.b32.xlu0 %v20092_v1, %s23127_s30  ;;  %4286 = vrot.lane.b32.xlu1 %v20102_v3, %s23127_s30  ;;  %s23326_s30 = smov 111  }
  0x6e   : > { %5256 = vrot.lane.b32.xlu0 %v20105_v4, %s23123_s12  ;;  %5258 = vrot.lane.b32.xlu1 %v20102_v3, %s23123_s12 }
  0x72   : > { %5254 = vrot.lane.b32.xlu0 %v20095_v2, %s23123_s12  ;;  %5260 = vrot.lane.b32.xlu1 %v20092_v1, %s23123_s12  ;;  %s23324_s12 = smov 113  }
  0x76   : > { %6228 = vrot.lane.b32.xlu0 %v20105_v4, %s23119_s13  ;;  %6230 = vrot.lane.b32.xlu1 %v20102_v3, %s23119_s13 }
  0x7a   : > { %6226 = vrot.lane.b32.xlu0 %v20095_v2, %s23119_s13  ;;  %6232 = vrot.lane.b32.xlu1 %v20092_v1, %s23119_s13  ;;  %s23322_s13 = smov 1  }
  0x7e   : > { %7200 = vrot.lane.b32.xlu0 %v20105_v4, %s23121_s14  ;;  %7202 = vrot.lane.b32.xlu1 %v20102_v3, %s23121_s14 }
  0x82   : > { %7198 = vrot.lane.b32.xlu0 %v20095_v2, %s23121_s14  ;;  %7204 = vrot.lane.b32.xlu1 %v20092_v1, %s23121_s14  ;;  %s23325_s14 = smov 112  }
  0x86   : > { %8172 = vrot.lane.b32.xlu0 %v20105_v4, %s23125_s29  ;;  %8174 = vrot.lane.b32.xlu1 %v20102_v3, %s23125_s29  ;;  %v1516_v4 = vand.u32 4294901760, %v1515_v60 }
  0x8a   : > { %8170 = vrot.lane.b32.xlu0 %v20095_v2, %s23125_s29  ;;  %8176 = vrot.lane.b32.xlu1 %v20092_v1, %s23125_s29  ;;  %s19565_s29 = sld [smem:[#allocation2 + $0xb]] }
  0xc0   : > { %v441_v17 = vpop.permute.xlu1 %440  ;;  %v435_v18 = vpop.permute.xlu0 %434 }
  0xc1   : > { %v448_v21 = vsel %vm444_vm1, %v441_v17, %v435_v18 }
  0xc2   : > { %v465_v22 = vmul.f32 %v20191_v14, %v448_v21  ;;  %v1477_v21 = vand.u32 4294901760, %v1476_v6 }
  0xc4   : > { %v505_v26 = vand.u32 4294901760, %v465_v22  ;;  %v439_v27 = vpop.permute.xlu1 %438  ;;  %v437_v28 = vpop.permute.xlu0 %436 }
  0xc5   : > { %v445_v30 = vsel %vm444_vm1, %v439_v27, %v441_v17  ;;  %v446_v31 = vsel %vm444_vm1, %v437_v28, %v439_v27  ;;  %v447_v32 = vsel %vm444_vm1, %v435_v18, %v437_v28  ;;  %v1517_v17 = vsub.f32 %v1515_v60, %v1516_v4 }
  0xc6   : > { %v588_v33 = vsub.f32 %v465_v22, %v505_v26  ;;  %v468_v34 = vmul.f32 %v20216_v23, %v445_v30  ;;  %v466_v35 = vmul.f32 %v20220_v24, %v447_v32  ;;  %v467_v36 = vmul.f32 %v20224_v25, %v446_v31 }
  0xc7   : > { %v20287_v18 = vsub.s32 1, %v20171_v8  ;;  %v1523_v22 = vsub.f32 %v1521_v63, %v1522_v7  ;;  %v1518_v28 = vand.u32 4294901760, %v1517_v17 }
  0xc8   : > { %v20237_v37 = vand.u32 4294901760, %v468_v34  ;;  %v503_v38 = vand.u32 4294901760, %v466_v35  ;;  %v589_v40 = vand.u32 4294901760, %v588_v33  ;;  %v20239_v42 = vand.u32 4294901760, %v467_v36  ;;  %v2339_v2 = vpop.permute.xlu0 %2338  ;;  %v20300_v27 = vpop.permute.xlu1 %2340 }
  0xc9   : > { %v20310_v30 = vrot.slane %v20201_v16, %v20287_v18  ;;  %v1524_v32 = vand.u32 4294901760, %v1523_v22 }
  0xca   : > { %504 = vmatprep.subr.mxu0 %v503_v38  ;;  %v582_v41 = vsub.f32 %v466_v35, %v503_v38  ;;  %v1047_v45 = vsub.f32 %v468_v34, %v20237_v37  ;;  %v590_v46 = vsub.f32 %v588_v33, %v589_v40  ;;  %v1053_v49 = vsub.f32 %v467_v36, %v20239_v42 }
  0xcb   : > { %506 = vmatpush1.msra.mxu0 %v505_v26  ;;  %23213 = vst [vmem:[#allocation20_spill] sm:$0xff] %v20310_v30  ;;  %v2372_v35 = vsel %vm469_vm0, %v19546_v29, 0 }
  0xcc   : > { %545 = vmatmul.mubr.f32.vlgmr.msra.gmra.mxu0 %v544_v39  ;;  %665 = vmatprep.subr.mxu0 %v582_v41  ;;  %v583_v44 = vand.u32 4294901760, %v582_v41  ;;  %v1048_v51 = vand.u32 4294901760, %v1047_v45  ;;  %v591_v52 = vand.u32 4294901760, %v590_v46  ;;  %v1054_v54 = vand.u32 4294901760, %v1053_v49  ;;  %v2345_v34 = vpop.permute.xlu0 %2344 }
  0xcd   : > { %668 = vmatpush1.msra.mxu0 %v588_v33  ;;  %701 = vmatprep.mubr.f32.mxu0 %v23129_v0  ;;  %v2349_v33 = vsel %vm2346_vm2, %v2339_v2, %v20300_v27  ;;  %v20355_v46 = vrot.slane %v20196_v15, %v20287_v18 }
  0xce   : > { %819 = vmatprep.subr.mxu0 %v583_v44  ;;  %v584_v47 = vsub.f32 %v582_v41, %v583_v44  ;;  %v1049_v56 = vsub.f32 %v1047_v45, %v1048_v51  ;;  %v1055_v59 = vsub.f32 %v1053_v49, %v1054_v54  ;;  %v2368_v36 = vmul.f32 %v20310_v30, %v2349_v33  ;;  %v2343_v44 = vpop.permute.xlu1 %2342 }
  0xcf   : > { %23215 = vst [vmem:[#allocation22_spill] sm:$0xff] %v20355_v46 }
  0xd0   : > { %704 = vmatmul.mubr.f32.vlgmr.msra.gmra.mxu0 %v20186_v13  ;;  %v585_v50 = vand.u32 4294901760, %v584_v47  ;;  %v1050_v61 = vand.u32 4294901760, %v1049_v56  ;;  %v1056_v5 = vand.u32 4294901760, %v1055_v59 }
  0xd1   : > { %823 = vmatpush1.msra.mxu0 %v589_v40  ;;  %856 = vmatprep.mubr.f32.mxu0 %v23129_v0  ;;  %v20338_v40 = vand.u32 4294901760, %v2368_v36 }
  0xd2   : > { %969 = vmatprep.subr.mxu0 %v20237_v37  ;;  %586 = vmatprep.subr.mxu1 %v585_v50 }
  0xd3   : > { %592 = vmatpush1.msra.mxu1 %v591_v52  ;;  %v2483_v48 = vsub.f32 %v2368_v36, %v20338_v40 }
  0xd4   : > { %627 = vmatmul.mubr.f32.vlgmr.msra.gmra.mxu1 %v20173_v9  ;;  %741 = vmatprep.subr.mxu1 %v503_v38 }
  0xd5   : > { %858 = vmatmul.mubr.f32.vlgmr.msra.gmra.mxu0 %v20173_v9  ;;  %743 = vmatpush1.msra.mxu1 %v505_v26 }
  0xd6   : > { %971 = vmatpush1.msra.mxu0 %v20239_v42  ;;  %895 = vmatprep.subr.mxu1 %v503_v38 }
  0xd7   : > { %1130 = vmatprep.subr.mxu0 %v1047_v45  ;;  %776 = vmatprep.mubr.f32.mxu1 %v23129_v0 }
  0xd8   : > { %1004 = vmatprep.mubr.f32.mxu0 %v23129_v0  ;;  %780 = vmatmul.mubr.f32.vlgmr.msra.gmra.mxu1 %v20209_v20 }
  0xd9   : > { %897 = vmatpush1.msra.mxu1 %v505_v26  ;;  %1010 = vmatmul.mubr.f32.vlgmr.msra.gmra.mxu0 %v544_v39  ;;  %v20295_v26 = vand.u32 4294901760, %v20102_v3  ;;  %v20332_v39 = vand.u32 4294901760, %v2372_v35 }
  0xda   : > { %1133 = vmatpush1.msra.mxu0 %v1053_v49  ;;  %1051 = vmatprep.subr.mxu1 %v1050_v61  ;;  %v2347_v49 = vsel %vm2346_vm2, %v2343_v44, %v2345_v34 }
  0xdb   : > { %1284 = vmatprep.subr.mxu0 %v1048_v51  ;;  %930 = vmatprep.mubr.f32.mxu1 %v23129_v0  ;;  %v20345_v43 = vsub.f32 %v2372_v35, %v20332_v39  ;;  %v2370_v56 = vmul.f32 %v20355_v46, %v2347_v49 }
  0xdc   : > { %1166 = vmatprep.mubr.f32.mxu0 %v23129_v0  ;;  %932 = vmatmul.mubr.f32.vlgmr.msra.gmra.mxu1 %v20173_v9 }
  0xdd   : > { %1057 = vmatpush1.msra.mxu1 %v1056_v5  ;;  %1169 = vmatmul.mubr.f32.vlgmr.msra.gmra.mxu0 %v20186_v13  ;;  %v20290_v13 = vand.u32 4294901760, %v20092_v1  ;;  %v20363_v51 = vand.u32 4294901760, %v20345_v43  ;;  %v20384_v5 = vand.u32 4294901760, %v2370_v56 }
  0xde   : > { %1288 = vmatpush1.msra.mxu0 %v1054_v54  ;;  %1206 = vmatprep.subr.mxu1 %v20237_v37  ;;  %v20369_v54 = vrot.slane %v20206_v19, %v20287_v18 }
  0xdf   : > { %1090 = vmatprep.mubr.f32.mxu1 %v23129_v0  ;;  %1321 = vmatprep.mubr.f32.mxu0 %v23129_v0  ;;  %v1980_v31 = vsub.f32 %v20092_v1, %v20290_v13  ;;  %v20325_v1 = vrot.slane %v20183_v12, %v20287_v18  ;;  %v2444_v59 = vsub.f32 %v20345_v43, %v20363_v51  ;;  %v19547_v18 = vld [vmem:[%s23206_s2 + $0x10] sm:$0xff] }
  0xe0   : > { %1092 = vmatmul.mubr.f32.vlgmr.msra.gmra.mxu1 %v20173_v9  ;;  %1437 = vmatprep.subr.mxu0 %v20254_v55  ;;  %23216 = vst [vmem:[#allocation23_spill] sm:$0xff] %v20369_v54  ;;  %v3344_v29 = vsel %vm469_vm0, %v19547_v18, 0  ;;  %v19548_v18 = vld [vmem:[%s23206_s2 + $0x18] sm:$0xff] }
  0xe1   : > { %1208 = vmatpush1.msra.mxu1 %v20239_v42  ;;  %1323 = vmatmul.mubr.f32.vlgmr.msra.gmra.mxu0 %v20173_v9  ;;  %23214 = vst [vmem:[#allocation21_spill] sm:$0xff] %v20325_v1  ;;  %v2445_v6 = vand.u32 4294901760, %v2444_v59 }
  0xe2   : > { %1360 = vmatprep.subr.mxu1 %v20237_v37  ;;  %1241 = vmatprep.mubr.f32.mxu1 %v23129_v0  ;;  %v1981_v37 = vand.u32 4294901760, %v1980_v31 }
  0xe3   : > { %1439 = vmatpush1.msra.mxu0 %v20259_v57  ;;  %1472 = vmatprep.mubr.f32.mxu0 %v23129_v0 }
  0xe4   : > { %1245 = vmatmul.mubr.f32.vlgmr.msra.gmra.mxu1 %v20209_v20  ;;  %1598 = vmatprep.subr.mxu0 %v1515_v60  ;;  %v1986_v20 = vsub.f32 %v20102_v3, %v20295_v26  ;;  %v2350_v3 = vsel %vm2346_vm2, %v2345_v34, %v2339_v2  ;;  %v1982_v41 = vsub.f32 %v1980_v31, %v1981_v37 }
  0xe5   : > { %1362 = vmatpush1.msra.mxu1 %v20239_v42  ;;  %1478 = vmatmul.mubr.f32.vlgmr.msra.gmra.mxu0 %v1477_v21 }
  0xe6   : > { %1395 = vmatprep.mubr.f32.mxu1 %v23129_v0  ;;  %1601 = vmatpush1.msra.mxu0 %v1521_v63  ;;  %v1987_v38 = vand.u32 4294901760, %v1986_v20  ;;  %v1983_v47 = vand.u32 4294901760, %v1982_v41  ;;  %v3311_v63 = vpop.permute.xlu0 %3310 }
  0xe7   : > { %1634 = vmatprep.mubr.f32.mxu0 %v23129_v0  ;;  %1519 = vmatprep.subr.mxu1 %v1518_v28 }
  0xe8   : > { %1397 = vmatmul.mubr.f32.vlgmr.msra.gmra.mxu1 %v20173_v9  ;;  %1752 = vmatprep.subr.mxu0 %v1516_v4  ;;  %v2367_v9 = vmul.f32 %v20325_v1, %v2350_v3  ;;  %v1988_v42 = vsub.f32 %v1986_v20, %v1987_v38  ;;  %v20389_v4 = vsub.s32 2, %v20171_v8 }
  0xe9   : > { %1637 = vmatmul.mubr.f32.vlgmr.msra.gmra.mxu0 %v20262_v58  ;;  %1525 = vmatpush1.msra.mxu1 %v1524_v32 }
  0xea   : > { %1558 = vmatprep.mubr.f32.mxu1 %v23129_v0  ;;  %1756 = vmatpush1.msra.mxu0 %v1522_v7  ;;  %v20349_v45 = vand.u32 4294901760, %v2367_v9  ;;  %v1989_v50 = vand.u32 4294901760, %v1988_v42  ;;  %v20396_v7 = vpop.permute.xlu1 %3312  ;;  %v20408_v22 = vrot.slane %v20201_v16, %v20389_v4  ;;  %v3317_v28 = vpop.permute.xlu0 %3316  ;;  %v20420_v32 = vrot.slane %v20183_v12, %v20389_v4 }
  0xeb   : > { %1789 = vmatprep.mubr.f32.mxu0 %v23129_v0  ;;  %1674 = vmatprep.subr.mxu1 %v20254_v55  ;;  %v3322_v33 = vsel %vm3318_vm3, %v3317_v28, %v3311_v63  ;;  %v20451_v42 = vrot.slane %v20196_v15, %v20389_v4 }
  0xec   : > { %1560 = vmatmul.mubr.f32.vlgmr.msra.gmra.mxu1 %v20250_v53  ;;  %1902 = vmatprep.subr.mxu0 %v20290_v13  ;;  %v2489_v52 = vsub.f32 %v2367_v9, %v20349_v45  ;;  %23217 = vst [vmem:[#allocation24_spill] sm:$0xff] %v20408_v22  ;;  %23218 = vst [vmem:[#allocation25_spill] sm:$0xff] %v20420_v32 }
  0xed   : > { %1791 = vmatmul.mubr.f32.vlgmr.msra.gmra.mxu0 %v20250_v53  ;;  %1676 = vmatpush1.msra.mxu1 %v20259_v57  ;;  %23219 = vst [vmem:[#allocation26_spill] sm:$0xff] %v20451_v42 }
  0xee   : > { %1709 = vmatprep.mubr.f32.mxu1 %v23129_v0  ;;  %1904 = vmatpush1.msra.mxu0 %v20295_v26  ;;  %v2490_v61 = vand.u32 4294901760, %v2489_v52 }
  0xef   : > { %1937 = vmatprep.mubr.f32.mxu0 %v23129_v0  ;;  %1828 = vmatprep.subr.mxu1 %v20254_v55  ;;  %v2348_v55 = vsel %vm2346_vm2, %v20300_v27, %v2343_v44  ;;  %v2948_v27 = vsub.f32 %v2370_v56, %v20384_v5 }
  0xf0   : > { %1713 = vmatmul.mubr.f32.vlgmr.msra.gmra.mxu1 %v20271_v62  ;;  %2063 = vmatprep.subr.mxu0 %v1980_v31  ;;  %v2369_v60 = vmul.f32 %v20369_v54, %v2348_v55  ;;  %v2491_v17 = vsub.f32 %v2489_v52, %v2490_v61 }
  0xf1   : > { %1943 = vmatmul.mubr.f32.vlgmr.msra.gmra.mxu0 %v1477_v21  ;;  %1830 = vmatpush1.msra.mxu1 %v20259_v57  ;;  %v2484_v57 = vand.u32 4294901760, %v2483_v48  ;;  %v2949_v34 = vand.u32 4294901760, %v2948_v27 }
  0xf2   : > { %1863 = vmatprep.mubr.f32.mxu1 %v23129_v0  ;;  %2066 = vmatpush1.msra.mxu0 %v1986_v20  ;;  %v20398_v2 = vand.u32 4294901760, %v2369_v60  ;;  %v2492_v31 = vand.u32 4294901760, %v2491_v17  ;;  %v20428_v20 = vand.u32 4294901760, %v3344_v29 }
  0xf3   : > { %2099 = vmatprep.mubr.f32.mxu0 %v23129_v0  ;;  %2217 = vmatprep.subr.mxu0 %v1981_v37  ;;  %v2950_v3 = vsub.f32 %v2948_v27, %v2949_v34 }
  0xf4   : > { %1865 = vmatmul.mubr.f32.vlgmr.msra.gmra.mxu1 %v20250_v53  ;;  %1984 = vmatprep.subr.mxu1 %v1983_v47  ;;  %v20441_v37 = vsub.f32 %v3344_v29, %v20428_v20  ;;  %v4316_v29 = vsel %vm469_vm0, %v19548_v18, 0 }
  0xf5   : > { %2102 = vmatmul.mubr.f32.vlgmr.msra.gmra.mxu0 %v20262_v58  ;;  %1990 = vmatpush1.msra.mxu1 %v1989_v50  ;;  %v2485_v58 = vsub.f32 %v2483_v48, %v2484_v57  ;;  %v2951_v44 = vand.u32 4294901760, %v2950_v3  ;;  %v20464_v50 = vrot.slane %v20206_v19, %v20389_v4 }
  0xf6   : > { %2221 = vmatpush1.msra.mxu0 %v1987_v38  ;;  %2023 = vmatprep.mubr.f32.mxu1 %v23129_v0  ;;  %v3315_v38 = vpop.permute.xlu1 %3314 }
  0xf7   : > { %2254 = vmatprep.mubr.f32.mxu0 %v23129_v0  ;;  %2405 = vmatprep.subr.mxu0 %v20338_v40  ;;  %v2486_v21 = vand.u32 4294901760, %v2485_v58  ;;  %23220 = vst [vmem:[#allocation27_spill] sm:$0xff] %v20464_v50  ;;  %v20485_v58 = vsub.s32 3, %v20171_v8 }
  0xf8   : > { %2025 = vmatmul.mubr.f32.vlgmr.msra.gmra.mxu1 %v20250_v53  ;;  %2139 = vmatprep.subr.mxu1 %v20290_v13 }
  0xf9   : > { %2256 = vmatmul.mubr.f32.vlgmr.msra.gmra.mxu0 %v20250_v53  ;;  %2141 = vmatpush1.msra.mxu1 %v20295_v26 }
  0xfa   : > { %2407 = vmatpush1.msra.mxu0 %v20349_v45  ;;  %2174 = vmatprep.mubr.f32.mxu1 %v23129_v0 }
  0xfb   : > { %2566 = vmatprep.subr.mxu0 %v2483_v48  ;;  %2293 = vmatprep.subr.mxu1 %v20290_v13  ;;  %v3321_v13 = vsel %vm3318_vm3, %v3311_v63, %v20396_v7  ;;  %v20459_v48 = vand.u32 4294901760, %v20441_v37 }
  0xfc   : > { %2440 = vmatprep.mubr.f32.mxu0 %v23129_v0  ;;  %2178 = vmatmul.mubr.f32.vlgmr.msra.gmra.mxu1 %v20271_v62  ;;  %v2954_v62 = vsub.f32 %v2369_v60, %v20398_v2 }
  0xfd   : > { %2295 = vmatpush1.msra.mxu1 %v20295_v26  ;;  %2446 = vmatmul.mubr.f32.vlgmr.msra.gmra.mxu0 %v2445_v6  ;;  %v3340_v26 = vmul.f32 %v20408_v22, %v3321_v13 }
  0xfe   : > { %2569 = vmatpush1.msra.mxu0 %v2489_v52  ;;  %2487 = vmatprep.subr.mxu1 %v2486_v21  ;;  %v2955_v35 = vand.u32 4294901760, %v2954_v62 }
  0xff   : > { %2720 = vmatprep.subr.mxu0 %v2484_v57  ;;  %2328 = vmatprep.mubr.f32.mxu1 %v23129_v0  ;;  %v20435_v36 = vand.u32 4294901760, %v3340_v26  ;;  %v3416_v57 = vsub.f32 %v20441_v37, %v20459_v48 }
 0x100   : > { %2602 = vmatprep.mubr.f32.mxu0 %v23129_v0  ;;  %2330 = vmatmul.mubr.f32.vlgmr.msra.gmra.mxu1 %v20250_v53  ;;  %v3339_v53 = vmul.f32 %v20420_v32, %v3322_v33  ;;  %v2956_v41 = vsub.f32 %v2954_v62, %v2955_v35 }
 0x101   : > { %2493 = vmatpush1.msra.mxu1 %v2492_v31  ;;  %2605 = vmatmul.mubr.f32.vlgmr.msra.gmra.mxu0 %v20345_v43  ;;  %v3455_v47 = vsub.f32 %v3340_v26, %v20435_v36  ;;  %v3417_v4 = vand.u32 4294901760, %v3416_v57  ;;  %v20516_v31 = vrot.slane %v20183_v12, %v20485_v58 }
 0x102   : > { %2724 = vmatpush1.msra.mxu0 %v2490_v61  ;;  %2642 = vmatprep.subr.mxu1 %v20338_v40  ;;  %v20445_v9 = vand.u32 4294901760, %v3339_v53  ;;  %v2957_v52 = vand.u32 4294901760, %v2956_v41  ;;  %v4283_v61 = vpop.permute.xlu0 %4282 }
 0x103   : > { %2870 = vmatprep.subr.mxu0 %v20384_v5  ;;  %2526 = vmatprep.mubr.f32.mxu1 %v23129_v0  ;;  %v3456_v56 = vand.u32 4294901760, %v3455_v47  ;;  %23222 = vst [vmem:[#allocation29_spill] sm:$0xff] %v20516_v31 }
 0x104   : > { %2757 = vmatprep.mubr.f32.mxu0 %v23129_v0  ;;  %2528 = vmatmul.mubr.f32.vlgmr.msra.gmra.mxu1 %v20332_v39  ;;  %v3461_v49 = vsub.f32 %v3339_v53, %v20445_v9 }
 0x105   : > { %2644 = vmatpush1.msra.mxu1 %v20349_v45  ;;  %2759 = vmatmul.mubr.f32.vlgmr.msra.gmra.mxu0 %v20332_v39 }
 0x106   : > { %2872 = vmatpush1.msra.mxu0 %v20398_v2  ;;  %2796 = vmatprep.subr.mxu1 %v20338_v40  ;;  %v3319_v40 = vsel %vm3318_vm3, %v3315_v38, %v3317_v28  ;;  %v3462_v60 = vand.u32 4294901760, %v3461_v49  ;;  %v4289_v28 = vpop.permute.xlu0 %4288 }
 0x107   : > { %3031 = vmatprep.subr.mxu0 %v2948_v27  ;;  %2677 = vmatprep.mubr.f32.mxu1 %v23129_v0  ;;  %v3342_v55 = vmul.f32 %v20451_v42, %v3319_v40  ;;  %v4294_v26 = vsel %vm4290_vm4, %v4289_v28, %v4283_v61  ;;  %v20547_v40 = vrot.slane %v20196_v15, %v20485_v58 }
 0x108   : > { %2905 = vmatprep.mubr.f32.mxu0 %v23129_v0  ;;  %2681 = vmatmul.mubr.f32.vlgmr.msra.gmra.mxu1 %v20363_v51  ;;  %v3463_v17 = vsub.f32 %v3461_v49, %v3462_v60 }
 0x109   : > { %2798 = vmatpush1.msra.mxu1 %v20349_v45  ;;  %2911 = vmatmul.mubr.f32.vlgmr.msra.gmra.mxu0 %v2445_v6  ;;  %v3320_v45 = vsel %vm3318_vm3, %v20396_v7, %v3315_v38  ;;  %v20480_v63 = vand.u32 4294901760, %v3342_v55  ;;  %v20492_v6 = vpop.permute.xlu1 %4284  ;;  %23223 = vst [vmem:[#allocation30_spill] sm:$0xff] %v20547_v40 }
 0x10a   : > { %3034 = vmatpush1.msra.mxu0 %v2954_v62  ;;  %2952 = vmatprep.subr.mxu1 %v2951_v44  ;;  %v3341_v59 = vmul.f32 %v20464_v50, %v3320_v45  ;;  %v4293_v13 = vsel %vm4290_vm4, %v4283_v61, %v20492_v6  ;;  %v3464_v62 = vand.u32 4294901760, %v3463_v17  ;;  %v20581_v17 = vsub.s32 4, %v20171_v8 }
 0x10b   : > { %3185 = vmatprep.subr.mxu0 %v2949_v34  ;;  %2831 = vmatprep.mubr.f32.mxu1 %v23129_v0  ;;  %v3920_v27 = vsub.f32 %v3342_v55, %v20480_v63  ;;  %v20524_v34 = vand.u32 4294901760, %v4316_v29 }
 0x10c   : > { %3067 = vmatprep.mubr.f32.mxu0 %v23129_v0  ;;  %2833 = vmatmul.mubr.f32.vlgmr.msra.gmra.mxu1 %v20332_v39  ;;  %v20494_v7 = vand.u32 4294901760, %v3341_v59 }
 0x10d   : > { %2958 = vmatpush1.msra.mxu1 %v2957_v52  ;;  %3070 = vmatmul.mubr.f32.vlgmr.msra.gmra.mxu0 %v20345_v43  ;;  %v3457_v43 = vsub.f32 %v3455_v47, %v3456_v56  ;;  %v3921_v33 = vand.u32 4294901760, %v3920_v27  ;;  %v20537_v38 = vsub.f32 %v4316_v29, %v20524_v34  ;;  %v4287_v41 = vpop.permute.xlu1 %4286 }
 0x10e   : > { %3189 = vmatpush1.msra.mxu0 %v2955_v35  ;;  %3107 = vmatprep.subr.mxu1 %v20384_v5 }
 0x10f   : > { %2991 = vmatprep.mubr.f32.mxu1 %v23129_v0  ;;  %3222 = vmatprep.mubr.f32.mxu0 %v23129_v0  ;;  %v3458_v21 = vand.u32 4294901760, %v3457_v43  ;;  %v3922_v3 = vsub.f32 %v3920_v27, %v3921_v33  ;;  %v20555_v45 = vand.u32 4294901760, %v20537_v38 }
 0x110   : > { %3377 = vmatprep.subr.mxu0 %v20435_v36  ;;  %2993 = vmatmul.mubr.f32.vlgmr.msra.gmra.mxu1 %v20332_v39 }
 0x111   : > { %3109 = vmatpush1.msra.mxu1 %v20398_v2  ;;  %3224 = vmatmul.mubr.f32.vlgmr.msra.gmra.mxu0 %v20332_v39  ;;  %v4388_v61 = vsub.f32 %v20537_v38, %v20555_v45 }
 0x112   : > { %3379 = vmatpush1.msra.mxu0 %v20445_v9  ;;  %3261 = vmatprep.subr.mxu1 %v20384_v5  ;;  %v20504_v5 = vrot.slane %v20201_v16, %v20485_v58 }
 0x113   : > { %3538 = vmatprep.subr.mxu0 %v3455_v47  ;;  %3142 = vmatprep.mubr.f32.mxu1 %v23129_v0  ;;  %v4389_v18 = vand.u32 4294901760, %v4388_v61 }
 0x114   : > { %3412 = vmatprep.mubr.f32.mxu0 %v23129_v0  ;;  %3146 = vmatmul.mubr.f32.vlgmr.msra.gmra.mxu1 %v20363_v51  ;;  %23221 = vst [vmem:[#allocation28_spill] sm:$0xff] %v20504_v5  ;;  %v3926_v51 = vsub.f32 %v3341_v59, %v20494_v7 }
 0x115   : > { %3263 = vmatpush1.msra.mxu1 %v20398_v2  ;;  %3418 = vmatmul.mubr.f32.vlgmr.msra.gmra.mxu0 %v3417_v4  ;;  %v4312_v2 = vmul.f32 %v20504_v5, %v4293_v13 }
 0x116   : > { %3541 = vmatpush1.msra.mxu0 %v3461_v49  ;;  %3459 = vmatprep.subr.mxu1 %v3458_v21  ;;  %v3927_v53 = vand.u32 4294901760, %v3926_v51  ;;  %v3923_v49 = vand.u32 4294901760, %v3922_v3  ;;  %v20588_v21 = vpop.permute.xlu1 %5258 }
 0x117   : > { %3692 = vmatprep.subr.mxu0 %v3456_v56  ;;  %3296 = vmatprep.mubr.f32.mxu1 %v23129_v0  ;;  %v20531_v35 = vand.u32 4294901760, %v4312_v2  ;;  %v20560_v56 = vrot.slane %v20206_v19, %v20485_v58 }
 0x118   : > { %3574 = vmatprep.mubr.f32.mxu0 %v23129_v0  ;;  %3298 = vmatmul.mubr.f32.vlgmr.msra.gmra.mxu1 %v20332_v39  ;;  %v4311_v39 = vmul.f32 %v20516_v31, %v4294_v26  ;;  %v3928_v47 = vsub.f32 %v3926_v51, %v3927_v53 }
 0x119   : > { %3465 = vmatpush1.msra.mxu1 %v3464_v62  ;;  %3577 = vmatmul.mubr.f32.vlgmr.msra.gmra.mxu0 %v20441_v37  ;;  %v4427_v52 = vsub.f32 %v4312_v2, %v20531_v35  ;;  %23224 = vst [vmem:[#allocation31_spill] sm:$0xff] %v20560_v56 }
 0x11a   : > { %3696 = vmatpush1.msra.mxu0 %v3462_v60  ;;  %3614 = vmatprep.subr.mxu1 %v20435_v36  ;;  %v20541_v44 = vand.u32 4294901760, %v4311_v39  ;;  %v3929_v57 = vand.u32 4294901760, %v3928_v47 }
 0x11b   : > { %3842 = vmatprep.subr.mxu0 %v20480_v63  ;;  %3498 = vmatprep.mubr.f32.mxu1 %v23129_v0  ;;  %v4428_v60 = vand.u32 4294901760, %v4427_v52 }
 0x11c   : > { %3729 = vmatprep.mubr.f32.mxu0 %v23129_v0  ;;  %3500 = vmatmul.mubr.f32.vlgmr.msra.gmra.mxu1 %v20428_v20  ;;  %v4433_v55 = vsub.f32 %v4311_v39, %v20541_v44  ;;  %v20612_v39 = vrot.slane %v20183_v12, %v20581_v17 }
 0x11d   : > { %3616 = vmatpush1.msra.mxu1 %v20445_v9  ;;  %3731 = vmatmul.mubr.f32.vlgmr.msra.gmra.mxu0 %v20428_v20 }
 0x11e   : > { %3844 = vmatpush1.msra.mxu0 %v20494_v7  ;;  %3768 = vmatprep.subr.mxu1 %v20435_v36  ;;  %v4291_v36 = vsel %vm4290_vm4, %v4287_v41, %v4289_v28  ;;  %v4434_v58 = vand.u32 4294901760, %v4433_v55  ;;  %v19549_v28 = vld [vmem:[%s23206_s2 + $0x28] sm:$0xff]  ;;  %23226 = vst [vmem:[#allocation33_spill] sm:$0xff] %v20612_v39 }
 0x11f   : > { %4003 = vmatprep.subr.mxu0 %v3920_v27  ;;  %3649 = vmatprep.mubr.f32.mxu1 %v23129_v0  ;;  %v4314_v59 = vmul.f32 %v20547_v40, %v4291_v36  ;;  %v5288_v26 = vsel %vm469_vm0, %v19549_v28, 0 }
 0x120   : > { %3877 = vmatprep.mubr.f32.mxu0 %v23129_v0  ;;  %3653 = vmatmul.mubr.f32.vlgmr.msra.gmra.mxu1 %v20459_v48  ;;  %v4435_v13 = vsub.f32 %v4433_v55, %v4434_v58 }
 0x121   : > { %3770 = vmatpush1.msra.mxu1 %v20445_v9  ;;  %3883 = vmatmul.mubr.f32.vlgmr.msra.gmra.mxu0 %v3417_v4  ;;  %v4292_v9 = vsel %vm4290_vm4, %v20492_v6, %v4287_v41  ;;  %v5257_v4 = vpop.permute.xlu0 %5256  ;;  %v20576_v6 = vand.u32 4294901760, %v4314_v59  ;;  %v20620_v41 = vand.u32 4294901760, %v5288_v26 }
 0x122   : > { %4006 = vmatpush1.msra.mxu0 %v3926_v51  ;;  %3924 = vmatprep.subr.mxu1 %v3923_v49  ;;  %v4313_v43 = vmul.f32 %v20560_v56, %v4292_v9  ;;  %v5264_v62 = vsel %vm5262_vm5, %v5257_v4, %v20588_v21 }
 0x123   : > { %4157 = vmatprep.subr.mxu0 %v3921_v33  ;;  %3803 = vmatprep.mubr.f32.mxu1 %v23129_v0  ;;  %v4892_v51 = vsub.f32 %v4314_v59, %v20576_v6  ;;  %v4436_v33 = vand.u32 4294901760, %v4435_v13  ;;  %v20633_v36 = vsub.f32 %v5288_v26, %v20620_v41  ;;  %v20643_v59 = vrot.slane %v20196_v15, %v20581_v17 }
 0x124   : > { %4039 = vmatprep.mubr.f32.mxu0 %v23129_v0  ;;  %3805 = vmatmul.mubr.f32.vlgmr.msra.gmra.mxu1 %v20428_v20  ;;  %v20590_v27 = vand.u32 4294901760, %v4313_v43  ;;  %v20656_v15 = vrot.slane %v20206_v19, %v20581_v17 }
 0x125   : > { %3930 = vmatpush1.msra.mxu1 %v3929_v57  ;;  %4042 = vmatmul.mubr.f32.vlgmr.msra.gmra.mxu0 %v20441_v37  ;;  %v4429_v37 = vsub.f32 %v4427_v52, %v4428_v60  ;;  %v5255_v2 = vpop.permute.xlu0 %5254  ;;  %v4893_v3 = vand.u32 4294901760, %v4892_v51  ;;  %23227 = vst [vmem:[#allocation34_spill] sm:$0xff] %v20643_v59 }
 0x126   : > { %4161 = vmatpush1.msra.mxu0 %v3927_v53  ;;  %4079 = vmatprep.subr.mxu1 %v20480_v63  ;;  %v5265_v53 = vsel %vm5262_vm5, %v5255_v2, %v5257_v4  ;;  %23228 = vst [vmem:[#allocation35_spill] sm:$0xff] %v20656_v15 }
 0x127   : > { %3963 = vmatprep.mubr.f32.mxu1 %v23129_v0  ;;  %4194 = vmatprep.mubr.f32.mxu0 %v23129_v0  ;;  %v4430_v29 = vand.u32 4294901760, %v4429_v37 }
 0x128   : > { %4349 = vmatprep.subr.mxu0 %v20531_v35  ;;  %3965 = vmatmul.mubr.f32.vlgmr.msra.gmra.mxu1 %v20428_v20 }
 0x129   : > { %4081 = vmatpush1.msra.mxu1 %v20494_v7  ;;  %4196 = vmatmul.mubr.f32.vlgmr.msra.gmra.mxu0 %v20428_v20  ;;  %v6229_v13 = vpop.permute.xlu0 %6228 }
 0x12a   : > { %4351 = vmatpush1.msra.mxu0 %v20541_v44  ;;  %4233 = vmatprep.subr.mxu1 %v20480_v63  ;;  %v20600_v63 = vrot.slane %v20201_v16, %v20581_v17 }
 0x12b   : > { %4510 = vmatprep.subr.mxu0 %v4427_v52  ;;  %4114 = vmatprep.mubr.f32.mxu1 %v23129_v0  ;;  %v4894_v52 = vsub.f32 %v4892_v51, %v4893_v3 }
 0x12c   : > { %4384 = vmatprep.mubr.f32.mxu0 %v23129_v0  ;;  %4118 = vmatmul.mubr.f32.vlgmr.msra.gmra.mxu1 %v20459_v48  ;;  %23225 = vst [vmem:[#allocation32_spill] sm:$0xff] %v20600_v63  ;;  %v4898_v48 = vsub.f32 %v4313_v43, %v20590_v27  ;;  %v20651_v43 = vand.u32 4294901760, %v20633_v36 }
 0x12d   : > { %4235 = vmatpush1.msra.mxu1 %v20494_v7  ;;  %4390 = vmatmul.mubr.f32.vlgmr.msra.gmra.mxu0 %v4389_v18  ;;  %v5284_v7 = vmul.f32 %v20600_v63, %v5264_v62 }
 0x12e   : > { %4513 = vmatpush1.msra.mxu0 %v4433_v55  ;;  %4431 = vmatprep.subr.mxu1 %v4430_v29  ;;  %v4899_v47 = vand.u32 4294901760, %v4898_v48  ;;  %v5261_v55 = vpop.permute.xlu1 %5260  ;;  %v5360_v19 = vsub.f32 %v20633_v36, %v20651_v43  ;;  %v20677_v29 = vsub.s32 5, %v20171_v8 }
 0x12f   : > { %4664 = vmatprep.subr.mxu0 %v4428_v60  ;;  %4268 = vmatprep.mubr.f32.mxu1 %v23129_v0  ;;  %v20627_v49 = vand.u32 4294901760, %v5284_v7  ;;  %v4895_v60 = vand.u32 4294901760, %v4894_v52 }
 0x130   : > { %4546 = vmatprep.mubr.f32.mxu0 %v23129_v0  ;;  %4270 = vmatmul.mubr.f32.vlgmr.msra.gmra.mxu1 %v20428_v20  ;;  %v5283_v20 = vmul.f32 %v20612_v39, %v5265_v53  ;;  %v4900_v9 = vsub.f32 %v4898_v48, %v4899_v47 }
 0x131   : > { %4437 = vmatpush1.msra.mxu1 %v4436_v33  ;;  %4549 = vmatmul.mubr.f32.vlgmr.msra.gmra.mxu0 %v20537_v38  ;;  %v5399_v61 = vsub.f32 %v5284_v7, %v20627_v49 }
 0x132   : > { %4668 = vmatpush1.msra.mxu0 %v4434_v58  ;;  %4586 = vmatprep.subr.mxu1 %v20531_v35  ;;  %v20637_v57 = vand.u32 4294901760, %v5283_v20  ;;  %v4901_v4 = vand.u32 4294901760, %v4900_v9  ;;  %v20686_v62 = vpop.permute.xlu1 %6230 }
 0x133   : > { %4814 = vmatprep.subr.mxu0 %v20576_v6  ;;  %4470 = vmatprep.mubr.f32.mxu1 %v23129_v0  ;;  %v6236_v53 = vsel %vm6234_vm6, %v6229_v13, %v20686_v62 }
 0x134   : > { %4701 = vmatprep.mubr.f32.mxu0 %v23129_v0  ;;  %4472 = vmatmul.mubr.f32.vlgmr.msra.gmra.mxu1 %v20524_v34  ;;  %v5405_v58 = vsub.f32 %v5283_v20, %v20637_v57 }
 0x135   : > { %4588 = vmatpush1.msra.mxu1 %v20541_v44  ;;  %4703 = vmatmul.mubr.f32.vlgmr.msra.gmra.mxu0 %v20524_v34 }
 0x136   : > { %4816 = vmatpush1.msra.mxu0 %v20590_v27  ;;  %4740 = vmatprep.subr.mxu1 %v20531_v35  ;;  %v5266_v35 = vsel %vm5262_vm5, %v5261_v55, %v5255_v2 }
 0x137   : > { %4975 = vmatprep.subr.mxu0 %v4892_v51  ;;  %4621 = vmatprep.mubr.f32.mxu1 %v23129_v0  ;;  %v5286_v37 = vmul.f32 %v20643_v59, %v5266_v35  ;;  %v20681_v51 = vand.u32 4294901760, %v5360_v19 }
 0x138   : > { %4849 = vmatprep.mubr.f32.mxu0 %v23129_v0  ;;  %4625 = vmatmul.mubr.f32.vlgmr.msra.gmra.mxu1 %v20555_v45 }
 0x139   : > { %4742 = vmatpush1.msra.mxu1 %v20541_v44  ;;  %4855 = vmatmul.mubr.f32.vlgmr.msra.gmra.mxu0 %v4389_v18  ;;  %v5263_v44 = vsel %vm5262_vm5, %v20588_v21, %v5261_v55  ;;  %v5400_v18 = vand.u32 4294901760, %v5399_v61  ;;  %v5406_v21 = vand.u32 4294901760, %v5405_v58  ;;  %v20672_v28 = vand.u32 4294901760, %v5286_v37 }
 0x13a   : > { %4978 = vmatpush1.msra.mxu0 %v4898_v48  ;;  %4896 = vmatprep.subr.mxu1 %v4895_v60  ;;  %v5285_v17 = vmul.f32 %v20656_v15, %v5263_v44  ;;  %v19550_v48 = vld [vmem:[%s23206_s2 + $0x30] sm:$0xff] }
 0x13b   : > { %5129 = vmatprep.subr.mxu0 %v4893_v3  ;;  %4775 = vmatprep.mubr.f32.mxu1 %v23129_v0  ;;  %v5407_v26 = vsub.f32 %v5405_v58, %v5406_v21  ;;  %v5864_v7 = vsub.f32 %v5286_v37, %v20672_v28  ;;  %v6227_v3 = vpop.permute.xlu0 %6226  ;;  %v20743_v37 = vld [vmem:[%s23105_s1 + $0x18] sm:$0xff] }
 0x13c   : > { %5011 = vmatprep.mubr.f32.mxu0 %v23129_v0  ;;  %4777 = vmatmul.mubr.f32.vlgmr.msra.gmra.mxu1 %v20524_v34  ;;  %v20688_v2 = vand.u32 4294901760, %v5285_v17  ;;  %v6237_v52 = vsel %vm6234_vm6, %v6227_v3, %v6229_v13 }
 0x13d   : > { %4902 = vmatpush1.msra.mxu1 %v4901_v4  ;;  %5014 = vmatmul.mubr.f32.vlgmr.msra.gmra.mxu0 %v20537_v38  ;;  %v5401_v38 = vsub.f32 %v5399_v61, %v5400_v18  ;;  %v5865_v55 = vand.u32 4294901760, %v5864_v7 }
 0x13e   : > { %5133 = vmatpush1.msra.mxu0 %v4899_v47  ;;  %5051 = vmatprep.subr.mxu1 %v20576_v6  ;;  %v5870_v20 = vsub.f32 %v5285_v17, %v20688_v2 }
 0x13f   : > { %4935 = vmatprep.mubr.f32.mxu1 %v23129_v0  ;;  %5166 = vmatprep.mubr.f32.mxu0 %v23129_v0  ;;  %v5402_v33 = vand.u32 4294901760, %v5401_v38  ;;  %v20764_v38 = vld [vmem:[%s23105_s1 + $0x10] sm:$0xff] }
 0x140   : > { %5321 = vmatprep.subr.mxu0 %v20627_v49  ;;  %4937 = vmatmul.mubr.f32.vlgmr.msra.gmra.mxu1 %v20524_v34 }
 0x141   : > { %5053 = vmatpush1.msra.mxu1 %v20590_v27  ;;  %5168 = vmatmul.mubr.f32.vlgmr.msra.gmra.mxu0 %v20524_v34 }
 0x142   : > { %5323 = vmatpush1.msra.mxu0 %v20637_v57  ;;  %5205 = vmatprep.subr.mxu1 %v20576_v6  ;;  %v20698_v6 = vrot.slane %v20201_v16, %v20677_v29  ;;  %v5408_v16 = vand.u32 4294901760, %v5407_v26  ;;  %v20768_v26 = vrot.slane %v20764_v38, %v20677_v29 }
 0x143   : > { %5482 = vmatprep.subr.mxu0 %v5399_v61  ;;  %5086 = vmatprep.mubr.f32.mxu1 %v23129_v0  ;;  %v5866_v61 = vsub.f32 %v5864_v7, %v5865_v55 }
 0x144   : > { %5356 = vmatprep.mubr.f32.mxu0 %v23129_v0  ;;  %5090 = vmatmul.mubr.f32.vlgmr.msra.gmra.mxu1 %v20555_v45  ;;  %23229 = vst [vmem:[#allocation36_spill] sm:$0xff] %v20698_v6  ;;  %v6260_v45 = vsel %vm469_vm0, %v19550_v48, 0  ;;  %v6256_v47 = vmul.f32 %v20698_v6, %v6236_v53  ;;  %23232 = vst [vmem:[#allocation39_spill] sm:$0xff] %v20768_v26  ;;  %v7201_v53 = vpop.permute.xlu0 %7200 }
 0x145   : > { %5207 = vmatpush1.msra.mxu1 %v20590_v27  ;;  %5362 = vmatmul.mubr.f32.vlgmr.msra.gmra.mxu0 %v20681_v51  ;;  %v20711_v27 = vrot.slane %v20183_v12, %v20677_v29  ;;  %v20719_v9 = vand.u32 4294901760, %v6260_v45 }
 0x146   : > { %5485 = vmatpush1.msra.mxu0 %v5405_v58  ;;  %5403 = vmatprep.subr.mxu1 %v5402_v33  ;;  %v20726_v60 = vand.u32 4294901760, %v6256_v47  ;;  %v6233_v58 = vpop.permute.xlu1 %6232 }
 0x147   : > { %5636 = vmatprep.subr.mxu0 %v5400_v18  ;;  %5240 = vmatprep.mubr.f32.mxu1 %v23129_v0  ;;  %23230 = vst [vmem:[#allocation37_spill] sm:$0xff] %v20711_v27  ;;  %v6255_v12 = vmul.f32 %v20711_v27, %v6237_v52  ;;  %v20732_v35 = vsub.f32 %v6260_v45, %v20719_v9  ;;  %v20790_v45 = vsub.s32 6, %v20171_v8 }
 0x148   : > { %5518 = vmatprep.mubr.f32.mxu0 %v23129_v0  ;;  %5242 = vmatmul.mubr.f32.vlgmr.msra.gmra.mxu1 %v20524_v34  ;;  %v5871_v34 = vand.u32 4294901760, %v5870_v20  ;;  %v20747_v18 = vrot.slane %v20743_v37, %v20677_v29  ;;  %v6371_v19 = vsub.f32 %v6256_v47, %v20726_v60  ;;  %v6238_v17 = vsel %vm6234_vm6, %v6233_v58, %v6227_v3 }
 0x149   : > { %5409 = vmatpush1.msra.mxu1 %v5408_v16  ;;  %5521 = vmatmul.mubr.f32.vlgmr.msra.gmra.mxu0 %v20633_v36  ;;  %v20736_v4 = vand.u32 4294901760, %v6255_v12 }
 0x14a   : > { %5640 = vmatpush1.msra.mxu0 %v5406_v21  ;;  %5558 = vmatprep.subr.mxu1 %v20627_v49  ;;  %v5872_v44 = vsub.f32 %v5870_v20, %v5871_v34  ;;  %23231 = vst [vmem:[#allocation38_spill] sm:$0xff] %v20747_v18  ;;  %v20756_v21 = vand.u32 4294901760, %v20732_v35  ;;  %v6258_v48 = vmul.f32 %v20747_v18, %v6238_v17  ;;  %v6372_v33 = vand.u32 4294901760, %v6371_v19  ;;  %v20799_v16 = vpop.permute.xlu1 %7202 }
 0x14b   : > { %5786 = vmatprep.subr.mxu0 %v20672_v28  ;;  %5442 = vmatprep.mubr.f32.mxu1 %v23129_v0  ;;  %v20759_v13 = vsub.f32 %v6255_v12, %v20736_v4  ;;  %v20813_v12 = vld [vmem:[%s23105_s1 + $0x8] sm:$0xff] }
 0x14c   : > { %5673 = vmatprep.mubr.f32.mxu0 %v23129_v0  ;;  %5444 = vmatmul.mubr.f32.vlgmr.msra.gmra.mxu1 %v20620_v41  ;;  %v6332_v29 = vsub.f32 %v20732_v35, %v20756_v21  ;;  %v20785_v3 = vand.u32 4294901760, %v6258_v48 }
 0x14d   : > { %5560 = vmatpush1.msra.mxu1 %v20637_v57  ;;  %5675 = vmatmul.mubr.f32.vlgmr.msra.gmra.mxu0 %v20620_v41 }
 0x14e   : > { %5788 = vmatpush1.msra.mxu0 %v20688_v2  ;;  %5712 = vmatprep.subr.mxu1 %v20627_v49  ;;  %v5867_v49 = vand.u32 4294901760, %v5866_v61  ;;  %v6836_v61 = vsub.f32 %v6258_v48, %v20785_v3 }
 0x14f   : > { %5947 = vmatprep.subr.mxu0 %v5864_v7  ;;  %5593 = vmatprep.mubr.f32.mxu1 %v23129_v0 }
 0x150   : > { %5821 = vmatprep.mubr.f32.mxu0 %v23129_v0  ;;  %5597 = vmatmul.mubr.f32.vlgmr.msra.gmra.mxu1 %v20651_v43 }
 0x151   : > { %5714 = vmatpush1.msra.mxu1 %v20637_v57  ;;  %5827 = vmatmul.mubr.f32.vlgmr.msra.gmra.mxu0 %v20681_v51  ;;  %v5873_v57 = vand.u32 4294901760, %v5872_v44  ;;  %v6235_v51 = vsel %vm6234_vm6, %v20686_v62, %v6233_v58  ;;  %v6378_v62 = vand.u32 4294901760, %v20759_v13  ;;  %v7199_v58 = vpop.permute.xlu0 %7198 }
 0x152   : > { %5950 = vmatpush1.msra.mxu0 %v5870_v20  ;;  %5868 = vmatprep.subr.mxu1 %v5867_v49  ;;  %v6257_v7 = vmul.f32 %v20768_v26, %v6235_v51  ;;  %v20794_v20 = vand.u32 4294901760, %v6332_v29  ;;  %v6837_v51 = vand.u32 4294901760, %v6836_v61 }
 0x153   : > { %6101 = vmatprep.subr.mxu0 %v5865_v55  ;;  %5747 = vmatprep.mubr.f32.mxu1 %v23129_v0  ;;  %v6379_v52 = vsub.f32 %v20759_v13, %v6378_v62  ;;  %v19551_v55 = vld [vmem:[%s23206_s2 + $0x38] sm:$0xff] }
 0x154   : > { %5983 = vmatprep.mubr.f32.mxu0 %v23129_v0  ;;  %5749 = vmatmul.mubr.f32.vlgmr.msra.gmra.mxu1 %v20620_v41  ;;  %v20801_v47 = vand.u32 4294901760, %v6257_v7  ;;  %v7232_v44 = vsel %vm469_vm0, %v19551_v55, 0  ;;  %v20867_v55 = vrot.slane %v20743_v37, %v20790_v45 }
 0x155   : > { %5874 = vmatpush1.msra.mxu1 %v5873_v57  ;;  %5986 = vmatmul.mubr.f32.vlgmr.msra.gmra.mxu0 %v20633_v36  ;;  %v6373_v36 = vsub.f32 %v6371_v19, %v6372_v33  ;;  %v7209_v57 = vsel %vm7206_vm7, %v7199_v58, %v7201_v53  ;;  %v20844_v48 = vand.u32 4294901760, %v7232_v44 }
 0x156   : > { %6105 = vmatpush1.msra.mxu0 %v5871_v34  ;;  %6023 = vmatprep.subr.mxu1 %v20672_v28  ;;  %v20817_v34 = vrot.slane %v20813_v12, %v20790_v45  ;;  %v6842_v49 = vsub.f32 %v6257_v7, %v20801_v47  ;;  %v6838_v7 = vsub.f32 %v6836_v61, %v6837_v51 }
 0x157   : > { %5907 = vmatprep.mubr.f32.mxu1 %v23129_v0  ;;  %6138 = vmatprep.mubr.f32.mxu0 %v23129_v0  ;;  %23235 = vst [vmem:[#allocation42_spill] sm:$0xff] %v20867_v55 }
 0x158   : > { %6293 = vmatprep.subr.mxu0 %v20726_v60  ;;  %5909 = vmatmul.mubr.f32.vlgmr.msra.gmra.mxu1 %v20620_v41  ;;  %23233 = vst [vmem:[#allocation40_spill] sm:$0xff] %v20817_v34 }
 0x159   : > { %6025 = vmatpush1.msra.mxu1 %v20688_v2  ;;  %6140 = vmatmul.mubr.f32.vlgmr.msra.gmra.mxu0 %v20620_v41 }
 0x15a   : > { %6295 = vmatpush1.msra.mxu0 %v20736_v4  ;;  %6177 = vmatprep.subr.mxu1 %v20672_v28  ;;  %v6374_v28 = vand.u32 4294901760, %v6373_v36 }
 0x15b   : > { %6454 = vmatprep.subr.mxu0 %v6371_v19  ;;  %6058 = vmatprep.mubr.f32.mxu1 %v23129_v0  ;;  %v6380_v19 = vand.u32 4294901760, %v6379_v52 }
 0x15c   : > { %6328 = vmatprep.mubr.f32.mxu0 %v23129_v0  ;;  %6062 = vmatmul.mubr.f32.vlgmr.msra.gmra.mxu1 %v20651_v43  ;;  %v7208_v43 = vsel %vm7206_vm7, %v7201_v53, %v20799_v16  ;;  %v7205_v53 = vpop.permute.xlu1 %7204 }
 0x15d   : > { %6179 = vmatpush1.msra.mxu1 %v20688_v2  ;;  %6334 = vmatmul.mubr.f32.vlgmr.msra.gmra.mxu0 %v20794_v20  ;;  %v20832_v2 = vld [vmem:[%s23105_s1] sm:$0xff] }
 0x15e   : > { %6457 = vmatpush1.msra.mxu0 %v20759_v13  ;;  %6375 = vmatprep.subr.mxu1 %v6374_v28  ;;  %v20836_v17 = vrot.slane %v20832_v2, %v20790_v45  ;;  %v7228_v13 = vmul.f32 %v20817_v34, %v7208_v43  ;;  %v6839_v28 = vand.u32 4294901760, %v6838_v7 }
 0x15f   : > { %6608 = vmatprep.subr.mxu0 %v6372_v33  ;;  %6212 = vmatprep.mubr.f32.mxu1 %v23129_v0  ;;  %v6843_v33 = vand.u32 4294901760, %v6842_v49 }
 0x160   : > { %23234 = vst [vmem:[#allocation41_spill] sm:$0xff] %v20836_v17  ;;  %6490 = vmatprep.mubr.f32.mxu0 %v23129_v0  ;;  %6214 = vmatmul.mubr.f32.vlgmr.msra.gmra.mxu1 %v20620_v41  ;;  %v7227_v41 = vmul.f32 %v20836_v17, %v7209_v57  ;;  %v20851_v29 = vand.u32 4294901760, %v7228_v13  ;;  %v8173_v57 = vpop.permute.xlu0 %8172  ;;  %v20909_v7 = vpop.permute.xlu1 %8174 }
 0x161   : > { %6381 = vmatpush1.msra.mxu1 %v6380_v19  ;;  %6493 = vmatmul.mubr.f32.vlgmr.msra.gmra.mxu0 %v20732_v35  ;;  %v6844_v52 = vsub.f32 %v6842_v49, %v6843_v33  ;;  %v20881_v19 = vrot.slane %v20764_v38, %v20790_v45 }
 0x162   : > { %6612 = vmatpush1.msra.mxu0 %v6378_v62  ;;  %6530 = vmatprep.subr.mxu1 %v20726_v60  ;;  %v20857_v62 = vsub.f32 %v7232_v44, %v20844_v48  ;;  %v20861_v36 = vand.u32 4294901760, %v7227_v41  ;;  %v7343_v43 = vsub.f32 %v7228_v13, %v20851_v29 }
 0x163   : > { %6758 = vmatprep.subr.mxu0 %v20785_v3  ;;  %6414 = vmatprep.mubr.f32.mxu1 %v23129_v0  ;;  %23236 = vst [vmem:[#allocation43_spill] sm:$0xff] %v20881_v19  ;;  %v6845_v13 = vand.u32 4294901760, %v6844_v52  ;;  %v19552_v52 = vld [vmem:[%s23206_s2 + $0x40] sm:$0xff]  ;;  %s22168_s2 = sld [smem:[#allocation2 + $0xc]] }
 0x164   : > { %6645 = vmatprep.mubr.f32.mxu0 %v23129_v0  ;;  %6416 = vmatmul.mubr.f32.vlgmr.msra.gmra.mxu1 %v20719_v9  ;;  %v7349_v44 = vsub.f32 %v7227_v41, %v20861_v36  ;;  %v20902_v41 = vsub.s32 7, %v20171_v8 }
 0x165   : > { %6532 = vmatpush1.msra.mxu1 %v20736_v4  ;;  %6647 = vmatmul.mubr.f32.vlgmr.msra.gmra.mxu0 %v20719_v9 }
 0x166   : > { %6760 = vmatpush1.msra.mxu0 %v20801_v47  ;;  %6684 = vmatprep.subr.mxu1 %v20726_v60  ;;  %v7210_v60 = vsel %vm7206_vm7, %v7205_v53, %v7199_v58  ;;  %v7344_v58 = vand.u32 4294901760, %v7343_v43 }
 0x167   : > { %6919 = vmatprep.subr.mxu0 %v6836_v61  ;;  %6565 = vmatprep.mubr.f32.mxu1 %v23129_v0  ;;  %v20876_v61 = vand.u32 4294901760, %v20857_v62 }
 0x168   : > { %6793 = vmatprep.mubr.f32.mxu0 %v23129_v0  ;;  %6569 = vmatmul.mubr.f32.vlgmr.msra.gmra.mxu1 %v20756_v21 }
 0x169   : > { %6686 = vmatpush1.msra.mxu1 %v20736_v4  ;;  %6799 = vmatmul.mubr.f32.vlgmr.msra.gmra.mxu0 %v20794_v20  ;;  %v7207_v4 = vsel %vm7206_vm7, %v20799_v16, %v7205_v53  ;;  %v7230_v20 = vmul.f32 %v20867_v55, %v7210_v60  ;;  %v7304_v45 = vsub.f32 %v20857_v62, %v20876_v61  ;;  %v7350_v16 = vand.u32 4294901760, %v7349_v44 }
 0x16a   : > { %6922 = vmatpush1.msra.mxu0 %v6842_v49  ;;  %6840 = vmatprep.subr.mxu1 %v6839_v28  ;;  %v7229_v49 = vmul.f32 %v20881_v19, %v7207_v4  ;;  %v8204_v4 = vsel %vm469_vm0, %v19552_v52, 0 }
 0x16b   : > { %7073 = vmatprep.subr.mxu0 %v6837_v51  ;;  %6719 = vmatprep.mubr.f32.mxu1 %v23129_v0  ;;  %v20897_v51 = vand.u32 4294901760, %v7230_v20  ;;  %v7351_v8 = vsub.f32 %v7349_v44, %v7350_v16 }
 0x16c   : > { %6955 = vmatprep.mubr.f32.mxu0 %v23129_v0  ;;  %6721 = vmatmul.mubr.f32.vlgmr.msra.gmra.mxu1 %v20719_v9  ;;  %v20911_v53 = vand.u32 4294901760, %v7229_v49 }
 0x16d   : > { %6846 = vmatpush1.msra.mxu1 %v6845_v13  ;;  %6958 = vmatmul.mubr.f32.vlgmr.msra.gmra.mxu0 %v20732_v35  ;;  %v7345_v35 = vsub.f32 %v7343_v43, %v7344_v58  ;;  %v7808_v60 = vsub.f32 %v7230_v20, %v20897_v51  ;;  %v8171_v13 = vpop.permute.xlu0 %8170  ;;  %v20933_v20 = vrot.slane %v20832_v2, %v20902_v41 }
 0x16e   : > { %7077 = vmatpush1.msra.mxu0 %v6843_v33  ;;  %6995 = vmatprep.subr.mxu1 %v20785_v3  ;;  %v7305_v33 = vand.u32 4294901760, %v7304_v45 }
 0x16f   : > { %6879 = vmatprep.mubr.f32.mxu1 %v23129_v0  ;;  %7110 = vmatprep.mubr.f32.mxu0 %v23129_v0  ;;  %v7346_v28 = vand.u32 4294901760, %v7345_v35  ;;  %23238 = vst [vmem:[#allocation45_spill] sm:$0xff] %v20933_v20  ;;  %v7809_v45 = vand.u32 4294901760, %v7808_v60  ;;  %v8177_v35 = vpop.permute.xlu1 %8176 }
 0x170   : > { %7265 = vmatprep.subr.mxu0 %v20851_v29  ;;  %6881 = vmatmul.mubr.f32.vlgmr.msra.gmra.mxu1 %v20719_v9 }
 0x171   : > { %6997 = vmatpush1.msra.mxu1 %v20801_v47  ;;  %7112 = vmatmul.mubr.f32.vlgmr.msra.gmra.mxu0 %v20719_v9 }
 0x172   : > { %7267 = vmatpush1.msra.mxu0 %v20861_v36  ;;  %7149 = vmatprep.subr.mxu1 %v20785_v3  ;;  %v20921_v3 = vrot.slane %v20813_v12, %v20902_v41  ;;  %v7352_v12 = vand.u32 4294901760, %v7351_v8 }
 0x173   : > { %7426 = vmatprep.subr.mxu0 %v7343_v43  ;;  %7030 = vmatprep.mubr.f32.mxu1 %v23129_v0  ;;  %v8180_v43 = vsel %vm8178_vm8, %v8173_v57, %v20909_v7 }
 0x174   : > { %7300 = vmatprep.mubr.f32.mxu0 %v23129_v0  ;;  %7034 = vmatmul.mubr.f32.vlgmr.msra.gmra.mxu1 %v20756_v21  ;;  %23237 = vst [vmem:[#allocation44_spill] sm:$0xff] %v20921_v3  ;;  %v7814_v21 = vsub.f32 %v7229_v49, %v20911_v53 }
 0x175   : > { %7151 = vmatpush1.msra.mxu1 %v20801_v47  ;;  %7306 = vmatmul.mubr.f32.vlgmr.msra.gmra.mxu0 %v7305_v33  ;;  %v8200_v47 = vmul.f32 %v20921_v3, %v8180_v43 }
 0x176   : > { %7429 = vmatpush1.msra.mxu0 %v7349_v44  ;;  %7347 = vmatprep.subr.mxu1 %v7346_v28  ;;  %v8181_v44 = vsel %vm8178_vm8, %v8171_v13, %v8173_v57  ;;  %v7815_v2 = vand.u32 4294901760, %v7814_v21  ;;  %v7810_v57 = vsub.f32 %v7808_v60, %v7809_v45  ;;  %v20964_v28 = vrot.slane %v20743_v37, %v20902_v41 }
 0x177   : > { %7580 = vmatprep.subr.mxu0 %v7344_v58  ;;  %7184 = vmatprep.mubr.f32.mxu1 %v23129_v0  ;;  %v20941_v58 = vand.u32 4294901760, %v8204_v4  ;;  %v20948_v49 = vand.u32 4294901760, %v8200_v47  ;;  %v20977_v37 = vrot.slane %v20764_v38, %v20902_v41 }
 0x178   : > { %7462 = vmatprep.mubr.f32.mxu0 %v23129_v0  ;;  %7186 = vmatmul.mubr.f32.vlgmr.msra.gmra.mxu1 %v20719_v9  ;;  %v8199_v9 = vmul.f32 %v20933_v20, %v8181_v44  ;;  %v7816_v52 = vsub.f32 %v7814_v21, %v7815_v2  ;;  %23239 = vst [vmem:[#allocation46_spill] sm:$0xff] %v20964_v28  ;;  %v7811_v43 = vand.u32 4294901760, %v7810_v57 }
 0x179   : > { %7353 = vmatpush1.msra.mxu1 %v7352_v12  ;;  %7465 = vmatmul.mubr.f32.vlgmr.msra.gmra.mxu0 %v20857_v62  ;;  %23240 = vst [vmem:[#allocation47_spill] sm:$0xff] %v20977_v37 }
 0x17a   : > { %7584 = vmatpush1.msra.mxu0 %v7350_v16  ;;  %7502 = vmatprep.subr.mxu1 %v20851_v29  ;;  %v20954_v16 = vsub.f32 %v8204_v4, %v20941_v58  ;;  %v20958_v8 = vand.u32 4294901760, %v8199_v9  ;;  %v8315_v4 = vsub.f32 %v8200_v47, %v20948_v49  ;;  %v7817_v47 = vand.u32 4294901760, %v7816_v52 }
 0x17b   : > { %7730 = vmatprep.subr.mxu0 %v20897_v51  ;;  %7386 = vmatprep.mubr.f32.mxu1 %v23129_v0 }
 0x17c   : > { %7617 = vmatprep.mubr.f32.mxu0 %v23129_v0  ;;  %7388 = vmatmul.mubr.f32.vlgmr.msra.gmra.mxu1 %v20844_v48  ;;  %v8321_v12 = vsub.f32 %v8199_v9, %v20958_v8 }
 0x17d   : > { %7504 = vmatpush1.msra.mxu1 %v20861_v36  ;;  %7619 = vmatmul.mubr.f32.vlgmr.msra.gmra.mxu0 %v20844_v48 }
 0x17e   : > { %7732 = vmatpush1.msra.mxu0 %v20911_v53  ;;  %7656 = vmatprep.subr.mxu1 %v20851_v29  ;;  %v8182_v29 = vsel %vm8178_vm8, %v8177_v35, %v8171_v13  ;;  %v8316_v13 = vand.u32 4294901760, %v8315_v4 }
 0x17f   : > { %7891 = vmatprep.subr.mxu0 %v7808_v60  ;;  %7537 = vmatprep.mubr.f32.mxu1 %v23129_v0  ;;  %v20972_v60 = vand.u32 4294901760, %v20954_v16 }
 0x180   : > { %7765 = vmatprep.mubr.f32.mxu0 %v23129_v0  ;;  %7541 = vmatmul.mubr.f32.vlgmr.msra.gmra.mxu1 %v20876_v61 }
 0x181   : > { %7658 = vmatpush1.msra.mxu1 %v20861_v36  ;;  %7771 = vmatmul.mubr.f32.vlgmr.msra.gmra.mxu0 %v7305_v33  ;;  %v8179_v36 = vsel %vm8178_vm8, %v20909_v7, %v8177_v35  ;;  %v8202_v33 = vmul.f32 %v20964_v28, %v8182_v29  ;;  %v8276_v38 = vsub.f32 %v20954_v16, %v20972_v60  ;;  %v8322_v7 = vand.u32 4294901760, %v8321_v12 }
 0x182   : > { %7894 = vmatpush1.msra.mxu0 %v7814_v21  ;;  %7812 = vmatprep.subr.mxu1 %v7811_v43  ;;  %v8201_v41 = vmul.f32 %v20977_v37, %v8179_v36 }
 0x183   : > { %8045 = vmatprep.subr.mxu0 %v7809_v45  ;;  %7691 = vmatprep.mubr.f32.mxu1 %v23129_v0  ;;  %v20993_v21 = vand.u32 4294901760, %v8202_v33  ;;  %v8277_v44 = vand.u32 4294901760, %v8276_v38  ;;  %v8323_v9 = vsub.f32 %v8321_v12, %v8322_v7 }
 0x184   : > { %7927 = vmatprep.mubr.f32.mxu0 %v23129_v0  ;;  %7693 = vmatmul.mubr.f32.vlgmr.msra.gmra.mxu1 %v20844_v48  ;;  %v21001_v45 = vand.u32 4294901760, %v8201_v41 }
 0x185   : > { %7818 = vmatpush1.msra.mxu1 %v7817_v47  ;;  %7930 = vmatmul.mubr.f32.vlgmr.msra.gmra.mxu0 %v20857_v62  ;;  %v8317_v62 = vsub.f32 %v8315_v4, %v8316_v13  ;;  %v8780_v35 = vsub.f32 %v8202_v33, %v20993_v21  ;;  %v8324_v43 = vand.u32 4294901760, %v8323_v9 }
 0x186   : > { %8049 = vmatpush1.msra.mxu0 %v7815_v2  ;;  %7967 = vmatprep.subr.mxu1 %v20897_v51  ;;  %v8786_v52 = vsub.f32 %v8201_v41, %v21001_v45 }
 0x187   : > { %7851 = vmatprep.mubr.f32.mxu1 %v23129_v0  ;;  %8082 = vmatprep.mubr.f32.mxu0 %v23129_v0  ;;  %v8318_v57 = vand.u32 4294901760, %v8317_v62 }
 0x188   : > { %8237 = vmatprep.subr.mxu0 %v20948_v49  ;;  %7853 = vmatmul.mubr.f32.vlgmr.msra.gmra.mxu1 %v20844_v48  ;;  %v8787_v29 = vand.u32 4294901760, %v8786_v52 }
 0x189   : > { %7969 = vmatpush1.msra.mxu1 %v20911_v53  ;;  %8084 = vmatmul.mubr.f32.vlgmr.msra.gmra.mxu0 %v20844_v48 }
 0x18a   : > { %8239 = vmatpush1.msra.mxu0 %v20958_v8  ;;  %8121 = vmatprep.subr.mxu1 %v20897_v51  ;;  %v8788_v41 = vsub.f32 %v8786_v52, %v8787_v29 }
 0x18b   : > { %8398 = vmatprep.subr.mxu0 %v8315_v4  ;;  %8002 = vmatprep.mubr.f32.mxu1 %v23129_v0 }
 0x18c   : > { %8272 = vmatprep.mubr.f32.mxu0 %v23129_v0  ;;  %v546_v2 = vpop.f32.mrf.mxu0  ;;  %8006 = vmatmul.mubr.f32.vlgmr.msra.gmra.mxu1 %v20876_v61  ;;  %v8781_v61 = vand.u32 4294901760, %v8780_v35 }
 0x18d   : > { %8123 = vmatpush1.msra.mxu1 %v20911_v53  ;;  %8278 = vmatmul.mubr.f32.vlgmr.msra.gmra.mxu0 %v8277_v44 }
 0x18e   : > { %8401 = vmatpush1.msra.mxu0 %v8321_v12  ;;  %8319 = vmatprep.subr.mxu1 %v8318_v57  ;;  %v21008_v51 = vpop.f32.mrf.mxu0 }
 0x18f   : > { %8552 = vmatprep.subr.mxu0 %v8316_v13  ;;  %8156 = vmatprep.mubr.f32.mxu1 %v23129_v0 }
 0x190   : > { %8434 = vmatprep.mubr.f32.mxu0 %v23129_v0  ;;  %v705_v4 = vpop.f32.mrf.mxu0  ;;  %8158 = vmatmul.mubr.f32.vlgmr.msra.gmra.mxu1 %v20844_v48  ;;  %v8782_v48 = vsub.f32 %v8780_v35, %v8781_v61 }
 0x191   : > { %8325 = vmatpush1.msra.mxu1 %v8324_v43  ;;  %8437 = vmatmul.mubr.f32.vlgmr.msra.gmra.mxu0 %v20954_v16  ;;  %v8789_v43 = vand.u32 4294901760, %v8788_v41 }
 0x192   : > { %8556 = vmatpush1.msra.mxu0 %v8322_v7  ;;  %8474 = vmatprep.subr.mxu1 %v20948_v49  ;;  %v21016_v53 = vpop.f32.mrf.mxu0  ;;  %v8783_v62 = vand.u32 4294901760, %v8782_v48 }
 0x193   : > { %8702 = vmatprep.subr.mxu0 %v20993_v21  ;;  %8358 = vmatprep.mubr.f32.mxu1 %v23129_v0 }
 0x194   : > { %8589 = vmatprep.mubr.f32.mxu0 %v23129_v0  ;;  %v628_v12 = vpop.f32.mrf.mxu1  ;;  %8360 = vmatmul.mubr.f32.vlgmr.msra.gmra.mxu1 %v20941_v58 }
 0x195   : > { %v629_v47 = vadd.f32 %v628_v12, %v546_v2  ;;  %v859_v36 = vpop.f32.mrf.mxu0  ;;  %8476 = vmatpush1.msra.mxu1 %v20958_v8  ;;  %8591 = vmatmul.mubr.f32.vlgmr.msra.gmra.mxu0 %v20941_v58 }
 0x196   : > { %8704 = vmatpush1.msra.mxu0 %v21001_v45  ;;  %8628 = vmatprep.subr.mxu1 %v20948_v49  ;;  %v21026_v33 = vpop.f32.mrf.mxu1 }
 0x197   : > { %8863 = vmatprep.subr.mxu0 %v8780_v35  ;;  %v21028_v13 = vpop.f32.mrf.mxu0  ;;  %8509 = vmatprep.mubr.f32.mxu1 %v23129_v0  ;;  %v706_v38 = vadd.f32 %v705_v4, %v629_v47 }
 0x198   : > { %8737 = vmatprep.mubr.f32.mxu0 %v23129_v0  ;;  %v781_v7 = vpop.f32.mrf.mxu1  ;;  %8513 = vmatmul.mubr.f32.vlgmr.msra.gmra.mxu1 %v20972_v60 }
 0x199   : > { %v782_v9 = vadd.f32 %v781_v7, %v706_v38  ;;  %v1011_v2 = vpop.f32.mrf.mxu0  ;;  %8630 = vmatpush1.msra.mxu1 %v20958_v8  ;;  %8743 = vmatmul.mubr.f32.vlgmr.msra.gmra.mxu0 %v8277_v44 }
 0x19a   : > { %8866 = vmatpush1.msra.mxu0 %v8786_v52  ;;  %8784 = vmatprep.subr.mxu1 %v8783_v62  ;;  %v21034_v49 = vpop.f32.mrf.mxu1 }
 0x19b   : > { %9017 = vmatprep.subr.mxu0 %v8781_v61  ;;  %v21036_v57 = vpop.f32.mrf.mxu0  ;;  %8663 = vmatprep.mubr.f32.mxu1 %v23129_v0  ;;  %v860_v35 = vadd.f32 %v859_v36, %v782_v9  ;;  %v19934_v61 = vmov 0  }
 0x19c   : > { %8899 = vmatprep.mubr.f32.mxu0 %v23129_v0  ;;  %v933_v4 = vpop.f32.mrf.mxu1  ;;  %8665 = vmatmul.mubr.f32.vlgmr.msra.gmra.mxu1 %v20941_v58 }
 0x19d   : > { %v934_v12 = vadd.f32 %v933_v4, %v860_v35  ;;  %v1170_v48 = vpop.f32.mrf.mxu0  ;;  %8790 = vmatpush1.msra.mxu1 %v8789_v43  ;;  %8902 = vmatmul.mubr.f32.vlgmr.msra.gmra.mxu0 %v20954_v16  ;;  %v9140_v16 = vld [vmem:[%s23241_s3] sm:$0xff]  ;;  %s18716_s3 = sld [smem:[#allocation2]] }
 0x19e   : > { %9021 = vmatpush1.msra.mxu0 %v8787_v29  ;;  %8939 = vmatprep.subr.mxu1 %v20993_v21  ;;  %v21043_v8 = vpop.f32.mrf.mxu1 }
 0x19f   : > { %v21045_v44 = vpop.f32.mrf.mxu0  ;;  %8823 = vmatprep.mubr.f32.mxu1 %v23129_v0  ;;  %9054 = vmatprep.mubr.f32.mxu0 %v23129_v0 }
 0x1a0   : > { %v1093_v52 = vpop.f32.mrf.mxu1  ;;  %8825 = vmatmul.mubr.f32.vlgmr.msra.gmra.mxu1 %v20941_v58  ;;  %19758 = vset.pattern.permute.xlu0 %v19934_v61 }
 0x1a1   : > { %v1094_v29 = vadd.f32 %v1093_v52, %v1011_v2  ;;  %v1324_v47 = vpop.f32.mrf.mxu0  ;;  %8941 = vmatpush1.msra.mxu1 %v21001_v45  ;;  %8974 = vmatprep.mubr.f32.mxu1 %v23129_v0 }
 0x1a2   : > { %9093 = vmatprep.subr.mxu1 %v20993_v21  ;;  %v21056_v36 = vpop.f32.mrf.mxu1  ;;  %9056 = vmatmul.mubr.f32.vlgmr.msra.gmra.mxu0 %v20941_v58 }
 0x1a3   : > { %v21059_v38 = vpop.f32.mrf.mxu0  ;;  %v1171_v41 = vadd.f32 %v1170_v48, %v1094_v29  ;;  %9143 = vperm.xlu0 %19758, %v9140_v16   ;;  %9242 = vmatprep.mubr.f32.mxu0 %v23129_v0 }
 0x1a4   : > { %v1246_v7 = vpop.f32.mrf.mxu1  ;;  %8978 = vmatmul.mubr.f32.vlgmr.msra.gmra.mxu1 %v20972_v60 }
 0x1a5   : > { %v1247_v62 = vadd.f32 %v1246_v7, %v1171_v41  ;;  %v1479_v9 = vpop.f32.mrf.mxu0  ;;  %9095 = vmatpush1.msra.mxu1 %v21001_v45  ;;  %9128 = vmatprep.mubr.f32.mxu1 %v23129_v0 }
 0x1a6   : > { %v1480_v21 = vadd.f32 %v1479_v9, %v934_v12  ;;  %v21065_v2 = vpop.f32.mrf.mxu1 }
 0x1a7   : > { %v21067_v35 = vpop.f32.mrf.mxu0  ;;  %v1325_v43 = vadd.f32 %v1324_v47, %v1247_v62 }
 0x1a8   : > { %v1398_v4 = vpop.f32.mrf.mxu1  ;;  %9130 = vmatmul.mubr.f32.vlgmr.msra.gmra.mxu1 %v20941_v58 }
 0x1a9   : > { %v1399_v48 = vadd.f32 %v1398_v4, %v1325_v43  ;;  %v1638_v52 = vpop.f32.mrf.mxu0  ;;  %9328 = vmatprep.mubr.f32.mxu1 %v23129_v0 }
 0x1aa   : > { %v21071_v60 = vpop.f32.mrf.mxu1 }
 0x1ab   : > { %v21073_v61 = vpop.f32.mrf.mxu0 }
 0x1ac   : > { %v1561_v45 = vpop.f32.mrf.mxu1 }
 0x1ad   : > { %v1562_v16 = vadd.f32 %v1561_v45, %v1480_v21  ;;  %v1792_v29 = vpop.f32.mrf.mxu0 }
 0x1ae   : > { %v21075_v12 = vpop.f32.mrf.mxu1 }
 0x1af   : > { %v21077_v41 = vpop.f32.mrf.mxu0  ;;  %v1639_v7 = vadd.f32 %v1638_v52, %v1562_v16 }
 0x1b0   : > { %v1714_v47 = vpop.f32.mrf.mxu1 }
 0x1b1   : > { %v1715_v62 = vadd.f32 %v1714_v47, %v1639_v7  ;;  %v1944_v9 = vpop.f32.mrf.mxu0 }
 0x1b2   : > { %v1945_v58 = vadd.f32 %v1944_v9, %v1399_v48  ;;  %v21079_v43 = vpop.f32.mrf.mxu1 }
 0x1b3   : > { %v21081_v4 = vpop.f32.mrf.mxu0  ;;  %v1793_v0 = vadd.f32 %v1792_v29, %v1715_v62 }
 0x1b4   : > { %v1866_v11 = vpop.f32.mrf.mxu1 }
 0x1b5   : > { %v1867_v37 = vadd.f32 %v1866_v11, %v1793_v0  ;;  %v2103_v28 = vpop.f32.mrf.mxu0 }
 0x1b6   : > { %v21083_v20 = vpop.f32.mrf.mxu1 }
 0x1b7   : > { %23242 = vst [vmem:[#allocation48_spill] sm:$0xff] %v21083_v20  ;;  %v21085_v21 = vpop.f32.mrf.mxu0 }
 0x1b8   : > { %v2026_v45 = vpop.f32.mrf.mxu1 }
 0x1b9   : > { %v2027_v3 = vadd.f32 %v2026_v45, %v1945_v58  ;;  %v2257_v19 = vpop.f32.mrf.mxu0 }
 0x1ba   : > { %v21087_v52 = vpop.f32.mrf.mxu1 }
 0x1bb   : > { %v2104_v16 = vadd.f32 %v2103_v28, %v2027_v3  ;;  %v21089_v7 = vpop.f32.mrf.mxu0 }
 0x1bc   : > { %23243 = vst [vmem:[#allocation49_spill] sm:$0xff] %v21089_v7  ;;  %v2179_v48 = vpop.f32.mrf.mxu1 }
 0x1bd   : > { %v2180_v47 = vadd.f32 %v2179_v48, %v2104_v16  ;;  %v2447_v9 = vpop.f32.mrf.mxu0 }
 0x1be   : > { %v21091_v55 = vpop.f32.mrf.mxu1 }
 0x1bf   : > { %v2258_v29 = vadd.f32 %v2257_v19, %v2180_v47  ;;  %v21093_v0 = vpop.f32.mrf.mxu0 }
 0x1c0   : > { %v2331_v11 = vpop.f32.mrf.mxu1 }
 0x1c1   : > { %v2332_v62 = vadd.f32 %v2331_v11, %v2258_v29  ;;  %v2606_v17 = vpop.f32.mrf.mxu0 }
 0x1c2   : > { %v21095_v34 = vpop.f32.mrf.mxu1 }
 0x1c3   : > { %23244 = vst [vmem:[#allocation50_spill] sm:$0xff] %v21095_v34  ;;  %v21097_v58 = vpop.f32.mrf.mxu0 }
 0x1c4   : > { %v2529_v45 = vpop.f32.mrf.mxu1 }
 0x1c5   : > { %v2530_v26 = vadd.f32 %v2529_v45, %v2447_v9  ;;  %v2760_v3 = vpop.f32.mrf.mxu0 }
 0x1c6   : > { %v21099_v28 = vpop.f32.mrf.mxu1 }
 0x1c7   : > { %v2607_v18 = vadd.f32 %v2606_v17, %v2530_v26  ;;  %v21101_v16 = vpop.f32.mrf.mxu0 }
 0x1c8   : > { %v2682_v48 = vpop.f32.mrf.mxu1 }
 0x1c9   : > { %v2683_v27 = vadd.f32 %v2682_v48, %v2607_v18  ;;  %v2912_v19 = vpop.f32.mrf.mxu0 }
 0x1ca   : > { %v21103_v47 = vpop.f32.mrf.mxu1 }
 0x1cb   : > { %v2761_v6 = vadd.f32 %v2760_v3, %v2683_v27  ;;  %v21105_v29 = vpop.f32.mrf.mxu0 }
 0x1cc   : > { %v2834_v11 = vpop.f32.mrf.mxu1 }
 0x1cd   : > { %v2835_v15 = vadd.f32 %v2834_v11, %v2761_v6  ;;  %v3071_v59 = vpop.f32.mrf.mxu0 }
 0x1ce   : > { %v21107_v39 = vpop.f32.mrf.mxu1 }
 0x1cf   : > { %v3304_v9 = vadd.f32 %v2835_v15, %v1867_v37  ;;  %v21109_v45 = vpop.f32.mrf.mxu0 }
 0x1d0   : > { %v2994_v63 = vpop.f32.mrf.mxu1 }
 0x1d1   : > { %v2995_v26 = vadd.f32 %v2994_v63, %v2912_v19  ;;  %v3225_v17 = vpop.f32.mrf.mxu0 }
 0x1d2   : > { %v21111_v56 = vpop.f32.mrf.mxu1 }
 0x1d3   : > { %v3072_v18 = vadd.f32 %v3071_v59, %v2995_v26  ;;  %v21113_v48 = vpop.f32.mrf.mxu0 }
 0x1d4   : > { %23245 = vst [vmem:[#allocation51_spill] sm:$0xff] %v21113_v48  ;;  %v3147_v40 = vpop.f32.mrf.mxu1 }
 0x1d5   : > { %v3148_v27 = vadd.f32 %v3147_v40, %v3072_v18  ;;  %v3419_v3 = vpop.f32.mrf.mxu0 }
 0x1d6   : > { %v21115_v31 = vpop.f32.mrf.mxu1 }
 0x1d7   : > { %23246 = vst [vmem:[#allocation52_spill] sm:$0xff] %v21115_v31  ;;  %v3226_v6 = vadd.f32 %v3225_v17, %v3148_v27  ;;  %v21117_v11 = vpop.f32.mrf.mxu0 }
 0x1d8   : > { %v3299_v5 = vpop.f32.mrf.mxu1 }
 0x1d9   : > { %v3300_v15 = vadd.f32 %v3299_v5, %v3226_v6  ;;  %v3578_v37 = vpop.f32.mrf.mxu0 }
 0x1da   : > { %v21119_v50 = vpop.f32.mrf.mxu1 }
 0x1db   : > { %23247 = vst [vmem:[#allocation53_spill] sm:$0xff] %v21119_v50  ;;  %v3306_v63 = vadd.f32 %v3300_v15, %v2332_v62  ;;  %v21121_v19 = vpop.f32.mrf.mxu0 }
 0x1dc   : > { %v3501_v42 = vpop.f32.mrf.mxu1 }
 0x1dd   : > { %v3502_v59 = vadd.f32 %v3501_v42, %v3419_v3  ;;  %v3732_v26 = vpop.f32.mrf.mxu0 }
 0x1de   : > { %v21123_v32 = vpop.f32.mrf.mxu1 }
 0x1df   : > { %v3579_v40 = vadd.f32 %v3578_v37, %v3502_v59  ;;  %v21125_v18 = vpop.f32.mrf.mxu0 }
 0x1e0   : > { %v3654_v22 = vpop.f32.mrf.mxu1 }
 0x1e1   : > { %v3655_v17 = vadd.f32 %v3654_v22, %v3579_v40  ;;  %v3884_v27 = vpop.f32.mrf.mxu0 }
 0x1e2   : > { %v21127_v54 = vpop.f32.mrf.mxu1 }
 0x1e3   : > { %v3733_v5 = vadd.f32 %v3732_v26, %v3655_v17  ;;  %v21129_v6 = vpop.f32.mrf.mxu0 }
 0x1e4   : > { %v3806_v46 = vpop.f32.mrf.mxu1 }
 0x1e5   : > { %v3807_v62 = vadd.f32 %v3806_v46, %v3733_v5  ;;  %v4043_v15 = vpop.f32.mrf.mxu0 }
 0x1e6   : > { %v21131_v1 = vpop.f32.mrf.mxu1 }
 0x1e7   : > { %23248 = vst [vmem:[#allocation54_spill] sm:$0xff] %v21131_v1  ;;  %v4276_v42 = vadd.f32 %v3807_v62, %v3304_v9  ;;  %v21133_v3 = vpop.f32.mrf.mxu0 }
 0x1e8   : > { %23249 = vst [vmem:[#allocation55_spill] sm:$0xff] %v21133_v3  ;;  %v3966_v30 = vpop.f32.mrf.mxu1 }
 0x1e9   : > { %v3967_v37 = vadd.f32 %v3966_v30, %v3884_v27  ;;  %v4197_v59 = vpop.f32.mrf.mxu0 }
 0x1ea   : > { %v21135_v23 = vpop.f32.mrf.mxu1 }
 0x1eb   : > { %v4044_v22 = vadd.f32 %v4043_v15, %v3967_v37  ;;  %v21137_v40 = vpop.f32.mrf.mxu0 }
 0x1ec   : > { %23250 = vst [vmem:[#allocation56_spill] sm:$0xff] %v21137_v40  ;;  %v4119_v14 = vpop.f32.mrf.mxu1 }
 0x1ed   : > { %v4120_v26 = vadd.f32 %v4119_v14, %v4044_v22  ;;  %v4391_v17 = vpop.f32.mrf.mxu0 }
 0x1ee   : > { %v21139_v25 = vpop.f32.mrf.mxu1 }
 0x1ef   : > { %23251 = vst [vmem:[#allocation57_spill] sm:$0xff] %v21139_v25  ;;  %v4198_v46 = vadd.f32 %v4197_v59, %v4120_v26  ;;  %v21141_v5 = vpop.f32.mrf.mxu0 }
 0x1f0   : > { %v4271_v24 = vpop.f32.mrf.mxu1 }
 0x1f1   : > { %v4272_v9 = vadd.f32 %v4271_v24, %v4198_v46  ;;  %v4550_v62 = vpop.f32.mrf.mxu0 }
 0x1f2   : > { %v21143_v10 = vpop.f32.mrf.mxu1 }
 0x1f3   : > { %23252 = vst [vmem:[#allocation58_spill] sm:$0xff] %v21143_v10  ;;  %v4278_v30 = vadd.f32 %v4272_v9, %v3306_v63  ;;  %v21145_v27 = vpop.f32.mrf.mxu0 }
 0x1f4   : > { %v4473_v50 = vpop.f32.mrf.mxu1 }
 0x1f5   : > { %v4474_v15 = vadd.f32 %v4473_v50, %v4391_v17  ;;  %v4704_v37 = vpop.f32.mrf.mxu0 }
 0x1f6   : > { %v21147_v40 = vpop.f32.mrf.mxu1 }
 0x1f7   : > { %v4551_v14 = vadd.f32 %v4550_v62, %v4474_v15  ;;  %v21149_v22 = vpop.f32.mrf.mxu0 }
 0x1f8   : > { %23253 = vst [vmem:[#allocation59_spill] sm:$0xff] %v21149_v22  ;;  %v4626_v48 = vpop.f32.mrf.mxu1 }
 0x1f9   : > { %v4627_v59 = vadd.f32 %v4626_v48, %v4551_v14  ;;  %v4856_v26 = vpop.f32.mrf.mxu0 }
 0x1fa   : > { %v21151_v34 = vpop.f32.mrf.mxu1 }
 0x1fb   : > { %v4705_v24 = vadd.f32 %v4704_v37, %v4627_v59  ;;  %v21153_v46 = vpop.f32.mrf.mxu0 }
 0x1fc   : > { %23254 = vst [vmem:[#allocation60_spill] sm:$0xff] %v21153_v46  ;;  %v4778_v10 = vpop.f32.mrf.mxu1 }
 0x1fd   : > { %v4779_v63 = vadd.f32 %v4778_v10, %v4705_v24  ;;  %v5015_v9 = vpop.f32.mrf.mxu0 }
 0x1fe   : > { %v21155_v25 = vpop.f32.mrf.mxu1 }
 0x1ff   : > { %23255 = vst [vmem:[#allocation61_spill] sm:$0xff] %v21155_v25  ;;  %v5248_v50 = vadd.f32 %v4779_v63, %v4276_v42  ;;  %v21157_v17 = vpop.f32.mrf.mxu0 }
 0x200   : > { %23256 = vst [vmem:[#allocation62_spill] sm:$0xff] %v21157_v17  ;;  %v4938_v1 = vpop.f32.mrf.mxu1 }
 0x201   : > { %v4939_v62 = vadd.f32 %v4938_v1, %v4856_v26  ;;  %v5169_v15 = vpop.f32.mrf.mxu0 }
 0x202   : > { %v21159_v22 = vpop.f32.mrf.mxu1 }
 0x203   : > { %23257 = vst [vmem:[#allocation63_spill] sm:$0xff] %v21159_v22  ;;  %v5016_v48 = vadd.f32 %v5015_v9, %v4939_v62  ;;  %v21161_v14 = vpop.f32.mrf.mxu0 }
 0x204   : > { %23258 = vst [vmem:[#allocation64_spill] sm:$0xff] %v21161_v14  ;;  %v5091_v31 = vpop.f32.mrf.mxu1 }
 0x205   : > { %v5092_v37 = vadd.f32 %v5091_v31, %v5016_v48  ;;  %v5363_v59 = vpop.f32.mrf.mxu0 }
 0x206   : > { %v21163_v46 = vpop.f32.mrf.mxu1 }
 0x207   : > { %23259 = vst [vmem:[#allocation65_spill] sm:$0xff] %v21163_v46  ;;  %v5170_v10 = vadd.f32 %v5169_v15, %v5092_v37  ;;  %v21165_v24 = vpop.f32.mrf.mxu0 }
 0x208   : > { %v5243_v25 = vpop.f32.mrf.mxu1 }
 0x209   : > { %v5244_v42 = vadd.f32 %v5243_v25, %v5170_v10  ;;  %v5522_v63 = vpop.f32.mrf.mxu0 }
 0x20a   : > { %v21167_v17 = vpop.f32.mrf.mxu1 }
 0x20b   : > { %23260 = vst [vmem:[#allocation66_spill] sm:$0xff] %v21167_v17  ;;  %v5250_v1 = vadd.f32 %v5244_v42, %v4278_v30  ;;  %v21169_v26 = vpop.f32.mrf.mxu0 }
 0x20c   : > { %v5445_v22 = vpop.f32.mrf.mxu1 }
 0x20d   : > { %v5446_v9 = vadd.f32 %v5445_v22, %v5363_v59  ;;  %v5676_v62 = vpop.f32.mrf.mxu0 }
 0x20e   : > { %v21171_v14 = vpop.f32.mrf.mxu1 }
 0x20f   : > { %v5523_v31 = vadd.f32 %v5522_v63, %v5446_v9  ;;  %v21173_v48 = vpop.f32.mrf.mxu0 }
 0x210   : > { %23261 = vst [vmem:[#allocation67_spill] sm:$0xff] %v21173_v48  ;;  %v5598_v46 = vpop.f32.mrf.mxu1 }
 0x211   : > { %v5599_v15 = vadd.f32 %v5598_v46, %v5523_v31  ;;  %v5828_v37 = vpop.f32.mrf.mxu0 }
 0x212   : > { %v21175_v7 = vpop.f32.mrf.mxu1 }
 0x213   : > { %v5677_v25 = vadd.f32 %v5676_v62, %v5599_v15  ;;  %v21177_v10 = vpop.f32.mrf.mxu0 }
 0x214   : > { %23262 = vst [vmem:[#allocation68_spill] sm:$0xff] %v21177_v10  ;;  %v5750_v17 = vpop.f32.mrf.mxu1 }
 0x215   : > { %v5751_v30 = vadd.f32 %v5750_v17, %v5677_v25  ;;  %v5987_v42 = vpop.f32.mrf.mxu0 }
 0x216   : > { %v21179_v20 = vpop.f32.mrf.mxu1 }
 0x217   : > { %23263 = vst [vmem:[#allocation69_spill] sm:$0xff] %v21179_v20  ;;  %v21181_v22 = vadd.f32 %v5751_v30, %v5248_v50  ;;  %v21183_v59 = vpop.f32.mrf.mxu0 }
 0x218   : > { %23265 = vst [vmem:[#allocation71_spill] sm:$0xff] %v21183_v59  ;;  %v5910_v63 = vpop.f32.mrf.mxu1 }
 0x219   : > { %23264 = vst [vmem:[#allocation70_spill] sm:$0xff] %v21181_v22  ;;  %v5911_v9 = vadd.f32 %v5910_v63, %v5828_v37  ;;  %v6141_v48 = vpop.f32.mrf.mxu0 }
 0x21a   : > { %v21185_v3 = vpop.f32.mrf.mxu1 }
 0x21b   : > { %v5988_v46 = vadd.f32 %v5987_v42, %v5911_v9  ;;  %v21187_v31 = vpop.f32.mrf.mxu0 }
 0x21c   : > { %23266 = vst [vmem:[#allocation72_spill] sm:$0xff] %v21187_v31  ;;  %v6063_v62 = vpop.f32.mrf.mxu1 }
 0x21d   : > { %v6064_v15 = vadd.f32 %v6063_v62, %v5988_v46  ;;  %v21189_v10 = vpop.f32.mrf.mxu0 }
 0x21e   : > { %v21191_v17 = vpop.f32.mrf.mxu1 }
 0x21f   : > { %23267 = vst [vmem:[#allocation73_spill] sm:$0xff] %v21191_v17  ;;  %v6142_v25 = vadd.f32 %v6141_v48, %v6064_v15  ;;  %v21193_v20 = vpop.f32.mrf.mxu0  ;;  %v631_v15 = vadd.f32 %v21026_v33, %v21008_v51 }
 0x220   : > { %v6215_v50 = vpop.f32.mrf.mxu1 }
 0x221   : > { %v6216_v30 = vadd.f32 %v6215_v50, %v6142_v25  ;;  %v21195_v22 = vpop.f32.mrf.mxu0 }
 0x222   : > { %v21197_v37 = vpop.f32.mrf.mxu1 }
 0x223   : > { %23268 = vst [vmem:[#allocation74_spill] sm:$0xff] %v21197_v37  ;;  %v21199_v63 = vadd.f32 %v6216_v30, %v5250_v1  ;;  %v21201_v42 = vpop.f32.mrf.mxu0  ;;  %v1096_v37 = vadd.f32 %v21056_v36, %v21036_v57 }
 0x224   : > { %v6417_v9 = vpop.f32.mrf.mxu1 }
 0x225   : > { %23269 = vst [vmem:[#allocation75_spill] sm:$0xff] %v21199_v63  ;;  %v21203_v31 = vpop.f32.mrf.mxu0  ;;  %v708_v63 = vadd.f32 %v21016_v53, %v631_v15 }
 0x226   : > { %23270 = vst [vmem:[#allocation76_spill] sm:$0xff] %v21203_v31  ;;  %v6419_v46 = vpop.f32.mrf.mxu1 }
 0x227   : > { %v21205_v62 = vpop.f32.mrf.mxu0  ;;  %v784_v33 = vadd.f32 %v21034_v49, %v708_v63 }
 0x228   : > { %23271 = vst [vmem:[#allocation77_spill] sm:$0xff] %v21205_v62  ;;  %v21207_v17 = vpop.f32.mrf.mxu1 }
 0x229   : > { %v21209_v48 = vpop.f32.mrf.mxu0  ;;  %v862_v57 = vadd.f32 %v21028_v13, %v784_v33  ;;  %v2532_v13 = vadd.f32 %v21099_v28, %v21093_v0 }
 0x22a   : > { %v21213_v25 = vpop.f32.mrf.mxu1 }
 0x22b   : > { %v21215_v50 = vpop.f32.mrf.mxu0  ;;  %v936_v49 = vadd.f32 %v21043_v8, %v862_v57  ;;  %v3504_v8 = vadd.f32 %v21123_v32, %v21117_v11  ;;  %v4476_v32 = vadd.f32 %v21147_v40, %v21141_v5  ;;  %v6418_v5 = vadd.f32 %v6417_v9, %v21189_v10 }
 0x22c   : > { %23272 = vst [vmem:[#allocation78_spill] sm:$0xff] %v21215_v50  ;;  %v21217_v1 = vpop.f32.mrf.mxu1  ;;  %v1173_v50 = vadd.f32 %v21045_v44, %v1096_v37 }
 0x22d   : > { %23273 = vst [vmem:[#allocation79_spill] sm:$0xff] %v21217_v1  ;;  %v21219_v30 = vpop.f32.mrf.mxu0  ;;  %v6495_v9 = vadd.f32 %v21195_v22, %v6418_v5  ;;  %v23290_v5 = vld [vmem:[#allocation57_spill] sm:$0xff] }
 0x22e   : > { %23274 = vst [vmem:[#allocation80_spill] sm:$0xff] %v21219_v30  ;;  %v21224_v59 = vpop.f32.mrf.mxu1  ;;  %v1249_v36 = vadd.f32 %v21065_v2, %v1173_v50 }
 0x22f   : > { %23275 = vst [vmem:[#allocation81_spill] sm:$0xff] %v21224_v59  ;;  %v21226_v62 = vpop.f32.mrf.mxu0 }
 0x230   : > { %23276 = vst [vmem:[#allocation82_spill] sm:$0xff] %v21226_v62  ;;  %v21228_v31 = vpop.f32.mrf.mxu1  ;;  %v1327_v44 = vadd.f32 %v21059_v38, %v1249_v36 }
 0x231   : > { %23277 = vst [vmem:[#allocation83_spill] sm:$0xff] %v21228_v31  ;;  %v21230_v51 = vpop.f32.mrf.mxu0 }
 0x232   : > { %23278 = vst [vmem:[#allocation84_spill] sm:$0xff] %v21230_v51  ;;  %v21234_v1 = vpop.f32.mrf.mxu1  ;;  %v1401_v50 = vadd.f32 %v21071_v60, %v1327_v44 }
 0x233   : > { %v21236_v30 = vpop.f32.mrf.mxu0 }
 0x234   : > { %23279 = vst [vmem:[#allocation85_spill] sm:$0xff] %v21236_v30  ;;  %v21238_v53 = vpop.f32.mrf.mxu1  ;;  %v1482_v30 = vadd.f32 %v21067_v35, %v936_v49  ;;  %v1947_v57 = vadd.f32 %v21081_v4, %v1401_v50  ;;  %v2609_v35 = vadd.f32 %v21097_v58, %v2532_v13 }
 0x235   : > { %23280 = vst [vmem:[#allocation86_spill] sm:$0xff] %v21238_v53  ;;  %v7307_v15 = vpop.f32.mrf.mxu0 }
 0x236   : > { %v21242_v62 = vpop.f32.mrf.mxu1  ;;  %v1564_v33 = vadd.f32 %v21075_v12, %v1482_v30  ;;  %v2029_v28 = vadd.f32 %v21087_v52, %v1947_v57  ;;  %v3581_v12 = vadd.f32 %v21121_v19, %v3504_v8  ;;  %v2685_v4 = vadd.f32 %v21103_v47, %v2609_v35 }
 0x237   : > { %v7309_v59 = vpop.f32.mrf.mxu0  ;;  %v5448_v52 = vadd.f32 %v21171_v14, %v21165_v24  ;;  %v2997_v19 = vadd.f32 %v21111_v56, %v21105_v29  ;;  %v4553_v47 = vadd.f32 %v21145_v27, %v4476_v32  ;;  %v3969_v14 = vadd.f32 %v21135_v23, %v21129_v6 }
 0x238   : > { %v21244_v31 = vpop.f32.mrf.mxu1  ;;  %v1641_v0 = vadd.f32 %v21073_v61, %v1564_v33  ;;  %v2106_v61 = vadd.f32 %v21085_v21, %v2029_v28  ;;  %v3657_v40 = vadd.f32 %v21127_v54, %v3581_v12  ;;  %v2763_v21 = vadd.f32 %v21101_v16, %v2685_v4  ;;  %v23286_v28 = vld [vmem:[#allocation54_spill] sm:$0xff]  ;;  %v23287_v4 = vld [vmem:[#allocation59_spill] sm:$0xff] }
 0x239   : > { %23281 = vst [vmem:[#allocation87_spill] sm:$0xff] %v21244_v31  ;;  %v7466_v51 = vpop.f32.mrf.mxu0  ;;  %v5525_v29 = vadd.f32 %v21169_v26, %v5448_v52  ;;  %v3074_v27 = vadd.f32 %v21109_v45, %v2997_v19  ;;  %v4629_v23 = vadd.f32 %v21151_v34, %v4553_v47  ;;  %v23283_v45 = vld [vmem:[#allocation48_spill] sm:$0xff]  ;;  %v6571_v12 = vadd.f32 %v21207_v17, %v6495_v9  ;;  %v23292_v17 = vld [vmem:[#allocation67_spill] sm:$0xff] }
 0x23a   : > { %v21248_v37 = vpop.f32.mrf.mxu1  ;;  %v1717_v44 = vadd.f32 %v21079_v43, %v1641_v0  ;;  %v6420_v43 = vadd.f32 %v6419_v46, %v21193_v20  ;;  %v2182_v54 = vadd.f32 %v21091_v55, %v2106_v61  ;;  %v3735_v20 = vadd.f32 %v21125_v18, %v3657_v40  ;;  %v23284_v18 = vld [vmem:[#allocation49_spill] sm:$0xff]  ;;  %v23289_v61 = vld [vmem:[#allocation63_spill] sm:$0xff] }
 0x23b   : > { %v7468_v63 = vpop.f32.mrf.mxu0  ;;  %v2837_v55 = vadd.f32 %v21107_v39, %v2763_v21  ;;  %v5601_v22 = vadd.f32 %v21175_v7, %v5525_v29  ;;  %v23294_v29 = vld [vmem:[#allocation83_spill] sm:$0xff] }
 0x23c   : > { %v7389_v53 = vpop.f32.mrf.mxu1  ;;  %v1795_v56 = vadd.f32 %v21077_v41, %v1717_v44  ;;  %v6497_v6 = vadd.f32 %v21201_v42, %v6420_v43  ;;  %v23282_v41 = vld [vmem:[#allocation55_spill] sm:$0xff]  ;;  %v2260_v0 = vadd.f32 %v23284_v18, %v2182_v54  ;;  %v3809_v42 = vadd.f32 %v23286_v28, %v3735_v20 }
 0x23d   : > { %v21253_v2 = vpop.f32.mrf.mxu0  ;;  %v7390_v24 = vadd.f32 %v7389_v53, %v7307_v15  ;;  %v4046_v26 = vadd.f32 %v23282_v41, %v3969_v14  ;;  %v4707_v44 = vadd.f32 %v23287_v4, %v4629_v23  ;;  %v23291_v14 = vld [vmem:[#allocation50_spill] sm:$0xff]  ;;  %v23296_v23 = vld [vmem:[#allocation76_spill] sm:$0xff]  ;;  %v23297_v41 = vld [vmem:[#allocation61_spill] sm:$0xff] }
 0x23e   : > { %v7391_v31 = vpop.f32.mrf.mxu1  ;;  %v1869_v35 = vadd.f32 %v23283_v45, %v1795_v56  ;;  %v6573_v19 = vadd.f32 %v21213_v25, %v6497_v6  ;;  %v23293_v56 = vld [vmem:[#allocation68_spill] sm:$0xff]  ;;  %v23295_v25 = vld [vmem:[#allocation51_spill] sm:$0xff]  ;;  %v6649_v6 = vadd.f32 %v23296_v23, %v6571_v12 }
 0x23f   : > { %v21259_v38 = vpop.f32.mrf.mxu0  ;;  %v7392_v16 = vadd.f32 %v7391_v31, %v7309_v59  ;;  %v7467_v15 = vadd.f32 %v7466_v51, %v7390_v24  ;;  %v23285_v31 = vld [vmem:[#allocation52_spill] sm:$0xff]  ;;  %v4122_v47 = vadd.f32 %v23290_v5, %v4046_v26  ;;  %v21328_v24 = vadd.f32 %v23291_v14, %v2260_v0  ;;  %v23303_v4 = vld [vmem:[#allocation71_spill] sm:$0xff] }
 0x240   : > { %v7542_v36 = vpop.f32.mrf.mxu1  ;;  %v3150_v34 = vadd.f32 %v23285_v31, %v3074_v27  ;;  %v23288_v51 = vld [vmem:[#allocation60_spill] sm:$0xff]  ;;  %v3305_v7 = vadd.f32 %v2837_v55, %v1869_v35  ;;  %v5913_v54 = vadd.f32 %v21185_v3, %v23293_v56  ;;  %v6883_v27 = vadd.f32 %v23294_v29, %v21209_v48  ;;  %v23299_v35 = vld [vmem:[#allocation77_spill] sm:$0xff]  ;;  %v23300_v3 = vld [vmem:[#allocation78_spill] sm:$0xff] }
 0x241   : > { %v21263_v49 = vpop.f32.mrf.mxu0  ;;  %v7469_v32 = vadd.f32 %v7468_v63, %v7392_v16  ;;  %v4941_v52 = vadd.f32 %v23289_v61, %v23288_v51  ;;  %v7543_v43 = vadd.f32 %v7542_v36, %v7467_v15  ;;  %v5679_v63 = vadd.f32 %v23292_v17, %v5601_v22  ;;  %v23298_v15 = vld [vmem:[#allocation62_spill] sm:$0xff]  ;;  %v23301_v22 = vld [vmem:[#allocation56_spill] sm:$0xff] }
 0x242   : > { %v21267_v60 = vpop.f32.mrf.mxu1  ;;  %v3228_v9 = vadd.f32 %v23295_v25, %v3150_v34  ;;  %v4277_v16 = vadd.f32 %v3809_v42, %v3305_v7  ;;  %v4781_v26 = vadd.f32 %v23297_v41, %v4707_v44  ;;  %v6651_v18 = vadd.f32 %v23299_v35, %v6573_v19  ;;  %v23304_v51 = vld [vmem:[#allocation80_spill] sm:$0xff]  ;;  %v23305_v7 = vld [vmem:[#allocation79_spill] sm:$0xff]  ;;  %v23311_v41 = vld [vmem:[#allocation70_spill] sm:$0xff] }
 0x243   : > { %v21270_v30 = vpop.f32.mrf.mxu0  ;;  %v7545_v36 = vadd.f32 %v21267_v60, %v7469_v32  ;;  %v5018_v45 = vadd.f32 %v23298_v15, %v4941_v52  ;;  %v6885_v0 = vadd.f32 %v21234_v1, %v23300_v3  ;;  %v4200_v31 = vadd.f32 %v23301_v22, %v4122_v47  ;;  %v23302_v60 = vld [vmem:[#allocation69_spill] sm:$0xff] }
 0x244   : > { %v21274_v11 = vpop.f32.mrf.mxu1  ;;  %v7621_v34 = vadd.f32 %v21253_v2, %v7543_v43  ;;  %v5753_v32 = vadd.f32 %v23302_v60, %v5679_v63  ;;  %v5990_v44 = vadd.f32 %v23303_v4, %v5913_v54  ;;  %v6960_v61 = vadd.f32 %v23304_v51, %v6883_v27  ;;  %v23308_v63 = vld [vmem:[#allocation82_spill] sm:$0xff] }
 0x245   : > { %v21277_v58 = vpop.f32.mrf.mxu0  ;;  %v6723_v1 = vadd.f32 %v23305_v7, %v6649_v6  ;;  %v7623_v5 = vadd.f32 %v21259_v38, %v7545_v36  ;;  %v5249_v43 = vadd.f32 %v4781_v26, %v4277_v16  ;;  %v6962_v56 = vadd.f32 %v23308_v63, %v6885_v0  ;;  %v23309_v38 = vld [vmem:[#allocation73_spill] sm:$0xff] }
 0x246   : > { %v21283_v13 = vpop.f32.mrf.mxu1  ;;  %v7695_v29 = vadd.f32 %v21274_v11, %v7621_v34 }
 0x247   : > { %v21289_v50 = vpop.f32.mrf.mxu0  ;;  %v6221_v23 = vadd.f32 %v5753_v32, %v5249_v43  ;;  %v7192_v26 = vadd.f32 %v6723_v1, %v23311_v41  ;;  %v7697_v15 = vadd.f32 %v21283_v13, %v7623_v5  ;;  %v23314_v32 = vld [vmem:[#allocation58_spill] sm:$0xff]  ;;  %v23315_v13 = vld [vmem:[#allocation72_spill] sm:$0xff] }
 0x248   : > { %v7854_v33 = vpop.f32.mrf.mxu1  ;;  %v4274_v4 = vadd.f32 %v23314_v32, %v4200_v31  ;;  %v23317_v5 = vld [vmem:[#allocation66_spill] sm:$0xff] }
 0x249   : > { %v21296_v8 = vpop.f32.mrf.mxu0  ;;  %v7855_v28 = vadd.f32 %v7854_v33, %v21263_v49  ;;  %v23306_v49 = vld [vmem:[#allocation65_spill] sm:$0xff]  ;;  %v8164_v34 = vadd.f32 %v7695_v29, %v7192_v26  ;;  %v17724_v32 = vld [vmem:[%s23327_s5] sm:$0xff]  ;;  %s19570_s5 = sld [smem:[#allocation2 + $0x5]] }
 0x24a   : > { %v7856_v10 = vpop.f32.mrf.mxu1  ;;  %v5094_v33 = vadd.f32 %v23306_v49, %v5018_v45 }
 0x24b   : > { %v21304_v46 = vpop.f32.mrf.mxu0  ;;  %v7857_v52 = vadd.f32 %v7856_v10, %v21270_v30  ;;  %v7932_v30 = vadd.f32 %v21277_v58, %v7855_v28 }
 0x24c   : > { %v21308_v53 = vpop.f32.mrf.mxu1 }
 0x24d   : > { %v8279_v57 = vpop.f32.mrf.mxu0  ;;  %v7934_v16 = vadd.f32 %v21289_v50, %v7857_v52  ;;  %v8008_v28 = vadd.f32 %v21308_v53, %v7932_v30  ;;  %v9144_v52 = vpop.permute.xlu0 %9143 }
 0x24e   : > { %v21315_v59 = vpop.f32.mrf.mxu1 }
 0x24f   : > { %v8281_v39 = vpop.f32.mrf.mxu0  ;;  %v8086_v31 = vadd.f32 %v21296_v8, %v8008_v28 }
 0x250   : > { %v21324_v40 = vpop.f32.mrf.mxu1 }
 0x251   : > { %v8438_v21 = vpop.f32.mrf.mxu0 }
 0x252   : > { %v21335_v20 = vpop.f32.mrf.mxu1 }
 0x253   : > { %v8440_v55 = vpop.f32.mrf.mxu0 }
 0x254   : > { %v8361_v48 = vpop.f32.mrf.mxu1 }
 0x255   : > { %v8362_v42 = vadd.f32 %v8361_v48, %v8279_v57  ;;  %v8592_v12 = vpop.f32.mrf.mxu0  ;;  %v23307_v57 = vld [vmem:[#allocation81_spill] sm:$0xff]  ;;  %v7038_v48 = vadd.f32 %v21242_v62, %v6962_v56  ;;  %v23320_v56 = vld [vmem:[#allocation87_spill] sm:$0xff] }
 0x256   : > { %v8363_v19 = vpop.f32.mrf.mxu1  ;;  %v6725_v17 = vadd.f32 %v23307_v57, %v6651_v18  ;;  %v23312_v18 = vld [vmem:[#allocation53_spill] sm:$0xff] }
 0x257   : > { %v8439_v47 = vadd.f32 %v8438_v21, %v8362_v42  ;;  %v8364_v14 = vadd.f32 %v8363_v19, %v8281_v39  ;;  %v8594_v2 = vpop.f32.mrf.mxu0  ;;  %v6066_v21 = vadd.f32 %v23309_v38, %v5990_v44  ;;  %v23310_v39 = vld [vmem:[#allocation86_spill] sm:$0xff]  ;;  %v3302_v58 = vadd.f32 %v23312_v18, %v3228_v9  ;;  %v23316_v44 = vld [vmem:[#allocation84_spill] sm:$0xff] }
 0x258   : > { %v8514_v54 = vpop.f32.mrf.mxu1  ;;  %v7036_v6 = vadd.f32 %v23310_v39, %v6960_v61  ;;  %v7193_v0 = vadd.f32 %v6725_v17, %v6221_v23  ;;  %v8010_v9 = vadd.f32 %v21315_v59, %v7934_v16  ;;  %v23319_v59 = vld [vmem:[#allocation74_spill] sm:$0xff] }
 0x259   : > { %v8441_v10 = vadd.f32 %v8440_v55, %v8364_v14  ;;  %v8515_v27 = vadd.f32 %v8514_v54, %v8439_v47  ;;  %v8744_v25 = vpop.f32.mrf.mxu0  ;;  %v23313_v55 = vld [vmem:[#allocation64_spill] sm:$0xff]  ;;  %v3307_v1 = vadd.f32 %v3302_v58, %v21328_v24  ;;  %v23318_v47 = vld [vmem:[#allocation85_spill] sm:$0xff] }
 0x25a   : > { %v8516_v36 = vpop.f32.mrf.mxu1  ;;  %v5172_v3 = vadd.f32 %v23313_v55, %v5094_v33  ;;  %v7114_v51 = vadd.f32 %v23316_v44, %v7036_v6  ;;  %v8165_v19 = vadd.f32 %v7697_v15, %v7193_v0  ;;  %v7116_v14 = vadd.f32 %v23318_v47, %v7038_v48 }
 0x25b   : > { %v8593_v45 = vadd.f32 %v8592_v12, %v8515_v27  ;;  %v8517_v35 = vadd.f32 %v8516_v36, %v8441_v10  ;;  %v8746_v11 = vpop.f32.mrf.mxu0  ;;  %v6144_v12 = vadd.f32 %v23315_v13, %v6066_v21  ;;  %v4279_v17 = vadd.f32 %v4274_v4, %v3307_v1  ;;  %v9156_v4 = vld [vmem:[%s23328_s4] sm:$0xff] }
 0x25c   : > { %v8666_v22 = vpop.f32.mrf.mxu1  ;;  %v5246_v53 = vadd.f32 %v23317_v5, %v5172_v3  ;;  %v7188_v54 = vadd.f32 %v23320_v56, %v7114_v51  ;;  %v8088_v29 = vadd.f32 %v21304_v46, %v8010_v9  ;;  %v7190_v8 = vadd.f32 %v21248_v37, %v7116_v14  ;;  %v23321_v46 = vld [vmem:[#allocation75_spill] sm:$0xff]  ;;  %v23333_v56 = vld [vmem:[#allocation17_spill] sm:$0xff] }
 0x25d   : > { %v8595_v50 = vadd.f32 %v8594_v2, %v8517_v35  ;;  %v8667_v42 = vadd.f32 %v8666_v22, %v8593_v45  ;;  %v8903_v60 = vpop.f32.mrf.mxu0  ;;  %v6218_v63 = vadd.f32 %v23319_v59, %v6144_v12  ;;  %v9174_v13 = vsel %vm469_vm0, %v9156_v4, 0  ;;  %v23332_v59 = vld [vmem:[#allocation16_spill] sm:$0xff] }
 0x25e   : > { %v8668_v61 = vpop.f32.mrf.mxu1  ;;  %v5251_v38 = vadd.f32 %v5246_v53, %v4279_v17  ;;  %v7194_v41 = vadd.f32 %v7188_v54, %v23321_v46  ;;  %v8162_v15 = vadd.f32 %v21335_v20, %v8088_v29  ;;  %v21462_v44 = vand.u32 4294901760, %v9174_v13 }
 0x25f   : > { %v9136_v7 = vadd.f32 %v8667_v42, %v8164_v34  ;;  %v8669_v62 = vadd.f32 %v8668_v61, %v8595_v50  ;;  %v8905_v43 = vpop.f32.mrf.mxu0 }
 0x260   : > { %v8826_v2 = vpop.f32.mrf.mxu1  ;;  %v6223_v36 = vadd.f32 %v6218_v63, %v5251_v38 }
 0x261   : > { %v9137_v49 = vadd.f32 %v8669_v62, %v8165_v19  ;;  %v9146_v33 = vadd.f32 %v9144_v52, %v9136_v7  ;;  %v8827_v57 = vadd.f32 %v8826_v2, %v8744_v25  ;;  %v8160_v25 = vadd.f32 %v21324_v40, %v8086_v31  ;;  %v23330_v19 = vld [vmem:[#allocation18_spill] sm:$0xff] }
 0x262   : > { %v8828_v30 = vpop.f32.mrf.mxu1  ;;  %v9057_v39 = vpop.f32.mrf.mxu0  ;;  %v7195_v37 = vadd.f32 %v7190_v8, %v6223_v36  ;;  %v23334_v8 = vmov 0.0  }
 0x263   : > { %v9147_v24 = vadd.f32 %v9144_v52, %v9137_v49  ;;  %v21379_v10 = vmax.f32 %v9146_v33, 0.0  ;;  %v8904_v27 = vadd.f32 %v8903_v60, %v8827_v57  ;;  %v8829_v23 = vadd.f32 %v8828_v30, %v8746_v11  ;;  %v23331_v57 = vld [vmem:[#allocation19_spill] sm:$0xff] }
 0x264   : > { %v8979_v21 = vpop.f32.mrf.mxu1  ;;  %v9059_v18 = vpop.f32.mrf.mxu0  ;;  %v8166_v55 = vadd.f32 %v8160_v25, %v7194_v41  ;;  %v8167_v48 = vadd.f32 %v8162_v15, %v7195_v37 }
 0x265   : > { %v8906_v6 = vadd.f32 %v8905_v43, %v8829_v23  ;;  %v8980_v16 = vadd.f32 %v8979_v21, %v8904_v27  ;;  %9157 = vrot.lane.b32.xlu1 %v21379_v10, %s23167_s22  ;;  %v21387_v45 = vmax.f32 %v9147_v24, 0.0  ;;  %v19553_v21 = vld [vmem:[%s23328_s4 + $0x20] sm:$0xff]  ;;  %v21511_v37 = vand.u32 4294901760, %v21379_v10 }
 0x266   : > { %v8981_v26 = vpop.f32.mrf.mxu1 }
 0x267   : > { %v9058_v35 = vadd.f32 %v9057_v39, %v8980_v16  ;;  %v8982_v11 = vadd.f32 %v8981_v26, %v8906_v6  ;;  %v10107_v6 = vsel %vm469_vm0, %v19553_v21, 0 }
 0x268   : > { %v9131_v58 = vpop.f32.mrf.mxu1  ;;  %v21497_v26 = vand.u32 4294901760, %v10107_v6 }
 0x269   : > { %v9060_v40 = vadd.f32 %v9059_v18, %v8982_v11  ;;  %v9132_v3 = vadd.f32 %v9131_v58, %v9058_v35  ;;  %9159 = vrot.lane.b32.xlu1 %v21387_v45, %s23167_s22  ;;  %v21502_v11 = vand.u32 4294901760, %v21387_v45 }
 0x26a   : > { %v9133_v0 = vpop.f32.mrf.mxu1  ;;  %v21506_v18 = vsub.f32 %v10107_v6, %v21497_v26 }
 0x26b   : > { %v9138_v22 = vadd.f32 %v9132_v3, %v8166_v55  ;;  %v9134_v34 = vadd.f32 %v9133_v0, %v9060_v40  ;;  %v10218_v40 = vsub.f32 %v21387_v45, %v21502_v11 }
 0x26c   : > { %v21518_v3 = vand.u32 4294901760, %v21506_v18 }
 0x26d   : > { %v9148_v28 = vadd.f32 %v9144_v52, %v9138_v22  ;;  %v9139_v50 = vadd.f32 %v9134_v34, %v8167_v48  ;;  %v10224_v48 = vsub.f32 %v21379_v10, %v21511_v37  ;;  %v10219_v22 = vand.u32 4294901760, %v10218_v40 }
 0x26f   : > { %v21391_v20 = vmax.f32 %v9148_v28, 0.0  ;;  %v9149_v42 = vadd.f32 %v9144_v52, %v9139_v50  ;;  %v21467_v52 = vsub.f32 %v9174_v13, %v21462_v44  ;;  %v10220_v28 = vsub.f32 %v10218_v40, %v10219_v22  ;;  %v19554_v13 = vld [vmem:[%s23328_s4 + $0x8] sm:$0xff] }
 0x271   : > { %v21393_v60 = vmax.f32 %v9149_v42, 0.0  ;;  %9161 = vrot.lane.b32.xlu1 %v21391_v20, %s23167_s22  ;;  %v21471_v1 = vand.u32 4294901760, %v21467_v52  ;;  %v21542_v4 = vand.u32 4294901760, %v21391_v20 }
 0x273   : > { %9163 = vrot.lane.b32.xlu0 %v21393_v60, %s23167_s22  ;;  %v9246_v2 = vsub.f32 %v21467_v52, %v21471_v1  ;;  %v21534_v50 = vand.u32 4294901760, %v21393_v60  ;;  %s19562_s22 = sld [smem:[#allocation2 + $0x1]] }
 0x275   : > { %11043 = vrot.lane.b32.xlu1 %v21387_v45, %s23171_s24  ;;  %v9247_v30 = vand.u32 4294901760, %v9246_v2  ;;  %v23336_v2 = vld [vmem:[#allocation21_spill] sm:$0xff] }
 0x277   : > { %11041 = vrot.lane.b32.xlu0 %v21379_v10, %s23171_s24 }
 0x279   : > { %11045 = vrot.lane.b32.xlu1 %v21391_v20, %s23171_s24 }
 0x27b   : > { %11047 = vrot.lane.b32.xlu0 %v21393_v60, %s23171_s24  ;;  %s19563_s24 = sld [smem:[#allocation2 + $0xa]] }
 0x27d   : > { %11998 = vrot.lane.b32.xlu1 %v21387_v45, %s23169_s25 }
 0x27f   : > { %11996 = vrot.lane.b32.xlu0 %v21379_v10, %s23169_s25 }
 0x281   : > { %12000 = vrot.lane.b32.xlu1 %v21391_v20, %s23169_s25 }
 0x283   : > { %12002 = vrot.lane.b32.xlu0 %v21393_v60, %s23169_s25  ;;  %s19564_s25 = sld [smem:[#allocation2 + $0x2]] }
 0x285   : > { %12953 = vrot.lane.b32.xlu1 %v21387_v45, %s23322_s13 }
 0x287   : > { %12951 = vrot.lane.b32.xlu0 %v21379_v10, %s23322_s13 }
 0x289   : > { %12955 = vrot.lane.b32.xlu1 %v21391_v20, %s23322_s13 }
 0x28b   : > { %12957 = vrot.lane.b32.xlu0 %v21393_v60, %s23322_s13 }
 0x28d   : > { %13910 = vrot.lane.b32.xlu1 %v21391_v20, %s23323_s15 }
 0x28f   : > { %13908 = vrot.lane.b32.xlu0 %v21387_v45, %s23323_s15 }
 0x291   : > { %13912 = vrot.lane.b32.xlu1 %v21393_v60, %s23323_s15 }
 0x293   : > { %13906 = vrot.lane.b32.xlu0 %v21379_v10, %s23323_s15 }
 0x295   : > { %14865 = vrot.lane.b32.xlu1 %v21391_v20, %s23324_s12 }
 0x297   : > { %14863 = vrot.lane.b32.xlu0 %v21387_v45, %s23324_s12 }
 0x299   : > { %14867 = vrot.lane.b32.xlu1 %v21393_v60, %s23324_s12 }
 0x29b   : > { %14861 = vrot.lane.b32.xlu0 %v21379_v10, %s23324_s12 }
 0x29d   : > { %15820 = vrot.lane.b32.xlu1 %v21391_v20, %s23325_s14 }
 0x29f   : > { %15818 = vrot.lane.b32.xlu0 %v21387_v45, %s23325_s14 }
 0x2a1   : > { %15822 = vrot.lane.b32.xlu1 %v21393_v60, %s23325_s14 }
 0x2a3   : > { %15816 = vrot.lane.b32.xlu0 %v21379_v10, %s23325_s14 }
 0x2a5   : > { %16775 = vrot.lane.b32.xlu1 %v21391_v20, %s23326_s30 }
 0x2a7   : > { %16773 = vrot.lane.b32.xlu0 %v21387_v45, %s23326_s30  ;;  %v10179_v45 = vsub.f32 %v21506_v18, %v21518_v3 }
 0x2a9   : > { %16777 = vrot.lane.b32.xlu1 %v21393_v60, %s23326_s30  ;;  %v10180_v42 = vand.u32 4294901760, %v10179_v45 }
 0x2ab   : > { %16771 = vrot.lane.b32.xlu0 %v21379_v10, %s23326_s30  ;;  %v10225_v10 = vand.u32 4294901760, %v10224_v48 }
 0x2af   : > { %17727 = vperm.xlu0 %19758, %v17724_v32   ;;  %v10226_v32 = vsub.f32 %v10224_v48, %v10225_v10 }
 0x2d7   : > { %v9158_v12 = vpop.permute.xlu1 %9157 }
 0x2db   : > { %v9160_v51 = vpop.permute.xlu1 %9159 }
 0x2dc   : > { %v9167_v61 = vsel %vm444_vm1, %v9158_v12, %v9160_v51 }
 0x2dd   : > { %v9170_v7 = vmul.f32 %v9167_v61, %v23330_v19  ;;  %v10683_v61 = vsub.f32 %v21393_v60, %v21534_v50 }
 0x2df   : > { %v9206_v62 = vand.u32 4294901760, %v9170_v7 }
 0x2e1   : > { %v9285_v5 = vsub.f32 %v9170_v7, %v9206_v62  ;;  %9207 = vmatprep.subr.mxu0 %v9206_v62  ;;  %v11058_v7 = vsel %vm469_vm0, %v19554_v13, 0 }
 0x2e3   : > { %v9162_v53 = vpop.permute.xlu1 %9161  ;;  %v9286_v47 = vand.u32 4294901760, %v9285_v5 }
 0x2e4   : > { %v9166_v14 = vsel %vm444_vm1, %v9160_v51, %v9162_v53  ;;  %v10221_v51 = vand.u32 4294901760, %v10220_v28 }
 0x2e5   : > { %v9164_v43 = vpop.permute.xlu0 %9163  ;;  %v9287_v31 = vsub.f32 %v9285_v5, %v9286_v47  ;;  %v9171_v17 = vmul.f32 %v9166_v14, %v23331_v57  ;;  %v21564_v14 = vand.u32 4294901760, %v11058_v7 }
 0x2e6   : > { %v9165_v49 = vsel %vm444_vm1, %v9162_v53, %v9164_v43  ;;  %v9168_v33 = vsel %vm444_vm1, %v9164_v43, %v9158_v12 }
 0x2e7   : > { %v9169_v63 = vmul.f32 %v9168_v33, %v23332_v59  ;;  %v9172_v54 = vmul.f32 %v9165_v49, %v23333_v56  ;;  %v9288_v29 = vand.u32 4294901760, %v9287_v31  ;;  %v21486_v23 = vand.u32 4294901760, %v9171_v17  ;;  %v11044_v12 = vpop.permute.xlu1 %11043 }
 0x2e8   : > { %v21577_v49 = vsub.f32 %v11058_v7, %v21564_v14 }
 0x2e9   : > { %v9208_v24 = vand.u32 4294901760, %v9169_v63  ;;  %v21484_v27 = vand.u32 4294901760, %v9172_v54  ;;  %9289 = vmatprep.subr.mxu1 %v9288_v29  ;;  %v9756_v16 = vsub.f32 %v9171_v17, %v21486_v23  ;;  %v11042_v34 = vpop.permute.xlu0 %11041 }
 0x2eb   : > { %v9291_v38 = vsub.f32 %v9169_v63, %v9208_v24  ;;  %9209 = vmatpush1.msra.mxu0 %v9208_v24  ;;  %v9750_v39 = vsub.f32 %v9172_v54, %v21484_v27  ;;  %v9757_v15 = vand.u32 4294901760, %v9756_v16  ;;  %v11046_v17 = vpop.permute.xlu1 %11045  ;;  %v21591_v54 = vand.u32 4294901760, %v21577_v49 }
 0x2ec   : > { %9248 = vmatmul.mubr.f32.vlgmr.msra.gmra.mxu0 %v9247_v30  ;;  %9368 = vmatprep.subr.mxu0 %v9285_v5  ;;  %v23335_v5 = vld [vmem:[#allocation20_spill] sm:$0xff] }
 0x2ed   : > { %9371 = vmatpush1.msra.mxu0 %v9291_v38  ;;  %9404 = vmatprep.mubr.f32.mxu0 %v23334_v8  ;;  %v9292_v25 = vand.u32 4294901760, %v9291_v38  ;;  %v9751_v46 = vand.u32 4294901760, %v9750_v39  ;;  %v9758_v58 = vsub.f32 %v9756_v16, %v9757_v15  ;;  %v11048_v19 = vpop.permute.xlu0 %11047  ;;  %v11130_v21 = vsub.f32 %v21577_v49, %v21591_v54 }
 0x2ee   : > { %9522 = vmatprep.subr.mxu0 %v9286_v47  ;;  %v11052_v53 = vsel %vm2346_vm2, %v11048_v19, %v11042_v34  ;;  %v10684_v47 = vand.u32 4294901760, %v10683_v61  ;;  %v11049_v56 = vsel %vm2346_vm2, %v11046_v17, %v11048_v19 }
 0x2ef   : > { %v9293_v36 = vsub.f32 %v9291_v38, %v9292_v25  ;;  %v9752_v35 = vsub.f32 %v9750_v39, %v9751_v46  ;;  %v9759_v0 = vand.u32 4294901760, %v9758_v58 }
 0x2f0   : > { %9407 = vmatmul.mubr.f32.vlgmr.msra.gmra.mxu0 %v21467_v52 }
 0x2f1   : > { %9526 = vmatpush1.msra.mxu0 %v9292_v25  ;;  %v9294_v41 = vand.u32 4294901760, %v9293_v36  ;;  %9559 = vmatprep.mubr.f32.mxu0 %v23334_v8  ;;  %v9753_v55 = vand.u32 4294901760, %v9752_v35 }
 0x2f2   : > { %9672 = vmatprep.subr.mxu0 %v21484_v27 }
 0x2f3   : > { %9295 = vmatpush1.msra.mxu1 %v9294_v41  ;;  %v11131_v41 = vand.u32 4294901760, %v11130_v21 }
 0x2f4   : > { %9330 = vmatmul.mubr.f32.vlgmr.msra.gmra.mxu1 %v21462_v44  ;;  %9444 = vmatprep.subr.mxu1 %v9206_v62 }
 0x2f5   : > { %9561 = vmatmul.mubr.f32.vlgmr.msra.gmra.mxu0 %v21462_v44  ;;  %9446 = vmatpush1.msra.mxu1 %v9208_v24 }
 0x2f6   : > { %9674 = vmatpush1.msra.mxu0 %v21486_v23  ;;  %9598 = vmatprep.subr.mxu1 %v9206_v62  ;;  %v10227_v62 = vand.u32 4294901760, %v10226_v32 }
 0x2f7   : > { %9833 = vmatprep.subr.mxu0 %v9750_v39  ;;  %9479 = vmatprep.mubr.f32.mxu1 %v23334_v8  ;;  %v23338_v39 = vld [vmem:[#allocation23_spill] sm:$0xff] }
 0x2f8   : > { %9707 = vmatprep.mubr.f32.mxu0 %v23334_v8  ;;  %9483 = vmatmul.mubr.f32.vlgmr.msra.gmra.mxu1 %v21471_v1 }
 0x2f9   : > { %9600 = vmatpush1.msra.mxu1 %v9208_v24  ;;  %9713 = vmatmul.mubr.f32.vlgmr.msra.gmra.mxu0 %v9247_v30  ;;  %v11050_v24 = vsel %vm2346_vm2, %v11044_v12, %v11046_v17 }
 0x2fa   : > { %9836 = vmatpush1.msra.mxu0 %v9756_v16  ;;  %9754 = vmatprep.subr.mxu1 %v9753_v55  ;;  %v11055_v25 = vmul.f32 %v11050_v24, %v23338_v39  ;;  %v11997_v16 = vpop.permute.xlu0 %11996  ;;  %v23343_v39 = vld [vmem:[#allocation28_spill] sm:$0xff] }
 0x2fb   : > { %9987 = vmatprep.subr.mxu0 %v9751_v46  ;;  %9633 = vmatprep.mubr.f32.mxu1 %v23334_v8 }
 0x2fc   : > { %9869 = vmatprep.mubr.f32.mxu0 %v23334_v8  ;;  %9635 = vmatmul.mubr.f32.vlgmr.msra.gmra.mxu1 %v21462_v44 }
 0x2fd   : > { %9760 = vmatpush1.msra.mxu1 %v9759_v0  ;;  %9872 = vmatmul.mubr.f32.vlgmr.msra.gmra.mxu0 %v21467_v52  ;;  %v11051_v52 = vsel %vm2346_vm2, %v11042_v34, %v11044_v12 }
 0x2fe   : > { %9991 = vmatpush1.msra.mxu0 %v9757_v15  ;;  %9909 = vmatprep.subr.mxu1 %v21484_v27  ;;  %v11054_v60 = vmul.f32 %v11051_v52, %v23335_v5  ;;  %v21615_v15 = vand.u32 4294901760, %v11055_v25 }
 0x2ff   : > { %10140 = vmatprep.subr.mxu0 %v21502_v11  ;;  %9793 = vmatprep.mubr.f32.mxu1 %v23334_v8 }
 0x300   : > { %10024 = vmatprep.mubr.f32.mxu0 %v23334_v8  ;;  %9795 = vmatmul.mubr.f32.vlgmr.msra.gmra.mxu1 %v21462_v44  ;;  %v21570_v31 = vand.u32 4294901760, %v11054_v60 }
 0x301   : > { %9911 = vmatpush1.msra.mxu1 %v21486_v23  ;;  %10026 = vmatmul.mubr.f32.vlgmr.msra.gmra.mxu0 %v21462_v44 }
 0x302   : > { %10142 = vmatpush1.msra.mxu0 %v21511_v37  ;;  %10063 = vmatprep.subr.mxu1 %v21484_v27  ;;  %v11169_v63 = vsub.f32 %v11054_v60, %v21570_v31  ;;  %v23337_v27 = vld [vmem:[#allocation22_spill] sm:$0xff] }
 0x303   : > { %10301 = vmatprep.subr.mxu0 %v10218_v40  ;;  %9944 = vmatprep.mubr.f32.mxu1 %v23334_v8  ;;  %v12003_v40 = vpop.permute.xlu0 %12002 }
 0x304   : > { %10175 = vmatprep.mubr.f32.mxu0 %v23334_v8  ;;  %9948 = vmatmul.mubr.f32.vlgmr.msra.gmra.mxu1 %v21471_v1  ;;  %v10689_v1 = vsub.f32 %v21391_v20, %v21542_v4  ;;  %v11053_v20 = vmul.f32 %v11052_v53, %v23336_v2  ;;  %v11170_v38 = vand.u32 4294901760, %v11169_v63  ;;  %v12007_v34 = vsel %vm3318_vm3, %v12003_v40, %v11997_v16  ;;  %v23341_v53 = vld [vmem:[#allocation26_spill] sm:$0xff] }
 0x305   : > { %10065 = vmatpush1.msra.mxu1 %v21486_v23  ;;  %10181 = vmatmul.mubr.f32.vlgmr.msra.gmra.mxu0 %v10180_v42  ;;  %v11056_v23 = vmul.f32 %v11049_v56, %v23337_v27  ;;  %v19556_v56 = vld [vmem:[%s23328_s4 + $0x18] sm:$0xff] }
 0x306   : > { %10304 = vmatpush1.msra.mxu0 %v10224_v48  ;;  %10222 = vmatprep.subr.mxu1 %v10221_v51  ;;  %v10690_v43 = vand.u32 4294901760, %v10689_v1  ;;  %v21581_v33 = vand.u32 4294901760, %v11053_v20  ;;  %v11171_v46 = vsub.f32 %v11169_v63, %v11170_v38  ;;  %v11640_v48 = vsub.f32 %v11055_v25, %v21615_v15 }
 0x307   : > { %10455 = vmatprep.subr.mxu0 %v10219_v22  ;;  %10098 = vmatprep.mubr.f32.mxu1 %v23334_v8  ;;  %v21607_v36 = vand.u32 4294901760, %v11056_v23  ;;  %v23339_v22 = vld [vmem:[#allocation24_spill] sm:$0xff] }
 0x308   : > { %10337 = vmatprep.mubr.f32.mxu0 %v23334_v8  ;;  %10100 = vmatmul.mubr.f32.vlgmr.msra.gmra.mxu1 %v21462_v44  ;;  %v10685_v44 = vsub.f32 %v10683_v61, %v10684_v47  ;;  %v10691_v57 = vsub.f32 %v10689_v1, %v10690_v43  ;;  %v11175_v29 = vsub.f32 %v11053_v20, %v21581_v33  ;;  %v11172_v58 = vand.u32 4294901760, %v11171_v46 }
 0x309   : > { %10228 = vmatpush1.msra.mxu1 %v10227_v62  ;;  %10340 = vmatmul.mubr.f32.vlgmr.msra.gmra.mxu0 %v21506_v18 }
 0x30a   : > { %10459 = vmatpush1.msra.mxu0 %v10225_v10  ;;  %10377 = vmatprep.subr.mxu1 %v21502_v11  ;;  %v10686_v59 = vand.u32 4294901760, %v10685_v44  ;;  %v10692_v30 = vand.u32 4294901760, %v10691_v57  ;;  %v11176_v6 = vand.u32 4294901760, %v11175_v29 }
 0x30b   : > { %10605 = vmatprep.subr.mxu0 %v21534_v50  ;;  %10261 = vmatprep.mubr.f32.mxu1 %v23334_v8 }
 0x30c   : > { %10492 = vmatprep.mubr.f32.mxu0 %v23334_v8  ;;  %10263 = vmatmul.mubr.f32.vlgmr.msra.gmra.mxu1 %v21497_v26  ;;  %v11177_v35 = vsub.f32 %v11175_v29, %v11176_v6 }
 0x30d   : > { %10379 = vmatpush1.msra.mxu1 %v21511_v37  ;;  %10494 = vmatmul.mubr.f32.vlgmr.msra.gmra.mxu0 %v21497_v26 }
 0x30e   : > { %10607 = vmatpush1.msra.mxu0 %v21542_v4  ;;  %10531 = vmatprep.subr.mxu1 %v21502_v11  ;;  %v19555_v11 = vld [vmem:[%s23328_s4 + $0x10] sm:$0xff] }
 0x30f   : > { %10766 = vmatprep.subr.mxu0 %v10683_v61  ;;  %10412 = vmatprep.mubr.f32.mxu1 %v23334_v8  ;;  %v12013_v0 = vsel %vm469_vm0, %v19555_v11, 0 }
 0x310   : > { %10640 = vmatprep.mubr.f32.mxu0 %v23334_v8  ;;  %10416 = vmatmul.mubr.f32.vlgmr.msra.gmra.mxu1 %v21518_v3  ;;  %v21636_v28 = vand.u32 4294901760, %v12013_v0 }
 0x311   : > { %10533 = vmatpush1.msra.mxu1 %v21511_v37  ;;  %10646 = vmatmul.mubr.f32.vlgmr.msra.gmra.mxu0 %v10180_v42  ;;  %v11634_v37 = vsub.f32 %v11056_v23, %v21607_v36  ;;  %v23340_v42 = vld [vmem:[#allocation25_spill] sm:$0xff] }
 0x312   : > { %10769 = vmatpush1.msra.mxu0 %v10689_v1  ;;  %10687 = vmatprep.subr.mxu1 %v10686_v59  ;;  %v12008_v32 = vmul.f32 %v12007_v34, %v23340_v42  ;;  %v21649_v13 = vsub.f32 %v12013_v0, %v21636_v28  ;;  %v23345_v34 = vld [vmem:[#allocation30_spill] sm:$0xff] }
 0x313   : > { %10920 = vmatprep.subr.mxu0 %v10684_v47  ;;  %10566 = vmatprep.mubr.f32.mxu1 %v23334_v8  ;;  %v11635_v10 = vand.u32 4294901760, %v11634_v37 }
 0x314   : > { %10802 = vmatprep.mubr.f32.mxu0 %v23334_v8  ;;  %10568 = vmatmul.mubr.f32.vlgmr.msra.gmra.mxu1 %v21497_v26  ;;  %v21653_v12 = vand.u32 4294901760, %v12008_v32  ;;  %v21663_v62 = vand.u32 4294901760, %v21649_v13 }
 0x315   : > { %10693 = vmatpush1.msra.mxu1 %v10692_v30  ;;  %10805 = vmatmul.mubr.f32.vlgmr.msra.gmra.mxu0 %v21506_v18  ;;  %v11999_v18 = vpop.permute.xlu1 %11998 }
 0x316   : > { %10924 = vmatpush1.msra.mxu0 %v10690_v43  ;;  %10842 = vmatprep.subr.mxu1 %v21534_v50  ;;  %v12006_v55 = vsel %vm3318_vm3, %v11997_v16, %v11999_v18  ;;  %v12130_v1 = vsub.f32 %v12008_v32, %v21653_v12  ;;  %v12085_v20 = vsub.f32 %v21649_v13, %v21663_v62  ;;  %v23342_v43 = vld [vmem:[#allocation27_spill] sm:$0xff] }
 0x317   : > { %11091 = vmatprep.subr.mxu0 %v21570_v31  ;;  %10726 = vmatprep.mubr.f32.mxu1 %v23334_v8  ;;  %v12009_v45 = vmul.f32 %v12006_v55, %v23339_v22  ;;  %v23346_v32 = vld [vmem:[#allocation31_spill] sm:$0xff] }
 0x318   : > { %10957 = vmatprep.mubr.f32.mxu0 %v23334_v8  ;;  %10728 = vmatmul.mubr.f32.vlgmr.msra.gmra.mxu1 %v21497_v26  ;;  %v12131_v44 = vand.u32 4294901760, %v12130_v1  ;;  %v12086_v17 = vand.u32 4294901760, %v12085_v20 }
 0x319   : > { %10844 = vmatpush1.msra.mxu1 %v21542_v4  ;;  %10959 = vmatmul.mubr.f32.vlgmr.msra.gmra.mxu0 %v21497_v26  ;;  %v12001_v61 = vpop.permute.xlu1 %12000 }
 0x31a   : > { %11093 = vmatpush1.msra.mxu0 %v21581_v33  ;;  %10996 = vmatprep.subr.mxu1 %v21534_v50  ;;  %v11641_v50 = vand.u32 4294901760, %v11640_v48  ;;  %v12004_v7 = vsel %vm3318_vm3, %v12001_v61, %v12003_v40  ;;  %v12005_v60 = vsel %vm3318_vm3, %v11999_v18, %v12001_v61 }
 0x31b   : > { %11252 = vmatprep.subr.mxu0 %v11169_v63  ;;  %10877 = vmatprep.mubr.f32.mxu1 %v23334_v8  ;;  %v12011_v47 = vmul.f32 %v12004_v7, %v23341_v53  ;;  %v12132_v63 = vsub.f32 %v12130_v1, %v12131_v44  ;;  %v19557_v7 = vld [vmem:[%s23328_s4 + $0x28] sm:$0xff] }
 0x31c   : > { %11126 = vmatprep.mubr.f32.mxu0 %v23334_v8  ;;  %10881 = vmatmul.mubr.f32.vlgmr.msra.gmra.mxu1 %v21518_v3  ;;  %v11178_v3 = vand.u32 4294901760, %v11177_v35  ;;  %v11642_v51 = vsub.f32 %v11640_v48, %v11641_v50 }
 0x31d   : > { %10998 = vmatpush1.msra.mxu1 %v21542_v4  ;;  %11132 = vmatmul.mubr.f32.vlgmr.msra.gmra.mxu0 %v11131_v41  ;;  %v21642_v4 = vand.u32 4294901760, %v12009_v45  ;;  %v21679_v57 = vand.u32 4294901760, %v12011_v47 }
 0x31e   : > { %11255 = vmatpush1.msra.mxu0 %v11175_v29  ;;  %11173 = vmatprep.subr.mxu1 %v11172_v58  ;;  %v11643_v5 = vand.u32 4294901760, %v11642_v51  ;;  %v12954_v29 = vpop.permute.xlu1 %12953 }
 0x31f   : > { %11406 = vmatprep.subr.mxu0 %v11170_v38  ;;  %11031 = vmatprep.mubr.f32.mxu1 %v23334_v8  ;;  %v12124_v19 = vsub.f32 %v12009_v45, %v21642_v4  ;;  %v12589_v24 = vsub.f32 %v12011_v47, %v21679_v57  ;;  %v12968_v38 = vsel %vm469_vm0, %v19556_v56, 0 }
 0x320   : > { %11288 = vmatprep.mubr.f32.mxu0 %v23334_v8  ;;  %11033 = vmatmul.mubr.f32.vlgmr.msra.gmra.mxu1 %v21497_v26  ;;  %v11636_v26 = vsub.f32 %v11634_v37, %v11635_v10 }
 0x321   : > { %11179 = vmatpush1.msra.mxu1 %v11178_v3  ;;  %11291 = vmatmul.mubr.f32.vlgmr.msra.gmra.mxu0 %v21577_v49  ;;  %v12125_v2 = vand.u32 4294901760, %v12124_v19  ;;  %v12590_v16 = vand.u32 4294901760, %v12589_v24 }
 0x322   : > { %11410 = vmatpush1.msra.mxu0 %v11176_v6  ;;  %11328 = vmatprep.subr.mxu1 %v21570_v31  ;;  %v11637_v52 = vand.u32 4294901760, %v11636_v26 }
 0x323   : > { %11556 = vmatprep.subr.mxu0 %v21607_v36  ;;  %11212 = vmatprep.mubr.f32.mxu1 %v23334_v8 }
 0x324   : > { %11443 = vmatprep.mubr.f32.mxu0 %v23334_v8  ;;  %11214 = vmatmul.mubr.f32.vlgmr.msra.gmra.mxu1 %v21564_v14 }
 0x325   : > { %11330 = vmatpush1.msra.mxu1 %v21581_v33  ;;  %11445 = vmatmul.mubr.f32.vlgmr.msra.gmra.mxu0 %v21564_v14 }
 0x326   : > { %11558 = vmatpush1.msra.mxu0 %v21615_v15  ;;  %11482 = vmatprep.subr.mxu1 %v21570_v31  ;;  %v12010_v31 = vmul.f32 %v12005_v60, %v23342_v43  ;;  %v23347_v43 = vld [vmem:[#allocation32_spill] sm:$0xff] }
 0x327   : > { %11717 = vmatprep.subr.mxu0 %v11634_v37  ;;  %11363 = vmatprep.mubr.f32.mxu1 %v23334_v8  ;;  %v12956_v37 = vpop.permute.xlu1 %12955 }
 0x328   : > { %11591 = vmatprep.mubr.f32.mxu0 %v23334_v8  ;;  %11367 = vmatmul.mubr.f32.vlgmr.msra.gmra.mxu1 %v21591_v54  ;;  %v21687_v59 = vand.u32 4294901760, %v12010_v31  ;;  %v12960_v45 = vsel %vm4290_vm4, %v12954_v29, %v12956_v37 }
 0x329   : > { %11484 = vmatpush1.msra.mxu1 %v21581_v33  ;;  %11597 = vmatmul.mubr.f32.vlgmr.msra.gmra.mxu0 %v11131_v41  ;;  %v12952_v33 = vpop.permute.xlu0 %12951  ;;  %v23344_v41 = vld [vmem:[#allocation29_spill] sm:$0xff] }
 0x32a   : > { %11720 = vmatpush1.msra.mxu0 %v11640_v48  ;;  %11638 = vmatprep.subr.mxu1 %v11637_v52  ;;  %v12961_v27 = vsel %vm4290_vm4, %v12952_v33, %v12954_v29  ;;  %v12595_v21 = vsub.f32 %v12010_v31, %v21687_v59 }
 0x32b   : > { %11871 = vmatprep.subr.mxu0 %v11635_v10  ;;  %11517 = vmatprep.mubr.f32.mxu1 %v23334_v8  ;;  %v12964_v25 = vmul.f32 %v12961_v27, %v23343_v39 }
 0x32c   : > { %11753 = vmatprep.mubr.f32.mxu0 %v23334_v8  ;;  %11519 = vmatmul.mubr.f32.vlgmr.msra.gmra.mxu1 %v21564_v14  ;;  %v12596_v46 = vand.u32 4294901760, %v12595_v21 }
 0x32d   : > { %11644 = vmatpush1.msra.mxu1 %v11643_v5  ;;  %11756 = vmatmul.mubr.f32.vlgmr.msra.gmra.mxu0 %v21577_v49  ;;  %v12126_v49 = vsub.f32 %v12124_v19, %v12125_v2  ;;  %v12958_v23 = vpop.permute.xlu0 %12957  ;;  %v21714_v35 = vand.u32 4294901760, %v12964_v25 }
 0x32e   : > { %11875 = vmatpush1.msra.mxu0 %v11641_v50  ;;  %11793 = vmatprep.subr.mxu1 %v21607_v36  ;;  %v12962_v6 = vsel %vm4290_vm4, %v12958_v23, %v12952_v33  ;;  %v12597_v58 = vsub.f32 %v12595_v21, %v12596_v46  ;;  %v12959_v0 = vsel %vm4290_vm4, %v12956_v37, %v12958_v23 }
 0x32f   : > { %12046 = vmatprep.subr.mxu0 %v21642_v4  ;;  %11677 = vmatprep.mubr.f32.mxu1 %v23334_v8  ;;  %v12127_v30 = vand.u32 4294901760, %v12126_v49  ;;  %v13079_v40 = vsub.f32 %v12964_v25, %v21714_v35  ;;  %v12966_v10 = vmul.f32 %v12959_v0, %v23345_v34  ;;  %v19558_v0 = vld [vmem:[%s23328_s4 + $0x30] sm:$0xff] }
 0x330   : > { %11908 = vmatprep.mubr.f32.mxu0 %v23334_v8  ;;  %11679 = vmatmul.mubr.f32.vlgmr.msra.gmra.mxu1 %v21564_v14  ;;  %v12598_v22 = vand.u32 4294901760, %v12597_v58 }
 0x331   : > { %11795 = vmatpush1.msra.mxu1 %v21615_v15  ;;  %11910 = vmatmul.mubr.f32.vlgmr.msra.gmra.mxu0 %v21564_v14  ;;  %v13080_v50 = vand.u32 4294901760, %v13079_v40  ;;  %v21751_v51 = vand.u32 4294901760, %v12966_v10 }
 0x332   : > { %12048 = vmatpush1.msra.mxu0 %v21653_v12  ;;  %11947 = vmatprep.subr.mxu1 %v21607_v36  ;;  %v21708_v36 = vand.u32 4294901760, %v12968_v38 }
 0x333   : > { %12207 = vmatprep.subr.mxu0 %v12124_v19  ;;  %11828 = vmatprep.mubr.f32.mxu1 %v23334_v8  ;;  %v13544_v60 = vsub.f32 %v12966_v10, %v21751_v51 }
 0x334   : > { %12081 = vmatprep.mubr.f32.mxu0 %v23334_v8  ;;  %11832 = vmatmul.mubr.f32.vlgmr.msra.gmra.mxu1 %v21591_v54  ;;  %v12133_v54 = vand.u32 4294901760, %v12132_v63  ;;  %v21721_v11 = vsub.f32 %v12968_v38, %v21708_v36 }
 0x335   : > { %11949 = vmatpush1.msra.mxu1 %v21615_v15  ;;  %12087 = vmatmul.mubr.f32.vlgmr.msra.gmra.mxu0 %v12086_v17  ;;  %v12963_v15 = vmul.f32 %v12962_v6, %v23344_v41  ;;  %v13545_v33 = vand.u32 4294901760, %v13544_v60  ;;  %v23349_v6 = vld [vmem:[#allocation34_spill] sm:$0xff] }
 0x336   : > { %12210 = vmatpush1.msra.mxu0 %v12130_v1  ;;  %12128 = vmatprep.subr.mxu1 %v12127_v30  ;;  %v21735_v48 = vand.u32 4294901760, %v21721_v11  ;;  %v13911_v1 = vpop.permute.xlu1 %13910 }
 0x337   : > { %12361 = vmatprep.subr.mxu0 %v12125_v2  ;;  %11982 = vmatprep.mubr.f32.mxu1 %v23334_v8  ;;  %v21725_v18 = vand.u32 4294901760, %v12963_v15  ;;  %v13923_v2 = vsel %vm469_vm0, %v19557_v7, 0 }
 0x338   : > { %12243 = vmatprep.mubr.f32.mxu0 %v23334_v8  ;;  %11984 = vmatmul.mubr.f32.vlgmr.msra.gmra.mxu1 %v21564_v14  ;;  %v12591_v14 = vsub.f32 %v12589_v24, %v12590_v16  ;;  %v13040_v42 = vsub.f32 %v21721_v11, %v21735_v48 }
 0x339   : > { %12134 = vmatpush1.msra.mxu1 %v12133_v54  ;;  %12246 = vmatmul.mubr.f32.vlgmr.msra.gmra.mxu0 %v21649_v13  ;;  %v13085_v3 = vsub.f32 %v12963_v15, %v21725_v18  ;;  %v23350_v15 = vld [vmem:[#allocation35_spill] sm:$0xff] }
 0x33a   : > { %12365 = vmatpush1.msra.mxu0 %v12131_v44  ;;  %12283 = vmatprep.subr.mxu1 %v21642_v4  ;;  %v12592_v55 = vand.u32 4294901760, %v12591_v14  ;;  %v13041_v61 = vand.u32 4294901760, %v13040_v42 }
 0x33b   : > { %12511 = vmatprep.subr.mxu0 %v21679_v57  ;;  %12167 = vmatprep.mubr.f32.mxu1 %v23334_v8  ;;  %v13086_v26 = vand.u32 4294901760, %v13085_v3 }
 0x33c   : > { %12398 = vmatprep.mubr.f32.mxu0 %v23334_v8  ;;  %12169 = vmatmul.mubr.f32.vlgmr.msra.gmra.mxu1 %v21636_v28 }
 0x33d   : > { %12285 = vmatpush1.msra.mxu1 %v21653_v12  ;;  %12400 = vmatmul.mubr.f32.vlgmr.msra.gmra.mxu0 %v21636_v28  ;;  %v13087_v19 = vsub.f32 %v13085_v3, %v13086_v26 }
 0x33e   : > { %12513 = vmatpush1.msra.mxu0 %v21687_v59  ;;  %12437 = vmatprep.subr.mxu1 %v21642_v4  ;;  %v12965_v4 = vmul.f32 %v12960_v45, %v23346_v32  ;;  %v23351_v32 = vld [vmem:[#allocation36_spill] sm:$0xff] }
 0x33f   : > { %12672 = vmatprep.subr.mxu0 %v12589_v24  ;;  %12318 = vmatprep.mubr.f32.mxu1 %v23334_v8  ;;  %v13913_v24 = vpop.permute.xlu1 %13912 }
 0x340   : > { %12546 = vmatprep.mubr.f32.mxu0 %v23334_v8  ;;  %12322 = vmatmul.mubr.f32.vlgmr.msra.gmra.mxu1 %v21663_v62  ;;  %v21759_v52 = vand.u32 4294901760, %v12965_v4  ;;  %v13914_v25 = vsel %vm5262_vm5, %v13911_v1, %v13913_v24 }
 0x341   : > { %12439 = vmatpush1.msra.mxu1 %v21653_v12  ;;  %12552 = vmatmul.mubr.f32.vlgmr.msra.gmra.mxu0 %v12086_v17  ;;  %v13909_v12 = vpop.permute.xlu0 %13908  ;;  %v23348_v17 = vld [vmem:[#allocation33_spill] sm:$0xff] }
 0x342   : > { %12675 = vmatpush1.msra.mxu0 %v12595_v21  ;;  %12593 = vmatprep.subr.mxu1 %v12592_v55  ;;  %v13915_v53 = vsel %vm5262_vm5, %v13909_v12, %v13911_v1  ;;  %v13550_v20 = vsub.f32 %v12965_v4, %v21759_v52 }
 0x343   : > { %12826 = vmatprep.subr.mxu0 %v12590_v16  ;;  %12472 = vmatprep.mubr.f32.mxu1 %v23334_v8  ;;  %v13919_v31 = vmul.f32 %v13915_v53, %v23347_v43 }
 0x344   : > { %12708 = vmatprep.mubr.f32.mxu0 %v23334_v8  ;;  %12474 = vmatmul.mubr.f32.vlgmr.msra.gmra.mxu1 %v21636_v28  ;;  %v13551_v49 = vand.u32 4294901760, %v13550_v20 }
 0x345   : > { %12599 = vmatpush1.msra.mxu1 %v12598_v22  ;;  %12711 = vmatmul.mubr.f32.vlgmr.msra.gmra.mxu0 %v21649_v13  ;;  %v13081_v13 = vsub.f32 %v13079_v40, %v13080_v50  ;;  %v13907_v47 = vpop.permute.xlu0 %13906  ;;  %v21786_v63 = vand.u32 4294901760, %v13919_v31 }
 0x346   : > { %12830 = vmatpush1.msra.mxu0 %v12596_v46  ;;  %12748 = vmatprep.subr.mxu1 %v21679_v57  ;;  %v13916_v44 = vsel %vm5262_vm5, %v13907_v47, %v13909_v12  ;;  %v13552_v30 = vsub.f32 %v13550_v20, %v13551_v49  ;;  %v13917_v38 = vsel %vm5262_vm5, %v13913_v24, %v13907_v47 }
 0x347   : > { %13001 = vmatprep.subr.mxu0 %v21714_v35  ;;  %12632 = vmatprep.mubr.f32.mxu1 %v23334_v8  ;;  %v13082_v5 = vand.u32 4294901760, %v13081_v13  ;;  %v14034_v23 = vsub.f32 %v13919_v31, %v21786_v63  ;;  %v13921_v16 = vmul.f32 %v13917_v38, %v23349_v6  ;;  %v19559_v38 = vld [vmem:[%s23328_s4 + $0x38] sm:$0xff] }
 0x348   : > { %12863 = vmatprep.mubr.f32.mxu0 %v23334_v8  ;;  %12634 = vmatmul.mubr.f32.vlgmr.msra.gmra.mxu1 %v21636_v28  ;;  %v13553_v39 = vand.u32 4294901760, %v13552_v30 }
 0x349   : > { %12750 = vmatpush1.msra.mxu1 %v21687_v59  ;;  %12865 = vmatmul.mubr.f32.vlgmr.msra.gmra.mxu0 %v21636_v28  ;;  %v14035_v46 = vand.u32 4294901760, %v14034_v23  ;;  %v21823_v58 = vand.u32 4294901760, %v13921_v16 }
 0x34a   : > { %13003 = vmatpush1.msra.mxu0 %v21725_v18  ;;  %12902 = vmatprep.subr.mxu1 %v21679_v57  ;;  %v21780_v57 = vand.u32 4294901760, %v13923_v2 }
 0x34b   : > { %13162 = vmatprep.subr.mxu0 %v13079_v40  ;;  %12783 = vmatprep.mubr.f32.mxu1 %v23334_v8  ;;  %v14499_v45 = vsub.f32 %v13921_v16, %v21823_v58 }
 0x34c   : > { %13036 = vmatprep.mubr.f32.mxu0 %v23334_v8  ;;  %12787 = vmatmul.mubr.f32.vlgmr.msra.gmra.mxu1 %v21663_v62  ;;  %v13088_v62 = vand.u32 4294901760, %v13087_v19  ;;  %v21793_v56 = vsub.f32 %v13923_v2, %v21780_v57 }
 0x34d   : > { %12904 = vmatpush1.msra.mxu1 %v21687_v59  ;;  %13042 = vmatmul.mubr.f32.vlgmr.msra.gmra.mxu0 %v13041_v61  ;;  %v13918_v59 = vmul.f32 %v13916_v44, %v23348_v17  ;;  %v14500_v12 = vand.u32 4294901760, %v14499_v45  ;;  %v23353_v44 = vld [vmem:[#allocation38_spill] sm:$0xff] }
 0x34e   : > { %13165 = vmatpush1.msra.mxu0 %v13085_v3  ;;  %13083 = vmatprep.subr.mxu1 %v13082_v5  ;;  %v21807_v21 = vand.u32 4294901760, %v21793_v56  ;;  %v14866_v3 = vpop.permute.xlu1 %14865 }
 0x34f   : > { %13316 = vmatprep.subr.mxu0 %v13080_v50  ;;  %12937 = vmatprep.mubr.f32.mxu1 %v23334_v8  ;;  %v21797_v29 = vand.u32 4294901760, %v13918_v59  ;;  %v14878_v50 = vsel %vm469_vm0, %v19558_v0, 0 }
 0x350   : > { %13198 = vmatprep.mubr.f32.mxu0 %v23334_v8  ;;  %12939 = vmatmul.mubr.f32.vlgmr.msra.gmra.mxu1 %v21636_v28  ;;  %v13546_v28 = vsub.f32 %v13544_v60, %v13545_v33  ;;  %v13995_v41 = vsub.f32 %v21793_v56, %v21807_v21 }
 0x351   : > { %13089 = vmatpush1.msra.mxu1 %v13088_v62  ;;  %13201 = vmatmul.mubr.f32.vlgmr.msra.gmra.mxu0 %v21721_v11  ;;  %v14040_v54 = vsub.f32 %v13918_v59, %v21797_v29  ;;  %v23354_v59 = vld [vmem:[#allocation39_spill] sm:$0xff] }
 0x352   : > { %13320 = vmatpush1.msra.mxu0 %v13086_v26  ;;  %13238 = vmatprep.subr.mxu1 %v21714_v35  ;;  %v13547_v27 = vand.u32 4294901760, %v13546_v28  ;;  %v13996_v37 = vand.u32 4294901760, %v13995_v41 }
 0x353   : > { %13466 = vmatprep.subr.mxu0 %v21751_v51  ;;  %13122 = vmatprep.mubr.f32.mxu1 %v23334_v8  ;;  %v14041_v14 = vand.u32 4294901760, %v14040_v54 }
 0x354   : > { %13353 = vmatprep.mubr.f32.mxu0 %v23334_v8  ;;  %13124 = vmatmul.mubr.f32.vlgmr.msra.gmra.mxu1 %v21708_v36 }
 0x355   : > { %13240 = vmatpush1.msra.mxu1 %v21725_v18  ;;  %13355 = vmatmul.mubr.f32.vlgmr.msra.gmra.mxu0 %v21708_v36  ;;  %v14042_v40 = vsub.f32 %v14040_v54, %v14041_v14 }
 0x356   : > { %13468 = vmatpush1.msra.mxu0 %v21759_v52  ;;  %13392 = vmatprep.subr.mxu1 %v21714_v35  ;;  %v13920_v35 = vmul.f32 %v13914_v25, %v23350_v15  ;;  %v23355_v15 = vld [vmem:[#allocation40_spill] sm:$0xff] }
 0x357   : > { %13627 = vmatprep.subr.mxu0 %v13544_v60  ;;  %13273 = vmatprep.mubr.f32.mxu1 %v23334_v8  ;;  %v14868_v60 = vpop.permute.xlu1 %14867 }
 0x358   : > { %13501 = vmatprep.mubr.f32.mxu0 %v23334_v8  ;;  %13277 = vmatmul.mubr.f32.vlgmr.msra.gmra.mxu1 %v21735_v48  ;;  %v21831_v55 = vand.u32 4294901760, %v13920_v35  ;;  %v14869_v31 = vsel %vm6234_vm6, %v14866_v3, %v14868_v60 }
 0x359   : > { %13394 = vmatpush1.msra.mxu1 %v21725_v18  ;;  %13507 = vmatmul.mubr.f32.vlgmr.msra.gmra.mxu0 %v13041_v61  ;;  %v14864_v18 = vpop.permute.xlu0 %14863  ;;  %v23352_v61 = vld [vmem:[#allocation37_spill] sm:$0xff] }
 0x35a   : > { %13630 = vmatpush1.msra.mxu0 %v13550_v20  ;;  %13548 = vmatprep.subr.mxu1 %v13547_v27  ;;  %v14870_v34 = vsel %vm6234_vm6, %v14864_v18, %v14866_v3  ;;  %v14505_v42 = vsub.f32 %v13920_v35, %v21831_v55 }
 0x35b   : > { %13781 = vmatprep.subr.mxu0 %v13545_v33  ;;  %13427 = vmatprep.mubr.f32.mxu1 %v23334_v8  ;;  %v14874_v4 = vmul.f32 %v14870_v34, %v23351_v32 }
 0x35c   : > { %13663 = vmatprep.mubr.f32.mxu0 %v23334_v8  ;;  %13429 = vmatmul.mubr.f32.vlgmr.msra.gmra.mxu1 %v21708_v36  ;;  %v14506_v13 = vand.u32 4294901760, %v14505_v42 }
 0x35d   : > { %13554 = vmatpush1.msra.mxu1 %v13553_v39  ;;  %13666 = vmatmul.mubr.f32.vlgmr.msra.gmra.mxu0 %v21721_v11  ;;  %v14036_v11 = vsub.f32 %v14034_v23, %v14035_v46  ;;  %v14862_v10 = vpop.permute.xlu0 %14861  ;;  %v21858_v19 = vand.u32 4294901760, %v14874_v4 }
 0x35e   : > { %13785 = vmatpush1.msra.mxu0 %v13551_v49  ;;  %13703 = vmatprep.subr.mxu1 %v21751_v51  ;;  %v14871_v26 = vsel %vm6234_vm6, %v14862_v10, %v14864_v18  ;;  %v14507_v5 = vsub.f32 %v14505_v42, %v14506_v13  ;;  %v14872_v2 = vsel %vm6234_vm6, %v14868_v60, %v14862_v10 }
 0x35f   : > { %13956 = vmatprep.subr.mxu0 %v21786_v63  ;;  %13587 = vmatprep.mubr.f32.mxu1 %v23334_v8  ;;  %v14037_v22 = vand.u32 4294901760, %v14036_v11  ;;  %v14989_v47 = vsub.f32 %v14874_v4, %v21858_v19  ;;  %v14876_v33 = vmul.f32 %v14872_v2, %v23353_v44  ;;  %v19560_v2 = vld [vmem:[%s23328_s4 + $0x40] sm:$0xff]  ;;  %s19561_s4 = sld [smem:[#allocation2 + $0x9]] }
 0x360   : > { %13818 = vmatprep.mubr.f32.mxu0 %v23334_v8  ;;  %13589 = vmatmul.mubr.f32.vlgmr.msra.gmra.mxu1 %v21708_v36  ;;  %v14508_v43 = vand.u32 4294901760, %v14507_v5 }
 0x361   : > { %13705 = vmatpush1.msra.mxu1 %v21759_v52  ;;  %13820 = vmatmul.mubr.f32.vlgmr.msra.gmra.mxu0 %v21708_v36  ;;  %v14990_v49 = vand.u32 4294901760, %v14989_v47  ;;  %v21895_v30 = vand.u32 4294901760, %v14876_v33 }
 0x362   : > { %13958 = vmatpush1.msra.mxu0 %v21797_v29  ;;  %13857 = vmatprep.subr.mxu1 %v21751_v51  ;;  %v21852_v51 = vand.u32 4294901760, %v14878_v50 }
 0x363   : > { %14117 = vmatprep.subr.mxu0 %v14034_v23  ;;  %13738 = vmatprep.mubr.f32.mxu1 %v23334_v8  ;;  %v15454_v25 = vsub.f32 %v14876_v33, %v21895_v30 }
 0x364   : > { %13991 = vmatprep.mubr.f32.mxu0 %v23334_v8  ;;  %13742 = vmatmul.mubr.f32.vlgmr.msra.gmra.mxu1 %v21735_v48  ;;  %v14043_v48 = vand.u32 4294901760, %v14042_v40  ;;  %v21865_v7 = vsub.f32 %v14878_v50, %v21852_v51 }
 0x365   : > { %13859 = vmatpush1.msra.mxu1 %v21759_v52  ;;  %13997 = vmatmul.mubr.f32.vlgmr.msra.gmra.mxu0 %v13996_v37  ;;  %v14873_v52 = vmul.f32 %v14871_v26, %v23352_v61  ;;  %v15455_v18 = vand.u32 4294901760, %v15454_v25  ;;  %v23357_v26 = vld [vmem:[#allocation42_spill] sm:$0xff] }
 0x366   : > { %14120 = vmatpush1.msra.mxu0 %v14040_v54  ;;  %14038 = vmatprep.subr.mxu1 %v14037_v22  ;;  %v21879_v20 = vand.u32 4294901760, %v21865_v7  ;;  %v15821_v54 = vpop.permute.xlu1 %15820 }
 0x367   : > { %14271 = vmatprep.subr.mxu0 %v14035_v46  ;;  %13892 = vmatprep.mubr.f32.mxu1 %v23334_v8  ;;  %v21869_v1 = vand.u32 4294901760, %v14873_v52  ;;  %v15833_v46 = vsel %vm469_vm0, %v19559_v38, 0 }
 0x368   : > { %14153 = vmatprep.mubr.f32.mxu0 %v23334_v8  ;;  %13894 = vmatmul.mubr.f32.vlgmr.msra.gmra.mxu1 %v21708_v36  ;;  %v14501_v36 = vsub.f32 %v14499_v45, %v14500_v12  ;;  %v14950_v17 = vsub.f32 %v21865_v7, %v21879_v20 }
 0x369   : > { %14044 = vmatpush1.msra.mxu1 %v14043_v48  ;;  %14156 = vmatmul.mubr.f32.vlgmr.msra.gmra.mxu0 %v21793_v56  ;;  %v14995_v62 = vsub.f32 %v14873_v52, %v21869_v1  ;;  %v23358_v52 = vld [vmem:[#allocation43_spill] sm:$0xff] }
 0x36a   : > { %14275 = vmatpush1.msra.mxu0 %v14041_v14  ;;  %14193 = vmatprep.subr.mxu1 %v21786_v63  ;;  %v14502_v53 = vand.u32 4294901760, %v14501_v36  ;;  %v14951_v24 = vand.u32 4294901760, %v14950_v17 }
 0x36b   : > { %14421 = vmatprep.subr.mxu0 %v21823_v58  ;;  %14077 = vmatprep.mubr.f32.mxu1 %v23334_v8  ;;  %v14996_v28 = vand.u32 4294901760, %v14995_v62 }
 0x36c   : > { %14308 = vmatprep.mubr.f32.mxu0 %v23334_v8  ;;  %14079 = vmatmul.mubr.f32.vlgmr.msra.gmra.mxu1 %v21780_v57 }
 0x36d   : > { %14195 = vmatpush1.msra.mxu1 %v21797_v29  ;;  %14310 = vmatmul.mubr.f32.vlgmr.msra.gmra.mxu0 %v21780_v57  ;;  %v14997_v23 = vsub.f32 %v14995_v62, %v14996_v28 }
 0x36e   : > { %14423 = vmatpush1.msra.mxu0 %v21831_v55  ;;  %14347 = vmatprep.subr.mxu1 %v21786_v63  ;;  %v14875_v63 = vmul.f32 %v14869_v31, %v23354_v59  ;;  %v23359_v59 = vld [vmem:[#allocation44_spill] sm:$0xff] }
 0x36f   : > { %14582 = vmatprep.subr.mxu0 %v14499_v45  ;;  %14228 = vmatprep.mubr.f32.mxu1 %v23334_v8  ;;  %v15823_v45 = vpop.permute.xlu1 %15822 }
 0x370   : > { %14456 = vmatprep.mubr.f32.mxu0 %v23334_v8  ;;  %14232 = vmatmul.mubr.f32.vlgmr.msra.gmra.mxu1 %v21807_v21  ;;  %v21903_v27 = vand.u32 4294901760, %v14875_v63  ;;  %v15824_v4 = vsel %vm7206_vm7, %v15821_v54, %v15823_v45 }
 0x371   : > { %14349 = vmatpush1.msra.mxu1 %v21797_v29  ;;  %14462 = vmatmul.mubr.f32.vlgmr.msra.gmra.mxu0 %v13996_v37  ;;  %v15819_v29 = vpop.permute.xlu0 %15818  ;;  %v23356_v37 = vld [vmem:[#allocation41_spill] sm:$0xff] }
 0x372   : > { %14585 = vmatpush1.msra.mxu0 %v14505_v42  ;;  %14503 = vmatprep.subr.mxu1 %v14502_v53  ;;  %v15825_v6 = vsel %vm7206_vm7, %v15819_v29, %v15821_v54  ;;  %v15460_v41 = vsub.f32 %v14875_v63, %v21903_v27 }
 0x373   : > { %14736 = vmatprep.subr.mxu0 %v14500_v12  ;;  %14382 = vmatprep.mubr.f32.mxu1 %v23334_v8  ;;  %v15829_v35 = vmul.f32 %v15825_v6, %v23355_v15 }
 0x374   : > { %14618 = vmatprep.mubr.f32.mxu0 %v23334_v8  ;;  %14384 = vmatmul.mubr.f32.vlgmr.msra.gmra.mxu1 %v21780_v57  ;;  %v15461_v11 = vand.u32 4294901760, %v15460_v41 }
 0x375   : > { %14509 = vmatpush1.msra.mxu1 %v14508_v43  ;;  %14621 = vmatmul.mubr.f32.vlgmr.msra.gmra.mxu0 %v21793_v56  ;;  %v14991_v56 = vsub.f32 %v14989_v47, %v14990_v49  ;;  %v15817_v16 = vpop.permute.xlu0 %15816  ;;  %v21930_v40 = vand.u32 4294901760, %v15829_v35 }
 0x376   : > { %14740 = vmatpush1.msra.mxu0 %v14506_v13  ;;  %14658 = vmatprep.subr.mxu1 %v21823_v58  ;;  %v15826_v14 = vsel %vm7206_vm7, %v15817_v16, %v15819_v29  ;;  %v15462_v22 = vsub.f32 %v15460_v41, %v15461_v11  ;;  %v15827_v50 = vsel %vm7206_vm7, %v15823_v45, %v15817_v16 }
 0x377   : > { %14911 = vmatprep.subr.mxu0 %v21858_v19  ;;  %14542 = vmatprep.mubr.f32.mxu1 %v23334_v8  ;;  %v14992_v39 = vand.u32 4294901760, %v14991_v56  ;;  %v15944_v10 = vsub.f32 %v15829_v35, %v21930_v40  ;;  %v15831_v12 = vmul.f32 %v15827_v50, %v23357_v26 }
 0x378   : > { %14773 = vmatprep.mubr.f32.mxu0 %v23334_v8  ;;  %14544 = vmatmul.mubr.f32.vlgmr.msra.gmra.mxu1 %v21780_v57  ;;  %v15463_v32 = vand.u32 4294901760, %v15462_v22 }
 0x379   : > { %14660 = vmatpush1.msra.mxu1 %v21831_v55  ;;  %14775 = vmatmul.mubr.f32.vlgmr.msra.gmra.mxu0 %v21780_v57  ;;  %v15945_v13 = vand.u32 4294901760, %v15944_v10  ;;  %v21967_v5 = vand.u32 4294901760, %v15831_v12 }
 0x37a   : > { %14913 = vmatpush1.msra.mxu0 %v21869_v1  ;;  %14812 = vmatprep.subr.mxu1 %v21823_v58  ;;  %v21924_v58 = vand.u32 4294901760, %v15833_v46 }
 0x37b   : > { %15072 = vmatprep.subr.mxu0 %v14989_v47  ;;  %14693 = vmatprep.mubr.f32.mxu1 %v23334_v8  ;;  %v16409_v31 = vsub.f32 %v15831_v12, %v21967_v5 }
 0x37c   : > { %14946 = vmatprep.mubr.f32.mxu0 %v23334_v8  ;;  %14697 = vmatmul.mubr.f32.vlgmr.msra.gmra.mxu1 %v21807_v21  ;;  %v14998_v21 = vand.u32 4294901760, %v14997_v23  ;;  %v21937_v0 = vsub.f32 %v15833_v46, %v21924_v58 }
 0x37d   : > { %14814 = vmatpush1.msra.mxu1 %v21831_v55  ;;  %14952 = vmatmul.mubr.f32.vlgmr.msra.gmra.mxu0 %v14951_v24  ;;  %v15828_v55 = vmul.f32 %v15826_v14, %v23356_v37  ;;  %v16410_v29 = vand.u32 4294901760, %v16409_v31  ;;  %v23361_v14 = vld [vmem:[#allocation46_spill] sm:$0xff] }
 0x37e   : > { %15075 = vmatpush1.msra.mxu0 %v14995_v62  ;;  %14993 = vmatprep.subr.mxu1 %v14992_v39  ;;  %v21951_v42 = vand.u32 4294901760, %v21937_v0  ;;  %v16776_v62 = vpop.permute.xlu1 %16775 }
 0x37f   : > { %15226 = vmatprep.subr.mxu0 %v14990_v49  ;;  %14847 = vmatprep.mubr.f32.mxu1 %v23334_v8  ;;  %v21941_v3 = vand.u32 4294901760, %v15828_v55  ;;  %v16788_v49 = vsel %vm469_vm0, %v19560_v2, 0 }
 0x380   : > { %15108 = vmatprep.mubr.f32.mxu0 %v23334_v8  ;;  %14849 = vmatmul.mubr.f32.vlgmr.msra.gmra.mxu1 %v21780_v57  ;;  %v15456_v57 = vsub.f32 %v15454_v25, %v15455_v18  ;;  %v15905_v61 = vsub.f32 %v21937_v0, %v21951_v42 }
 0x381   : > { %14999 = vmatpush1.msra.mxu1 %v14998_v21  ;;  %15111 = vmatmul.mubr.f32.vlgmr.msra.gmra.mxu0 %v21865_v7  ;;  %v15950_v48 = vsub.f32 %v15828_v55, %v21941_v3  ;;  %v23362_v55 = vld [vmem:[#allocation47_spill] sm:$0xff] }
 0x382   : > { %15230 = vmatpush1.msra.mxu0 %v14996_v28  ;;  %15148 = vmatprep.subr.mxu1 %v21858_v19  ;;  %v15457_v34 = vand.u32 4294901760, %v15456_v57  ;;  %v15906_v60 = vand.u32 4294901760, %v15905_v61 }
 0x383   : > { %15376 = vmatprep.subr.mxu0 %v21895_v30  ;;  %15032 = vmatprep.mubr.f32.mxu1 %v23334_v8  ;;  %v15951_v36 = vand.u32 4294901760, %v15950_v48 }
 0x384   : > { %15263 = vmatprep.mubr.f32.mxu0 %v23334_v8  ;;  %15034 = vmatmul.mubr.f32.vlgmr.msra.gmra.mxu1 %v21852_v51 }
 0x385   : > { %15150 = vmatpush1.msra.mxu1 %v21869_v1  ;;  %15265 = vmatmul.mubr.f32.vlgmr.msra.gmra.mxu0 %v21852_v51  ;;  %v15952_v47 = vsub.f32 %v15950_v48, %v15951_v36 }
 0x386   : > { %15378 = vmatpush1.msra.mxu0 %v21903_v27  ;;  %15302 = vmatprep.subr.mxu1 %v21858_v19  ;;  %v15830_v19 = vmul.f32 %v15824_v4, %v23358_v52 }
 0x387   : > { %15537 = vmatprep.subr.mxu0 %v15454_v25  ;;  %15183 = vmatprep.mubr.f32.mxu1 %v23334_v8  ;;  %v16778_v25 = vpop.permute.xlu1 %16777 }
 0x388   : > { %15411 = vmatprep.mubr.f32.mxu0 %v23334_v8  ;;  %15187 = vmatmul.mubr.f32.vlgmr.msra.gmra.mxu1 %v21879_v20  ;;  %v21975_v53 = vand.u32 4294901760, %v15830_v19  ;;  %v16779_v35 = vsel %vm8178_vm8, %v16776_v62, %v16778_v25 }
 0x389   : > { %15304 = vmatpush1.msra.mxu1 %v21869_v1  ;;  %15417 = vmatmul.mubr.f32.vlgmr.msra.gmra.mxu0 %v14951_v24  ;;  %v16774_v1 = vpop.permute.xlu0 %16773  ;;  %v23360_v24 = vld [vmem:[#allocation45_spill] sm:$0xff] }
 0x38a   : > { %15540 = vmatpush1.msra.mxu0 %v15460_v41  ;;  %15458 = vmatprep.subr.mxu1 %v15457_v34  ;;  %v16780_v44 = vsel %vm8178_vm8, %v16774_v1, %v16776_v62  ;;  %v16415_v17 = vsub.f32 %v15830_v19, %v21975_v53 }
 0x38b   : > { %15691 = vmatprep.subr.mxu0 %v15455_v18  ;;  %15337 = vmatprep.mubr.f32.mxu1 %v23334_v8  ;;  %v16784_v63 = vmul.f32 %v16780_v44, %v23359_v59 }
 0x38c   : > { %15573 = vmatprep.mubr.f32.mxu0 %v23334_v8  ;;  %15339 = vmatmul.mubr.f32.vlgmr.msra.gmra.mxu1 %v21852_v51  ;;  %v16416_v56 = vand.u32 4294901760, %v16415_v17 }
 0x38d   : > { %15464 = vmatpush1.msra.mxu1 %v15463_v32  ;;  %15576 = vmatmul.mubr.f32.vlgmr.msra.gmra.mxu0 %v21865_v7  ;;  %v15946_v7 = vsub.f32 %v15944_v10, %v15945_v13  ;;  %v16772_v33 = vpop.permute.xlu0 %16771  ;;  %v22002_v23 = vand.u32 4294901760, %v16784_v63 }
 0x38e   : > { %15695 = vmatpush1.msra.mxu0 %v15461_v11  ;;  %15613 = vmatprep.subr.mxu1 %v21895_v30  ;;  %v16781_v28 = vsel %vm8178_vm8, %v16772_v33, %v16774_v1  ;;  %v16417_v39 = vsub.f32 %v16415_v17, %v16416_v56  ;;  %v16782_v46 = vsel %vm8178_vm8, %v16778_v25, %v16772_v33 }
 0x38f   : > { %15866 = vmatprep.subr.mxu0 %v21930_v40  ;;  %15497 = vmatprep.mubr.f32.mxu1 %v23334_v8  ;;  %v15947_v43 = vand.u32 4294901760, %v15946_v7  ;;  %v16899_v16 = vsub.f32 %v16784_v63, %v22002_v23  ;;  %v16786_v18 = vmul.f32 %v16782_v46, %v23361_v14 }
 0x390   : > { %15728 = vmatprep.mubr.f32.mxu0 %v23334_v8  ;;  %15499 = vmatmul.mubr.f32.vlgmr.msra.gmra.mxu1 %v21852_v51  ;;  %v16418_v15 = vand.u32 4294901760, %v16417_v39 }
 0x391   : > { %15615 = vmatpush1.msra.mxu1 %v21903_v27  ;;  %15730 = vmatmul.mubr.f32.vlgmr.msra.gmra.mxu0 %v21852_v51  ;;  %v16900_v11 = vand.u32 4294901760, %v16899_v16 }
 0x392   : > { %15868 = vmatpush1.msra.mxu0 %v21941_v3  ;;  %15767 = vmatprep.subr.mxu1 %v21895_v30  ;;  %v21996_v30 = vand.u32 4294901760, %v16788_v49 }
 0x393   : > { %16027 = vmatprep.subr.mxu0 %v15944_v10  ;;  %15648 = vmatprep.mubr.f32.mxu1 %v23334_v8 }
 0x394   : > { %15901 = vmatprep.mubr.f32.mxu0 %v23334_v8  ;;  %15652 = vmatmul.mubr.f32.vlgmr.msra.gmra.mxu1 %v21879_v20  ;;  %v15953_v20 = vand.u32 4294901760, %v15952_v47  ;;  %v22009_v38 = vsub.f32 %v16788_v49, %v21996_v30 }
 0x395   : > { %15769 = vmatpush1.msra.mxu1 %v21903_v27  ;;  %15907 = vmatmul.mubr.f32.vlgmr.msra.gmra.mxu0 %v15906_v60  ;;  %v16783_v27 = vmul.f32 %v16781_v28, %v23360_v24 }
 0x396   : > { %16030 = vmatpush1.msra.mxu0 %v15950_v48  ;;  %15948 = vmatprep.subr.mxu1 %v15947_v43  ;;  %v22023_v41 = vand.u32 4294901760, %v22009_v38 }
 0x397   : > { %16181 = vmatprep.subr.mxu0 %v15945_v13  ;;  %15802 = vmatprep.mubr.f32.mxu1 %v23334_v8  ;;  %v22013_v54 = vand.u32 4294901760, %v16783_v27 }
 0x398   : > { %16063 = vmatprep.mubr.f32.mxu0 %v23334_v8  ;;  %15804 = vmatmul.mubr.f32.vlgmr.msra.gmra.mxu1 %v21852_v51  ;;  %v16411_v51 = vsub.f32 %v16409_v31, %v16410_v29  ;;  %v16860_v37 = vsub.f32 %v22009_v38, %v22023_v41 }
 0x399   : > { %15954 = vmatpush1.msra.mxu1 %v15953_v20  ;;  %16066 = vmatmul.mubr.f32.vlgmr.msra.gmra.mxu0 %v21937_v0  ;;  %v16905_v21 = vsub.f32 %v16783_v27, %v22013_v54 }
 0x39a   : > { %16185 = vmatpush1.msra.mxu0 %v15951_v36  ;;  %16103 = vmatprep.subr.mxu1 %v21930_v40  ;;  %v16412_v6 = vand.u32 4294901760, %v16411_v51  ;;  %v16861_v22 = vand.u32 4294901760, %v16860_v37 }
 0x39b   : > { %16331 = vmatprep.subr.mxu0 %v21967_v5  ;;  %15987 = vmatprep.mubr.f32.mxu1 %v23334_v8  ;;  %v16906_v57 = vand.u32 4294901760, %v16905_v21 }
 0x39c   : > { %16218 = vmatprep.mubr.f32.mxu0 %v23334_v8  ;;  %15989 = vmatmul.mubr.f32.vlgmr.msra.gmra.mxu1 %v21924_v58 }
 0x39d   : > { %16105 = vmatpush1.msra.mxu1 %v21941_v3  ;;  %16220 = vmatmul.mubr.f32.vlgmr.msra.gmra.mxu0 %v21924_v58  ;;  %v16907_v34 = vsub.f32 %v16905_v21, %v16906_v57 }
 0x39e   : > { %16333 = vmatpush1.msra.mxu0 %v21975_v53  ;;  %16257 = vmatprep.subr.mxu1 %v21930_v40  ;;  %v16785_v40 = vmul.f32 %v16779_v35, %v23362_v55 }
 0x39f   : > { %16492 = vmatprep.subr.mxu0 %v16409_v31  ;;  %16138 = vmatprep.mubr.f32.mxu1 %v23334_v8  ;;  %v16908_v26 = vand.u32 4294901760, %v16907_v34 }
 0x3a0   : > { %16366 = vmatprep.mubr.f32.mxu0 %v23334_v8  ;;  %16142 = vmatmul.mubr.f32.vlgmr.msra.gmra.mxu1 %v21951_v42  ;;  %v22047_v45 = vand.u32 4294901760, %v16785_v40 }
 0x3a1   : > { %16259 = vmatpush1.msra.mxu1 %v21941_v3  ;;  %16372 = vmatmul.mubr.f32.vlgmr.msra.gmra.mxu0 %v15906_v60  ;;  %v22039_v3 = vand.u32 4294901760, %v16786_v18 }
 0x3a2   : > { %16495 = vmatpush1.msra.mxu0 %v16415_v17  ;;  %16413 = vmatprep.subr.mxu1 %v16412_v6  ;;  %v17370_v4 = vsub.f32 %v16785_v40, %v22047_v45 }
 0x3a3   : > { %16646 = vmatprep.subr.mxu0 %v16410_v29  ;;  %16292 = vmatprep.mubr.f32.mxu1 %v23334_v8  ;;  %v17364_v48 = vsub.f32 %v16786_v18, %v22039_v3 }
 0x3a4   : > { %16528 = vmatprep.mubr.f32.mxu0 %v23334_v8  ;;  %16294 = vmatmul.mubr.f32.vlgmr.msra.gmra.mxu1 %v21924_v58  ;;  %v17371_v61 = vand.u32 4294901760, %v17370_v4 }
 0x3a5   : > { %16419 = vmatpush1.msra.mxu1 %v16418_v15  ;;  %16531 = vmatmul.mubr.f32.vlgmr.msra.gmra.mxu0 %v21937_v0  ;;  %v16901_v0 = vsub.f32 %v16899_v16, %v16900_v11 }
 0x3a6   : > { %16650 = vmatpush1.msra.mxu0 %v16416_v56  ;;  %16568 = vmatprep.subr.mxu1 %v21967_v5  ;;  %v17372_v60 = vsub.f32 %v17370_v4, %v17371_v61 }
 0x3a7   : > { %16821 = vmatprep.subr.mxu0 %v22002_v23  ;;  %16452 = vmatprep.mubr.f32.mxu1 %v23334_v8  ;;  %v16902_v50 = vand.u32 4294901760, %v16901_v0 }
 0x3a8   : > { %16683 = vmatprep.mubr.f32.mxu0 %v23334_v8  ;;  %16454 = vmatmul.mubr.f32.vlgmr.msra.gmra.mxu1 %v21924_v58  ;;  %v17373_v49 = vand.u32 4294901760, %v17372_v60 }
 0x3a9   : > { %16570 = vmatpush1.msra.mxu1 %v21975_v53  ;;  %16685 = vmatmul.mubr.f32.vlgmr.msra.gmra.mxu0 %v21924_v58 }
 0x3aa   : > { %16823 = vmatpush1.msra.mxu0 %v22013_v54  ;;  %16722 = vmatprep.subr.mxu1 %v21967_v5 }
 0x3ab   : > { %16982 = vmatprep.subr.mxu0 %v16899_v16  ;;  %16603 = vmatprep.mubr.f32.mxu1 %v23334_v8 }
 0x3ac   : > { %16856 = vmatprep.mubr.f32.mxu0 %v23334_v8  ;;  %v9249_v10 = vpop.f32.mrf.mxu0  ;;  %16607 = vmatmul.mubr.f32.vlgmr.msra.gmra.mxu1 %v21951_v42  ;;  %v17365_v42 = vand.u32 4294901760, %v17364_v48 }
 0x3ad   : > { %16724 = vmatpush1.msra.mxu1 %v21975_v53  ;;  %16862 = vmatmul.mubr.f32.vlgmr.msra.gmra.mxu0 %v16861_v22 }
 0x3ae   : > { %16985 = vmatpush1.msra.mxu0 %v16905_v21  ;;  %16903 = vmatprep.subr.mxu1 %v16902_v50  ;;  %v9251_v32 = vpop.f32.mrf.mxu0  ;;  %v17366_v19 = vsub.f32 %v17364_v48, %v17365_v42 }
 0x3af   : > { %17136 = vmatprep.subr.mxu0 %v16900_v11  ;;  %16757 = vmatprep.mubr.f32.mxu1 %v23334_v8 }
 0x3b0   : > { %17018 = vmatprep.mubr.f32.mxu0 %v23334_v8  ;;  %v9408_v12 = vpop.f32.mrf.mxu0  ;;  %16759 = vmatmul.mubr.f32.vlgmr.msra.gmra.mxu1 %v21924_v58  ;;  %v17367_v47 = vand.u32 4294901760, %v17366_v19 }
 0x3b1   : > { %16909 = vmatpush1.msra.mxu1 %v16908_v26  ;;  %17021 = vmatmul.mubr.f32.vlgmr.msra.gmra.mxu0 %v22009_v38 }
 0x3b2   : > { %17140 = vmatpush1.msra.mxu0 %v16906_v57  ;;  %17058 = vmatprep.subr.mxu1 %v22002_v23  ;;  %v9410_v13 = vpop.f32.mrf.mxu0 }
 0x3b3   : > { %17286 = vmatprep.subr.mxu0 %v22039_v3  ;;  %16942 = vmatprep.mubr.f32.mxu1 %v23334_v8 }
 0x3b4   : > { %17173 = vmatprep.mubr.f32.mxu0 %v23334_v8  ;;  %v9331_v52 = vpop.f32.mrf.mxu1  ;;  %16944 = vmatmul.mubr.f32.vlgmr.msra.gmra.mxu1 %v21996_v30 }
 0x3b5   : > { %v9332_v58 = vadd.f32 %v9331_v52, %v9249_v10  ;;  %v9562_v36 = vpop.f32.mrf.mxu0  ;;  %17060 = vmatpush1.msra.mxu1 %v22013_v54  ;;  %17175 = vmatmul.mubr.f32.vlgmr.msra.gmra.mxu0 %v21996_v30 }
 0x3b6   : > { %17288 = vmatpush1.msra.mxu0 %v22047_v45  ;;  %17212 = vmatprep.subr.mxu1 %v22002_v23  ;;  %v9333_v1 = vpop.f32.mrf.mxu1 }
 0x3b7   : > { %17447 = vmatprep.subr.mxu0 %v17364_v48  ;;  %v9564_v5 = vpop.f32.mrf.mxu0  ;;  %17093 = vmatprep.mubr.f32.mxu1 %v23334_v8  ;;  %v9409_v7 = vadd.f32 %v9408_v12, %v9332_v58  ;;  %v9334_v31 = vadd.f32 %v9333_v1, %v9251_v32 }
 0x3b8   : > { %17321 = vmatprep.mubr.f32.mxu0 %v23334_v8  ;;  %v9484_v53 = vpop.f32.mrf.mxu1  ;;  %17097 = vmatmul.mubr.f32.vlgmr.msra.gmra.mxu1 %v22023_v41 }
 0x3b9   : > { %v9485_v2 = vadd.f32 %v9484_v53, %v9409_v7  ;;  %v9714_v62 = vpop.f32.mrf.mxu0  ;;  %17214 = vmatpush1.msra.mxu1 %v22013_v54  ;;  %17327 = vmatmul.mubr.f32.vlgmr.msra.gmra.mxu0 %v16861_v22  ;;  %v9411_v28 = vadd.f32 %v9410_v13, %v9334_v31 }
 0x3ba   : > { %17450 = vmatpush1.msra.mxu0 %v17370_v4  ;;  %17368 = vmatprep.subr.mxu1 %v17367_v47  ;;  %v9486_v43 = vpop.f32.mrf.mxu1 }
 0x3bb   : > { %17601 = vmatprep.subr.mxu0 %v17365_v42  ;;  %v9716_v44 = vpop.f32.mrf.mxu0  ;;  %17247 = vmatprep.mubr.f32.mxu1 %v23334_v8  ;;  %v9563_v33 = vadd.f32 %v9562_v36, %v9485_v2  ;;  %v9487_v51 = vadd.f32 %v9486_v43, %v9411_v28 }
 0x3bc   : > { %17483 = vmatprep.mubr.f32.mxu0 %v23334_v8  ;;  %v9636_v17 = vpop.f32.mrf.mxu1  ;;  %17249 = vmatmul.mubr.f32.vlgmr.msra.gmra.mxu1 %v21996_v30 }
 0x3bd   : > { %v9637_v20 = vadd.f32 %v9636_v17, %v9563_v33  ;;  %v9873_v59 = vpop.f32.mrf.mxu0  ;;  %17374 = vmatpush1.msra.mxu1 %v17373_v49  ;;  %17486 = vmatmul.mubr.f32.vlgmr.msra.gmra.mxu0 %v22009_v38  ;;  %v9565_v35 = vadd.f32 %v9564_v5, %v9487_v51 }
 0x3be   : > { %17605 = vmatpush1.msra.mxu0 %v17371_v61  ;;  %17523 = vmatprep.subr.mxu1 %v22039_v3  ;;  %v9638_v63 = vpop.f32.mrf.mxu1 }
 0x3bf   : > { %v9875_v29 = vpop.f32.mrf.mxu0  ;;  %17407 = vmatprep.mubr.f32.mxu1 %v23334_v8  ;;  %17638 = vmatprep.mubr.f32.mxu0 %v23334_v8 }
 0x3c0   : > { %v9796_v56 = vpop.f32.mrf.mxu1  ;;  %17409 = vmatmul.mubr.f32.vlgmr.msra.gmra.mxu1 %v21996_v30  ;;  %19621 = vmatprep.subr.mxu0 %v23334_v8 }
 0x3c1   : > { %v9797_v24 = vadd.f32 %v9796_v56, %v9714_v62  ;;  %v10027_v27 = vpop.f32.mrf.mxu0  ;;  %17525 = vmatpush1.msra.mxu1 %v22047_v45  ;;  %17558 = vmatprep.mubr.f32.mxu1 %v23334_v8 }
 0x3c2   : > { %17677 = vmatprep.subr.mxu1 %v22039_v3  ;;  %v9798_v23 = vpop.f32.mrf.mxu1  ;;  %17640 = vmatmul.mubr.f32.vlgmr.msra.gmra.mxu0 %v21996_v30  ;;  %v9639_v3 = vadd.f32 %v9638_v63, %v9565_v35 }
 0x3c3   : > { %v9799_v38 = vadd.f32 %v9798_v23, %v9716_v44  ;;  %v10029_v54 = vpop.f32.mrf.mxu0  ;;  %v9874_v39 = vadd.f32 %v9873_v59, %v9797_v24  ;;  %19623 = vmatprep.mubr.msk.f32.mxu0 %vm19935_vm9, %v23334_v8 }
 0x3c4   : > { %v9949_v25 = vpop.f32.mrf.mxu1  ;;  %17562 = vmatmul.mubr.f32.vlgmr.msra.gmra.mxu1 %v22023_v41 }
 0x3c5   : > { %v9950_v6 = vadd.f32 %v9949_v25, %v9874_v39  ;;  %v10182_v16 = vpop.f32.mrf.mxu0  ;;  %17679 = vmatpush1.msra.mxu1 %v22047_v45  ;;  %v9876_v46 = vadd.f32 %v9875_v29, %v9799_v38  ;;  %17712 = vmatprep.mubr.f32.mxu1 %v23334_v8 }
 0x3c6   : > { %v10183_v21 = vadd.f32 %v10182_v16, %v9637_v20  ;;  %v9951_v15 = vpop.f32.mrf.mxu1  ;;  %19626 = vmatprep.subr.mxu1 %v23334_v8 }
 0x3c7   : > { %v9952_v14 = vadd.f32 %v9951_v15, %v9876_v46  ;;  %v10184_v18 = vpop.f32.mrf.mxu0  ;;  %v10028_v11 = vadd.f32 %v10027_v27, %v9950_v6 }
 0x3c8   : > { %v10101_v37 = vpop.f32.mrf.mxu1  ;;  %17714 = vmatmul.mubr.f32.vlgmr.msra.gmra.mxu1 %v21996_v30  ;;  %v10185_v34 = vadd.f32 %v10184_v18, %v9639_v3 }
 0x3c9   : > { %v10102_v55 = vadd.f32 %v10101_v37, %v10028_v11  ;;  %v10341_v41 = vpop.f32.mrf.mxu0  ;;  %v10030_v40 = vadd.f32 %v10029_v54, %v9952_v14  ;;  %19628 = vmatprep.mubr.msk.f32.mxu1 %vm19935_vm9, %v23334_v8 }
 0x3ca   : > { %v10103_v57 = vpop.f32.mrf.mxu1 }
 0x3cb   : > { %v10104_v0 = vadd.f32 %v10103_v57, %v10030_v40  ;;  %v10343_v22 = vpop.f32.mrf.mxu0 }
 0x3cc   : > { %v10264_v45 = vpop.f32.mrf.mxu1 }
 0x3cd   : > { %v10265_v10 = vadd.f32 %v10264_v45, %v10183_v21  ;;  %v10495_v50 = vpop.f32.mrf.mxu0 }
 0x3ce   : > { %v10266_v48 = vpop.f32.mrf.mxu1 }
 0x3cf   : > { %v10267_v32 = vadd.f32 %v10266_v48, %v10185_v34  ;;  %v10497_v4 = vpop.f32.mrf.mxu0  ;;  %v10342_v26 = vadd.f32 %v10341_v41, %v10265_v10 }
 0x3d0   : > { %v10417_v12 = vpop.f32.mrf.mxu1 }
 0x3d1   : > { %v10418_v42 = vadd.f32 %v10417_v12, %v10342_v26  ;;  %v10647_v13 = vpop.f32.mrf.mxu0  ;;  %v10344_v61 = vadd.f32 %v10343_v22, %v10267_v32 }
 0x3d2   : > { %v10648_v30 = vadd.f32 %v10647_v13, %v10102_v55  ;;  %v10419_v52 = vpop.f32.mrf.mxu1 }
 0x3d3   : > { %v10420_v19 = vadd.f32 %v10419_v52, %v10344_v61  ;;  %v10649_v58 = vpop.f32.mrf.mxu0  ;;  %v10496_v36 = vadd.f32 %v10495_v50, %v10418_v42 }
 0x3d4   : > { %v10650_v1 = vadd.f32 %v10649_v58, %v10104_v0  ;;  %v10569_v5 = vpop.f32.mrf.mxu1 }
 0x3d5   : > { %v10570_v7 = vadd.f32 %v10569_v5, %v10496_v36  ;;  %v10498_v60 = vadd.f32 %v10497_v4, %v10420_v19  ;;  %v10806_v53 = vpop.f32.mrf.mxu0 }
 0x3d6   : > { %v10571_v47 = vpop.f32.mrf.mxu1 }
 0x3d7   : > { %v10572_v2 = vadd.f32 %v10571_v47, %v10498_v60  ;;  %v10808_v62 = vpop.f32.mrf.mxu0 }
 0x3d8   : > { %v10729_v43 = vpop.f32.mrf.mxu1 }
 0x3d9   : > { %v10730_v31 = vadd.f32 %v10729_v43, %v10648_v30  ;;  %v10960_v44 = vpop.f32.mrf.mxu0 }
 0x3da   : > { %v10731_v33 = vpop.f32.mrf.mxu1 }
 0x3db   : > { %v10807_v49 = vadd.f32 %v10806_v53, %v10730_v31  ;;  %v10732_v17 = vadd.f32 %v10731_v33, %v10650_v1  ;;  %v10962_v20 = vpop.f32.mrf.mxu0 }
 0x3dc   : > { %v10882_v59 = vpop.f32.mrf.mxu1 }
 0x3dd   : > { %v10809_v63 = vadd.f32 %v10808_v62, %v10732_v17  ;;  %v10883_v28 = vadd.f32 %v10882_v59, %v10807_v49  ;;  %v11133_v29 = vpop.f32.mrf.mxu0 }
 0x3de   : > { %v10884_v56 = vpop.f32.mrf.mxu1 }
 0x3df   : > { %v10961_v24 = vadd.f32 %v10960_v44, %v10883_v28  ;;  %v10885_v27 = vadd.f32 %v10884_v56, %v10809_v63  ;;  %v11135_v23 = vpop.f32.mrf.mxu0 }
 0x3e0   : > { %v11034_v51 = vpop.f32.mrf.mxu1 }
 0x3e1   : > { %v10963_v38 = vadd.f32 %v10962_v20, %v10885_v27  ;;  %v11035_v54 = vadd.f32 %v11034_v51, %v10961_v24  ;;  %v11292_v39 = vpop.f32.mrf.mxu0 }
 0x3e2   : > { %v11036_v25 = vpop.f32.mrf.mxu1 }
 0x3e3   : > { %v11037_v6 = vadd.f32 %v11036_v25, %v10963_v38  ;;  %v11294_v16 = vpop.f32.mrf.mxu0 }
 0x3e4   : > { %v11215_v46 = vpop.f32.mrf.mxu1 }
 0x3e5   : > { %v11216_v21 = vadd.f32 %v11215_v46, %v11133_v29  ;;  %v11446_v15 = vpop.f32.mrf.mxu0 }
 0x3e6   : > { %v11217_v35 = vpop.f32.mrf.mxu1 }
 0x3e7   : > { %v11293_v14 = vadd.f32 %v11292_v39, %v11216_v21  ;;  %v11218_v18 = vadd.f32 %v11217_v35, %v11135_v23  ;;  %v11448_v11 = vpop.f32.mrf.mxu0 }
 0x3e8   : > { %v11368_v37 = vpop.f32.mrf.mxu1 }
 0x3e9   : > { %v11295_v55 = vadd.f32 %v11294_v16, %v11218_v18  ;;  %v11369_v41 = vadd.f32 %v11368_v37, %v11293_v14  ;;  %v11598_v40 = vpop.f32.mrf.mxu0 }
 0x3ea   : > { %v11370_v57 = vpop.f32.mrf.mxu1 }
 0x3eb   : > { %v11447_v3 = vadd.f32 %v11446_v15, %v11369_v41  ;;  %v11371_v0 = vadd.f32 %v11370_v57, %v11295_v55  ;;  %v11600_v22 = vpop.f32.mrf.mxu0 }
 0x3ec   : > { %v11520_v45 = vpop.f32.mrf.mxu1 }
 0x3ed   : > { %v11449_v34 = vadd.f32 %v11448_v11, %v11371_v0  ;;  %v11521_v10 = vadd.f32 %v11520_v45, %v11447_v3  ;;  %v11757_v50 = vpop.f32.mrf.mxu0 }
 0x3ee   : > { %v11522_v48 = vpop.f32.mrf.mxu1 }
 0x3ef   : > { %v11990_v32 = vadd.f32 %v11521_v10, %v10570_v7  ;;  %v11523_v4 = vadd.f32 %v11522_v48, %v11449_v34  ;;  %v11759_v26 = vpop.f32.mrf.mxu0 }
 0x3f0   : > { %v11680_v12 = vpop.f32.mrf.mxu1 }
 0x3f1   : > { %v11991_v42 = vadd.f32 %v11523_v4, %v10572_v2  ;;  %v11681_v13 = vadd.f32 %v11680_v12, %v11598_v40  ;;  %v11911_v61 = vpop.f32.mrf.mxu0 }
 0x3f2   : > { %v11682_v30 = vpop.f32.mrf.mxu1 }
 0x3f3   : > { %v11758_v52 = vadd.f32 %v11757_v50, %v11681_v13  ;;  %v11683_v19 = vadd.f32 %v11682_v30, %v11600_v22  ;;  %v11913_v58 = vpop.f32.mrf.mxu0 }
 0x3f4   : > { %v11833_v36 = vpop.f32.mrf.mxu1 }
 0x3f5   : > { %v11760_v1 = vadd.f32 %v11759_v26, %v11683_v19  ;;  %v11834_v5 = vadd.f32 %v11833_v36, %v11758_v52  ;;  %v12088_v60 = vpop.f32.mrf.mxu0 }
 0x3f6   : > { %v11835_v53 = vpop.f32.mrf.mxu1 }
 0x3f7   : > { %v11912_v47 = vadd.f32 %v11911_v61, %v11834_v5  ;;  %v11836_v62 = vadd.f32 %v11835_v53, %v11760_v1  ;;  %v12090_v43 = vpop.f32.mrf.mxu0 }
 0x3f8   : > { %v11985_v31 = vpop.f32.mrf.mxu1 }
 0x3f9   : > { %v11914_v7 = vadd.f32 %v11913_v58, %v11836_v62  ;;  %v11986_v44 = vadd.f32 %v11985_v31, %v11912_v47  ;;  %v12247_v33 = vpop.f32.mrf.mxu0 }
 0x3fa   : > { %v11987_v49 = vpop.f32.mrf.mxu1 }
 0x3fb   : > { %v11992_v2 = vadd.f32 %v11986_v44, %v11035_v54  ;;  %v11988_v17 = vadd.f32 %v11987_v49, %v11914_v7  ;;  %v12249_v20 = vpop.f32.mrf.mxu0 }
 0x3fc   : > { %v12170_v59 = vpop.f32.mrf.mxu1 }
 0x3fd   : > { %v11993_v63 = vadd.f32 %v11988_v17, %v11037_v6  ;;  %v12171_v28 = vadd.f32 %v12170_v59, %v12088_v60  ;;  %v12401_v29 = vpop.f32.mrf.mxu0 }
 0x3fe   : > { %v12172_v56 = vpop.f32.mrf.mxu1 }
 0x3ff   : > { %v12248_v24 = vadd.f32 %v12247_v33, %v12171_v28  ;;  %v12173_v27 = vadd.f32 %v12172_v56, %v12090_v43  ;;  %v12403_v23 = vpop.f32.mrf.mxu0 }
 0x400   : > { %v12323_v51 = vpop.f32.mrf.mxu1 }
 0x401   : > { %v12250_v38 = vadd.f32 %v12249_v20, %v12173_v27  ;;  %v12324_v39 = vadd.f32 %v12323_v51, %v12248_v24  ;;  %v12553_v25 = vpop.f32.mrf.mxu0 }
 0x402   : > { %v12325_v16 = vpop.f32.mrf.mxu1 }
 0x403   : > { %v12402_v46 = vadd.f32 %v12401_v29, %v12324_v39  ;;  %v12326_v21 = vadd.f32 %v12325_v16, %v12250_v38  ;;  %v12555_v15 = vpop.f32.mrf.mxu0 }
 0x404   : > { %v12475_v35 = vpop.f32.mrf.mxu1 }
 0x405   : > { %v12404_v54 = vadd.f32 %v12403_v23, %v12326_v21  ;;  %v12476_v14 = vadd.f32 %v12475_v35, %v12402_v46  ;;  %v12712_v18 = vpop.f32.mrf.mxu0 }
 0x406   : > { %v12477_v11 = vpop.f32.mrf.mxu1 }
 0x407   : > { %v12945_v6 = vadd.f32 %v12476_v14, %v11990_v32  ;;  %v12478_v37 = vadd.f32 %v12477_v11, %v12404_v54  ;;  %v12714_v55 = vpop.f32.mrf.mxu0 }
 0x408   : > { %v12635_v41 = vpop.f32.mrf.mxu1 }
 0x409   : > { %v12946_v40 = vadd.f32 %v12478_v37, %v11991_v42  ;;  %v12636_v57 = vadd.f32 %v12635_v41, %v12553_v25  ;;  %v12866_v3 = vpop.f32.mrf.mxu0 }
 0x40a   : > { %v12637_v0 = vpop.f32.mrf.mxu1 }
 0x40b   : > { %v12713_v22 = vadd.f32 %v12712_v18, %v12636_v57  ;;  %v12638_v45 = vadd.f32 %v12637_v0, %v12555_v15  ;;  %v12868_v34 = vpop.f32.mrf.mxu0 }
 0x40c   : > { %v12788_v10 = vpop.f32.mrf.mxu1 }
 0x40d   : > { %v12715_v50 = vadd.f32 %v12714_v55, %v12638_v45  ;;  %v12789_v48 = vadd.f32 %v12788_v10, %v12713_v22  ;;  %v13043_v4 = vpop.f32.mrf.mxu0 }
 0x40e   : > { %v12790_v26 = vpop.f32.mrf.mxu1 }
 0x40f   : > { %v12867_v12 = vadd.f32 %v12866_v3, %v12789_v48  ;;  %v12791_v13 = vadd.f32 %v12790_v26, %v12715_v50  ;;  %v13045_v61 = vpop.f32.mrf.mxu0 }
 0x410   : > { %v12940_v30 = vpop.f32.mrf.mxu1 }
 0x411   : > { %v12869_v32 = vadd.f32 %v12868_v34, %v12791_v13  ;;  %v12941_v52 = vadd.f32 %v12940_v30, %v12867_v12  ;;  %v13202_v19 = vpop.f32.mrf.mxu0 }
 0x412   : > { %v12942_v58 = vpop.f32.mrf.mxu1 }
 0x413   : > { %v12947_v42 = vadd.f32 %v12941_v52, %v11992_v2  ;;  %v12943_v36 = vadd.f32 %v12942_v58, %v12869_v32  ;;  %v13204_v1 = vpop.f32.mrf.mxu0 }
 0x414   : > { %v13125_v5 = vpop.f32.mrf.mxu1 }
 0x415   : > { %v12948_v60 = vadd.f32 %v12943_v36, %v11993_v63  ;;  %v13126_v53 = vadd.f32 %v13125_v5, %v13043_v4  ;;  %v13356_v47 = vpop.f32.mrf.mxu0 }
 0x416   : > { %v13127_v62 = vpop.f32.mrf.mxu1 }
 0x417   : > { %v13203_v43 = vadd.f32 %v13202_v19, %v13126_v53  ;;  %v13128_v31 = vadd.f32 %v13127_v62, %v13045_v61  ;;  %v13358_v7 = vpop.f32.mrf.mxu0 }
 0x418   : > { %v13278_v44 = vpop.f32.mrf.mxu1 }
 0x419   : > { %v13205_v33 = vadd.f32 %v13204_v1, %v13128_v31  ;;  %v13279_v49 = vadd.f32 %v13278_v44, %v13203_v43  ;;  %v13508_v17 = vpop.f32.mrf.mxu0 }
 0x41a   : > { %v13280_v20 = vpop.f32.mrf.mxu1 }
 0x41b   : > { %v13357_v59 = vadd.f32 %v13356_v47, %v13279_v49  ;;  %v13281_v28 = vadd.f32 %v13280_v20, %v13205_v33  ;;  %v13510_v29 = vpop.f32.mrf.mxu0 }
 0x41c   : > { %v13430_v56 = vpop.f32.mrf.mxu1 }
 0x41d   : > { %v13359_v2 = vadd.f32 %v13358_v7, %v13281_v28  ;;  %v13431_v24 = vadd.f32 %v13430_v56, %v13357_v59  ;;  %v13667_v27 = vpop.f32.mrf.mxu0 }
 0x41e   : > { %v13432_v23 = vpop.f32.mrf.mxu1 }
 0x41f   : > { %v13900_v63 = vadd.f32 %v13431_v24, %v12945_v6  ;;  %v13433_v51 = vadd.f32 %v13432_v23, %v13359_v2  ;;  %v13669_v38 = vpop.f32.mrf.mxu0 }
 0x420   : > { %v13590_v39 = vpop.f32.mrf.mxu1 }
 0x421   : > { %v13901_v25 = vadd.f32 %v13433_v51, %v12946_v40  ;;  %v13591_v16 = vadd.f32 %v13590_v39, %v13508_v17  ;;  %v13821_v46 = vpop.f32.mrf.mxu0 }
 0x422   : > { %v13592_v21 = vpop.f32.mrf.mxu1 }
 0x423   : > { %v13668_v15 = vadd.f32 %v13667_v27, %v13591_v16  ;;  %v13593_v35 = vadd.f32 %v13592_v21, %v13510_v29  ;;  %v13823_v54 = vpop.f32.mrf.mxu0 }
 0x424   : > { %v13743_v14 = vpop.f32.mrf.mxu1 }
 0x425   : > { %v13670_v18 = vadd.f32 %v13669_v38, %v13593_v35  ;;  %v13744_v11 = vadd.f32 %v13743_v14, %v13668_v15  ;;  %v13998_v37 = vpop.f32.mrf.mxu0 }
 0x426   : > { %v13745_v55 = vpop.f32.mrf.mxu1 }
 0x427   : > { %v13822_v41 = vadd.f32 %v13821_v46, %v13744_v11  ;;  %v13746_v57 = vadd.f32 %v13745_v55, %v13670_v18  ;;  %v14000_v3 = vpop.f32.mrf.mxu0 }
 0x428   : > { %v13895_v0 = vpop.f32.mrf.mxu1 }
 0x429   : > { %v13824_v6 = vadd.f32 %v13823_v54, %v13746_v57  ;;  %v13896_v22 = vadd.f32 %v13895_v0, %v13822_v41  ;;  %v14157_v45 = vpop.f32.mrf.mxu0 }
 0x42a   : > { %v13897_v34 = vpop.f32.mrf.mxu1 }
 0x42b   : > { %v13902_v40 = vadd.f32 %v13896_v22, %v12947_v42  ;;  %v13898_v10 = vadd.f32 %v13897_v34, %v13824_v6  ;;  %v14159_v50 = vpop.f32.mrf.mxu0 }
 0x42c   : > { %v14080_v48 = vpop.f32.mrf.mxu1 }
 0x42d   : > { %v13903_v4 = vadd.f32 %v13898_v10, %v12948_v60  ;;  %v14081_v26 = vadd.f32 %v14080_v48, %v13998_v37  ;;  %v14311_v12 = vpop.f32.mrf.mxu0 }
 0x42e   : > { %v14082_v13 = vpop.f32.mrf.mxu1 }
 0x42f   : > { %v14158_v61 = vadd.f32 %v14157_v45, %v14081_v26  ;;  %v14083_v30 = vadd.f32 %v14082_v13, %v14000_v3  ;;  %v14313_v32 = vpop.f32.mrf.mxu0 }
 0x430   : > { %v14233_v52 = vpop.f32.mrf.mxu1 }
 0x431   : > { %v14160_v19 = vadd.f32 %v14159_v50, %v14083_v30  ;;  %v14234_v58 = vadd.f32 %v14233_v52, %v14158_v61  ;;  %v14463_v36 = vpop.f32.mrf.mxu0 }
 0x432   : > { %v14235_v1 = vpop.f32.mrf.mxu1 }
 0x433   : > { %v14312_v5 = vadd.f32 %v14311_v12, %v14234_v58  ;;  %v14236_v53 = vadd.f32 %v14235_v1, %v14160_v19  ;;  %v14465_v47 = vpop.f32.mrf.mxu0 }
 0x434   : > { %v14385_v62 = vpop.f32.mrf.mxu1 }
 0x435   : > { %v14314_v42 = vadd.f32 %v14313_v32, %v14236_v53  ;;  %v14386_v43 = vadd.f32 %v14385_v62, %v14312_v5  ;;  %v14622_v31 = vpop.f32.mrf.mxu0 }
 0x436   : > { %v14387_v7 = vpop.f32.mrf.mxu1 }
 0x437   : > { %v22090_v60 = vadd.f32 %v14386_v43, %v13900_v63  ;;  %v14388_v44 = vadd.f32 %v14387_v7, %v14314_v42  ;;  %v14624_v33 = vpop.f32.mrf.mxu0 }
 0x438   : > { %v14545_v49 = vpop.f32.mrf.mxu1 }
 0x439   : > { %v22092_v17 = vadd.f32 %v14388_v44, %v13901_v25  ;;  %v14546_v20 = vadd.f32 %v14545_v49, %v14463_v36  ;;  %v14776_v59 = vpop.f32.mrf.mxu0 }
 0x43a   : > { %v14547_v28 = vpop.f32.mrf.mxu1 }
 0x43b   : > { %v14623_v29 = vadd.f32 %v14622_v31, %v14546_v20  ;;  %v14548_v56 = vadd.f32 %v14547_v28, %v14465_v47  ;;  %v14778_v2 = vpop.f32.mrf.mxu0 }
 0x43c   : > { %v14698_v24 = vpop.f32.mrf.mxu1 }
 0x43d   : > { %v14625_v27 = vadd.f32 %v14624_v33, %v14548_v56  ;;  %v14699_v23 = vadd.f32 %v14698_v24, %v14623_v29  ;;  %v14953_v51 = vpop.f32.mrf.mxu0 }
 0x43e   : > { %v14700_v38 = vpop.f32.mrf.mxu1 }
 0x43f   : > { %v14777_v39 = vadd.f32 %v14776_v59, %v14699_v23  ;;  %v14701_v16 = vadd.f32 %v14700_v38, %v14625_v27  ;;  %v14955_v63 = vpop.f32.mrf.mxu0 }
 0x440   : > { %v14850_v46 = vpop.f32.mrf.mxu1 }
 0x441   : > { %v14779_v21 = vadd.f32 %v14778_v2, %v14701_v16  ;;  %v14851_v15 = vadd.f32 %v14850_v46, %v14777_v39  ;;  %v15112_v35 = vpop.f32.mrf.mxu0 }
 0x442   : > { %v14852_v25 = vpop.f32.mrf.mxu1 }
 0x443   : > { %v22094_v54 = vadd.f32 %v14851_v15, %v13902_v40  ;;  %v14853_v14 = vadd.f32 %v14852_v25, %v14779_v21  ;;  %v15114_v18 = vpop.f32.mrf.mxu0 }
 0x444   : > { %v15035_v11 = vpop.f32.mrf.mxu1 }
 0x445   : > { %v22096_v37 = vadd.f32 %v14853_v14, %v13903_v4  ;;  %v15266_v55 = vpop.f32.mrf.mxu0  ;;  %v15036_v44 = vadd.f32 %v15035_v11, %v14953_v51 }
 0x446   : > { %v15037_v41 = vpop.f32.mrf.mxu1 }
 0x447   : > { %v15268_v57 = vpop.f32.mrf.mxu0  ;;  %v15038_v59 = vadd.f32 %v15037_v41, %v14955_v63  ;;  %v15113_v56 = vadd.f32 %v15112_v35, %v15036_v44 }
 0x448   : > { %v15188_v3 = vpop.f32.mrf.mxu1 }
 0x449   : > { %v15418_v0 = vpop.f32.mrf.mxu0  ;;  %v15115_v38 = vadd.f32 %v15114_v18, %v15038_v59  ;;  %v15189_v46 = vadd.f32 %v15188_v3, %v15113_v56 }
 0x44a   : > { %v15190_v6 = vpop.f32.mrf.mxu1 }
 0x44b   : > { %v15420_v22 = vpop.f32.mrf.mxu0  ;;  %v15191_v14 = vadd.f32 %v15190_v6, %v15115_v38  ;;  %v15267_v41 = vadd.f32 %v15266_v55, %v15189_v46 }
 0x44c   : > { %v15340_v45 = vpop.f32.mrf.mxu1 }
 0x44d   : > { %v15577_v34 = vpop.f32.mrf.mxu0  ;;  %v15269_v44 = vadd.f32 %v15268_v57, %v15191_v14  ;;  %v15341_v3 = vadd.f32 %v15340_v45, %v15267_v41 }
 0x44e   : > { %v22098_v10 = vpop.f32.mrf.mxu1 }
 0x44f   : > { %v22100_v50 = vpop.f32.mrf.mxu0 }
 0x450   : > { %v15500_v40 = vpop.f32.mrf.mxu1 }
 0x451   : > { %v22102_v48 = vpop.f32.mrf.mxu0  ;;  %v15501_v35 = vadd.f32 %v15500_v40, %v15418_v0  ;;  %v15343_v0 = vadd.f32 %v22098_v10, %v15269_v44 }
 0x452   : > { %v15502_v26 = vpop.f32.mrf.mxu1 }
 0x453   : > { %v22104_v12 = vpop.f32.mrf.mxu0  ;;  %v15811_v10 = vadd.f32 %v15343_v0, %v22092_v17 }
 0x454   : > { %v22106_v4 = vpop.f32.mrf.mxu1 }
 0x455   : > { %v15908_v13 = vpop.f32.mrf.mxu0 }
 0x456   : > { %v22108_v61 = vpop.f32.mrf.mxu1 }
 0x457   : > { %v15910_v30 = vpop.f32.mrf.mxu0 }
 0x458   : > { %v22110_v32 = vpop.f32.mrf.mxu1 }
 0x459   : > { %v16067_v52 = vpop.f32.mrf.mxu0 }
 0x45a   : > { %v22112_v19 = vpop.f32.mrf.mxu1 }
 0x45b   : > { %v16069_v58 = vpop.f32.mrf.mxu0 }
 0x45c   : > { %v15990_v36 = vpop.f32.mrf.mxu1 }
 0x45d   : > { %v16221_v1 = vpop.f32.mrf.mxu0  ;;  %v15991_v28 = vadd.f32 %v15990_v36, %v15908_v13 }
 0x45e   : > { %v15992_v5 = vpop.f32.mrf.mxu1 }
 0x45f   : > { %v16223_v53 = vpop.f32.mrf.mxu0  ;;  %v15993_v24 = vadd.f32 %v15992_v5, %v15910_v30  ;;  %v16068_v39 = vadd.f32 %v16067_v52, %v15991_v28  ;;  %v15503_v28 = vadd.f32 %v15502_v26, %v15420_v22 }
 0x460   : > { %v16143_v47 = vpop.f32.mrf.mxu1 }
 0x461   : > { %v16373_v62 = vpop.f32.mrf.mxu0  ;;  %v16070_v15 = vadd.f32 %v16069_v58, %v15993_v24  ;;  %v16144_v63 = vadd.f32 %v16143_v47, %v16068_v39  ;;  %v15578_v24 = vadd.f32 %v15577_v34, %v15501_v35  ;;  %v15580_v45 = vadd.f32 %v22100_v50, %v15503_v28 }
 0x462   : > { %v16145_v42 = vpop.f32.mrf.mxu1 }
 0x463   : > { %v16375_v43 = vpop.f32.mrf.mxu0  ;;  %v16146_v30 = vadd.f32 %v16145_v42, %v16070_v15  ;;  %v16222_v18 = vadd.f32 %v16221_v1, %v16144_v63  ;;  %v15810_v1 = vadd.f32 %v15341_v3, %v22090_v60  ;;  %v15654_v34 = vadd.f32 %v22106_v4, %v15578_v24 }
 0x464   : > { %v16295_v31 = vpop.f32.mrf.mxu1  ;;  %v15656_v60 = vadd.f32 %v22108_v61, %v15580_v45 }
 0x465   : > { %v16532_v7 = vpop.f32.mrf.mxu0  ;;  %v16224_v9 = vadd.f32 %v16223_v53, %v16146_v30  ;;  %v16296_v40 = vadd.f32 %v16295_v31, %v16222_v18 }
 0x466   : > { %v16297_v33 = vpop.f32.mrf.mxu1 }
 0x467   : > { %v16534_v49 = vpop.f32.mrf.mxu0  ;;  %v16298_v53 = vadd.f32 %v16297_v33, %v16224_v9  ;;  %v16765_v31 = vadd.f32 %v16296_v40, %v15810_v1  ;;  %v17728_v33 = vpop.permute.xlu0 %17727 }
 0x468   : > { %v16455_v20 = vpop.f32.mrf.mxu1 }
 0x469   : > { %v22114_v29 = vpop.f32.mrf.mxu0  ;;  %v16456_v58 = vadd.f32 %v16455_v20, %v16373_v62 }
 0x46a   : > { %v16457_v2 = vpop.f32.mrf.mxu1 }
 0x46b   : > { %v22116_v27 = vpop.f32.mrf.mxu0  ;;  %v16458_v55 = vadd.f32 %v16457_v2, %v16375_v43  ;;  %v16533_v22 = vadd.f32 %v16532_v7, %v16456_v58  ;;  %v15732_v7 = vadd.f32 %v22102_v48, %v15654_v34 }
 0x46c   : > { %v16608_v23 = vpop.f32.mrf.mxu1 }
 0x46d   : > { %v16863_v16 = vpop.f32.mrf.mxu0  ;;  %v16535_v43 = vadd.f32 %v16534_v49, %v16458_v55  ;;  %v16609_v63 = vadd.f32 %v16608_v23, %v16533_v22  ;;  %v15806_v23 = vadd.f32 %v22110_v32, %v15732_v7 }
 0x46e   : > { %v16610_v21 = vpop.f32.mrf.mxu1 }
 0x46f   : > { %v16865_v51 = vpop.f32.mrf.mxu0  ;;  %v16611_v41 = vadd.f32 %v16610_v21, %v16535_v43  ;;  %v16687_v44 = vadd.f32 %v22114_v29, %v16609_v63 }
 0x470   : > { %v22118_v25 = vpop.f32.mrf.mxu1 }
 0x471   : > { %v17022_v11 = vpop.f32.mrf.mxu0 }
 0x472   : > { %v22120_v13 = vpop.f32.mrf.mxu1 }
 0x473   : > { %v17024_v36 = vpop.f32.mrf.mxu0 }
 0x474   : > { %v16945_v5 = vpop.f32.mrf.mxu1 }
 0x475   : > { %v16946_v52 = vadd.f32 %v16945_v5, %v16863_v16  ;;  %v17176_v59 = vpop.f32.mrf.mxu0  ;;  %v15734_v5 = vadd.f32 %v22104_v12, %v15656_v60  ;;  %v16761_v12 = vadd.f32 %v22118_v25, %v16687_v44 }
 0x476   : > { %v16947_v56 = vpop.f32.mrf.mxu1 }
 0x477   : > { %v17023_v6 = vadd.f32 %v17022_v11, %v16946_v52  ;;  %v16948_v47 = vadd.f32 %v16947_v56, %v16865_v51  ;;  %v17178_v38 = vpop.f32.mrf.mxu0  ;;  %v16766_v11 = vadd.f32 %v16298_v53, %v15811_v10  ;;  %v15808_v56 = vadd.f32 %v22112_v19, %v15734_v5 }
 0x478   : > { %v17098_v39 = vpop.f32.mrf.mxu1 }
 0x479   : > { %v17025_v42 = vadd.f32 %v17024_v36, %v16948_v47  ;;  %v17099_v46 = vadd.f32 %v17098_v39, %v17023_v6  ;;  %v17328_v57 = vpop.f32.mrf.mxu0  ;;  %v15812_v6 = vadd.f32 %v15806_v23, %v22094_v54  ;;  %v15813_v19 = vadd.f32 %v15808_v56, %v22096_v37 }
 0x47a   : > { %v17100_v26 = vpop.f32.mrf.mxu1 }
 0x47b   : > { %v17177_v62 = vadd.f32 %v17176_v59, %v17099_v46  ;;  %v17101_v20 = vadd.f32 %v17100_v26, %v17025_v42  ;;  %v17330_v16 = vpop.f32.mrf.mxu0  ;;  %v16689_v59 = vadd.f32 %v22116_v27, %v16611_v41  ;;  %v16767_v40 = vadd.f32 %v16761_v12, %v15812_v6 }
 0x47c   : > { %v17250_v2 = vpop.f32.mrf.mxu1  ;;  %v22170_v41 = vstv %s19562_s22  ;;  %s22182_s22 = sld [smem:[#allocation2 + $0xe]]  ;;  %v22186_v12 = vstv %s19565_s29  ;;  %v22195_v6 = vstv %s22164_s0  ;;  %s23363_s29 = smov 16  }
 0x47d   : > { %v17179_v15 = vadd.f32 %v17178_v38, %v17101_v20  ;;  %v17251_v51 = vadd.f32 %v17250_v2, %v17177_v62  ;;  %v17487_v14 = vpop.f32.mrf.mxu0  ;;  %v16763_v47 = vadd.f32 %v22120_v13, %v16689_v59  ;;  %s22219_s0 = sld [smem:[#allocation2 + $0x7]] }
 0x47e   : > { %v17252_v50 = vpop.f32.mrf.mxu1 }
 0x47f   : > { %v17720_v4 = vadd.f32 %v17251_v51, %v16765_v31  ;;  %v17253_v9 = vadd.f32 %v17252_v50, %v17179_v15  ;;  %v17489_v36 = vpop.f32.mrf.mxu0 }
 0x480   : > { %v17410_v35 = vpop.f32.mrf.mxu1 }
 0x481   : > { %v22129_v49 = vadd.f32 %v17728_v33, %v17720_v4  ;;  %v17721_v30 = vadd.f32 %v17253_v9, %v16766_v11  ;;  %v17411_v17 = vadd.f32 %v17410_v35, %v17328_v57  ;;  %v16768_v57 = vadd.f32 %v16763_v47, %v15813_v19 }
 0x482   : > { %v17412_v61 = vpop.f32.mrf.mxu1  ;;  %v17641_v58 = vpop.f32.mrf.mxu0  ;;  %v22198_v47 = vstv %s22168_s2  ;;  %s23364_s2 = smov 15  }
 0x483   : > { %v22134_v18 = vadd.f32 %v17728_v33, %v17721_v30  ;;  %v17488_v48 = vadd.f32 %v17487_v14, %v17411_v17  ;;  %v17413_v52 = vadd.f32 %v17412_v61, %v17330_v16  ;;  %v18663_v21 = vrot.slane %v22129_v49, 4 }
 0x484   : > { %v17563_v3 = vpop.f32.mrf.mxu1  ;;  %v17643_v0 = vpop.f32.mrf.mxu0  ;;  %v22176_v61 = vstv %s19563_s24  ;;  %s22188_s24 = sld [smem:[#allocation2 + $0x6]] }
 0x485   : > { %v17490_v28 = vadd.f32 %v17489_v36, %v17413_v52  ;;  %v17564_v24 = vadd.f32 %v17563_v3, %v17488_v48  ;;  %v17735_v32 = vadd.f32 %v22134_v18, %v22129_v49  ;;  %v18664_v27 = vadd.f32 %v18663_v21, %v22129_v49 }
 0x486   : > { %v17565_v29 = vpop.f32.mrf.mxu1  ;;  %v18693_v54 = vmax.f32 %v22129_v49, %v18663_v21  ;;  %v18669_v26 = vrot.slane %v22134_v18, 4  ;;  %v17742_v51 = vmax.f32 %v22129_v49, %v22134_v18  ;;  %v22180_v52 = vstv %s19564_s25  ;;  %s22192_s25 = sld [smem:[#allocation2 + $0xf]] }
 0x487   : > { %v17642_v38 = vadd.f32 %v17641_v58, %v17564_v24  ;;  %v17566_v55 = vadd.f32 %v17565_v29, %v17490_v28  ;;  %17736 = vadd.xlane.f32.xlu1 %v17735_v32  ;;  %v18665_v1 = vrot.slane %v18664_v27, 2 }
 0x488   : > { %v17715_v39 = vpop.f32.mrf.mxu1  ;;  %v18694_v20 = vrot.slane %v18693_v54, 2  ;;  %v18670_v16 = vadd.f32 %v18669_v26, %v22134_v18  ;;  %v18699_v63 = vmax.f32 %v22134_v18, %v18669_v26 }
 0x489   : > { %v17644_v25 = vadd.f32 %v17643_v0, %v17566_v55  ;;  %v17716_v42 = vadd.f32 %v17715_v39, %v17642_v38  ;;  %v18666_v34 = vadd.f32 %v18665_v1, %v18664_v27  ;;  %v22200_v27 = vstv %s18716_s3  ;;  %s22233_s3 = sld [smem:[#allocation2 + $0x10]] }
 0x48a   : > { %v17717_v46 = vpop.f32.mrf.mxu1  ;;  %v18695_v10 = vmax.f32 %v18693_v54, %v18694_v20  ;;  %v18671_v14 = vrot.slane %v18670_v16, 2  ;;  %v22207_v0 = vstv %s19561_s4  ;;  %v22226_v54 = vstv %s22182_s22  ;;  %s22247_s4 = sld [smem:[#allocation2 + $0x8]] }
 0x48b   : > { %v17722_v45 = vadd.f32 %v17716_v42, %v16767_v40  ;;  %v17718_v22 = vadd.f32 %v17717_v46, %v17644_v25  ;;  %v18667_v2 = vrot.slane %v18666_v34, 1  ;;  %v22213_v42 = vstv %s19570_s5  ;;  %s23365_s5 = smov 17   ;;  %s22261_s22 = sld [smem:[#allocation2 + $0x11]] }
 0x48c   : > { %v18696_v50 = vrot.slane %v18695_v10, 1  ;;  %v18672_v4 = vadd.f32 %v18671_v14, %v18670_v16  ;;  %v22245_v14 = vstv %s22192_s25  ;;  %s22644_s25 = sld [smem:[#allocation5 + $0x1]] }
 0x48d   : > { %v17723_v13 = vadd.f32 %v17718_v22, %v16768_v57  ;;  %v22148_v53 = vadd.f32 %v17728_v33, %v17722_v45  ;;  %v18668_v60 = vadd.f32 %v18667_v2, %v18666_v34 }
 0x48e   : > { %v22172_v35 = vmax.f32 %v18695_v10, %v18696_v50  ;;  %v18673_v36 = vrot.slane %v18672_v4, 1 }
 0x48f   : > { %v22150_v62 = vadd.f32 %v17728_v33, %v17723_v13  ;;  %v18675_v31 = vrot.slane %v22148_v53, 4  ;;  %v22166_v9 = vmul.f32 0.125, %v18668_v60  ;;  %v18700_v33 = vrot.slane %v18699_v63, 2 }
 0x490   : > { %v18760_v3 = vmul.f32 %v22176_v61, %v22172_v35  ;;  %v18674_v28 = vadd.f32 %v18673_v36, %v18672_v4  ;;  %v18808_v39 = vmul.f32 %v22186_v12, %v22172_v35  ;;  %v18852_v22 = vmul.f32 %v22198_v47, %v22172_v35 }
 0x491   : > { %v17747_v37 = vadd.f32 %v22150_v62, %v22148_v53  ;;  %v17753_v43 = vmax.f32 %v22148_v53, %v22150_v62  ;;  %v18681_v15 = vrot.slane %v22150_v62, 4  ;;  %v18676_v7 = vadd.f32 %v18675_v31, %v22148_v53 }
 0x492   : > { %v18705_v5 = vmax.f32 %v22148_v53, %v18675_v31  ;;  %v18754_v23 = vmul.f32 %v22170_v41, %v22166_v9  ;;  %v18701_v48 = vmax.f32 %v18699_v63, %v18700_v33  ;;  %v18802_v29 = vmul.f32 %v22180_v52, %v22166_v9 }
 0x493   : > { %17748 = vadd.xlane.f32.xlu0 %v17747_v37  ;;  %17754 = vmax.xlane.f32.xlu1 %v17753_v43  ;;  %v18682_v11 = vadd.f32 %v18681_v15, %v22150_v62  ;;  %v18677_v30 = vrot.slane %v18676_v7, 2  ;;  %v18711_v44 = vmax.f32 %v22150_v62, %v18681_v15  ;;  %v22211_v19 = vmul.f32 0.125, %v18674_v28 }
 0x494   : > { %v18706_v58 = vrot.slane %v18705_v5, 2  ;;  %v18764_v24 = vadd.f32 %v18760_v3, %v18754_v23  ;;  %v18702_v32 = vrot.slane %v18701_v48, 1  ;;  %v18812_v46 = vadd.f32 %v18808_v39, %v18802_v29 }
 0x495   : > { %v18683_v17 = vrot.slane %v18682_v11, 2  ;;  %v18678_v59 = vadd.f32 %v18677_v30, %v18676_v7  ;;  %v18712_v56 = vrot.slane %v18711_v44, 2  ;;  %v18846_v57 = vmul.f32 %v22195_v6, %v22166_v9 }
 0x496   : > { %v18707_v40 = vmax.f32 %v18705_v5, %v18706_v58  ;;  %v18718_v1 = vmul.f32 %v22200_v27, %v22166_v9  ;;  %v22221_v45 = vmax.f32 %v18701_v48, %v18702_v32  ;;  %v18724_v34 = vmul.f32 %v22207_v0, %v22172_v35 }
 0x497   : > { %17743 = vmax.xlane.f32.xlu0 %v17742_v51  ;;  %v18684_v21 = vadd.f32 %v18683_v17, %v18682_v11  ;;  %v18679_v38 = vrot.slane %v18678_v59, 1  ;;  %v18713_v25 = vmax.f32 %v18711_v44, %v18712_v56  ;;  %v18910_v20 = vmul.f32 %v22213_v42, %v22166_v9 }
 0x498   : > { %v18708_v37 = vrot.slane %v18707_v40, 1  ;;  %v18755_v43 = vmul.f32 %v22170_v41, %v22211_v19  ;;  %v18856_v2 = vadd.f32 %v18852_v22, %v18846_v57  ;;  %v18728_v10 = vadd.f32 %v18724_v34, %v18718_v1 }
 0x499   : > { %v18685_v55 = vrot.slane %v18684_v21, 1  ;;  %v18680_v13 = vadd.f32 %v18679_v38, %v18678_v59  ;;  %v18714_v16 = vrot.slane %v18713_v25, 1  ;;  %v18916_v31 = vmul.f32 %v22226_v54, %v22172_v35 }
 0x49a   : > { %v18761_v15 = vmul.f32 %v22176_v61, %v22221_v45  ;;  %v22242_v51 = vstv %s22188_s24  ;;  %v18889_v60 = vstv %s22202_s8  ;;  %v18895_v11 = vstv %s22209_s9  ;;  %s22631_s24 = sld [smem:[#allocation5]] }
 0x49b   : > { %v18686_v26 = vadd.f32 %v18685_v55, %v18684_v21  ;;  %v22250_v63 = vmul.f32 0.125, %v18680_v13  ;;  %v18920_v7 = vadd.f32 %v18916_v31, %v18910_v20  ;;  %v22257_v4 = vmax.f32 %v18707_v40, %v18708_v37  ;;  %s19584_s8 = sld [smem:[#allocation5 + $0x7]] }
 0x49c   : > { %v22259_v33 = vmax.f32 %v18713_v25, %v18714_v16  ;;  %v18765_v30 = vadd.f32 %v18761_v15, %v18755_v43  ;;  %v18954_v17 = vmul.f32 %v22242_v51, %v22166_v9  ;;  %v18960_v36 = vmul.f32 %v22245_v14, %v22172_v35  ;;  %s19585_s9 = sld [smem:[#allocation5 + $0x8]] }
 0x49d   : > { %v22252_v50 = vmul.f32 0.125, %v18686_v26  ;;  %v18803_v5 = vmul.f32 %v22180_v52, %v22211_v19  ;;  %v22270_v44 = vstv %s22219_s0  ;;  %v18890_v23 = vmul.f32 %v18889_v60, %v22166_v9  ;;  %s22653_s0 = sld [smem:[#allocation5 + $0x2]] }
 0x49e   : > { %v18896_v48 = vmul.f32 %v18895_v11, %v22172_v35  ;;  %v18891_v59 = vmul.f32 %v18889_v60, %v22211_v19  ;;  %v18897_v21 = vmul.f32 %v18895_v11, %v22221_v45  ;;  %v18809_v3 = vmul.f32 %v22186_v12, %v22221_v45 }
 0x49f   : > { %v22285_v28 = vstv %s22233_s3  ;;  %v18892_v58 = vmul.f32 %v18889_v60, %v22250_v63  ;;  %v18893_v56 = vmul.f32 %v18889_v60, %v22252_v50  ;;  %v18898_v32 = vmul.f32 %v18895_v11, %v22257_v4  ;;  %s22660_s3 = sld [smem:[#allocation5 + $0x3]] }
 0x4a0   : > { %v22291_v29 = vadd.f32 %v18897_v21, %v18891_v59  ;;  %v18899_v38 = vmul.f32 %v18895_v11, %v22259_v33  ;;  %v18964_v55 = vadd.f32 %v18960_v36, %v18954_v17  ;;  %v18813_v39 = vadd.f32 %v18809_v3, %v18803_v5 }
 0x4a1   : > { %v18998_v40 = vmul.f32 %v22270_v44, %v22166_v9  ;;  %v18847_v25 = vmul.f32 %v22195_v6, %v22211_v19  ;;  %v22302_v57 = vadd.f32 %v18898_v32, %v18892_v58  ;;  %v19004_v22 = vmul.f32 %v22285_v28, %v22172_v35 }
 0x4a2   : > { %v22304_v1 = vadd.f32 %v18899_v38, %v18893_v56  ;;  %v18853_v13 = vmul.f32 %v22198_v47, %v22221_v45  ;;  %v22313_v26 = vstv %s22261_s22  ;;  %v18911_v16 = vmul.f32 %v22213_v42, %v22211_v19  ;;  %s22679_s22 = sld [smem:[#allocation5 + $0x6]] }
 0x4a3   : > { %v19008_v34 = vadd.f32 %v19004_v22, %v18998_v40  ;;  %v19048_v43 = vmul.f32 %v22313_v26, %v22172_v35  ;;  %v18719_v15 = vmul.f32 %v22200_v27, %v22211_v19  ;;  %v18725_v60 = vmul.f32 %v22207_v0, %v22221_v45 }
 0x4a4   : > { %18768 = vrot.lane.b32.xlu1 %v18764_v24, %s23363_s29  ;;  %v22289_v24 = vadd.f32 %v18896_v48, %v18890_v23  ;;  %v18857_v20 = vadd.f32 %v18853_v13, %v18847_v25  ;;  %v18961_v35 = vmul.f32 %v22245_v14, %v22221_v45  ;;  %v18999_v17 = vmul.f32 %v22270_v44, %v22211_v19 }
 0x4a5   : > { %v18726_v36 = vmul.f32 %v22207_v0, %v22257_v4  ;;  %v19005_v5 = vmul.f32 %v22285_v28, %v22221_v45  ;;  %v18756_v59 = vmul.f32 %v22170_v41, %v22250_v63  ;;  %v18762_v3 = vmul.f32 %v22176_v61, %v22257_v4 }
 0x4a6   : > { %v19049_v58 = vmul.f32 %v22313_v26, %v22221_v45  ;;  %v18804_v38 = vmul.f32 %v22180_v52, %v22250_v63  ;;  %v18848_v25 = vmul.f32 %v22195_v6, %v22250_v63  ;;  %v18757_v22 = vmul.f32 %v22170_v41, %v22252_v50 }
 0x4a7   : > { %v19009_v48 = vadd.f32 %v19005_v5, %v18999_v17  ;;  %v18766_v56 = vadd.f32 %v18762_v3, %v18756_v59  ;;  %v18763_v13 = vmul.f32 %v22176_v61, %v22259_v33  ;;  %v18918_v41 = vmul.f32 %v22226_v54, %v22257_v4 }
 0x4a8   : > { %18816 = vrot.lane.b32.xlu1 %v18812_v46, %s23364_s2  ;;  %v22300_v46 = vstv %s22247_s4  ;;  %v18963_v17 = vmul.f32 %v22245_v14, %v22259_v33  ;;  %v19001_v5 = vmul.f32 %v22270_v44, %v22252_v50  ;;  %s22666_s4 = sld [smem:[#allocation5 + $0x5]] }
 0x4a9   : > { %v19042_v37 = vmul.f32 %v22300_v46, %v22166_v9  ;;  %v18955_v9 = vmul.f32 %v22242_v51, %v22211_v19  ;;  %v19043_v21 = vmul.f32 %v22300_v46, %v22211_v19  ;;  %v18810_v19 = vmul.f32 %v22186_v12, %v22257_v4 }
 0x4ab   : > { %v18965_v11 = vadd.f32 %v18961_v35, %v18955_v9  ;;  %v19053_v32 = vadd.f32 %v19049_v58, %v19043_v21  ;;  %v18814_v40 = vadd.f32 %v18810_v19, %v18804_v38  ;;  %v19000_v9 = vmul.f32 %v22270_v44, %v22250_v63  ;;  %v17757_v44 = vld [vmem:[%s23110_s6] sm:$0x3] }
 0x4ac   : > { %18860 = vrot.lane.b32.xlu1 %v18856_v2, %s23322_s13  ;;  %v18917_v2 = vmul.f32 %v22226_v54, %v22221_v45  ;;  %v18919_v35 = vmul.f32 %v22226_v54, %v22259_v33 }
 0x4ad   : > { %18732 = vrot.lane.b32.xlu0 %v18728_v10, %s23365_s5  ;;  %v19052_v10 = vadd.f32 %v19048_v43, %v19042_v37  ;;  %v18805_v37 = vmul.f32 %v22180_v52, %v22252_v50  ;;  %v18962_v52 = vmul.f32 %v22245_v14, %v22257_v4  ;;  %v19051_v14 = vmul.f32 %v22313_v26, %v22259_v33 }
 0x4ae   : > { %v18921_v31 = vadd.f32 %v18917_v2, %v18911_v16  ;;  %v18811_v16 = vmul.f32 %v22186_v12, %v22259_v33  ;;  %v18956_v2 = vmul.f32 %v22242_v51, %v22250_v63 }
 0x4b0   : > { %18924 = vrot.lane.b32.xlu1 %v18920_v7, %s23323_s15  ;;  %v18729_v7 = vadd.f32 %v18725_v60, %v18719_v15  ;;  %v18815_v61 = vadd.f32 %v18811_v16, %v18805_v37  ;;  %v18966_v15 = vadd.f32 %v18962_v52, %v18956_v2  ;;  %v18913_v60 = vmul.f32 %v22213_v42, %v22252_v50 }
 0x4b1   : > { %18770 = vrot.lane.b32.xlu0 %v18765_v30, %s23363_s29  ;;  %v18720_v30 = vmul.f32 %v22200_v27, %v22250_v63 }
 0x4b3   : > { %v18730_v23 = vadd.f32 %v18726_v36, %v18720_v30  ;;  %v18957_v30 = vmul.f32 %v22242_v51, %v22252_v50  ;;  %v19007_v51 = vmul.f32 %v22285_v28, %v22259_v33 }
 0x4b4   : > { %18968 = vrot.lane.b32.xlu1 %v18964_v55, %s23324_s12  ;;  %v18721_v55 = vmul.f32 %v22200_v27, %v22252_v50  ;;  %v18854_v27 = vmul.f32 %v22198_v47, %v22257_v4 }
 0x4b5   : > { %18818 = vrot.lane.b32.xlu0 %v18813_v39, %s23364_s2  ;;  %v18727_v39 = vmul.f32 %v22207_v0, %v22259_v33  ;;  %v18767_v0 = vadd.f32 %v18763_v13, %v18757_v22  ;;  %v18967_v54 = vadd.f32 %v18963_v17, %v18957_v30  ;;  %v22494_v30 = vld [vmem:[%s23105_s1] sm:$0xff] }
 0x4b7   : > { %v18731_v45 = vadd.f32 %v18727_v39, %v18721_v55 }
 0x4b8   : > { %19012 = vrot.lane.b32.xlu1 %v19008_v34, %s23325_s14  ;;  %v18858_v34 = vadd.f32 %v18854_v27, %v18848_v25 }
 0x4b9   : > { %18862 = vrot.lane.b32.xlu0 %v18857_v20, %s23322_s13  ;;  %v18912_v20 = vmul.f32 %v22213_v42, %v22250_v63  ;;  %v19050_v42 = vmul.f32 %v22313_v26, %v22257_v4 }
 0x4bb   : > { %v18922_v43 = vadd.f32 %v18918_v41, %v18912_v20 }
 0x4bc   : > { %19056 = vrot.lane.b32.xlu1 %v19052_v10, %s23326_s30  ;;  %v18849_v10 = vmul.f32 %v22195_v6, %v22252_v50  ;;  %v19006_v6 = vmul.f32 %v22285_v28, %v22257_v4 }
 0x4bd   : > { %18926 = vrot.lane.b32.xlu0 %v18921_v31, %s23323_s15  ;;  %v18855_v31 = vmul.f32 %v22198_v47, %v22259_v33  ;;  %v18923_v47 = vadd.f32 %v18919_v35, %v18913_v60  ;;  %v22486_v35 = vld [vmem:[%s23105_s1 + $0x8] sm:$0xff] }
 0x4bf   : > { %v18859_v12 = vadd.f32 %v18855_v31, %v18849_v10 }
 0x4c0   : > { %18734 = vrot.lane.b32.xlu1 %v18729_v7, %s23365_s5  ;;  %v19010_v7 = vadd.f32 %v19006_v6, %v19000_v9 }
 0x4c1   : > { %18970 = vrot.lane.b32.xlu0 %v18965_v11, %s23324_s12  ;;  %v19044_v11 = vmul.f32 %v22300_v46, %v22250_v63  ;;  %v19011_v63 = vadd.f32 %v19007_v51, %v19001_v5 }
 0x4c3   : > { %v19054_v36 = vadd.f32 %v19050_v42, %v19044_v11  ;;  %v18873_v11 = vrot.slane %v22486_v35, 3  ;;  %v18936_v42 = vrot.slane %v22494_v30, 4 }
 0x4c4   : > { %18736 = vrot.lane.b32.xlu1 %v18730_v23, %s23365_s5  ;;  %v19045_v23 = vmul.f32 %v22300_v46, %v22252_v50  ;;  %v23366_v46 = vld [vmem:[#allocation14_spill] sm:$0xff] }
 0x4c5   : > { %19014 = vrot.lane.b32.xlu0 %v19009_v48, %s23325_s14  ;;  %v17759_v48 = vsel %vm469_vm0, %v17757_v44, 0  ;;  %vm17734_vm10 = vcmp.eq.s32.totalorder %v23366_v46, 0  ;;  %vm17741_vm11 = vcmp.eq.s32.totalorder %v23366_v46, 1  ;;  %vm17746_vm12 = vcmp.eq.s32.totalorder %v23366_v46, 2 }
 0x4c6   : > { %v19055_v4 = vadd.f32 %v19051_v14, %v19045_v23  ;;  %v17827_v59 = vand.u32 4294901760, %v17759_v48  ;;  %vm17752_vm13 = vcmp.eq.s32.totalorder %v23366_v46, 3  ;;  %v22508_v14 = vld [vmem:[%s23105_s1 + $0x10] sm:$0xff]  ;;  %v18784_v44 = vrot.slane %v22494_v30, 1 }
 0x4c8   : > { %18772 = vrot.lane.b32.xlu1 %v18766_v56, %s23363_s29  ;;  %v17828_v28 = vsub.f32 %v17759_v48, %v17827_v59  ;;  %v22515_v48 = vld [vmem:[%s23105_s1 + $0x18] sm:$0xff] }
 0x4c9   : > { %19058 = vrot.lane.b32.xlu0 %v19053_v32, %s23326_s30 }
 0x4ca   : > { %v17829_v3 = vand.u32 4294901760, %v17828_v28 }
 0x4cc   : > { %18820 = vrot.lane.b32.xlu1 %v18814_v40, %s23364_s2  ;;  %v17830_v33 = vsub.f32 %v17828_v28, %v17829_v3 }
 0x4cd   : > { %18738 = vrot.lane.b32.xlu0 %v18731_v45, %s23365_s5 }
 0x4ce   : > { %v17831_v45 = vand.u32 4294901760, %v17830_v33  ;;  %v18872_v33 = vrot.slane %v22494_v30, 3 }
 0x4d0   : > { %18864 = vrot.lane.b32.xlu1 %v18858_v34, %s23322_s13 }
 0x4d1   : > { %18774 = vrot.lane.b32.xlu0 %v18767_v0, %s23363_s29 }
 0x4d4   : > { %18928 = vrot.lane.b32.xlu1 %v18922_v43, %s23323_s15 }
 0x4d5   : > { %18822 = vrot.lane.b32.xlu0 %v18815_v61, %s23364_s2 }
 0x4d8   : > { %18972 = vrot.lane.b32.xlu1 %v18966_v15, %s23324_s12 }
 0x4d9   : > { %18866 = vrot.lane.b32.xlu0 %v18859_v12, %s23322_s13 }
 0x4dc   : > { %19016 = vrot.lane.b32.xlu1 %v19010_v7, %s23325_s14  ;;  %v23175_v7 = vrot.slane %v22486_v35, 1 }
 0x4dd   : > { %18930 = vrot.lane.b32.xlu0 %v18923_v47, %s23323_s15  ;;  %v18829_v47 = vrot.slane %v22486_v35, 2 }
 0x4e0   : > { %19060 = vrot.lane.b32.xlu1 %v19054_v36, %s23326_s30  ;;  %v23184_v36 = vrot.slane %v22494_v30, 5 }
 0x4e1   : > { %18974 = vrot.lane.b32.xlu0 %v18967_v54, %s23324_s12 }
 0x4e5   : > { %19018 = vrot.lane.b32.xlu0 %v19011_v63, %s23325_s14 }
 0x4e9   : > { %19062 = vrot.lane.b32.xlu0 %v19055_v4, %s23326_s30  ;;  %v18786_v4 = vrot.slane %v22508_v14, 1 }
 0x510   : > { %v17737_v21 = vpop.xlane.xlu1 %17736 }
 0x511   : > { %v17739_v58 = vmul.f32 0.00390625, %v17737_v21  ;;  %v18828_v21 = vrot.slane %v22494_v30, 2 }
 0x513   : > { %v17740_v26 = vsel %vm17734_vm10, %v17739_v58, 0.0  ;;  %v18874_v58 = vrot.slane %v22508_v14, 3 }
 0x51c   : > { %v17749_v50 = vpop.xlane.xlu0 %17748  ;;  %v17755_v56 = vpop.xlane.xlu1 %17754 }
 0x51d   : > { %v17750_v32 = vmul.f32 0.00390625, %v17749_v50 }
 0x520   : > { %v17744_v38 = vpop.xlane.xlu0 %17743  ;;  %v22435_v19 = vpop.permute.xlu1 %18768 }
 0x521   : > { %v17745_v55 = vsel %vm17741_vm11, %v17744_v38, %v17740_v26  ;;  %v18875_v26 = vrot.slane %v22515_v48, 3 }
 0x522   : > { %v17751_v39 = vsel %vm17746_vm12, %v17750_v32, %v17745_v55  ;;  %v23186_v32 = vrot.slane %v22486_v35, 4 }
 0x523   : > { %v17756_v40 = vsel %vm17752_vm13, %v17755_v56, %v17751_v39 }
 0x524   : > { %v17792_v25 = vand.u32 4294901760, %v17756_v40  ;;  %v22437_v22 = vpop.permute.xlu0 %18732  ;;  %v22439_v27 = vpop.permute.xlu1 %18816 }
 0x526   : > { %v17869_v13 = vsub.f32 %v17756_v40, %v17792_v25  ;;  %19622 = vmatpush3.msra.mxu0 %v17792_v25 }
 0x527   : > { %19624 = vmatmul.mubr.f32.vlgmr.msra.gmra.mxu0 %v17831_v45  ;;  %19631 = vmatprep.subr.mxu0 %v23334_v8  ;;  %v23185_v45 = vrot.slane %v22508_v14, 4 }
 0x528   : > { %v22442_v34 = vpop.permute.xlu0 %18770  ;;  %19632 = vmatpush3.msra.mxu0 %v17869_v13  ;;  %19633 = vmatprep.mubr.msk.f32.mxu0 %vm19935_vm9, %v23334_v8  ;;  %v17870_v0 = vand.u32 4294901760, %v17869_v13  ;;  %v22446_v20 = vpop.permute.xlu1 %18860 }
 0x529   : > { %19641 = vmatprep.subr.mxu0 %v23334_v8  ;;  %v18778_v50 = vsel %vm2346_vm2, %v22435_v19, %v22442_v34 }
 0x52a   : > { %v17871_v37 = vsub.f32 %v17869_v13, %v17870_v0 }
 0x52b   : > { %19634 = vmatmul.mubr.f32.vlgmr.msra.gmra.mxu0 %v17828_v28  ;;  %v18830_v28 = vrot.slane %v22508_v14, 2 }
 0x52c   : > { %19642 = vmatpush3.msra.mxu0 %v17870_v0  ;;  %v22449_v41 = vpop.permute.xlu0 %18818  ;;  %v17872_v16 = vand.u32 4294901760, %v17871_v37  ;;  %19643 = vmatprep.mubr.msk.f32.mxu0 %vm19935_vm9, %v23334_v8  ;;  %v22453_v43 = vpop.permute.xlu1 %18924  ;;  %v23183_v0 = vrot.slane %v22515_v48, 4  ;;  %v23182_v37 = vrot.slane %v22486_v35, 5 }
 0x52d   : > { %19651 = vmatprep.subr.mxu0 %v23334_v8 }
 0x52e   : > { %19627 = vmatpush3.msra.mxu1 %v17872_v16  ;;  %v18793_v16 = vmul.f32 %v23175_v7, %v18778_v50 }
 0x52f   : > { %19629 = vmatmul.mubr.f32.vlgmr.msra.gmra.mxu1 %v17827_v59  ;;  %19636 = vmatprep.subr.mxu1 %v23334_v8 }
 0x530   : > { %v22457_v61 = vpop.permute.xlu0 %18862  ;;  %19637 = vmatpush3.msra.mxu1 %v17792_v25  ;;  %19638 = vmatprep.mubr.msk.f32.mxu1 %vm19935_vm9, %v23334_v8  ;;  %v22461_v2 = vpop.permute.xlu1 %18968 }
 0x531   : > { %19646 = vmatprep.subr.mxu1 %v23334_v8  ;;  %19644 = vmatmul.mubr.f32.vlgmr.msra.gmra.mxu0 %v17827_v59 }
 0x532   : > { %19653 = vmatprep.mubr.msk.f32.mxu0 %vm19935_vm9, %v23334_v8 }
 0x533   : > { %19639 = vmatmul.mubr.f32.vlgmr.msra.gmra.mxu1 %v17829_v3  ;;  %v18831_v3 = vrot.slane %v22515_v48, 2 }
 0x534   : > { %19647 = vmatpush3.msra.mxu1 %v17792_v25  ;;  %v22466_v10 = vpop.permute.xlu0 %18926  ;;  %19648 = vmatprep.mubr.msk.f32.mxu1 %vm19935_vm9, %v23334_v8  ;;  %v22470_v52 = vpop.permute.xlu1 %19012 }
 0x535   : > { %19656 = vmatprep.subr.mxu1 %v23334_v8 }
 0x537   : > { %19649 = vmatmul.mubr.f32.vlgmr.msra.gmra.mxu1 %v17827_v59  ;;  %v23174_v59 = vrot.slane %v22515_v48, 1 }
 0x538   : > { %v22473_v31 = vpop.permute.xlu0 %18970  ;;  %19658 = vmatprep.mubr.msk.f32.mxu1 %vm19935_vm9, %v23334_v8  ;;  %v22477_v15 = vpop.permute.xlu1 %19056 }
 0x53c   : > { %v22479_v12 = vpop.permute.xlu0 %19014  ;;  %v18735_v9 = vpop.permute.xlu1 %18734 }
 0x53d   : > { %v18742_v23 = vsel %vm444_vm1, %v22437_v22, %v18735_v9 }
 0x53e   : > { %v18745_v38 = vmul.f32 %v22486_v35, %v18742_v23 }
 0x540   : > { %v22481_v60 = vpop.permute.xlu0 %19058  ;;  %v18737_v6 = vpop.permute.xlu1 %18736  ;;  %v18797_v5 = vadd.f32 %v18793_v16, %v18745_v38  ;;  %v23181_v38 = vrot.slane %v22486_v35, 6 }
 0x544   : > { %v18739_v17 = vpop.permute.xlu0 %18738  ;;  %v18773_v63 = vpop.permute.xlu1 %18772 }
 0x545   : > { %v18740_v51 = vsel %vm444_vm1, %v18737_v6, %v18739_v17  ;;  %v18743_v23 = vsel %vm444_vm1, %v18739_v17, %v22437_v22  ;;  %v18741_v22 = vsel %vm444_vm1, %v18735_v9, %v18737_v6 }
 0x546   : > { %v18747_v25 = vmul.f32 %v22515_v48, %v18740_v51  ;;  %v18826_v51 = vsel %vm3318_vm3, %v22439_v27, %v22449_v41 }
 0x547   : > { %v18837_v6 = vmul.f32 %v18829_v47, %v18826_v51 }
 0x548   : > { %v18775_v56 = vpop.permute.xlu0 %18774  ;;  %v18821_v40 = vpop.permute.xlu1 %18820 }
 0x549   : > { %v18776_v55 = vsel %vm2346_vm2, %v18773_v63, %v18775_v56  ;;  %v18779_v39 = vsel %vm2346_vm2, %v18775_v56, %v22435_v19  ;;  %v18744_v56 = vmul.f32 %v22494_v30, %v18743_v23 }
 0x54a   : > { %v18795_v13 = vmul.f32 %v23174_v59, %v18776_v55  ;;  %v18777_v55 = vsel %vm2346_vm2, %v22442_v34, %v18773_v63  ;;  %v18792_v50 = vmul.f32 %v18784_v44, %v18779_v39  ;;  %v18825_v34 = vsel %vm3318_vm3, %v22449_v41, %v18821_v40 }
 0x54b   : > { %v18934_v41 = vsel %vm5262_vm5, %v22453_v43, %v22466_v10  ;;  %v18838_v16 = vmul.f32 %v18830_v28, %v18825_v34  ;;  %v23180_v34 = vrot.slane %v22508_v14, 6 }
 0x54c   : > { %v18799_v59 = vadd.f32 %v18795_v13, %v18747_v25  ;;  %v18823_v7 = vpop.permute.xlu0 %18822  ;;  %v18865_v19 = vpop.permute.xlu1 %18864  ;;  %v18746_v13 = vmul.f32 %v22508_v14, %v18741_v22 }
 0x54d   : > { %v18824_v17 = vsel %vm3318_vm3, %v18821_v40, %v18823_v7  ;;  %v18827_v54 = vsel %vm3318_vm3, %v18823_v7, %v22439_v27  ;;  %v18870_v27 = vsel %vm4290_vm4, %v22446_v20, %v22457_v61  ;;  %v18794_v7 = vmul.f32 %v18786_v4, %v18777_v55 }
 0x54e   : > { %v18836_v63 = vmul.f32 %v18828_v21, %v18827_v54  ;;  %v18839_v9 = vmul.f32 %v18831_v3, %v18824_v17  ;;  %v18796_v54 = vadd.f32 %v18792_v50, %v18744_v56  ;;  %v18869_v40 = vsel %vm4290_vm4, %v22457_v61, %v18865_v19 }
 0x54f   : > { %v18841_v56 = vadd.f32 %v18837_v6, %v18797_v5  ;;  %v18798_v22 = vadd.f32 %v18794_v7, %v18746_v13  ;;  %v18882_v17 = vmul.f32 %v18874_v58, %v18869_v40  ;;  %v18944_v5 = vmul.f32 %v18936_v42, %v18934_v41 }
 0x550   : > { %v18843_v39 = vadd.f32 %v18839_v9, %v18799_v59  ;;  %v18867_v25 = vpop.permute.xlu0 %18866  ;;  %v18929_v55 = vpop.permute.xlu1 %18928  ;;  %v18840_v59 = vadd.f32 %v18836_v63, %v18796_v54  ;;  %v18978_v7 = vsel %vm6234_vm6, %v22461_v2, %v22473_v31 }
 0x551   : > { %v18868_v23 = vsel %vm4290_vm4, %v18865_v19, %v18867_v25  ;;  %v18871_v51 = vsel %vm4290_vm4, %v18867_v25, %v22446_v20  ;;  %v23179_v19 = vrot.slane %v22515_v48, 6  ;;  %v18881_v20 = vmul.f32 %v18873_v11, %v18870_v27 }
 0x552   : > { %v18880_v50 = vmul.f32 %v18872_v33, %v18871_v51  ;;  %v18883_v61 = vmul.f32 %v18875_v26, %v18868_v23  ;;  %v18842_v54 = vadd.f32 %v18838_v16, %v18798_v22  ;;  %v18933_v40 = vsel %vm5262_vm5, %v22466_v10, %v18929_v55 }
 0x553   : > { %v18885_v13 = vadd.f32 %v18881_v20, %v18841_v56 }
 0x554   : > { %v18884_v63 = vadd.f32 %v18880_v50, %v18840_v59  ;;  %v18887_v9 = vadd.f32 %v18883_v61, %v18843_v39  ;;  %v18931_v6 = vpop.permute.xlu0 %18930  ;;  %v18973_v25 = vpop.permute.xlu1 %18972  ;;  %v18886_v51 = vadd.f32 %v18882_v17, %v18842_v54  ;;  %v23178_v59 = vrot.slane %v22486_v35, 7 }
 0x555   : > { %v18935_v27 = vsel %vm5262_vm5, %v18931_v6, %v22453_v43  ;;  %v18932_v16 = vsel %vm5262_vm5, %v18929_v55, %v18931_v6  ;;  %v18977_v10 = vsel %vm6234_vm6, %v22473_v31, %v18973_v25  ;;  %v18988_v61 = vmul.f32 %v23184_v36, %v18978_v7 }
 0x556   : > { %v18904_v41 = vadd.f32 %v22289_v24, %v18884_v63  ;;  %v18907_v39 = vadd.f32 %v22304_v1, %v18887_v9  ;;  %v18947_v23 = vmul.f32 %v23183_v0, %v18935_v27  ;;  %v18945_v24 = vmul.f32 %v23186_v32, %v18933_v40 }
 0x557   : > { %v23177_v1 = vrot.slane %v22508_v14, 7  ;;  %v19022_v31 = vsel %vm7206_vm7, %v22470_v52, %v22479_v12  ;;  %v18905_v20 = vadd.f32 %v22291_v29, %v18885_v13  ;;  %v18989_v63 = vmul.f32 %v23182_v37, %v18977_v10 }
 0x558   : > { %v18948_v43 = vadd.f32 %v18944_v5, %v18904_v41  ;;  %v18951_v56 = vadd.f32 %v18947_v23, %v18907_v39  ;;  %v18975_v50 = vpop.permute.xlu0 %18974  ;;  %v19017_v17 = vpop.permute.xlu1 %19016  ;;  %v18946_v5 = vmul.f32 %v23185_v45, %v18932_v16  ;;  %v23367_v9 = vrot.slane %v22515_v48, 5 }
 0x559   : > { %v18976_v55 = vsel %vm6234_vm6, %v18973_v25, %v18975_v50  ;;  %v18979_v22 = vsel %vm6234_vm6, %v18975_v50, %v22461_v2  ;;  %v18906_v54 = vadd.f32 %v22302_v57, %v18886_v51  ;;  %v19021_v2 = vsel %vm7206_vm7, %v22479_v12, %v19017_v17 }
 0x55a   : > { %v18991_v6 = vmul.f32 %v23367_v9, %v18979_v22  ;;  %v18992_v7 = vadd.f32 %v18988_v61, %v18948_v43  ;;  %v23176_v29 = vrot.slane %v22515_v48, 7  ;;  %v18949_v40 = vadd.f32 %v18945_v24, %v18905_v20 }
 0x55b   : > { %v23368_v27 = vrot.slane %v22508_v14, 5  ;;  %v19033_v13 = vmul.f32 %v23181_v38, %v19021_v2  ;;  %v23369_v57 = vrot.slane %v22494_v30, 6  ;;  %v19066_v12 = vsel %vm8178_vm8, %v22477_v15, %v22481_v60 }
 0x55c   : > { %v18995_v41 = vadd.f32 %v18991_v6, %v18951_v56  ;;  %v19019_v39 = vpop.permute.xlu0 %19018  ;;  %v19061_v10 = vpop.permute.xlu1 %19060  ;;  %v18950_v43 = vadd.f32 %v18946_v5, %v18906_v54  ;;  %v18993_v24 = vadd.f32 %v18989_v63, %v18949_v40  ;;  %v23370_v5 = vrot.slane %v22494_v30, 7 }
 0x55d   : > { %v18990_v25 = vmul.f32 %v23368_v27, %v18976_v55  ;;  %v19032_v23 = vmul.f32 %v23369_v57, %v19022_v31  ;;  %v19020_v51 = vsel %vm7206_vm7, %v19017_v17, %v19019_v39  ;;  %v19023_v16 = vsel %vm7206_vm7, %v19019_v39, %v22470_v52 }
 0x55e   : > { %v19034_v56 = vmul.f32 %v23180_v34, %v19020_v51  ;;  %v19035_v50 = vmul.f32 %v23179_v19, %v19023_v16  ;;  %v19065_v31 = vsel %vm8178_vm8, %v22481_v60, %v19061_v10  ;;  %v19037_v52 = vadd.f32 %v19033_v13, %v18993_v24 }
 0x55f   : > { %v19036_v61 = vadd.f32 %v19032_v23, %v18992_v7  ;;  %v18994_v55 = vadd.f32 %v18990_v25, %v18950_v43  ;;  %v19077_v17 = vmul.f32 %v23178_v59, %v19065_v31  ;;  %v19076_v63 = vmul.f32 %v23370_v5, %v19066_v12 }
 0x560   : > { %v19039_v22 = vadd.f32 %v19035_v50, %v18995_v41  ;;  %v19063_v20 = vpop.permute.xlu0 %19062  ;;  %v19089_v40 = vstv %s22631_s24  ;;  %v19115_v27 = vstv %s22644_s25  ;;  %v19141_v57 = vstv %s22653_s0  ;;  %s19937_s25 = smov [#allocation8]  }
 0x561   : > { %v19064_v9 = vsel %vm8178_vm8, %v19061_v10, %v19063_v20  ;;  %v19067_v60 = vsel %vm8178_vm8, %v19063_v20, %v22477_v15  ;;  %v19038_v6 = vadd.f32 %v19034_v56, %v18994_v55  ;;  %v19081_v7 = vadd.f32 %v19077_v17, %v19037_v52 }
 0x562   : > { %v19078_v54 = vmul.f32 %v23177_v1, %v19064_v9  ;;  %v19079_v2 = vmul.f32 %v23176_v29, %v19067_v60  ;;  %v19080_v25 = vadd.f32 %v19076_v63, %v19036_v61  ;;  %v19167_v23 = vstv %s22660_s3 }
 0x563   : > { %v22703_v41 = vmax.f32 %v19081_v7, 0.0  ;;  %v19203_v12 = vstv %s22666_s4  ;;  %v19229_v15 = vstv %s22679_s22  ;;  %v19255_v52 = vstv %s19584_s8 }
 0x564   : > { %v19082_v13 = vadd.f32 %v19078_v54, %v19038_v6  ;;  %v19083_v39 = vadd.f32 %v19079_v2, %v19039_v22  ;;  %v22729_v31 = vmax.f32 %v19080_v25, 0.0  ;;  %v19281_v22 = vstv %s19585_s9 }
 0x565   : > { %v19091_v10 = vmul.f32 %v19089_v40, %v22703_v41  ;;  %v22715_v43 = vmul.f32 %v19115_v27, %v22703_v41  ;;  %v22718_v24 = vmul.f32 %v19141_v57, %v22703_v41  ;;  %v22721_v56 = vmul.f32 %v19167_v23, %v22703_v41 }
 0x566   : > { %v22709_v51 = vmax.f32 %v19082_v13, 0.0  ;;  %v22711_v16 = vmax.f32 %v19083_v39, 0.0  ;;  %v22724_v50 = vmul.f32 %v19203_v12, %v22703_v41  ;;  %v22727_v61 = vmul.f32 %v19229_v15, %v22703_v41 }
 0x567   : > { %19096 = vrot.lane.b32.xlu1 %v19091_v10, %s23365_s5  ;;  %v22753_v6 = vmul.f32 %v19255_v52, %v22703_v41  ;;  %v19090_v54 = vmul.f32 %v19089_v40, %v22729_v31  ;;  %v22760_v2 = vmul.f32 %v19281_v22, %v22703_v41  ;;  %v19116_v13 = vmul.f32 %v19115_v27, %v22729_v31 }
 0x568   : > { %v19092_v55 = vmul.f32 %v19089_v40, %v22709_v51  ;;  %v22735_v17 = vmul.f32 %v19089_v40, %v22711_v16  ;;  %v22738_v20 = vmul.f32 %v19115_v27, %v22711_v16  ;;  %v22741_v5 = vmul.f32 %v19141_v57, %v22711_v16 }
 0x569   : > { %v22744_v63 = vmul.f32 %v19167_v23, %v22711_v16  ;;  %v22747_v9 = vmul.f32 %v19203_v12, %v22711_v16  ;;  %v22750_v60 = vmul.f32 %v19229_v15, %v22711_v16  ;;  %v22756_v7 = vmul.f32 %v19255_v52, %v22711_v16 }
 0x56a   : > { %19098 = vrot.lane.b32.xlu0 %v19092_v55, %s23365_s5  ;;  %v22763_v25 = vmul.f32 %v19281_v22, %v22711_v16  ;;  %v19118_v39 = vmul.f32 %v19115_v27, %v22709_v51  ;;  %v19142_v10 = vmul.f32 %v19141_v57, %v22729_v31  ;;  %v19144_v40 = vmul.f32 %v19141_v57, %v22709_v51 }
 0x56b   : > { %v19168_v55 = vmul.f32 %v19167_v23, %v22729_v31  ;;  %v19204_v27 = vmul.f32 %v19203_v12, %v22729_v31  ;;  %v19230_v57 = vmul.f32 %v19229_v15, %v22729_v31 }
 0x56e   : > { %19094 = vrot.lane.b32.xlu0 %v19090_v54, %s23365_s5  ;;  %v19170_v54 = vmul.f32 %v19167_v23, %v22709_v51  ;;  %v19256_v23 = vmul.f32 %v19255_v52, %v22729_v31 }
 0x572   : > { %19120 = vrot.lane.b32.xlu0 %v19116_v13, %s23363_s29  ;;  %v19206_v13 = vmul.f32 %v19203_v12, %v22709_v51  ;;  %v19282_v12 = vmul.f32 %v19281_v22, %v22729_v31 }
 0x576   : > { %19124 = vrot.lane.b32.xlu0 %v19118_v39, %s23363_s29  ;;  %v19232_v39 = vmul.f32 %v19229_v15, %v22709_v51  ;;  %v18208_v15 = vld [vmem:[%s23111_s7] sm:$0xff] }
 0x57a   : > { %19146 = vrot.lane.b32.xlu0 %v19142_v10, %s23364_s2  ;;  %v19258_v10 = vmul.f32 %v19255_v52, %v22709_v51 }
 0x57e   : > { %19150 = vrot.lane.b32.xlu0 %v19144_v40, %s23364_s2  ;;  %v19284_v40 = vmul.f32 %v19281_v22, %v22709_v51 }
 0x582   : > { %19172 = vrot.lane.b32.xlu0 %v19168_v55, %s23322_s13 }
 0x586   : > { %19176 = vrot.lane.b32.xlu0 %v19170_v54, %s23322_s13 }
 0x58a   : > { %19208 = vrot.lane.b32.xlu0 %v19204_v27, %s23323_s15  ;;  %v18211_v27 = vsel %vm18209_vm14, %v18208_v15, 0 }
 0x58b   : > { %v18283_v52 = vand.u32 4294901760, %v18211_v27 }
 0x58e   : > { %19212 = vrot.lane.b32.xlu0 %v19206_v13, %s23323_s15 }
 0x592   : > { %19234 = vrot.lane.b32.xlu0 %v19230_v57, %s23324_s12 }
 0x596   : > { %19238 = vrot.lane.b32.xlu0 %v19232_v39, %s23324_s12 }
 0x59a   : > { %19260 = vrot.lane.b32.xlu0 %v19256_v23, %s23325_s14 }
 0x59e   : > { %19264 = vrot.lane.b32.xlu0 %v19258_v10, %s23325_s14  ;;  %v18284_v10 = vsub.f32 %v18211_v27, %v18283_v52 }
 0x5a0   : > { %v18285_v19 = vand.u32 4294901760, %v18284_v10 }
 0x5a2   : > { %19286 = vrot.lane.b32.xlu0 %v19282_v12, %s23326_s30  ;;  %v18286_v36 = vsub.f32 %v18284_v10, %v18285_v19 }
 0x5a6   : > { %19290 = vrot.lane.b32.xlu0 %v19284_v40, %s23326_s30 }
 0x5e7   : > { %v17833_v55 = vpop.f32.mrf.mxu0 }
 0x5e9   : > { %v19625_v54 = vpop.f32.mrf.mxu0 }
 0x5eb   : > { %v17983_v13 = vpop.f32.mrf.mxu0 }
 0x5ed   : > { %v19635_v57 = vpop.f32.mrf.mxu0 }
 0x5ee   : > { %v18287_v57 = vand.u32 4294901760, %v18286_v36 }
 0x5ef   : > { %v17909_v39 = vpop.f32.mrf.mxu1 }
 0x5f0   : > { %v17910_v23 = vadd.f32 %v17909_v39, %v17833_v55 }
 0x5f1   : > { %v19630_v29 = vpop.f32.mrf.mxu1  ;;  %v18131_v12 = vpop.f32.mrf.mxu0 }
 0x5f2   : > { %v17984_v1 = vadd.f32 %v17983_v13, %v17910_v23 }
 0x5f3   : > { %v18057_v22 = vpop.f32.mrf.mxu1  ;;  %v19645_v59 = vpop.f32.mrf.mxu0 }
 0x5f4   : > { %v18058_v40 = vadd.f32 %v18057_v22, %v17984_v1 }
 0x5f5   : > { %v19640_v34 = vpop.f32.mrf.mxu1 }
 0x5f6   : > { %v18132_v38 = vadd.f32 %v18131_v12, %v18058_v40 }
 0x5f7   : > { %v18203_v37 = vpop.f32.mrf.mxu1 }
 0x5f8   : > { %v18204_v0 = vadd.f32 %v18203_v37, %v18132_v38 }
 0x5f9   : > { %v19650_v15 = vpop.f32.mrf.mxu1 }
 0x5fa   : > { %v18207_v54 = vmax.f32 %v18204_v0, 0.0 }
 0x5fc   : > { %v18215_v45 = vsel %vm18213_vm15, %v18207_v54, 0 }
 0x5fd   : > { %v18248_v32 = vand.u32 4294901760, %v18215_v45 }
 0x5ff   : > { %v18325_v55 = vsub.f32 %v18215_v45, %v18248_v32  ;;  %19652 = vmatpush3.msra.mxu0 %v18248_v32 }
 0x600   : > { %19654 = vmatmul.mubr.f32.vlgmr.msra.gmra.mxu0 %v18287_v57  ;;  %19661 = vmatprep.subr.mxu0 %v23334_v8 }
 0x601   : > { %19662 = vmatpush3.msra.mxu0 %v18325_v55  ;;  %19663 = vmatprep.mubr.msk.f32.mxu0 %vm19935_vm9, %v23334_v8  ;;  %v18326_v34 = vand.u32 4294901760, %v18325_v55 }
 0x602   : > { %19671 = vmatprep.subr.mxu0 %v23334_v8 }
 0x603   : > { %v18327_v37 = vsub.f32 %v18325_v55, %v18326_v34 }
 0x604   : > { %19664 = vmatmul.mubr.f32.vlgmr.msra.gmra.mxu0 %v18284_v10 }
 0x605   : > { %19672 = vmatpush3.msra.mxu0 %v18326_v34  ;;  %v18328_v38 = vand.u32 4294901760, %v18327_v37  ;;  %19673 = vmatprep.mubr.msk.f32.mxu0 %vm19935_vm9, %v23334_v8 }
 0x607   : > { %19657 = vmatpush3.msra.mxu1 %v18328_v38 }
 0x608   : > { %19659 = vmatmul.mubr.f32.vlgmr.msra.gmra.mxu1 %v18283_v52  ;;  %19666 = vmatprep.subr.mxu1 %v23334_v8 }
 0x609   : > { %19667 = vmatpush3.msra.mxu1 %v18248_v32  ;;  %19668 = vmatprep.mubr.msk.f32.mxu1 %vm19935_vm9, %v23334_v8 }
 0x60a   : > { %19676 = vmatprep.subr.mxu1 %v23334_v8  ;;  %19674 = vmatmul.mubr.f32.vlgmr.msra.gmra.mxu0 %v18283_v52 }
 0x60c   : > { %19669 = vmatmul.mubr.f32.vlgmr.msra.gmra.mxu1 %v18285_v19 }
 0x60d   : > { %19677 = vmatpush3.msra.mxu1 %v18248_v32  ;;  %19678 = vmatprep.mubr.msk.f32.mxu1 %vm19935_vm9, %v23334_v8  ;;  %v19936_v8 = vmov 2  }
 0x60e   : > { %19759 = vset.pattern.permute.xlu1 %v19936_v8 }
 0x610   : > { %19679 = vmatmul.mubr.f32.vlgmr.msra.gmra.mxu1 %v18283_v52 }
 0x6c0   : > { %v18289_v36 = vpop.f32.mrf.mxu0 }
 0x6c2   : > { %v19655_v45 = vpop.f32.mrf.mxu0 }
 0x6c4   : > { %v18439_v0 = vpop.f32.mrf.mxu0 }
 0x6c6   : > { %v19665_v59 = vpop.f32.mrf.mxu0 }
 0x6c8   : > { %v18365_v1 = vpop.f32.mrf.mxu1 }
 0x6c9   : > { %v18366_v29 = vadd.f32 %v18365_v1, %v18289_v36 }
 0x6ca   : > { %v19660_v27 = vpop.f32.mrf.mxu1  ;;  %v18587_v13 = vpop.f32.mrf.mxu0 }
 0x6cb   : > { %v18440_v39 = vadd.f32 %v18439_v0, %v18366_v29 }
 0x6cc   : > { %v18513_v23 = vpop.f32.mrf.mxu1  ;;  %v19675_v10 = vpop.f32.mrf.mxu0 }
 0x6cd   : > { %v18514_v12 = vadd.f32 %v18513_v23, %v18440_v39 }
 0x6ce   : > { %v19670_v22 = vpop.f32.mrf.mxu1 }
 0x6cf   : > { %v18588_v40 = vadd.f32 %v18587_v13, %v18514_v12 }
 0x6d0   : > { %v18659_v19 = vpop.f32.mrf.mxu1 }
 0x6d1   : > { %v18660_v32 = vadd.f32 %v18659_v19, %v18588_v40 }
 0x6d2   : > { %v19680_v15 = vpop.f32.mrf.mxu1 }
 0x6d3   : > { %19331 = vrot.lane.b32.xlu1 %v18660_v32, %s23323_s15 }
 0x6d7   : > { %19100 = vrot.lane.b32.xlu1 %v22735_v17, %s23365_s5  ;;  %v19099_v17 = vpop.permute.xlu0 %19098 }
 0x6db   : > { %19122 = vrot.lane.b32.xlu1 %v22715_v43, %s23363_s29  ;;  %v19097_v43 = vpop.permute.xlu1 %19096 }
 0x6dc   : > { %v19103_v15 = vsel %vm444_vm1, %v19097_v43, %v19099_v17 }
 0x6df   : > { %19126 = vrot.lane.b32.xlu1 %v22738_v20, %s23363_s29 }
 0x6e3   : > { %19148 = vrot.lane.b32.xlu1 %v22718_v24, %s23364_s2 }
 0x6e7   : > { %19152 = vrot.lane.b32.xlu1 %v22741_v5, %s23364_s2  ;;  %v19095_v5 = vpop.permute.xlu0 %19094 }
 0x6e8   : > { %v19104_v10 = vsel %vm444_vm1, %v19095_v5, %v19097_v43 }
 0x6eb   : > { %19174 = vrot.lane.b32.xlu1 %v22721_v56, %s23322_s13 }
 0x6ef   : > { %19178 = vrot.lane.b32.xlu1 %v22744_v63, %s23322_s13  ;;  %s22860_s13 = sld [smem:[#allocation5 + $0x4]] }
 0x6f3   : > { %19210 = vrot.lane.b32.xlu1 %v22724_v50, %s23323_s15 }
 0x6f7   : > { %19214 = vrot.lane.b32.xlu1 %v22747_v9, %s23323_s15  ;;  %s23008_s15 = sand.u32 1, %s19913_s18  }
 0x6f8   : > { %s19392_s9 = scalar_lea.sflag [#allocation9], %s23008_s15 }
 0x6fb   : > { %19236 = vrot.lane.b32.xlu1 %v22727_v61, %s23324_s12 }
 0x6ff   : > { %19240 = vrot.lane.b32.xlu1 %v22750_v60, %s23324_s12  ;;  %s19541_s12 = sshll.u32 %s23008_s15, 5 }
 0x700   : > { %s23016_s2 = scalar_lea.vmem [#allocation7], %s19541_s12 }
 0x701   : > { %s19406_s5 = sshll.u32 %s23016_s2, 4  ;;  %s23039_s5 = int_to_ptr.vmem [resolvable:$true] %s19406_s5 }
 0x703   : > { %19262 = vrot.lane.b32.xlu1 %v22753_v6, %s23325_s14  ;;  %v19121_v6 = vpop.permute.xlu0 %19120 }
 0x707   : > { %19266 = vrot.lane.b32.xlu1 %v22756_v7, %s23325_s14  ;;  %v19125_v52 = vpop.permute.xlu0 %19124  ;;  %s19595_s14 = sshll.u32 %s20020_s21, 9 }
 0x708   : > { %s23026_s3 = scalar_lea.hbm %s23115_s11, %s19595_s14  ;;  %s23037_s8 = scalar_lea.hbm %s23114_s10, %s19595_s14 }
 0x70b   : > { %19288 = vrot.lane.b32.xlu1 %v22760_v2, %s23326_s30  ;;  %v19147_v54 = vpop.permute.xlu0 %19146 }
 0x70f   : > { %19292 = vrot.lane.b32.xlu1 %v22763_v25, %s23326_s30  ;;  %v19151_v55 = vpop.permute.xlu0 %19150  ;;  %s417_s30 = scalar_lea.vmem [#allocation8], %s19541_s12 }
 0x710   : > { %s19420_s29 = sshll.u32 %s417_s30, 4  ;;  %s23028_s29 = int_to_ptr.vmem [resolvable:$true] %s19420_s29 }
 0x711   : > { %s19823_s24 = scalar_lea.vmem %s23028_s29, 512 }
 0x712   : > { %p19824_p10 = scmp.ne.s32.totalorder %s23028_s29, %s19823_s24 }
 0x713   : > { %v19173_v37 = vpop.permute.xlu0 %19172 }
 0x714   : > { %p19825_p0 = pnand %p19824_p10, %p23389_p12 }
 0x716   : > { %p19826_p7 = pneg %p19825_p0 }
 0x717   : > { %v19177_v36 = vpop.permute.xlu0 %19176 }
 0x71b   : > { %v22840_v0 = vpop.permute.xlu0 %19208 }
 0x71f   : > { %v22844_v1 = vpop.permute.xlu0 %19212 }
 0x723   : > { %v22848_v27 = vpop.permute.xlu0 %19234 }
 0x727   : > { %v22852_v39 = vpop.permute.xlu0 %19238 }
 0x745   : > { %v19332_v24 = vpop.permute.xlu1 %19331 }
 0x746   : > { %v19334_v56 = vadd.f32 %v19332_v24, %v18660_v32  ;;  %v22873_v24 = vpop.permute.xlu0 %19260 }
 0x748   : > { %v19335_v50 = vsub.f32 0.0, %v19334_v56 }
 0x749   : > { %v19101_v20 = vpop.permute.xlu1 %19100 }
 0x74a   : > { %v19336_v61 = vmul.f32 1.442695, %v19335_v50  ;;  %v19105_v12 = vsel %vm444_vm1, %v19101_v20, %v19095_v5 }
 0x74c   : > { %19761 = vpow2.f32 %v19336_v61  ;;  %v19106_v61 = vmul.f32 %v22494_v30, %v19105_v12  ;;  %v19265_v12 = vpop.permute.xlu0 %19264 }
 0x74d   : > { %v19123_v60 = vpop.permute.xlu1 %19122 }
 0x74e   : > { %v19130_v22 = vsel %vm2346_vm2, %v19121_v6, %v19123_v60  ;;  %v19129_v56 = vsel %vm2346_vm2, %v19123_v60, %v19125_v52 }
 0x751   : > { %v19127_v7 = vpop.permute.xlu1 %19126 }
 0x752   : > { %v19131_v23 = vsel %vm2346_vm2, %v19127_v7, %v19121_v6  ;;  %v19128_v50 = vsel %vm2346_vm2, %v19125_v52, %v19127_v7  ;;  %v23372_v7 = vrot.slane %v22515_v48, 1 }
 0x753   : > { %v19132_v40 = vmul.f32 %v19131_v23, %v18784_v44  ;;  %v19102_v44 = vsel %vm444_vm1, %v19099_v17, %v19101_v20  ;;  %v19134_v20 = vmul.f32 %v19129_v56, %v18786_v4 }
 0x754   : > { %v19135_v52 = vmul.f32 %v19128_v50, %v23372_v7  ;;  %v19109_v23 = vmul.f32 %v22515_v48, %v19102_v44 }
 0x755   : > { %v19149_v2 = vpop.permute.xlu1 %19148 }
 0x756   : > { %v19156_v5 = vsel %vm3318_vm3, %v19147_v54, %v19149_v2  ;;  %v19155_v60 = vsel %vm3318_vm3, %v19149_v2, %v19151_v55 }
 0x757   : > { %v19159_v2 = vmul.f32 %v19156_v5, %v18829_v47 }
 0x759   : > { %v19762_v63 = vpop.eup %19761  ;;  %v19153_v25 = vpop.permute.xlu1 %19152 }
 0x75a   : > { %v19338_v9 = vadd.f32 1.0, %v19762_v63  ;;  %v19157_v19 = vsel %vm3318_vm3, %v19153_v25, %v19147_v54  ;;  %v23371_v63 = vrot.slane %v22486_v35, 1  ;;  %v19154_v6 = vsel %vm3318_vm3, %v19151_v55, %v19153_v25 }
 0x75b   : > { %v19158_v17 = vmul.f32 %v19157_v19, %v18828_v21  ;;  %v19136_v54 = vadd.f32 %v19132_v40, %v19106_v61  ;;  %v19108_v55 = vmul.f32 %v22508_v14, %v19103_v15 }
 0x75c   : > { %19763 = vrcp.f32 %v19338_v9  ;;  %v19133_v9 = vmul.f32 %v19130_v22, %v23371_v63  ;;  %v19287_v63 = vpop.permute.xlu0 %19286 }
 0x75d   : > { %v19175_v34 = vpop.permute.xlu1 %19174  ;;  %v19138_v40 = vadd.f32 %v19134_v20, %v19108_v55 }
 0x75e   : > { %v19181_v25 = vsel %vm4290_vm4, %v19175_v34, %v19177_v36 }
 0x75f   : > { %v19186_v19 = vmul.f32 %v19181_v25, %v18874_v58 }
 0x761   : > { %v19179_v38 = vpop.permute.xlu1 %19178 }
 0x762   : > { %v19183_v43 = vsel %vm4290_vm4, %v19179_v38, %v19173_v37  ;;  %v19180_v21 = vsel %vm4290_vm4, %v19177_v36, %v19179_v38  ;;  %v19193_v36 = vstv %s22860_s13  ;;  %s19827_s13 = sshll.u32 %s19937_s25, 4  ;;  %s19828_s13 = int_to_ptr.vmem [resolvable:$false] %s19827_s13 }
 0x763   : > { %v19184_v4 = vmul.f32 %v19183_v43, %v18872_v33  ;;  %v19139_v33 = vadd.f32 %v19135_v52, %v19109_v23  ;;  %v19187_v15 = vmul.f32 %v19180_v21, %v18875_v26  ;;  %v19195_v26 = vmul.f32 %v19193_v36, %v22703_v41  ;;  %s19829_s12 = scalar_lea.vmem %s19828_s13, 1024  ;;  %p19830_p8 = scmp.lt.s32.totalorder %s23028_s29, %s19828_s13 }
 0x764   : > { %v19197_v20 = vmul.f32 %v19193_v36, %v22711_v16  ;;  %v23376_v23 = vrot.slane %v22515_v48, 4  ;;  %p19831_p11 = scmp.lt.s32.totalorder %s19829_s12, %s19823_s24 }
 0x765   : > { %v19211_v45 = vpop.permute.xlu1 %19210 }
 0x766   : > { %v19217_v61 = vsel %vm5262_vm5, %v19211_v45, %v22844_v1  ;;  %p19832_p13 = por %p19831_p11, %p19830_p8 }
 0x768   : > { %p19833_p1 = pnand %p19832_p13, %p19826_p7 }
 0x769   : > { %v19764_v57 = vpop.eup %19763  ;;  %v22842_v59 = vpop.permute.xlu1 %19214 }
 0x76a   : > { %19365 = vperm.xlu1 %19759, %v19764_v57   ;;  %19343 = vperm.xlu0 %19758, %v19764_v57   ;;  %v19182_v57 = vsel %vm4290_vm4, %v19173_v37, %v19175_v34  ;;  %v19161_v37 = vmul.f32 %v19154_v6, %v18831_v3  ;;  %v19162_v34 = vadd.f32 %v19158_v17, %v19136_v54  ;;  %v23373_v6 = vrot.slane %v22486_v35, 4 }
 0x76b   : > { %v19185_v38 = vmul.f32 %v19182_v57, %v18873_v11  ;;  %v19194_v11 = vmul.f32 %v19193_v36, %v22729_v31  ;;  %v19196_v31 = vmul.f32 %v19193_v36, %v22709_v51  ;;  %v19219_v16 = vsel %vm5262_vm5, %v22842_v59, %v22840_v0 }
 0x76c   : > { %v19188_v56 = vadd.f32 %v19184_v4, %v19162_v34  ;;  %v19165_v3 = vadd.f32 %v19161_v37, %v19139_v33  ;;  %v19221_v17 = vmul.f32 %v19217_v61, %v23373_v6  ;;  %v23377_v37 = vrot.slane %v22486_v35, 5 }
 0x76d   : > { %v22846_v29 = vpop.permute.xlu1 %19236  ;;  %v23379_v36 = vrot.slane %v22494_v30, 6 }
 0x76e   : > { %19760 = vset.pattern.permute.xlu0 %v19936_v8  ;;  %v19107_v8 = vmul.f32 %v22486_v35, %v19104_v10  ;;  %v19160_v10 = vmul.f32 %v19155_v60, %v18830_v28  ;;  %v19191_v58 = vadd.f32 %v19187_v15, %v19165_v3  ;;  %v19244_v41 = vsel %vm6234_vm6, %v22848_v27, %v22846_v29 }
 0x76f   : > { %v19243_v51 = vsel %vm6234_vm6, %v22846_v29, %v22852_v39  ;;  %v23380_v15 = vrot.slane %v22515_v48, 5 }
 0x770   : > { %v19137_v22 = vadd.f32 %v19133_v9, %v19107_v8  ;;  %v19164_v50 = vadd.f32 %v19160_v10, %v19138_v40  ;;  %v19218_v8 = vsel %vm5262_vm5, %v22840_v0, %v19211_v45  ;;  %v19198_v9 = vadd.f32 %v19194_v11, %v19188_v56 }
 0x771   : > { %v22850_v13 = vpop.permute.xlu1 %19240  ;;  %v19220_v60 = vmul.f32 %v19218_v8, %v18936_v42  ;;  %v19216_v45 = vsel %vm5262_vm5, %v22844_v1, %v22842_v59  ;;  %v19201_v42 = vadd.f32 %v19197_v20, %v19191_v58  ;;  %v23374_v1 = vrot.slane %v22508_v14, 4 }
 0x772   : > { %v19163_v28 = vadd.f32 %v19159_v2, %v19137_v22  ;;  %v19190_v5 = vadd.f32 %v19186_v19, %v19164_v50  ;;  %v19242_v2 = vsel %vm6234_vm6, %v22852_v39, %v22850_v13  ;;  %v23375_v59 = vrot.slane %v22494_v30, 5  ;;  %v19291_v39 = vpop.permute.xlu0 %19290 }
 0x773   : > { %v19224_v54 = vadd.f32 %v19220_v60, %v19198_v9  ;;  %v19222_v57 = vmul.f32 %v19216_v45, %v23374_v1  ;;  %v19245_v29 = vsel %vm6234_vm6, %v22850_v13, %v22848_v27  ;;  %v19223_v10 = vmul.f32 %v19219_v16, %v23376_v23 }
 0x774   : > { %v19189_v44 = vadd.f32 %v19185_v38, %v19163_v28  ;;  %v19200_v52 = vadd.f32 %v19196_v31, %v19190_v5  ;;  %v19246_v21 = vmul.f32 %v19244_v41, %v23375_v59  ;;  %v19247_v22 = vmul.f32 %v19243_v51, %v23377_v37 }
 0x775   : > { %v22868_v32 = vpop.permute.xlu1 %19262  ;;  %v23378_v27 = vrot.slane %v22508_v14, 5  ;;  %v23381_v28 = vrot.slane %v22486_v35, 6  ;;  %v23382_v8 = vrot.slane %v22508_v14, 6  ;;  %v23383_v11 = vrot.slane %v22494_v30, 7 }
 0x776   : > { %v19199_v7 = vadd.f32 %v19195_v26, %v19189_v44  ;;  %v19270_v25 = vsel %vm7206_vm7, %v22873_v24, %v22868_v32  ;;  %v19269_v4 = vsel %vm7206_vm7, %v22868_v32, %v19265_v12  ;;  %v19226_v19 = vadd.f32 %v19222_v57, %v19200_v52 }
 0x777   : > { %v19248_v13 = vmul.f32 %v19242_v2, %v23378_v27  ;;  %v19272_v32 = vmul.f32 %v19270_v25, %v23379_v36  ;;  %v19273_v56 = vmul.f32 %v19269_v4, %v23381_v28  ;;  %v19250_v3 = vadd.f32 %v19246_v21, %v19224_v54 }
 0x778   : > { %v19225_v0 = vadd.f32 %v19221_v17, %v19199_v7  ;;  %v19227_v61 = vadd.f32 %v19223_v10, %v19201_v42  ;;  %v23384_v58 = vrot.slane %v22515_v48, 6  ;;  %v23385_v26 = vrot.slane %v22486_v35, 7 }
 0x779   : > { %v19267_v47 = vpop.permute.xlu1 %19266  ;;  %v19252_v60 = vadd.f32 %v19248_v13, %v19226_v19  ;;  %v19276_v6 = vadd.f32 %v19272_v32, %v19250_v3  ;;  %v23386_v17 = vrot.slane %v22508_v14, 7  ;;  %v23387_v30 = vrot.slane %v22515_v48, 7 }
 0x77a   : > { %v19268_v34 = vsel %vm7206_vm7, %v19265_v12, %v19267_v47  ;;  %v19271_v40 = vsel %vm7206_vm7, %v19267_v47, %v22873_v24  ;;  %v19249_v12 = vmul.f32 %v19245_v29, %v23380_v15  ;;  %v19251_v5 = vadd.f32 %v19247_v22, %v19225_v0 }
 0x77b   : > { %v19274_v44 = vmul.f32 %v19268_v34, %v23382_v8  ;;  %v23388_v34 = vld [vmem:[#allocation15_spill] sm:$0xff] }
 0x77c   : > { %v19253_v31 = vadd.f32 %v19249_v12, %v19227_v61  ;;  %v19277_v45 = vadd.f32 %v19273_v56, %v19251_v5 }
 0x77d   : > { %v19289_v43 = vpop.permute.xlu1 %19288  ;;  %v19278_v46 = vadd.f32 %v19274_v44, %v19252_v60 }
 0x77e   : > { %v19296_v38 = vsel %vm8178_vm8, %v19287_v63, %v19289_v43  ;;  %v19295_v33 = vsel %vm8178_vm8, %v19289_v43, %v19291_v39  ;;  %v19275_v43 = vmul.f32 %v19271_v40, %v23384_v58 }
 0x77f   : > { %v19298_v24 = vmul.f32 %v19296_v38, %v23383_v11  ;;  %v19299_v9 = vmul.f32 %v19295_v33, %v23385_v26  ;;  %v19792_v11 = vld [vmem:[%s20089_s16 + $0x8] sm:$0xff] }
 0x780   : > { %v19279_v41 = vadd.f32 %v19275_v43, %v19253_v31 }
 0x781   : > { %v19293_v55 = vpop.permute.xlu1 %19292  ;;  %v19303_v52 = vadd.f32 %v19299_v9, %v19277_v45 }
 0x782   : > { %v19294_v50 = vsel %vm8178_vm8, %v19291_v39, %v19293_v55  ;;  %v19297_v47 = vsel %vm8178_vm8, %v19293_v55, %v19287_v63  ;;  %v19302_v63 = vadd.f32 %v19298_v24, %v19276_v6 }
 0x783   : > { %v19300_v20 = vmul.f32 %v19294_v50, %v23386_v17  ;;  %v19301_v7 = vmul.f32 %v19297_v47, %v23387_v30  ;;  %v19307_v54 = vsub.f32 0.0, %v19303_v52 }
 0x784   : > { %v19306_v51 = vsub.f32 0.0, %v19302_v63 }
 0x785   : > { %v19304_v42 = vadd.f32 %v19300_v20, %v19278_v46  ;;  %v19305_v16 = vadd.f32 %v19301_v7, %v19279_v41  ;;  %v19312_v2 = vmul.f32 1.442695, %v19307_v54 }
 0x786   : > { %v19310_v57 = vmul.f32 1.442695, %v19306_v51 }
 0x787   : > { %v19308_v35 = vsub.f32 0.0, %v19304_v42  ;;  %v19309_v1 = vsub.f32 0.0, %v19305_v16 }
 0x788   : > { %19765 = vpow2.f32 %v19310_v57 }
 0x789   : > { %v19314_v25 = vmul.f32 1.442695, %v19308_v35  ;;  %v19316_v14 = vmul.f32 1.442695, %v19309_v1  ;;  %19767 = vpow2.f32 %v19312_v2 }
 0x78b   : > { %19769 = vpow2.f32 %v19314_v25 }
 0x78c   : > { %19771 = vpow2.f32 %v19316_v14 }
 0x795   : > { %v19766_v48 = vpop.eup %19765 }
 0x796   : > { %v19768_v0 = vpop.eup %19767  ;;  %v19318_v29 = vadd.f32 1.0, %v19766_v48 }
 0x797   : > { %v19319_v4 = vadd.f32 1.0, %v19768_v0 }
 0x798   : > { %v19770_v59 = vpop.eup %19769  ;;  %19773 = vrcp.f32 %v19318_v29 }
 0x799   : > { %v19772_v21 = vpop.eup %19771  ;;  %v19320_v55 = vadd.f32 1.0, %v19770_v59  ;;  %19775 = vrcp.f32 %v19319_v4 }
 0x79a   : > { %v19321_v39 = vadd.f32 1.0, %v19772_v21 }
 0x79b   : > { %19777 = vrcp.f32 %v19320_v55 }
 0x79c   : > { %19779 = vrcp.f32 %v19321_v39 }
 0x7a5   : > { %v19774_v23 = vpop.eup %19773 }
 0x7a6   : > { %v19776_v10 = vpop.eup %19775  ;;  %v19349_v13 = vrot.slane %v19774_v23, %v23388_v34 }
 0x7a7   : > { %v19353_v36 = vrot.slane %v19776_v10, %v23388_v34 }
 0x7a8   : > { %v19778_v37 = vpop.eup %19777 }
 0x7a9   : > { %v19780_v22 = vpop.eup %19779  ;;  %v19371_v38 = vrot.slane %v19778_v37, %v23388_v34 }
 0x7aa   : > { %v19375_v27 = vrot.slane %v19780_v22, %v23388_v34 }
 0x7e5   : > { %v19366_v32 = vpop.permute.xlu1 %19365  ;;  %v19344_v40 = vpop.permute.xlu0 %19343 }
 0x7e6   : > { %v19376_v33 = vadd.f32 %v19371_v38, %v19366_v32  ;;  %v19377_v19 = vadd.f32 %v19375_v27, %v19366_v32  ;;  %v19354_v15 = vadd.f32 %v19349_v13, %v19344_v40  ;;  %v19355_v12 = vadd.f32 %v19353_v36, %v19344_v40 }
 0x7e8   : > { %v19378_v28 = vmul.f32 %v19376_v33, %v22148_v53  ;;  %v19379_v56 = vmul.f32 %v19377_v19, %v22150_v62  ;;  %v19356_v50 = vmul.f32 %v19354_v15, %v22129_v49  ;;  %v19357_v3 = vmul.f32 %v19355_v12, %v22134_v18  ;;  %v19789_v53 = vld [vmem:[%s20089_s16 + $0x10] sm:$0xff]  ;;  %v19790_v62 = vld [vmem:[%s20089_s16 + $0x18] sm:$0xff]  ;;  %v19791_v49 = vld [vmem:[%s20089_s16] sm:$0xff] }
 0x7ea   : > { %19380 = vst [vmem:[%s417_s30 + $0x10] sm:$0xff] %v19378_v28  ;;  %19381 = vst [vmem:[%s417_s30 + $0x18] sm:$0xff] %v19379_v56  ;;  %v19382_v8 = vadd.f32 %v19789_v53, %v19378_v28  ;;  %v19383_v44 = vadd.f32 %v19790_v62, %v19379_v56  ;;  %v19360_v18 = vadd.f32 %v19791_v49, %v19356_v50 }
 0x7eb   : > { %19358 = vst [vmem:[%s417_s30] sm:$0xff] %v19356_v50  ;;  %19359 = vst [vmem:[%s417_s30 + $0x8] sm:$0xff] %v19357_v3  ;;  %v19361_v24 = vadd.f32 %v19792_v11, %v19357_v3 }
 0x7ec   : > { %19836 = shalt.err (!%p19833_p1)
}
 0x7ed   : > { %s19837_s16 = scalar_lea.hbm %s23026_s3, 512  ;;  %s19841_s21 = scalar_lea.hbm %s23115_s11, 1024 }
 0x7ee   : > { %p19838_p2 = scmp.ne.s32.totalorder %s23026_s3, %s19837_s16  ;;  %p19842_p9 = scmp.lt.s32.totalorder %s23026_s3, %s23115_s11 }
 0x7ef   : > { %p19843_p5 = scmp.lt.s32.totalorder %s19841_s21, %s19837_s16 }
 0x7f0   : > { %p19839_p3 = pnand %p19838_p2, %p23389_p12 }
 0x7f1   : > { %p19844_p6 = por %p19843_p5, %p19842_p9 }
 0x7f2   : > { %p19840_p4 = pneg %p19839_p3 }
 0x7f4   : > { %p19845_p10 = pnand %p19844_p6, %p19840_p4 }
 0x7f6   : > { %19848 = shalt.err (!%p19845_p10)
}
 0x7f7   : > { %19690 = dma.vmem_to_hbm [thread:$0]  (%p23389_p12), %s23028_s29, 512, %s23026_s3, %s19392_s9   ;;  %19384 = vst [vmem:[%s23016_s2 + $0x10] sm:$0xff] %v19382_v8  ;;  %19385 = vst [vmem:[%s23016_s2 + $0x18] sm:$0xff] %v19383_v44 }
 0x7f8   : > { %19362 = vst [vmem:[%s23016_s2] sm:$0xff] %v19360_v18  ;;  %19363 = vst [vmem:[%s23016_s2 + $0x8] sm:$0xff] %v19361_v24  ;;  %s19387_s22 = scalar_lea.sflag [#allocation3], %s23008_s15  ;;  %s19849_s24 = scalar_lea.vmem %s23039_s5, 512 }
 0x7f9   : > { %p19850_p0 = scmp.ne.s32.totalorder %s23039_s5, %s19849_s24  ;;  %s19938_s25 = smov [#allocation7]  }
 0x7fa   : > { %s19853_s13 = sshll.u32 %s19938_s25, 4  ;;  %s19854_s13 = int_to_ptr.vmem [resolvable:$false] %s19853_s13 }
 0x7fb   : > { %p19851_p7 = pnand %p19850_p0, %p23389_p12  ;;  %s19855_s12 = scalar_lea.vmem %s19854_s13, 1024 }
 0x7fc   : > { %p19856_p11 = scmp.lt.s32.totalorder %s23039_s5, %s19854_s13  ;;  %p19857_p13 = scmp.lt.s32.totalorder %s19855_s12, %s19849_s24 }
 0x7fd   : > { %p19852_p8 = pneg %p19851_p7 }
 0x7fe   : > { %p19858_p1 = por %p19857_p13, %p19856_p11 }
 0x800   : > { %p19859_p2 = pnand %p19858_p1, %p19852_p8 }
 0x802   : > { %19862 = shalt.err (!%p19859_p2)
}
 0x803   : > { %s19863_s29 = scalar_lea.hbm %s23037_s8, 512  ;;  %s19867_s3 = scalar_lea.hbm %s23114_s10, 1024 }
 0x804   : > { %p19864_p3 = scmp.ne.s32.totalorder %s23037_s8, %s19863_s29  ;;  %p19868_p5 = scmp.lt.s32.totalorder %s23037_s8, %s23114_s10 }
 0x805   : > { %p19869_p6 = scmp.lt.s32.totalorder %s19867_s3, %s19863_s29 }
 0x806   : > { %p19865_p4 = pnand %p19864_p3, %p23389_p12 }
 0x807   : > { %p19870_p10 = por %p19869_p6, %p19868_p5 }
 0x808   : > { %p19866_p9 = pneg %p19865_p4 }
 0x80a   : > { %p19871_p0 = pnand %p19870_p10, %p19866_p9 }
 0x80c   : > { %19874 = shalt.err (!%p19871_p0)
}
 0x80d   : > { %19689 = dma.vmem_to_hbm [thread:$0]  (%p23389_p12), %s23039_s5, 512, %s23037_s8, %s19387_s22  }
 0x80e PF: > { %p19711_p7 = scmp.ge.s32.totalorder %s19921_s20, 2  ;;  %s19432_s14 = sand.u32 1, %s19909_s17  }
 0x80f   : > { %p23390_p8 = scmp.ne.s32.totalorder %s23195_s28, 0  ;;  %s19433_s30 = scalar_lea.sflag [#allocation3], %s19432_s14 }
 0x811   : > { %p19701_p11 = pnand %p19711_p7, %p23390_p8 }
 0x813   : > { %p19702_p13 = pneg %p19701_p11 }
 0x815   : > { %19900 = dma.done.wait (%p19702_p13), %s19433_s30, 512  }
 0x816   : > { %19902 = vsyncadd (%p19702_p13), %s19433_s30, 4294966784  ;;  %s19442_s21 = scalar_lea.sflag [#allocation9], %s19432_s14 }
 0x817   : > { %19904 = dma.done.wait (%p19702_p13), %s19442_s21, 512  }
 0x818   : > { %19906 = vsyncadd (%p19702_p13), %s19442_s21, 4294966784  ;;  %p27_p12 = scmp.ge.s32.totalorder %s20024_s23, 4   ;;  %s23391_s17 = smov %s19913_s18 }
 0x819   : > { %s23392_s18 = smov %s19917_s19  ;;  %s23393_s19 = smov %s20035_s26 }
 0x81a   : > { %s23394_s20 = smov %s20024_s23  ;;  %29 = sbr.rel (!%p27_p12) target bundleno = 15 (0xf), region = 137 }
 0x81f   :  { %19447 = vsyncpa [#allocation3], 1 }
 0x820   :  { %19449 = vsyncpa [#allocation3 + $0x1], 1 }
 0x821   :  { %19450 = vsyncpa [#allocation9], 1 }
 0x822   :  { %19452 = vsyncpa [#allocation9 + $0x1], 1 }
 0x823   :  { %19453 = vsyncpa [#allocation4], 1 }
 0x824   :  { %19455 = vsyncpa [#allocation4 + $0x1], 1 }
 0x825   :  { %19456 = vsyncpa [#allocation6], 1 }

</bundles_post_ra>
